<compile_context>
chip_gen: v5e
topology: v5e:2x2
jax: 0.10.0
libtpu: 0.0.40
codegen_flags: <defaults>
</compile_context>

<pallas_src>
import functools

import jax
import jax.numpy as jnp
from jax.experimental import pallas as pl
from jax.experimental.pallas import tpu as pltpu

# ----------------------------------------------------------------------------
# Model dimensions (from the PyTorch module __init__).
# ----------------------------------------------------------------------------
CIN = 5          # Conv1d in_channels
CONV_OUT = 8     # Conv1d out_channels
K = 3            # Conv1d kernel_size (padding=1)
HIDDEN = 16      # LSTM / GRU hidden size
EMBED = 16       # attention embed_dim
NHEADS = 2       # attention heads
FC1 = 32         # fc1 out features
NOUT = 2         # fc2 out features

# Packed bf16 weight slab layout: name -> (row_start, rows, cols).
# Row starts are 16-aligned (bf16 sublane tile) so every slice stays tile-local.
W_LAYOUT = {
    "conv":      (0,   K * CIN,      CONV_OUT),   # im2col (K*Cin, Cout)
    "lstm_wih":  (16,  CONV_OUT,     4 * HIDDEN),
    "lstm_whh":  (32,  HIDDEN,       4 * HIDDEN),
    "gru_wih":   (48,  HIDDEN,       3 * HIDDEN),
    "gru_whh":   (64,  HIDDEN,       3 * HIDDEN),
    "attn_win":  (80,  EMBED,        3 * EMBED),
    "attn_wout": (96,  EMBED,        EMBED),
    "fc1":       (112, EMBED,        FC1),
    "fc2":       (128, FC1,          NOUT),
}
W_ROWS, W_COLS = 160, 64

# Packed f32 bias slab layout: name -> (row, cols).
B_LAYOUT = {
    "conv":      (0, CONV_OUT),
    "lstm":      (1, 4 * HIDDEN),     # b_ih + b_hh summed
    "gru_bih":   (2, 3 * HIDDEN),
    "gru_bhh":   (3, 3 * HIDDEN),
    "attn_bin":  (4, 3 * EMBED),
    "attn_bout": (5, EMBED),
    "fc1":       (6, FC1),
    "fc2":       (7, NOUT),
}
B_ROWS, B_COLS = 8, 64


# ----------------------------------------------------------------------------
# Fake quantization (stand-in for the IntQuantized* weight quantization).
# TODO(synk): exact IntQuantized* quant scheme (per-channel? activation quant?)
# is not given in the source snippet; we model symmetric per-tensor weight
# fake-quant at num_bits and keep activations in fp32/bf16.
# ----------------------------------------------------------------------------
def fake_quant(w, num_bits=8):
    qmax = 2.0 ** (num_bits - 1) - 1.0
    scale = jnp.maximum(jnp.max(jnp.abs(w)), 1e-8) / qmax
    return jnp.clip(jnp.round(w / scale), -qmax - 1.0, qmax) * scale


# ----------------------------------------------------------------------------
# Single fused kernel: Bb batch rows per grid step, everything in VMEM/vregs.
# ----------------------------------------------------------------------------
def fused_kernel(x_ref, w_ref, b_ref, o_ref,
                 xp_s, gi_s, lstm_seq_s, gru_seq_s, *, num_heads):
    Bb, T, Cin = x_ref.shape
    H = HIDDEN
    E = EMBED
    bf16 = jnp.bfloat16
    f32 = jnp.float32

    def W(name):
        r, n, c = W_LAYOUT[name]
        return w_ref[r:r + n, 0:c]

    def Bv(name):
        r, c = B_LAYOUT[name]
        return b_ref[r:r + 1, 0:c]

    def mm(a, wname):
        return jnp.dot(a.astype(bf16), W(wname), preferred_element_type=f32)

    # ---- Conv1d(5, 8, k=3, padding=1): zero-pad via VMEM scratch, K tap
    # matmuls accumulated (no im2col concat) ---------------------------------
    xp_s[:, 0, :] = jnp.zeros((Bb, Cin), f32)
    xp_s[:, T + 1, :] = jnp.zeros((Bb, Cin), f32)
    xp_s[:, 1:T + 1, :] = x_ref[...]
    conv_r0 = W_LAYOUT["conv"][0]
    conv_out = jnp.zeros((Bb * T, CONV_OUT), f32)
    for k in range(K):                                   # static, K = 3
        tap = xp_s[:, k:k + T, :].reshape(Bb * T, Cin)
        wk = w_ref[conv_r0 + k * Cin: conv_r0 + (k + 1) * Cin, 0:CONV_OUT]
        conv_out = conv_out + jnp.dot(tap.astype(bf16), wk,
                                      preferred_element_type=f32)
    conv_out = conv_out + Bv("conv")                     # (Bb*T, 8)

    # ---- LSTM(8, 16), gate order i,f,g,o -----------------------------------
    # Input projection hoisted out of the recurrence: one (Bb*T, 8)x(8, 64).
    lstm_gi = mm(conv_out, "lstm_wih") + Bv("lstm")      # (Bb*T, 4H)
    gi_s[...] = lstm_gi.reshape(Bb, T, 4 * H)
    h = jnp.zeros((Bb, H), f32)
    c = jnp.zeros((Bb, H), f32)
    for t in range(T):                                   # static -> unrolled
        gates = gi_s[:, t, :] + mm(h, "lstm_whh")        # (Bb, 4H)
        i_g = jax.nn.sigmoid(gates[:, 0:H])
        f_g = jax.nn.sigmoid(gates[:, H:2 * H])
        g_g = jnp.tanh(gates[:, 2 * H:3 * H])
        o_g = jax.nn.sigmoid(gates[:, 3 * H:4 * H])
        c = f_g * c + i_g * g_g
        h = o_g * jnp.tanh(c)
        lstm_seq_s[:, t, :] = h

    # ---- GRU(16, 16), gate order r,z,n; n = tanh(gi_n + r * gh_n) ----------
    gru_gi = mm(lstm_seq_s[...].reshape(Bb * T, H), "gru_wih") + Bv("gru_bih")
    gi_s[:, :, 0:3 * H] = gru_gi.reshape(Bb, T, 3 * H)
    h = jnp.zeros((Bb, H), f32)
    for t in range(T):                                   # static -> unrolled
        gh = mm(h, "gru_whh") + Bv("gru_bhh")            # (Bb, 3H)
        gi = gi_s[:, t, 0:3 * H]
        r_g = jax.nn.sigmoid(gi[:, 0:H] + gh[:, 0:H])
        z_g = jax.nn.sigmoid(gi[:, H:2 * H] + gh[:, H:2 * H])
        n_g = jnp.tanh(gi[:, 2 * H:3 * H] + r_g * gh[:, 2 * H:3 * H])
        h = (1.0 - z_g) * n_g + z_g * h
        gru_seq_s[:, t, :] = h

    # ---- MultiheadAttention(16, 2), batch-first self-attention -------------
    # TODO(synk): assumes batch_first semantics for IntQuantizedAttention
    # (attention over the T axis per batch element).
    # Only attn_out[:, -1, :] is consumed downstream, so only the last-position
    # query is computed; per-head scores/context use VPU mul + reduce (MXU is
    # useless at q-len 1 and this avoids batched 3-D dot_general).
    qkv = mm(gru_seq_s[...].reshape(Bb * T, H), "attn_win") + Bv("attn_bin")
    qkv3 = qkv.reshape(Bb, T, 3 * E)
    dh = E // num_heads
    scale = 1.0 / (dh ** 0.5)
    q_last = qkv3[:, T - 1, 0:E] * scale                 # (Bb, E)
    k_all = qkv3[:, :, E:2 * E]                          # (Bb, T, E)
    v_all = qkv3[:, :, 2 * E:3 * E]                      # (Bb, T, E)
    ctx_heads = []
    for hh in range(num_heads):                          # static head loop (2)
        lo, hi = hh * dh, (hh + 1) * dh
        s = jnp.sum(q_last[:, None, lo:hi] * k_all[:, :, lo:hi], axis=-1)  # (Bb, T)
        p = jax.nn.softmax(s, axis=-1)                                     # (Bb, T)
        ctx_heads.append(jnp.sum(p[:, :, None] * v_all[:, :, lo:hi], axis=1))
    ctx = jnp.concatenate(ctx_heads, axis=1)             # (Bb, E)
    attn_out = mm(ctx, "attn_wout") + Bv("attn_bout")    # (Bb, E)

    # ---- fc1 -> ReLU -> fc2 -------------------------------------------------
    h1 = jnp.maximum(mm(attn_out, "fc1") + Bv("fc1"), 0.0)   # IntQuantizedReLU
    out = mm(h1, "fc2") + Bv("fc2")                      # (Bb, NOUT)
    o_ref[0] = out


# ----------------------------------------------------------------------------
# Wrapper: one pallas_call; grid of G steps (G=2 -> one per TensorCore on v7x),
# each step processes Bb = B // G batch rows folded into the matmul M dim.
# ----------------------------------------------------------------------------
def forward(x, params, num_heads=NHEADS, grid_blocks=None):
    B, T, Cin = x.shape
    assert Cin == CIN
    if grid_blocks is None:
        grid_blocks = 2 if (B % 2 == 0 and B >= 2) else 1
    G = grid_blocks
    assert B % G == 0
    Bb = B // G

    out = pl.pallas_call(
        functools.partial(fused_kernel, num_heads=num_heads),
        out_shape=jax.ShapeDtypeStruct((G, Bb, NOUT), jnp.float32),
        grid=(G,),
        in_specs=[
            pl.BlockSpec((Bb, T, Cin), lambda g: (g, 0, 0)),
            pl.BlockSpec((W_ROWS, W_COLS), lambda g: (0, 0)),   # bf16 weight slab
            pl.BlockSpec((B_ROWS, B_COLS), lambda g: (0, 0)),   # f32 bias slab
        ],
        out_specs=pl.BlockSpec((1, Bb, NOUT), lambda g: (g, 0, 0)),
        scratch_shapes=[
            pltpu.VMEM((Bb, T + 2, CIN), jnp.float32),          # zero-padded conv input
            pltpu.VMEM((Bb, T, 4 * HIDDEN), jnp.float32),       # gate-input rows (LSTM/GRU)
            pltpu.VMEM((Bb, T, HIDDEN), jnp.float32),           # LSTM output sequence
            pltpu.VMEM((Bb, T, HIDDEN), jnp.float32),           # GRU output sequence
        ],
        compiler_params=pltpu.CompilerParams(
            dimension_semantics=("parallel",)),                 # engages 2nd TC on v7x
    )(x, params["w_slab"], params["b_slab"])
    return out.reshape(B, NOUT)


# ----------------------------------------------------------------------------
# Parameters (deterministic, shapes from the PyTorch module __init__), packed
# into one bf16 weight slab + one f32 bias slab.
# ----------------------------------------------------------------------------
def init_params(key, num_bits=8):
    ks = jax.random.split(key, 20)

    def w(k, shape, scale=0.1):
        return fake_quant(scale * jax.random.normal(k, shape, jnp.float32), num_bits)

    def b(k, shape, scale=0.05):
        return scale * jax.random.normal(k, shape, jnp.float32)

    # PyTorch-native weight shapes.
    conv_w = w(ks[0], (CONV_OUT, CIN, K))            # (Cout, Cin, K)
    conv_b = b(ks[1], (CONV_OUT,))
    lstm_wih = w(ks[2], (4 * HIDDEN, CONV_OUT))
    lstm_whh = w(ks[3], (4 * HIDDEN, HIDDEN))
    lstm_b = b(ks[4], (4 * HIDDEN,)) + b(ks[5], (4 * HIDDEN,))
    gru_wih = w(ks[6], (3 * HIDDEN, HIDDEN))
    gru_whh = w(ks[7], (3 * HIDDEN, HIDDEN))
    gru_bih = b(ks[8], (3 * HIDDEN,))
    gru_bhh = b(ks[9], (3 * HIDDEN,))
    attn_win = w(ks[10], (3 * EMBED, EMBED))
    attn_bin = b(ks[11], (3 * EMBED,))
    attn_wout = w(ks[12], (EMBED, EMBED))
    attn_bout = b(ks[13], (EMBED,))
    fc1_w = w(ks[14], (FC1, EMBED))
    fc1_b = b(ks[15], (FC1,))
    fc2_w = w(ks[16], (NOUT, FC1))
    fc2_b = b(ks[17], (NOUT,))

    # (in, out)-major matrices as they are consumed by the kernel's matmuls.
    mats = {
        # (Cout, Cin, K) -> (K, Cin, Cout) -> (K*Cin, Cout) tap-major slab
        "conv":      jnp.transpose(conv_w, (2, 1, 0)).reshape(K * CIN, CONV_OUT),
        "lstm_wih":  lstm_wih.T,
        "lstm_whh":  lstm_whh.T,
        "gru_wih":   gru_wih.T,
        "gru_whh":   gru_whh.T,
        "attn_win":  attn_win.T,
        "attn_wout": attn_wout.T,
        "fc1":       fc1_w.T,
        "fc2":       fc2_w.T,
    }
    w_slab = jnp.zeros((W_ROWS, W_COLS), jnp.float32)
    for name, m in mats.items():
        r, n, c = W_LAYOUT[name]
        assert m.shape == (n, c), (name, m.shape, (n, c))
        w_slab = w_slab.at[r:r + n, 0:c].set(m)

    biases = {
        "conv": conv_b, "lstm": lstm_b, "gru_bih": gru_bih, "gru_bhh": gru_bhh,
        "attn_bin": attn_bin, "attn_bout": attn_bout, "fc1": fc1_b, "fc2": fc2_b,
    }
    b_slab = jnp.zeros((B_ROWS, B_COLS), jnp.float32)
    for name, v in biases.items():
        r, c = B_LAYOUT[name]
        assert v.shape == (c,), (name, v.shape, c)
        b_slab = b_slab.at[r, 0:c].set(v)

    # TODO(synk): on v5e/v6e an int8-MXU path would match the quant semantics
    # more closely; kept bf16 so the same kernel also runs on v7x (no int MXU).
    return {"w_slab": w_slab.astype(jnp.bfloat16), "b_slab": b_slab}


if __name__ == "__main__":
    key = jax.random.PRNGKey(0)
    pkey, xkey = jax.random.split(key)
    params = init_params(pkey, num_bits=8)
    # batch=8, seq=8, features=5 (Conv1d in_channels=5); batch folded into M.
    B, T = 8, 8
    x = jax.random.normal(xkey, (B, T, CIN), jnp.float32)
    out = jax.jit(forward)(x, params)
    out = jax.block_until_ready(out)
    assert out.shape == (B, NOUT) and out.dtype == jnp.float32
    assert bool(jnp.all(jnp.isfinite(out)))
    print("KERNEL_OK")
</pallas_src>

<mosaic_0001>
module attributes {stable_mosaic.version = 11 : i64} {
  func.func @fused_kernel(%arg0: i32, %arg1: memref<4x8x5xf32, #tpu.memory_space<vmem>>, %arg2: memref<160x64xbf16, #tpu.memory_space<vmem>>, %arg3: memref<8x64xf32, #tpu.memory_space<vmem>>, %arg4: memref<1x4x2xf32, #tpu.memory_space<vmem>>, %arg5: memref<4x10x5xf32, #tpu.memory_space<vmem>>, %arg6: memref<4x8x64xf32, #tpu.memory_space<vmem>>, %arg7: memref<4x8x16xf32, #tpu.memory_space<vmem>>, %arg8: memref<4x8x16xf32, #tpu.memory_space<vmem>>) attributes {dimension_semantics = [#tpu.dimension_semantics<parallel>], iteration_bounds = array<i64: 2>, scalar_prefetch = 0 : i64, scratch_operands = 4 : i64, tpu.core_type = #tpu.core_type<tc>, window_params = [{transform_indices = @transform_0, window_bounds = array<i64: 4, 8, 5>}, {pipeline_mode = #tpu.pipeline_mode<synchronous>, transform_indices = @transform_1, window_bounds = array<i64: 160, 64>}, {pipeline_mode = #tpu.pipeline_mode<synchronous>, transform_indices = @transform_2, window_bounds = array<i64: 8, 64>}, {transform_indices = @transform_3, window_bounds = array<i64: 1, 4, 2>}]} {
    %cst = arith.constant 0.000000e+00 : f32
    %0 = vector.broadcast %cst : f32 to vector<4x5xf32>
    %c0 = arith.constant 0 : index
    %c0_0 = arith.constant 0 : index
    %c0_1 = arith.constant 0 : index
    %1 = vector.load %arg5[%c0, %c0_0, %c0_1] : memref<4x10x5xf32, #tpu.memory_space<vmem>>, vector<4x1x5xf32>
    %2 = vector.shape_cast %1 : vector<4x1x5xf32> to vector<4x5xf32>
    %3 = vector.shape_cast %0 : vector<4x5xf32> to vector<4x1x5xf32>
    tpu.vector_store %arg5[%c0, %c0_0, %c0_1], %3 {strides = array<i32>} : memref<4x10x5xf32, #tpu.memory_space<vmem>>, vector<4x1x5xf32>,
    %cst_2 = arith.constant 0.000000e+00 : f32
    %4 = vector.broadcast %cst_2 : f32 to vector<4x5xf32>
    %c0_3 = arith.constant 0 : index
    %c9 = arith.constant 9 : index
    %c0_4 = arith.constant 0 : index
    %5 = vector.load %arg5[%c0_3, %c9, %c0_4] : memref<4x10x5xf32, #tpu.memory_space<vmem>>, vector<4x1x5xf32>
    %6 = vector.shape_cast %5 : vector<4x1x5xf32> to vector<4x5xf32>
    %7 = vector.shape_cast %4 : vector<4x5xf32> to vector<4x1x5xf32>
    tpu.vector_store %arg5[%c0_3, %c9, %c0_4], %7 {strides = array<i32>} : memref<4x10x5xf32, #tpu.memory_space<vmem>>, vector<4x1x5xf32>,
    %c0_5 = arith.constant 0 : index
    %c0_6 = arith.constant 0 : index
    %c0_7 = arith.constant 0 : index
    %8 = vector.load %arg1[%c0_5, %c0_6, %c0_7] : memref<4x8x5xf32, #tpu.memory_space<vmem>>, vector<4x8x5xf32>
    %c0_8 = arith.constant 0 : index
    %c1 = arith.constant 1 : index
    %c0_9 = arith.constant 0 : index
    %9 = vector.load %arg5[%c0_8, %c1, %c0_9] : memref<4x10x5xf32, #tpu.memory_space<vmem>>, vector<4x8x5xf32>
    tpu.vector_store %arg5[%c0_8, %c1, %c0_9], %8 {strides = array<i32>} : memref<4x10x5xf32, #tpu.memory_space<vmem>>, vector<4x8x5xf32>,
    %cst_10 = arith.constant 0.000000e+00 : f32
    %10 = vector.broadcast %cst_10 : f32 to vector<32x8xf32>
    %c0_11 = arith.constant 0 : index
    %c0_12 = arith.constant 0 : index
    %c0_13 = arith.constant 0 : index
    %11 = vector.load %arg5[%c0_11, %c0_12, %c0_13] : memref<4x10x5xf32, #tpu.memory_space<vmem>>, vector<4x8x5xf32>
    %12 = vector.shape_cast %11 : vector<4x8x5xf32> to vector<32x5xf32>
    %c0_14 = arith.constant 0 : index
    %c0_15 = arith.constant 0 : index
    %13 = vector.load %arg2[%c0_14, %c0_15] : memref<160x64xbf16, #tpu.memory_space<vmem>>, vector<5x8xbf16>
    %14 = arith.truncf %12 : vector<32x5xf32> to vector<32x5xbf16>
    %cst_16 = arith.constant dense<0.000000e+00> : vector<32x8xf32>
    %15 = tpu.matmul %14, %13, %cst_16 {dimension_numbers = #tpu.dot_dimension_numbers<[1], [0], [0], [1], [0, 0, 1, 1], [], []>} : vector<32x5xbf16>, vector<5x8xbf16>, vector<32x8xf32> -> vector<32x8xf32>
    %16 = arith.addf %10, %15 : vector<32x8xf32>
    %c0_17 = arith.constant 0 : index
    %c1_18 = arith.constant 1 : index
    %c0_19 = arith.constant 0 : index
    %17 = vector.load %arg5[%c0_17, %c1_18, %c0_19] : memref<4x10x5xf32, #tpu.memory_space<vmem>>, vector<4x8x5xf32>
    %18 = vector.shape_cast %17 : vector<4x8x5xf32> to vector<32x5xf32>
    %c5 = arith.constant 5 : index
    %c0_20 = arith.constant 0 : index
    %19 = vector.load %arg2[%c5, %c0_20] : memref<160x64xbf16, #tpu.memory_space<vmem>>, vector<5x8xbf16>
    %20 = arith.truncf %18 : vector<32x5xf32> to vector<32x5xbf16>
    %cst_21 = arith.constant dense<0.000000e+00> : vector<32x8xf32>
    %21 = tpu.matmul %20, %19, %cst_21 {dimension_numbers = #tpu.dot_dimension_numbers<[1], [0], [0], [1], [0, 0, 1, 1], [], []>} : vector<32x5xbf16>, vector<5x8xbf16>, vector<32x8xf32> -> vector<32x8xf32>
    %22 = arith.addf %16, %21 : vector<32x8xf32>
    %c0_22 = arith.constant 0 : index
    %c2 = arith.constant 2 : index
    %c0_23 = arith.constant 0 : index
    %23 = vector.load %arg5[%c0_22, %c2, %c0_23] : memref<4x10x5xf32, #tpu.memory_space<vmem>>, vector<4x8x5xf32>
    %24 = vector.shape_cast %23 : vector<4x8x5xf32> to vector<32x5xf32>
    %c10 = arith.constant 10 : index
    %c0_24 = arith.constant 0 : index
    %25 = vector.load %arg2[%c10, %c0_24] : memref<160x64xbf16, #tpu.memory_space<vmem>>, vector<5x8xbf16>
    %26 = arith.truncf %24 : vector<32x5xf32> to vector<32x5xbf16>
    %cst_25 = arith.constant dense<0.000000e+00> : vector<32x8xf32>
    %27 = tpu.matmul %26, %25, %cst_25 {dimension_numbers = #tpu.dot_dimension_numbers<[1], [0], [0], [1], [0, 0, 1, 1], [], []>} : vector<32x5xbf16>, vector<5x8xbf16>, vector<32x8xf32> -> vector<32x8xf32>
    %28 = arith.addf %22, %27 : vector<32x8xf32>
    %c0_26 = arith.constant 0 : index
    %c0_27 = arith.constant 0 : index
    %29 = vector.load %arg3[%c0_26, %c0_27] : memref<8x64xf32, #tpu.memory_space<vmem>>, vector<1x8xf32>
    %30 = vector.broadcast %29 : vector<1x8xf32> to vector<32x8xf32>
    %31 = arith.addf %28, %30 : vector<32x8xf32>
    %32 = arith.truncf %31 : vector<32x8xf32> to vector<32x8xbf16>
    %c16 = arith.constant 16 : index
    %c0_28 = arith.constant 0 : index
    %33 = vector.load %arg2[%c16, %c0_28] : memref<160x64xbf16, #tpu.memory_space<vmem>>, vector<8x64xbf16>
    %cst_29 = arith.constant dense<0.000000e+00> : vector<32x64xf32>
    %34 = tpu.matmul %32, %33, %cst_29 {dimension_numbers = #tpu.dot_dimension_numbers<[1], [0], [0], [1], [0, 0, 1, 1], [], []>} : vector<32x8xbf16>, vector<8x64xbf16>, vector<32x64xf32> -> vector<32x64xf32>
    %c1_30 = arith.constant 1 : index
    %c0_31 = arith.constant 0 : index
    %35 = vector.load %arg3[%c1_30, %c0_31] : memref<8x64xf32, #tpu.memory_space<vmem>>, vector<1x64xf32>
    %36 = vector.broadcast %35 : vector<1x64xf32> to vector<32x64xf32>
    %37 = arith.addf %34, %36 : vector<32x64xf32>
    %38 = vector.shape_cast %37 : vector<32x64xf32> to vector<4x8x64xf32>
    %c0_32 = arith.constant 0 : index
    %c0_33 = arith.constant 0 : index
    %c0_34 = arith.constant 0 : index
    %39 = vector.load %arg6[%c0_32, %c0_33, %c0_34] : memref<4x8x64xf32, #tpu.memory_space<vmem>>, vector<4x8x64xf32>
    tpu.vector_store %arg6[%c0_32, %c0_33, %c0_34], %38 {strides = array<i32>} : memref<4x8x64xf32, #tpu.memory_space<vmem>>, vector<4x8x64xf32>,
    %cst_35 = arith.constant 0.000000e+00 : f32
    %40 = vector.broadcast %cst_35 : f32 to vector<4x16xf32>
    %cst_36 = arith.constant 0.000000e+00 : f32
    %41 = vector.broadcast %cst_36 : f32 to vector<4x16xf32>
    %c0_37 = arith.constant 0 : index
    %c0_38 = arith.constant 0 : index
    %c0_39 = arith.constant 0 : index
    %42 = vector.load %arg6[%c0_37, %c0_38, %c0_39] : memref<4x8x64xf32, #tpu.memory_space<vmem>>, vector<4x1x64xf32>
    %43 = vector.shape_cast %42 : vector<4x1x64xf32> to vector<4x64xf32>
    %44 = arith.truncf %40 : vector<4x16xf32> to vector<4x16xbf16>
    %c32 = arith.constant 32 : index
    %c0_40 = arith.constant 0 : index
    %45 = vector.load %arg2[%c32, %c0_40] : memref<160x64xbf16, #tpu.memory_space<vmem>>, vector<16x64xbf16>
    %cst_41 = arith.constant dense<0.000000e+00> : vector<4x64xf32>
    %46 = tpu.matmul %44, %45, %cst_41 {dimension_numbers = #tpu.dot_dimension_numbers<[1], [0], [0], [1], [0, 0, 1, 1], [], []>} : vector<4x16xbf16>, vector<16x64xbf16>, vector<4x64xf32> -> vector<4x64xf32>
    %47 = arith.addf %43, %46 : vector<4x64xf32>
    %48 = vector.extract_strided_slice %47 {offsets = [0, 0], sizes = [4, 16], strides = [1, 1]} : vector<4x64xf32> to vector<4x16xf32>
    %49 = arith.negf %48 : vector<4x16xf32>
    %50 = math.exp %49 : vector<4x16xf32>
    %cst_42 = arith.constant 1.000000e+00 : f32
    %51 = vector.broadcast %cst_42 : f32 to vector<4x16xf32>
    %52 = arith.addf %51, %50 : vector<4x16xf32>
    %53 = arith.divf %51, %52 : vector<4x16xf32>
    %54 = vector.extract_strided_slice %47 {offsets = [0, 16], sizes = [4, 16], strides = [1, 1]} : vector<4x64xf32> to vector<4x16xf32>
    %55 = arith.negf %54 : vector<4x16xf32>
    %56 = math.exp %55 : vector<4x16xf32>
    %cst_43 = arith.constant 1.000000e+00 : f32
    %57 = vector.broadcast %cst_43 : f32 to vector<4x16xf32>
    %58 = arith.addf %57, %56 : vector<4x16xf32>
    %59 = arith.divf %57, %58 : vector<4x16xf32>
    %60 = vector.extract_strided_slice %47 {offsets = [0, 32], sizes = [4, 16], strides = [1, 1]} : vector<4x64xf32> to vector<4x16xf32>
    %61 = math.tanh %60 : vector<4x16xf32>
    %62 = vector.extract_strided_slice %47 {offsets = [0, 48], sizes = [4, 16], strides = [1, 1]} : vector<4x64xf32> to vector<4x16xf32>
    %63 = arith.negf %62 : vector<4x16xf32>
    %64 = math.exp %63 : vector<4x16xf32>
    %cst_44 = arith.constant 1.000000e+00 : f32
    %65 = vector.broadcast %cst_44 : f32 to vector<4x16xf32>
    %66 = arith.addf %65, %64 : vector<4x16xf32>
    %67 = arith.divf %65, %66 : vector<4x16xf32>
    %68 = arith.mulf %59, %41 : vector<4x16xf32>
    %69 = arith.mulf %53, %61 : vector<4x16xf32>
    %70 = arith.addf %68, %69 : vector<4x16xf32>
    %71 = math.tanh %70 : vector<4x16xf32>
    %72 = arith.mulf %67, %71 : vector<4x16xf32>
    %c0_45 = arith.constant 0 : index
    %c0_46 = arith.constant 0 : index
    %c0_47 = arith.constant 0 : index
    %73 = vector.load %arg7[%c0_45, %c0_46, %c0_47] : memref<4x8x16xf32, #tpu.memory_space<vmem>>, vector<4x1x16xf32>
    %74 = vector.shape_cast %73 : vector<4x1x16xf32> to vector<4x16xf32>
    %75 = vector.shape_cast %72 : vector<4x16xf32> to vector<4x1x16xf32>
    tpu.vector_store %arg7[%c0_45, %c0_46, %c0_47], %75 {strides = array<i32>} : memref<4x8x16xf32, #tpu.memory_space<vmem>>, vector<4x1x16xf32>,
    %c0_48 = arith.constant 0 : index
    %c1_49 = arith.constant 1 : index
    %c0_50 = arith.constant 0 : index
    %76 = vector.load %arg6[%c0_48, %c1_49, %c0_50] : memref<4x8x64xf32, #tpu.memory_space<vmem>>, vector<4x1x64xf32>
    %77 = vector.shape_cast %76 : vector<4x1x64xf32> to vector<4x64xf32>
    %78 = arith.truncf %72 : vector<4x16xf32> to vector<4x16xbf16>
    %c32_51 = arith.constant 32 : index
    %c0_52 = arith.constant 0 : index
    %79 = vector.load %arg2[%c32_51, %c0_52] : memref<160x64xbf16, #tpu.memory_space<vmem>>, vector<16x64xbf16>
    %cst_53 = arith.constant dense<0.000000e+00> : vector<4x64xf32>
    %80 = tpu.matmul %78, %79, %cst_53 {dimension_numbers = #tpu.dot_dimension_numbers<[1], [0], [0], [1], [0, 0, 1, 1], [], []>} : vector<4x16xbf16>, vector<16x64xbf16>, vector<4x64xf32> -> vector<4x64xf32>
    %81 = arith.addf %77, %80 : vector<4x64xf32>
    %82 = vector.extract_strided_slice %81 {offsets = [0, 0], sizes = [4, 16], strides = [1, 1]} : vector<4x64xf32> to vector<4x16xf32>
    %83 = arith.negf %82 : vector<4x16xf32>
    %84 = math.exp %83 : vector<4x16xf32>
    %cst_54 = arith.constant 1.000000e+00 : f32
    %85 = vector.broadcast %cst_54 : f32 to vector<4x16xf32>
    %86 = arith.addf %85, %84 : vector<4x16xf32>
    %87 = arith.divf %85, %86 : vector<4x16xf32>
    %88 = vector.extract_strided_slice %81 {offsets = [0, 16], sizes = [4, 16], strides = [1, 1]} : vector<4x64xf32> to vector<4x16xf32>
    %89 = arith.negf %88 : vector<4x16xf32>
    %90 = math.exp %89 : vector<4x16xf32>
    %cst_55 = arith.constant 1.000000e+00 : f32
    %91 = vector.broadcast %cst_55 : f32 to vector<4x16xf32>
    %92 = arith.addf %91, %90 : vector<4x16xf32>
    %93 = arith.divf %91, %92 : vector<4x16xf32>
    %94 = vector.extract_strided_slice %81 {offsets = [0, 32], sizes = [4, 16], strides = [1, 1]} : vector<4x64xf32> to vector<4x16xf32>
    %95 = math.tanh %94 : vector<4x16xf32>
    %96 = vector.extract_strided_slice %81 {offsets = [0, 48], sizes = [4, 16], strides = [1, 1]} : vector<4x64xf32> to vector<4x16xf32>
    %97 = arith.negf %96 : vector<4x16xf32>
    %98 = math.exp %97 : vector<4x16xf32>
    %cst_56 = arith.constant 1.000000e+00 : f32
    %99 = vector.broadcast %cst_56 : f32 to vector<4x16xf32>
    %100 = arith.addf %99, %98 : vector<4x16xf32>
    %101 = arith.divf %99, %100 : vector<4x16xf32>
    %102 = arith.mulf %93, %70 : vector<4x16xf32>
    %103 = arith.mulf %87, %95 : vector<4x16xf32>
    %104 = arith.addf %102, %103 : vector<4x16xf32>
    %105 = math.tanh %104 : vector<4x16xf32>
    %106 = arith.mulf %101, %105 : vector<4x16xf32>
    %c0_57 = arith.constant 0 : index
    %c1_58 = arith.constant 1 : index
    %c0_59 = arith.constant 0 : index
    %107 = vector.load %arg7[%c0_57, %c1_58, %c0_59] : memref<4x8x16xf32, #tpu.memory_space<vmem>>, vector<4x1x16xf32>
    %108 = vector.shape_cast %107 : vector<4x1x16xf32> to vector<4x16xf32>
    %109 = vector.shape_cast %106 : vector<4x16xf32> to vector<4x1x16xf32>
    tpu.vector_store %arg7[%c0_57, %c1_58, %c0_59], %109 {strides = array<i32>} : memref<4x8x16xf32, #tpu.memory_space<vmem>>, vector<4x1x16xf32>,
    %c0_60 = arith.constant 0 : index
    %c2_61 = arith.constant 2 : index
    %c0_62 = arith.constant 0 : index
    %110 = vector.load %arg6[%c0_60, %c2_61, %c0_62] : memref<4x8x64xf32, #tpu.memory_space<vmem>>, vector<4x1x64xf32>
    %111 = vector.shape_cast %110 : vector<4x1x64xf32> to vector<4x64xf32>
    %112 = arith.truncf %106 : vector<4x16xf32> to vector<4x16xbf16>
    %c32_63 = arith.constant 32 : index
    %c0_64 = arith.constant 0 : index
    %113 = vector.load %arg2[%c32_63, %c0_64] : memref<160x64xbf16, #tpu.memory_space<vmem>>, vector<16x64xbf16>
    %cst_65 = arith.constant dense<0.000000e+00> : vector<4x64xf32>
    %114 = tpu.matmul %112, %113, %cst_65 {dimension_numbers = #tpu.dot_dimension_numbers<[1], [0], [0], [1], [0, 0, 1, 1], [], []>} : vector<4x16xbf16>, vector<16x64xbf16>, vector<4x64xf32> -> vector<4x64xf32>
    %115 = arith.addf %111, %114 : vector<4x64xf32>
    %116 = vector.extract_strided_slice %115 {offsets = [0, 0], sizes = [4, 16], strides = [1, 1]} : vector<4x64xf32> to vector<4x16xf32>
    %117 = arith.negf %116 : vector<4x16xf32>
    %118 = math.exp %117 : vector<4x16xf32>
    %cst_66 = arith.constant 1.000000e+00 : f32
    %119 = vector.broadcast %cst_66 : f32 to vector<4x16xf32>
    %120 = arith.addf %119, %118 : vector<4x16xf32>
    %121 = arith.divf %119, %120 : vector<4x16xf32>
    %122 = vector.extract_strided_slice %115 {offsets = [0, 16], sizes = [4, 16], strides = [1, 1]} : vector<4x64xf32> to vector<4x16xf32>
    %123 = arith.negf %122 : vector<4x16xf32>
    %124 = math.exp %123 : vector<4x16xf32>
    %cst_67 = arith.constant 1.000000e+00 : f32
    %125 = vector.broadcast %cst_67 : f32 to vector<4x16xf32>
    %126 = arith.addf %125, %124 : vector<4x16xf32>
    %127 = arith.divf %125, %126 : vector<4x16xf32>
    %128 = vector.extract_strided_slice %115 {offsets = [0, 32], sizes = [4, 16], strides = [1, 1]} : vector<4x64xf32> to vector<4x16xf32>
    %129 = math.tanh %128 : vector<4x16xf32>
    %130 = vector.extract_strided_slice %115 {offsets = [0, 48], sizes = [4, 16], strides = [1, 1]} : vector<4x64xf32> to vector<4x16xf32>
    %131 = arith.negf %130 : vector<4x16xf32>
    %132 = math.exp %131 : vector<4x16xf32>
    %cst_68 = arith.constant 1.000000e+00 : f32
    %133 = vector.broadcast %cst_68 : f32 to vector<4x16xf32>
    %134 = arith.addf %133, %132 : vector<4x16xf32>
    %135 = arith.divf %133, %134 : vector<4x16xf32>
    %136 = arith.mulf %127, %104 : vector<4x16xf32>
    %137 = arith.mulf %121, %129 : vector<4x16xf32>
    %138 = arith.addf %136, %137 : vector<4x16xf32>
    %139 = math.tanh %138 : vector<4x16xf32>
    %140 = arith.mulf %135, %139 : vector<4x16xf32>
    %c0_69 = arith.constant 0 : index
    %c2_70 = arith.constant 2 : index
    %c0_71 = arith.constant 0 : index
    %141 = vector.load %arg7[%c0_69, %c2_70, %c0_71] : memref<4x8x16xf32, #tpu.memory_space<vmem>>, vector<4x1x16xf32>
    %142 = vector.shape_cast %141 : vector<4x1x16xf32> to vector<4x16xf32>
    %143 = vector.shape_cast %140 : vector<4x16xf32> to vector<4x1x16xf32>
    tpu.vector_store %arg7[%c0_69, %c2_70, %c0_71], %143 {strides = array<i32>} : memref<4x8x16xf32, #tpu.memory_space<vmem>>, vector<4x1x16xf32>,
    %c0_72 = arith.constant 0 : index
    %c3 = arith.constant 3 : index
    %c0_73 = arith.constant 0 : index
    %144 = vector.load %arg6[%c0_72, %c3, %c0_73] : memref<4x8x64xf32, #tpu.memory_space<vmem>>, vector<4x1x64xf32>
    %145 = vector.shape_cast %144 : vector<4x1x64xf32> to vector<4x64xf32>
    %146 = arith.truncf %140 : vector<4x16xf32> to vector<4x16xbf16>
    %c32_74 = arith.constant 32 : index
    %c0_75 = arith.constant 0 : index
    %147 = vector.load %arg2[%c32_74, %c0_75] : memref<160x64xbf16, #tpu.memory_space<vmem>>, vector<16x64xbf16>
    %cst_76 = arith.constant dense<0.000000e+00> : vector<4x64xf32>
    %148 = tpu.matmul %146, %147, %cst_76 {dimension_numbers = #tpu.dot_dimension_numbers<[1], [0], [0], [1], [0, 0, 1, 1], [], []>} : vector<4x16xbf16>, vector<16x64xbf16>, vector<4x64xf32> -> vector<4x64xf32>
    %149 = arith.addf %145, %148 : vector<4x64xf32>
    %150 = vector.extract_strided_slice %149 {offsets = [0, 0], sizes = [4, 16], strides = [1, 1]} : vector<4x64xf32> to vector<4x16xf32>
    %151 = arith.negf %150 : vector<4x16xf32>
    %152 = math.exp %151 : vector<4x16xf32>
    %cst_77 = arith.constant 1.000000e+00 : f32
    %153 = vector.broadcast %cst_77 : f32 to vector<4x16xf32>
    %154 = arith.addf %153, %152 : vector<4x16xf32>
    %155 = arith.divf %153, %154 : vector<4x16xf32>
    %156 = vector.extract_strided_slice %149 {offsets = [0, 16], sizes = [4, 16], strides = [1, 1]} : vector<4x64xf32> to vector<4x16xf32>
    %157 = arith.negf %156 : vector<4x16xf32>
    %158 = math.exp %157 : vector<4x16xf32>
    %cst_78 = arith.constant 1.000000e+00 : f32
    %159 = vector.broadcast %cst_78 : f32 to vector<4x16xf32>
    %160 = arith.addf %159, %158 : vector<4x16xf32>
    %161 = arith.divf %159, %160 : vector<4x16xf32>
    %162 = vector.extract_strided_slice %149 {offsets = [0, 32], sizes = [4, 16], strides = [1, 1]} : vector<4x64xf32> to vector<4x16xf32>
    %163 = math.tanh %162 : vector<4x16xf32>
    %164 = vector.extract_strided_slice %149 {offsets = [0, 48], sizes = [4, 16], strides = [1, 1]} : vector<4x64xf32> to vector<4x16xf32>
    %165 = arith.negf %164 : vector<4x16xf32>
    %166 = math.exp %165 : vector<4x16xf32>
    %cst_79 = arith.constant 1.000000e+00 : f32
    %167 = vector.broadcast %cst_79 : f32 to vector<4x16xf32>
    %168 = arith.addf %167, %166 : vector<4x16xf32>
    %169 = arith.divf %167, %168 : vector<4x16xf32>
    %170 = arith.mulf %161, %138 : vector<4x16xf32>
    %171 = arith.mulf %155, %163 : vector<4x16xf32>
    %172 = arith.addf %170, %171 : vector<4x16xf32>
    %173 = math.tanh %172 : vector<4x16xf32>
    %174 = arith.mulf %169, %173 : vector<4x16xf32>
    %c0_80 = arith.constant 0 : index
    %c3_81 = arith.constant 3 : index
    %c0_82 = arith.constant 0 : index
    %175 = vector.load %arg7[%c0_80, %c3_81, %c0_82] : memref<4x8x16xf32, #tpu.memory_space<vmem>>, vector<4x1x16xf32>
    %176 = vector.shape_cast %175 : vector<4x1x16xf32> to vector<4x16xf32>
    %177 = vector.shape_cast %174 : vector<4x16xf32> to vector<4x1x16xf32>
    tpu.vector_store %arg7[%c0_80, %c3_81, %c0_82], %177 {strides = array<i32>} : memref<4x8x16xf32, #tpu.memory_space<vmem>>, vector<4x1x16xf32>,
    %c0_83 = arith.constant 0 : index
    %c4 = arith.constant 4 : index
    %c0_84 = arith.constant 0 : index
    %178 = vector.load %arg6[%c0_83, %c4, %c0_84] : memref<4x8x64xf32, #tpu.memory_space<vmem>>, vector<4x1x64xf32>
    %179 = vector.shape_cast %178 : vector<4x1x64xf32> to vector<4x64xf32>
    %180 = arith.truncf %174 : vector<4x16xf32> to vector<4x16xbf16>
    %c32_85 = arith.constant 32 : index
    %c0_86 = arith.constant 0 : index
    %181 = vector.load %arg2[%c32_85, %c0_86] : memref<160x64xbf16, #tpu.memory_space<vmem>>, vector<16x64xbf16>
    %cst_87 = arith.constant dense<0.000000e+00> : vector<4x64xf32>
    %182 = tpu.matmul %180, %181, %cst_87 {dimension_numbers = #tpu.dot_dimension_numbers<[1], [0], [0], [1], [0, 0, 1, 1], [], []>} : vector<4x16xbf16>, vector<16x64xbf16>, vector<4x64xf32> -> vector<4x64xf32>
    %183 = arith.addf %179, %182 : vector<4x64xf32>
    %184 = vector.extract_strided_slice %183 {offsets = [0, 0], sizes = [4, 16], strides = [1, 1]} : vector<4x64xf32> to vector<4x16xf32>
    %185 = arith.negf %184 : vector<4x16xf32>
    %186 = math.exp %185 : vector<4x16xf32>
    %cst_88 = arith.constant 1.000000e+00 : f32
    %187 = vector.broadcast %cst_88 : f32 to vector<4x16xf32>
    %188 = arith.addf %187, %186 : vector<4x16xf32>
    %189 = arith.divf %187, %188 : vector<4x16xf32>
    %190 = vector.extract_strided_slice %183 {offsets = [0, 16], sizes = [4, 16], strides = [1, 1]} : vector<4x64xf32> to vector<4x16xf32>
    %191 = arith.negf %190 : vector<4x16xf32>
    %192 = math.exp %191 : vector<4x16xf32>
    %cst_89 = arith.constant 1.000000e+00 : f32
    %193 = vector.broadcast %cst_89 : f32 to vector<4x16xf32>
    %194 = arith.addf %193, %192 : vector<4x16xf32>
    %195 = arith.divf %193, %194 : vector<4x16xf32>
    %196 = vector.extract_strided_slice %183 {offsets = [0, 32], sizes = [4, 16], strides = [1, 1]} : vector<4x64xf32> to vector<4x16xf32>
    %197 = math.tanh %196 : vector<4x16xf32>
    %198 = vector.extract_strided_slice %183 {offsets = [0, 48], sizes = [4, 16], strides = [1, 1]} : vector<4x64xf32> to vector<4x16xf32>
    %199 = arith.negf %198 : vector<4x16xf32>
    %200 = math.exp %199 : vector<4x16xf32>
    %cst_90 = arith.constant 1.000000e+00 : f32
    %201 = vector.broadcast %cst_90 : f32 to vector<4x16xf32>
    %202 = arith.addf %201, %200 : vector<4x16xf32>
    %203 = arith.divf %201, %202 : vector<4x16xf32>
    %204 = arith.mulf %195, %172 : vector<4x16xf32>
    %205 = arith.mulf %189, %197 : vector<4x16xf32>
    %206 = arith.addf %204, %205 : vector<4x16xf32>
    %207 = math.tanh %206 : vector<4x16xf32>
    %208 = arith.mulf %203, %207 : vector<4x16xf32>
    %c0_91 = arith.constant 0 : index
    %c4_92 = arith.constant 4 : index
    %c0_93 = arith.constant 0 : index
    %209 = vector.load %arg7[%c0_91, %c4_92, %c0_93] : memref<4x8x16xf32, #tpu.memory_space<vmem>>, vector<4x1x16xf32>
    %210 = vector.shape_cast %209 : vector<4x1x16xf32> to vector<4x16xf32>
    %211 = vector.shape_cast %208 : vector<4x16xf32> to vector<4x1x16xf32>
    tpu.vector_store %arg7[%c0_91, %c4_92, %c0_93], %211 {strides = array<i32>} : memref<4x8x16xf32, #tpu.memory_space<vmem>>, vector<4x1x16xf32>,
    %c0_94 = arith.constant 0 : index
    %c5_95 = arith.constant 5 : index
    %c0_96 = arith.constant 0 : index
    %212 = vector.load %arg6[%c0_94, %c5_95, %c0_96] : memref<4x8x64xf32, #tpu.memory_space<vmem>>, vector<4x1x64xf32>
    %213 = vector.shape_cast %212 : vector<4x1x64xf32> to vector<4x64xf32>
    %214 = arith.truncf %208 : vector<4x16xf32> to vector<4x16xbf16>
    %c32_97 = arith.constant 32 : index
    %c0_98 = arith.constant 0 : index
    %215 = vector.load %arg2[%c32_97, %c0_98] : memref<160x64xbf16, #tpu.memory_space<vmem>>, vector<16x64xbf16>
    %cst_99 = arith.constant dense<0.000000e+00> : vector<4x64xf32>
    %216 = tpu.matmul %214, %215, %cst_99 {dimension_numbers = #tpu.dot_dimension_numbers<[1], [0], [0], [1], [0, 0, 1, 1], [], []>} : vector<4x16xbf16>, vector<16x64xbf16>, vector<4x64xf32> -> vector<4x64xf32>
    %217 = arith.addf %213, %216 : vector<4x64xf32>
    %218 = vector.extract_strided_slice %217 {offsets = [0, 0], sizes = [4, 16], strides = [1, 1]} : vector<4x64xf32> to vector<4x16xf32>
    %219 = arith.negf %218 : vector<4x16xf32>
    %220 = math.exp %219 : vector<4x16xf32>
    %cst_100 = arith.constant 1.000000e+00 : f32
    %221 = vector.broadcast %cst_100 : f32 to vector<4x16xf32>
    %222 = arith.addf %221, %220 : vector<4x16xf32>
    %223 = arith.divf %221, %222 : vector<4x16xf32>
    %224 = vector.extract_strided_slice %217 {offsets = [0, 16], sizes = [4, 16], strides = [1, 1]} : vector<4x64xf32> to vector<4x16xf32>
    %225 = arith.negf %224 : vector<4x16xf32>
    %226 = math.exp %225 : vector<4x16xf32>
    %cst_101 = arith.constant 1.000000e+00 : f32
    %227 = vector.broadcast %cst_101 : f32 to vector<4x16xf32>
    %228 = arith.addf %227, %226 : vector<4x16xf32>
    %229 = arith.divf %227, %228 : vector<4x16xf32>
    %230 = vector.extract_strided_slice %217 {offsets = [0, 32], sizes = [4, 16], strides = [1, 1]} : vector<4x64xf32> to vector<4x16xf32>
    %231 = math.tanh %230 : vector<4x16xf32>
    %232 = vector.extract_strided_slice %217 {offsets = [0, 48], sizes = [4, 16], strides = [1, 1]} : vector<4x64xf32> to vector<4x16xf32>
    %233 = arith.negf %232 : vector<4x16xf32>
    %234 = math.exp %233 : vector<4x16xf32>
    %cst_102 = arith.constant 1.000000e+00 : f32
    %235 = vector.broadcast %cst_102 : f32 to vector<4x16xf32>
    %236 = arith.addf %235, %234 : vector<4x16xf32>
    %237 = arith.divf %235, %236 : vector<4x16xf32>
    %238 = arith.mulf %229, %206 : vector<4x16xf32>
    %239 = arith.mulf %223, %231 : vector<4x16xf32>
    %240 = arith.addf %238, %239 : vector<4x16xf32>
    %241 = math.tanh %240 : vector<4x16xf32>
    %242 = arith.mulf %237, %241 : vector<4x16xf32>
    %c0_103 = arith.constant 0 : index
    %c5_104 = arith.constant 5 : index
    %c0_105 = arith.constant 0 : index
    %243 = vector.load %arg7[%c0_103, %c5_104, %c0_105] : memref<4x8x16xf32, #tpu.memory_space<vmem>>, vector<4x1x16xf32>
    %244 = vector.shape_cast %243 : vector<4x1x16xf32> to vector<4x16xf32>
    %245 = vector.shape_cast %242 : vector<4x16xf32> to vector<4x1x16xf32>
    tpu.vector_store %arg7[%c0_103, %c5_104, %c0_105], %245 {strides = array<i32>} : memref<4x8x16xf32, #tpu.memory_space<vmem>>, vector<4x1x16xf32>,
    %c0_106 = arith.constant 0 : index
    %c6 = arith.constant 6 : index
    %c0_107 = arith.constant 0 : index
    %246 = vector.load %arg6[%c0_106, %c6, %c0_107] : memref<4x8x64xf32, #tpu.memory_space<vmem>>, vector<4x1x64xf32>
    %247 = vector.shape_cast %246 : vector<4x1x64xf32> to vector<4x64xf32>
    %248 = arith.truncf %242 : vector<4x16xf32> to vector<4x16xbf16>
    %c32_108 = arith.constant 32 : index
    %c0_109 = arith.constant 0 : index
    %249 = vector.load %arg2[%c32_108, %c0_109] : memref<160x64xbf16, #tpu.memory_space<vmem>>, vector<16x64xbf16>
    %cst_110 = arith.constant dense<0.000000e+00> : vector<4x64xf32>
    %250 = tpu.matmul %248, %249, %cst_110 {dimension_numbers = #tpu.dot_dimension_numbers<[1], [0], [0], [1], [0, 0, 1, 1], [], []>} : vector<4x16xbf16>, vector<16x64xbf16>, vector<4x64xf32> -> vector<4x64xf32>
    %251 = arith.addf %247, %250 : vector<4x64xf32>
    %252 = vector.extract_strided_slice %251 {offsets = [0, 0], sizes = [4, 16], strides = [1, 1]} : vector<4x64xf32> to vector<4x16xf32>
    %253 = arith.negf %252 : vector<4x16xf32>
    %254 = math.exp %253 : vector<4x16xf32>
    %cst_111 = arith.constant 1.000000e+00 : f32
    %255 = vector.broadcast %cst_111 : f32 to vector<4x16xf32>
    %256 = arith.addf %255, %254 : vector<4x16xf32>
    %257 = arith.divf %255, %256 : vector<4x16xf32>
    %258 = vector.extract_strided_slice %251 {offsets = [0, 16], sizes = [4, 16], strides = [1, 1]} : vector<4x64xf32> to vector<4x16xf32>
    %259 = arith.negf %258 : vector<4x16xf32>
    %260 = math.exp %259 : vector<4x16xf32>
    %cst_112 = arith.constant 1.000000e+00 : f32
    %261 = vector.broadcast %cst_112 : f32 to vector<4x16xf32>
    %262 = arith.addf %261, %260 : vector<4x16xf32>
    %263 = arith.divf %261, %262 : vector<4x16xf32>
    %264 = vector.extract_strided_slice %251 {offsets = [0, 32], sizes = [4, 16], strides = [1, 1]} : vector<4x64xf32> to vector<4x16xf32>
    %265 = math.tanh %264 : vector<4x16xf32>
    %266 = vector.extract_strided_slice %251 {offsets = [0, 48], sizes = [4, 16], strides = [1, 1]} : vector<4x64xf32> to vector<4x16xf32>
    %267 = arith.negf %266 : vector<4x16xf32>
    %268 = math.exp %267 : vector<4x16xf32>
    %cst_113 = arith.constant 1.000000e+00 : f32
    %269 = vector.broadcast %cst_113 : f32 to vector<4x16xf32>
    %270 = arith.addf %269, %268 : vector<4x16xf32>
    %271 = arith.divf %269, %270 : vector<4x16xf32>
    %272 = arith.mulf %263, %240 : vector<4x16xf32>
    %273 = arith.mulf %257, %265 : vector<4x16xf32>
    %274 = arith.addf %272, %273 : vector<4x16xf32>
    %275 = math.tanh %274 : vector<4x16xf32>
    %276 = arith.mulf %271, %275 : vector<4x16xf32>
    %c0_114 = arith.constant 0 : index
    %c6_115 = arith.constant 6 : index
    %c0_116 = arith.constant 0 : index
    %277 = vector.load %arg7[%c0_114, %c6_115, %c0_116] : memref<4x8x16xf32, #tpu.memory_space<vmem>>, vector<4x1x16xf32>
    %278 = vector.shape_cast %277 : vector<4x1x16xf32> to vector<4x16xf32>
    %279 = vector.shape_cast %276 : vector<4x16xf32> to vector<4x1x16xf32>
    tpu.vector_store %arg7[%c0_114, %c6_115, %c0_116], %279 {strides = array<i32>} : memref<4x8x16xf32, #tpu.memory_space<vmem>>, vector<4x1x16xf32>,
    %c0_117 = arith.constant 0 : index
    %c7 = arith.constant 7 : index
    %c0_118 = arith.constant 0 : index
    %280 = vector.load %arg6[%c0_117, %c7, %c0_118] : memref<4x8x64xf32, #tpu.memory_space<vmem>>, vector<4x1x64xf32>
    %281 = vector.shape_cast %280 : vector<4x1x64xf32> to vector<4x64xf32>
    %282 = arith.truncf %276 : vector<4x16xf32> to vector<4x16xbf16>
    %c32_119 = arith.constant 32 : index
    %c0_120 = arith.constant 0 : index
    %283 = vector.load %arg2[%c32_119, %c0_120] : memref<160x64xbf16, #tpu.memory_space<vmem>>, vector<16x64xbf16>
    %cst_121 = arith.constant dense<0.000000e+00> : vector<4x64xf32>
    %284 = tpu.matmul %282, %283, %cst_121 {dimension_numbers = #tpu.dot_dimension_numbers<[1], [0], [0], [1], [0, 0, 1, 1], [], []>} : vector<4x16xbf16>, vector<16x64xbf16>, vector<4x64xf32> -> vector<4x64xf32>
    %285 = arith.addf %281, %284 : vector<4x64xf32>
    %286 = vector.extract_strided_slice %285 {offsets = [0, 0], sizes = [4, 16], strides = [1, 1]} : vector<4x64xf32> to vector<4x16xf32>
    %287 = arith.negf %286 : vector<4x16xf32>
    %288 = math.exp %287 : vector<4x16xf32>
    %cst_122 = arith.constant 1.000000e+00 : f32
    %289 = vector.broadcast %cst_122 : f32 to vector<4x16xf32>
    %290 = arith.addf %289, %288 : vector<4x16xf32>
    %291 = arith.divf %289, %290 : vector<4x16xf32>
    %292 = vector.extract_strided_slice %285 {offsets = [0, 16], sizes = [4, 16], strides = [1, 1]} : vector<4x64xf32> to vector<4x16xf32>
    %293 = arith.negf %292 : vector<4x16xf32>
    %294 = math.exp %293 : vector<4x16xf32>
    %cst_123 = arith.constant 1.000000e+00 : f32
    %295 = vector.broadcast %cst_123 : f32 to vector<4x16xf32>
    %296 = arith.addf %295, %294 : vector<4x16xf32>
    %297 = arith.divf %295, %296 : vector<4x16xf32>
    %298 = vector.extract_strided_slice %285 {offsets = [0, 32], sizes = [4, 16], strides = [1, 1]} : vector<4x64xf32> to vector<4x16xf32>
    %299 = math.tanh %298 : vector<4x16xf32>
    %300 = vector.extract_strided_slice %285 {offsets = [0, 48], sizes = [4, 16], strides = [1, 1]} : vector<4x64xf32> to vector<4x16xf32>
    %301 = arith.negf %300 : vector<4x16xf32>
    %302 = math.exp %301 : vector<4x16xf32>
    %cst_124 = arith.constant 1.000000e+00 : f32
    %303 = vector.broadcast %cst_124 : f32 to vector<4x16xf32>
    %304 = arith.addf %303, %302 : vector<4x16xf32>
    %305 = arith.divf %303, %304 : vector<4x16xf32>
    %306 = arith.mulf %297, %274 : vector<4x16xf32>
    %307 = arith.mulf %291, %299 : vector<4x16xf32>
    %308 = arith.addf %306, %307 : vector<4x16xf32>
    %309 = math.tanh %308 : vector<4x16xf32>
    %310 = arith.mulf %305, %309 : vector<4x16xf32>
    %c0_125 = arith.constant 0 : index
    %c7_126 = arith.constant 7 : index
    %c0_127 = arith.constant 0 : index
    %311 = vector.load %arg7[%c0_125, %c7_126, %c0_127] : memref<4x8x16xf32, #tpu.memory_space<vmem>>, vector<4x1x16xf32>
    %312 = vector.shape_cast %311 : vector<4x1x16xf32> to vector<4x16xf32>
    %313 = vector.shape_cast %310 : vector<4x16xf32> to vector<4x1x16xf32>
    tpu.vector_store %arg7[%c0_125, %c7_126, %c0_127], %313 {strides = array<i32>} : memref<4x8x16xf32, #tpu.memory_space<vmem>>, vector<4x1x16xf32>,
    %c0_128 = arith.constant 0 : index
    %c0_129 = arith.constant 0 : index
    %c0_130 = arith.constant 0 : index
    %314 = vector.load %arg7[%c0_128, %c0_129, %c0_130] : memref<4x8x16xf32, #tpu.memory_space<vmem>>, vector<4x8x16xf32>
    %315 = vector.shape_cast %314 : vector<4x8x16xf32> to vector<32x16xf32>
    %316 = arith.truncf %315 : vector<32x16xf32> to vector<32x16xbf16>
    %c48 = arith.constant 48 : index
    %c0_131 = arith.constant 0 : index
    %317 = vector.load %arg2[%c48, %c0_131] : memref<160x64xbf16, #tpu.memory_space<vmem>>, vector<16x48xbf16>
    %cst_132 = arith.constant dense<0.000000e+00> : vector<32x48xf32>
    %318 = tpu.matmul %316, %317, %cst_132 {dimension_numbers = #tpu.dot_dimension_numbers<[1], [0], [0], [1], [0, 0, 1, 1], [], []>} : vector<32x16xbf16>, vector<16x48xbf16>, vector<32x48xf32> -> vector<32x48xf32>
    %c2_133 = arith.constant 2 : index
    %c0_134 = arith.constant 0 : index
    %319 = vector.load %arg3[%c2_133, %c0_134] : memref<8x64xf32, #tpu.memory_space<vmem>>, vector<1x48xf32>
    %320 = vector.broadcast %319 : vector<1x48xf32> to vector<32x48xf32>
    %321 = arith.addf %318, %320 : vector<32x48xf32>
    %322 = vector.shape_cast %321 : vector<32x48xf32> to vector<4x8x48xf32>
    %c0_135 = arith.constant 0 : index
    %c0_136 = arith.constant 0 : index
    %c0_137 = arith.constant 0 : index
    %323 = vector.load %arg6[%c0_135, %c0_136, %c0_137] : memref<4x8x64xf32, #tpu.memory_space<vmem>>, vector<4x8x48xf32>
    tpu.vector_store %arg6[%c0_135, %c0_136, %c0_137], %322 {strides = array<i32>} : memref<4x8x64xf32, #tpu.memory_space<vmem>>, vector<4x8x48xf32>,
    %cst_138 = arith.constant 0.000000e+00 : f32
    %324 = vector.broadcast %cst_138 : f32 to vector<4x16xf32>
    %325 = arith.truncf %324 : vector<4x16xf32> to vector<4x16xbf16>
    %c64 = arith.constant 64 : index
    %c0_139 = arith.constant 0 : index
    %326 = vector.load %arg2[%c64, %c0_139] : memref<160x64xbf16, #tpu.memory_space<vmem>>, vector<16x48xbf16>
    %cst_140 = arith.constant dense<0.000000e+00> : vector<4x48xf32>
    %327 = tpu.matmul %325, %326, %cst_140 {dimension_numbers = #tpu.dot_dimension_numbers<[1], [0], [0], [1], [0, 0, 1, 1], [], []>} : vector<4x16xbf16>, vector<16x48xbf16>, vector<4x48xf32> -> vector<4x48xf32>
    %c3_141 = arith.constant 3 : index
    %c0_142 = arith.constant 0 : index
    %328 = vector.load %arg3[%c3_141, %c0_142] : memref<8x64xf32, #tpu.memory_space<vmem>>, vector<1x48xf32>
    %329 = vector.broadcast %328 : vector<1x48xf32> to vector<4x48xf32>
    %330 = arith.addf %327, %329 : vector<4x48xf32>
    %c0_143 = arith.constant 0 : index
    %c0_144 = arith.constant 0 : index
    %c0_145 = arith.constant 0 : index
    %331 = vector.load %arg6[%c0_143, %c0_144, %c0_145] : memref<4x8x64xf32, #tpu.memory_space<vmem>>, vector<4x1x48xf32>
    %332 = vector.shape_cast %331 : vector<4x1x48xf32> to vector<4x48xf32>
    %333 = vector.extract_strided_slice %332 {offsets = [0, 0], sizes = [4, 16], strides = [1, 1]} : vector<4x48xf32> to vector<4x16xf32>
    %334 = vector.extract_strided_slice %330 {offsets = [0, 0], sizes = [4, 16], strides = [1, 1]} : vector<4x48xf32> to vector<4x16xf32>
    %335 = arith.addf %333, %334 : vector<4x16xf32>
    %336 = arith.negf %335 : vector<4x16xf32>
    %337 = math.exp %336 : vector<4x16xf32>
    %cst_146 = arith.constant 1.000000e+00 : f32
    %338 = vector.broadcast %cst_146 : f32 to vector<4x16xf32>
    %339 = arith.addf %338, %337 : vector<4x16xf32>
    %340 = arith.divf %338, %339 : vector<4x16xf32>
    %341 = vector.extract_strided_slice %332 {offsets = [0, 16], sizes = [4, 16], strides = [1, 1]} : vector<4x48xf32> to vector<4x16xf32>
    %342 = vector.extract_strided_slice %330 {offsets = [0, 16], sizes = [4, 16], strides = [1, 1]} : vector<4x48xf32> to vector<4x16xf32>
    %343 = arith.addf %341, %342 : vector<4x16xf32>
    %344 = arith.negf %343 : vector<4x16xf32>
    %345 = math.exp %344 : vector<4x16xf32>
    %cst_147 = arith.constant 1.000000e+00 : f32
    %346 = vector.broadcast %cst_147 : f32 to vector<4x16xf32>
    %347 = arith.addf %346, %345 : vector<4x16xf32>
    %348 = arith.divf %346, %347 : vector<4x16xf32>
    %349 = vector.extract_strided_slice %332 {offsets = [0, 32], sizes = [4, 16], strides = [1, 1]} : vector<4x48xf32> to vector<4x16xf32>
    %350 = vector.extract_strided_slice %330 {offsets = [0, 32], sizes = [4, 16], strides = [1, 1]} : vector<4x48xf32> to vector<4x16xf32>
    %351 = arith.mulf %340, %350 : vector<4x16xf32>
    %352 = arith.addf %349, %351 : vector<4x16xf32>
    %353 = math.tanh %352 : vector<4x16xf32>
    %cst_148 = arith.constant 1.000000e+00 : f32
    %354 = vector.broadcast %cst_148 : f32 to vector<4x16xf32>
    %355 = arith.subf %354, %348 : vector<4x16xf32>
    %356 = arith.mulf %355, %353 : vector<4x16xf32>
    %357 = arith.mulf %348, %324 : vector<4x16xf32>
    %358 = arith.addf %356, %357 : vector<4x16xf32>
    %c0_149 = arith.constant 0 : index
    %c0_150 = arith.constant 0 : index
    %c0_151 = arith.constant 0 : index
    %359 = vector.load %arg8[%c0_149, %c0_150, %c0_151] : memref<4x8x16xf32, #tpu.memory_space<vmem>>, vector<4x1x16xf32>
    %360 = vector.shape_cast %359 : vector<4x1x16xf32> to vector<4x16xf32>
    %361 = vector.shape_cast %358 : vector<4x16xf32> to vector<4x1x16xf32>
    tpu.vector_store %arg8[%c0_149, %c0_150, %c0_151], %361 {strides = array<i32>} : memref<4x8x16xf32, #tpu.memory_space<vmem>>, vector<4x1x16xf32>,
    %362 = arith.truncf %358 : vector<4x16xf32> to vector<4x16xbf16>
    %c64_152 = arith.constant 64 : index
    %c0_153 = arith.constant 0 : index
    %363 = vector.load %arg2[%c64_152, %c0_153] : memref<160x64xbf16, #tpu.memory_space<vmem>>, vector<16x48xbf16>
    %cst_154 = arith.constant dense<0.000000e+00> : vector<4x48xf32>
    %364 = tpu.matmul %362, %363, %cst_154 {dimension_numbers = #tpu.dot_dimension_numbers<[1], [0], [0], [1], [0, 0, 1, 1], [], []>} : vector<4x16xbf16>, vector<16x48xbf16>, vector<4x48xf32> -> vector<4x48xf32>
    %c3_155 = arith.constant 3 : index
    %c0_156 = arith.constant 0 : index
    %365 = vector.load %arg3[%c3_155, %c0_156] : memref<8x64xf32, #tpu.memory_space<vmem>>, vector<1x48xf32>
    %366 = vector.broadcast %365 : vector<1x48xf32> to vector<4x48xf32>
    %367 = arith.addf %364, %366 : vector<4x48xf32>
    %c0_157 = arith.constant 0 : index
    %c1_158 = arith.constant 1 : index
    %c0_159 = arith.constant 0 : index
    %368 = vector.load %arg6[%c0_157, %c1_158, %c0_159] : memref<4x8x64xf32, #tpu.memory_space<vmem>>, vector<4x1x48xf32>
    %369 = vector.shape_cast %368 : vector<4x1x48xf32> to vector<4x48xf32>
    %370 = vector.extract_strided_slice %369 {offsets = [0, 0], sizes = [4, 16], strides = [1, 1]} : vector<4x48xf32> to vector<4x16xf32>
    %371 = vector.extract_strided_slice %367 {offsets = [0, 0], sizes = [4, 16], strides = [1, 1]} : vector<4x48xf32> to vector<4x16xf32>
    %372 = arith.addf %370, %371 : vector<4x16xf32>
    %373 = arith.negf %372 : vector<4x16xf32>
    %374 = math.exp %373 : vector<4x16xf32>
    %cst_160 = arith.constant 1.000000e+00 : f32
    %375 = vector.broadcast %cst_160 : f32 to vector<4x16xf32>
    %376 = arith.addf %375, %374 : vector<4x16xf32>
    %377 = arith.divf %375, %376 : vector<4x16xf32>
    %378 = vector.extract_strided_slice %369 {offsets = [0, 16], sizes = [4, 16], strides = [1, 1]} : vector<4x48xf32> to vector<4x16xf32>
    %379 = vector.extract_strided_slice %367 {offsets = [0, 16], sizes = [4, 16], strides = [1, 1]} : vector<4x48xf32> to vector<4x16xf32>
    %380 = arith.addf %378, %379 : vector<4x16xf32>
    %381 = arith.negf %380 : vector<4x16xf32>
    %382 = math.exp %381 : vector<4x16xf32>
    %cst_161 = arith.constant 1.000000e+00 : f32
    %383 = vector.broadcast %cst_161 : f32 to vector<4x16xf32>
    %384 = arith.addf %383, %382 : vector<4x16xf32>
    %385 = arith.divf %383, %384 : vector<4x16xf32>
    %386 = vector.extract_strided_slice %369 {offsets = [0, 32], sizes = [4, 16], strides = [1, 1]} : vector<4x48xf32> to vector<4x16xf32>
    %387 = vector.extract_strided_slice %367 {offsets = [0, 32], sizes = [4, 16], strides = [1, 1]} : vector<4x48xf32> to vector<4x16xf32>
    %388 = arith.mulf %377, %387 : vector<4x16xf32>
    %389 = arith.addf %386, %388 : vector<4x16xf32>
    %390 = math.tanh %389 : vector<4x16xf32>
    %cst_162 = arith.constant 1.000000e+00 : f32
    %391 = vector.broadcast %cst_162 : f32 to vector<4x16xf32>
    %392 = arith.subf %391, %385 : vector<4x16xf32>
    %393 = arith.mulf %392, %390 : vector<4x16xf32>
    %394 = arith.mulf %385, %358 : vector<4x16xf32>
    %395 = arith.addf %393, %394 : vector<4x16xf32>
    %c0_163 = arith.constant 0 : index
    %c1_164 = arith.constant 1 : index
    %c0_165 = arith.constant 0 : index
    %396 = vector.load %arg8[%c0_163, %c1_164, %c0_165] : memref<4x8x16xf32, #tpu.memory_space<vmem>>, vector<4x1x16xf32>
    %397 = vector.shape_cast %396 : vector<4x1x16xf32> to vector<4x16xf32>
    %398 = vector.shape_cast %395 : vector<4x16xf32> to vector<4x1x16xf32>
    tpu.vector_store %arg8[%c0_163, %c1_164, %c0_165], %398 {strides = array<i32>} : memref<4x8x16xf32, #tpu.memory_space<vmem>>, vector<4x1x16xf32>,
    %399 = arith.truncf %395 : vector<4x16xf32> to vector<4x16xbf16>
    %c64_166 = arith.constant 64 : index
    %c0_167 = arith.constant 0 : index
    %400 = vector.load %arg2[%c64_166, %c0_167] : memref<160x64xbf16, #tpu.memory_space<vmem>>, vector<16x48xbf16>
    %cst_168 = arith.constant dense<0.000000e+00> : vector<4x48xf32>
    %401 = tpu.matmul %399, %400, %cst_168 {dimension_numbers = #tpu.dot_dimension_numbers<[1], [0], [0], [1], [0, 0, 1, 1], [], []>} : vector<4x16xbf16>, vector<16x48xbf16>, vector<4x48xf32> -> vector<4x48xf32>
    %c3_169 = arith.constant 3 : index
    %c0_170 = arith.constant 0 : index
    %402 = vector.load %arg3[%c3_169, %c0_170] : memref<8x64xf32, #tpu.memory_space<vmem>>, vector<1x48xf32>
    %403 = vector.broadcast %402 : vector<1x48xf32> to vector<4x48xf32>
    %404 = arith.addf %401, %403 : vector<4x48xf32>
    %c0_171 = arith.constant 0 : index
    %c2_172 = arith.constant 2 : index
    %c0_173 = arith.constant 0 : index
    %405 = vector.load %arg6[%c0_171, %c2_172, %c0_173] : memref<4x8x64xf32, #tpu.memory_space<vmem>>, vector<4x1x48xf32>
    %406 = vector.shape_cast %405 : vector<4x1x48xf32> to vector<4x48xf32>
    %407 = vector.extract_strided_slice %406 {offsets = [0, 0], sizes = [4, 16], strides = [1, 1]} : vector<4x48xf32> to vector<4x16xf32>
    %408 = vector.extract_strided_slice %404 {offsets = [0, 0], sizes = [4, 16], strides = [1, 1]} : vector<4x48xf32> to vector<4x16xf32>
    %409 = arith.addf %407, %408 : vector<4x16xf32>
    %410 = arith.negf %409 : vector<4x16xf32>
    %411 = math.exp %410 : vector<4x16xf32>
    %cst_174 = arith.constant 1.000000e+00 : f32
    %412 = vector.broadcast %cst_174 : f32 to vector<4x16xf32>
    %413 = arith.addf %412, %411 : vector<4x16xf32>
    %414 = arith.divf %412, %413 : vector<4x16xf32>
    %415 = vector.extract_strided_slice %406 {offsets = [0, 16], sizes = [4, 16], strides = [1, 1]} : vector<4x48xf32> to vector<4x16xf32>
    %416 = vector.extract_strided_slice %404 {offsets = [0, 16], sizes = [4, 16], strides = [1, 1]} : vector<4x48xf32> to vector<4x16xf32>
    %417 = arith.addf %415, %416 : vector<4x16xf32>
    %418 = arith.negf %417 : vector<4x16xf32>
    %419 = math.exp %418 : vector<4x16xf32>
    %cst_175 = arith.constant 1.000000e+00 : f32
    %420 = vector.broadcast %cst_175 : f32 to vector<4x16xf32>
    %421 = arith.addf %420, %419 : vector<4x16xf32>
    %422 = arith.divf %420, %421 : vector<4x16xf32>
    %423 = vector.extract_strided_slice %406 {offsets = [0, 32], sizes = [4, 16], strides = [1, 1]} : vector<4x48xf32> to vector<4x16xf32>
    %424 = vector.extract_strided_slice %404 {offsets = [0, 32], sizes = [4, 16], strides = [1, 1]} : vector<4x48xf32> to vector<4x16xf32>
    %425 = arith.mulf %414, %424 : vector<4x16xf32>
    %426 = arith.addf %423, %425 : vector<4x16xf32>
    %427 = math.tanh %426 : vector<4x16xf32>
    %cst_176 = arith.constant 1.000000e+00 : f32
    %428 = vector.broadcast %cst_176 : f32 to vector<4x16xf32>
    %429 = arith.subf %428, %422 : vector<4x16xf32>
    %430 = arith.mulf %429, %427 : vector<4x16xf32>
    %431 = arith.mulf %422, %395 : vector<4x16xf32>
    %432 = arith.addf %430, %431 : vector<4x16xf32>
    %c0_177 = arith.constant 0 : index
    %c2_178 = arith.constant 2 : index
    %c0_179 = arith.constant 0 : index
    %433 = vector.load %arg8[%c0_177, %c2_178, %c0_179] : memref<4x8x16xf32, #tpu.memory_space<vmem>>, vector<4x1x16xf32>
    %434 = vector.shape_cast %433 : vector<4x1x16xf32> to vector<4x16xf32>
    %435 = vector.shape_cast %432 : vector<4x16xf32> to vector<4x1x16xf32>
    tpu.vector_store %arg8[%c0_177, %c2_178, %c0_179], %435 {strides = array<i32>} : memref<4x8x16xf32, #tpu.memory_space<vmem>>, vector<4x1x16xf32>,
    %436 = arith.truncf %432 : vector<4x16xf32> to vector<4x16xbf16>
    %c64_180 = arith.constant 64 : index
    %c0_181 = arith.constant 0 : index
    %437 = vector.load %arg2[%c64_180, %c0_181] : memref<160x64xbf16, #tpu.memory_space<vmem>>, vector<16x48xbf16>
    %cst_182 = arith.constant dense<0.000000e+00> : vector<4x48xf32>
    %438 = tpu.matmul %436, %437, %cst_182 {dimension_numbers = #tpu.dot_dimension_numbers<[1], [0], [0], [1], [0, 0, 1, 1], [], []>} : vector<4x16xbf16>, vector<16x48xbf16>, vector<4x48xf32> -> vector<4x48xf32>
    %c3_183 = arith.constant 3 : index
    %c0_184 = arith.constant 0 : index
    %439 = vector.load %arg3[%c3_183, %c0_184] : memref<8x64xf32, #tpu.memory_space<vmem>>, vector<1x48xf32>
    %440 = vector.broadcast %439 : vector<1x48xf32> to vector<4x48xf32>
    %441 = arith.addf %438, %440 : vector<4x48xf32>
    %c0_185 = arith.constant 0 : index
    %c3_186 = arith.constant 3 : index
    %c0_187 = arith.constant 0 : index
    %442 = vector.load %arg6[%c0_185, %c3_186, %c0_187] : memref<4x8x64xf32, #tpu.memory_space<vmem>>, vector<4x1x48xf32>
    %443 = vector.shape_cast %442 : vector<4x1x48xf32> to vector<4x48xf32>
    %444 = vector.extract_strided_slice %443 {offsets = [0, 0], sizes = [4, 16], strides = [1, 1]} : vector<4x48xf32> to vector<4x16xf32>
    %445 = vector.extract_strided_slice %441 {offsets = [0, 0], sizes = [4, 16], strides = [1, 1]} : vector<4x48xf32> to vector<4x16xf32>
    %446 = arith.addf %444, %445 : vector<4x16xf32>
    %447 = arith.negf %446 : vector<4x16xf32>
    %448 = math.exp %447 : vector<4x16xf32>
    %cst_188 = arith.constant 1.000000e+00 : f32
    %449 = vector.broadcast %cst_188 : f32 to vector<4x16xf32>
    %450 = arith.addf %449, %448 : vector<4x16xf32>
    %451 = arith.divf %449, %450 : vector<4x16xf32>
    %452 = vector.extract_strided_slice %443 {offsets = [0, 16], sizes = [4, 16], strides = [1, 1]} : vector<4x48xf32> to vector<4x16xf32>
    %453 = vector.extract_strided_slice %441 {offsets = [0, 16], sizes = [4, 16], strides = [1, 1]} : vector<4x48xf32> to vector<4x16xf32>
    %454 = arith.addf %452, %453 : vector<4x16xf32>
    %455 = arith.negf %454 : vector<4x16xf32>
    %456 = math.exp %455 : vector<4x16xf32>
    %cst_189 = arith.constant 1.000000e+00 : f32
    %457 = vector.broadcast %cst_189 : f32 to vector<4x16xf32>
    %458 = arith.addf %457, %456 : vector<4x16xf32>
    %459 = arith.divf %457, %458 : vector<4x16xf32>
    %460 = vector.extract_strided_slice %443 {offsets = [0, 32], sizes = [4, 16], strides = [1, 1]} : vector<4x48xf32> to vector<4x16xf32>
    %461 = vector.extract_strided_slice %441 {offsets = [0, 32], sizes = [4, 16], strides = [1, 1]} : vector<4x48xf32> to vector<4x16xf32>
    %462 = arith.mulf %451, %461 : vector<4x16xf32>
    %463 = arith.addf %460, %462 : vector<4x16xf32>
    %464 = math.tanh %463 : vector<4x16xf32>
    %cst_190 = arith.constant 1.000000e+00 : f32
    %465 = vector.broadcast %cst_190 : f32 to vector<4x16xf32>
    %466 = arith.subf %465, %459 : vector<4x16xf32>
    %467 = arith.mulf %466, %464 : vector<4x16xf32>
    %468 = arith.mulf %459, %432 : vector<4x16xf32>
    %469 = arith.addf %467, %468 : vector<4x16xf32>
    %c0_191 = arith.constant 0 : index
    %c3_192 = arith.constant 3 : index
    %c0_193 = arith.constant 0 : index
    %470 = vector.load %arg8[%c0_191, %c3_192, %c0_193] : memref<4x8x16xf32, #tpu.memory_space<vmem>>, vector<4x1x16xf32>
    %471 = vector.shape_cast %470 : vector<4x1x16xf32> to vector<4x16xf32>
    %472 = vector.shape_cast %469 : vector<4x16xf32> to vector<4x1x16xf32>
    tpu.vector_store %arg8[%c0_191, %c3_192, %c0_193], %472 {strides = array<i32>} : memref<4x8x16xf32, #tpu.memory_space<vmem>>, vector<4x1x16xf32>,
    %473 = arith.truncf %469 : vector<4x16xf32> to vector<4x16xbf16>
    %c64_194 = arith.constant 64 : index
    %c0_195 = arith.constant 0 : index
    %474 = vector.load %arg2[%c64_194, %c0_195] : memref<160x64xbf16, #tpu.memory_space<vmem>>, vector<16x48xbf16>
    %cst_196 = arith.constant dense<0.000000e+00> : vector<4x48xf32>
    %475 = tpu.matmul %473, %474, %cst_196 {dimension_numbers = #tpu.dot_dimension_numbers<[1], [0], [0], [1], [0, 0, 1, 1], [], []>} : vector<4x16xbf16>, vector<16x48xbf16>, vector<4x48xf32> -> vector<4x48xf32>
    %c3_197 = arith.constant 3 : index
    %c0_198 = arith.constant 0 : index
    %476 = vector.load %arg3[%c3_197, %c0_198] : memref<8x64xf32, #tpu.memory_space<vmem>>, vector<1x48xf32>
    %477 = vector.broadcast %476 : vector<1x48xf32> to vector<4x48xf32>
    %478 = arith.addf %475, %477 : vector<4x48xf32>
    %c0_199 = arith.constant 0 : index
    %c4_200 = arith.constant 4 : index
    %c0_201 = arith.constant 0 : index
    %479 = vector.load %arg6[%c0_199, %c4_200, %c0_201] : memref<4x8x64xf32, #tpu.memory_space<vmem>>, vector<4x1x48xf32>
    %480 = vector.shape_cast %479 : vector<4x1x48xf32> to vector<4x48xf32>
    %481 = vector.extract_strided_slice %480 {offsets = [0, 0], sizes = [4, 16], strides = [1, 1]} : vector<4x48xf32> to vector<4x16xf32>
    %482 = vector.extract_strided_slice %478 {offsets = [0, 0], sizes = [4, 16], strides = [1, 1]} : vector<4x48xf32> to vector<4x16xf32>
    %483 = arith.addf %481, %482 : vector<4x16xf32>
    %484 = arith.negf %483 : vector<4x16xf32>
    %485 = math.exp %484 : vector<4x16xf32>
    %cst_202 = arith.constant 1.000000e+00 : f32
    %486 = vector.broadcast %cst_202 : f32 to vector<4x16xf32>
    %487 = arith.addf %486, %485 : vector<4x16xf32>
    %488 = arith.divf %486, %487 : vector<4x16xf32>
    %489 = vector.extract_strided_slice %480 {offsets = [0, 16], sizes = [4, 16], strides = [1, 1]} : vector<4x48xf32> to vector<4x16xf32>
    %490 = vector.extract_strided_slice %478 {offsets = [0, 16], sizes = [4, 16], strides = [1, 1]} : vector<4x48xf32> to vector<4x16xf32>
    %491 = arith.addf %489, %490 : vector<4x16xf32>
    %492 = arith.negf %491 : vector<4x16xf32>
    %493 = math.exp %492 : vector<4x16xf32>
    %cst_203 = arith.constant 1.000000e+00 : f32
    %494 = vector.broadcast %cst_203 : f32 to vector<4x16xf32>
    %495 = arith.addf %494, %493 : vector<4x16xf32>
    %496 = arith.divf %494, %495 : vector<4x16xf32>
    %497 = vector.extract_strided_slice %480 {offsets = [0, 32], sizes = [4, 16], strides = [1, 1]} : vector<4x48xf32> to vector<4x16xf32>
    %498 = vector.extract_strided_slice %478 {offsets = [0, 32], sizes = [4, 16], strides = [1, 1]} : vector<4x48xf32> to vector<4x16xf32>
    %499 = arith.mulf %488, %498 : vector<4x16xf32>
    %500 = arith.addf %497, %499 : vector<4x16xf32>
    %501 = math.tanh %500 : vector<4x16xf32>
    %cst_204 = arith.constant 1.000000e+00 : f32
    %502 = vector.broadcast %cst_204 : f32 to vector<4x16xf32>
    %503 = arith.subf %502, %496 : vector<4x16xf32>
    %504 = arith.mulf %503, %501 : vector<4x16xf32>
    %505 = arith.mulf %496, %469 : vector<4x16xf32>
    %506 = arith.addf %504, %505 : vector<4x16xf32>
    %c0_205 = arith.constant 0 : index
    %c4_206 = arith.constant 4 : index
    %c0_207 = arith.constant 0 : index
    %507 = vector.load %arg8[%c0_205, %c4_206, %c0_207] : memref<4x8x16xf32, #tpu.memory_space<vmem>>, vector<4x1x16xf32>
    %508 = vector.shape_cast %507 : vector<4x1x16xf32> to vector<4x16xf32>
    %509 = vector.shape_cast %506 : vector<4x16xf32> to vector<4x1x16xf32>
    tpu.vector_store %arg8[%c0_205, %c4_206, %c0_207], %509 {strides = array<i32>} : memref<4x8x16xf32, #tpu.memory_space<vmem>>, vector<4x1x16xf32>,
    %510 = arith.truncf %506 : vector<4x16xf32> to vector<4x16xbf16>
    %c64_208 = arith.constant 64 : index
    %c0_209 = arith.constant 0 : index
    %511 = vector.load %arg2[%c64_208, %c0_209] : memref<160x64xbf16, #tpu.memory_space<vmem>>, vector<16x48xbf16>
    %cst_210 = arith.constant dense<0.000000e+00> : vector<4x48xf32>
    %512 = tpu.matmul %510, %511, %cst_210 {dimension_numbers = #tpu.dot_dimension_numbers<[1], [0], [0], [1], [0, 0, 1, 1], [], []>} : vector<4x16xbf16>, vector<16x48xbf16>, vector<4x48xf32> -> vector<4x48xf32>
    %c3_211 = arith.constant 3 : index
    %c0_212 = arith.constant 0 : index
    %513 = vector.load %arg3[%c3_211, %c0_212] : memref<8x64xf32, #tpu.memory_space<vmem>>, vector<1x48xf32>
    %514 = vector.broadcast %513 : vector<1x48xf32> to vector<4x48xf32>
    %515 = arith.addf %512, %514 : vector<4x48xf32>
    %c0_213 = arith.constant 0 : index
    %c5_214 = arith.constant 5 : index
    %c0_215 = arith.constant 0 : index
    %516 = vector.load %arg6[%c0_213, %c5_214, %c0_215] : memref<4x8x64xf32, #tpu.memory_space<vmem>>, vector<4x1x48xf32>
    %517 = vector.shape_cast %516 : vector<4x1x48xf32> to vector<4x48xf32>
    %518 = vector.extract_strided_slice %517 {offsets = [0, 0], sizes = [4, 16], strides = [1, 1]} : vector<4x48xf32> to vector<4x16xf32>
    %519 = vector.extract_strided_slice %515 {offsets = [0, 0], sizes = [4, 16], strides = [1, 1]} : vector<4x48xf32> to vector<4x16xf32>
    %520 = arith.addf %518, %519 : vector<4x16xf32>
    %521 = arith.negf %520 : vector<4x16xf32>
    %522 = math.exp %521 : vector<4x16xf32>
    %cst_216 = arith.constant 1.000000e+00 : f32
    %523 = vector.broadcast %cst_216 : f32 to vector<4x16xf32>
    %524 = arith.addf %523, %522 : vector<4x16xf32>
    %525 = arith.divf %523, %524 : vector<4x16xf32>
    %526 = vector.extract_strided_slice %517 {offsets = [0, 16], sizes = [4, 16], strides = [1, 1]} : vector<4x48xf32> to vector<4x16xf32>
    %527 = vector.extract_strided_slice %515 {offsets = [0, 16], sizes = [4, 16], strides = [1, 1]} : vector<4x48xf32> to vector<4x16xf32>
    %528 = arith.addf %526, %527 : vector<4x16xf32>
    %529 = arith.negf %528 : vector<4x16xf32>
    %530 = math.exp %529 : vector<4x16xf32>
    %cst_217 = arith.constant 1.000000e+00 : f32
    %531 = vector.broadcast %cst_217 : f32 to vector<4x16xf32>
    %532 = arith.addf %531, %530 : vector<4x16xf32>
    %533 = arith.divf %531, %532 : vector<4x16xf32>
    %534 = vector.extract_strided_slice %517 {offsets = [0, 32], sizes = [4, 16], strides = [1, 1]} : vector<4x48xf32> to vector<4x16xf32>
    %535 = vector.extract_strided_slice %515 {offsets = [0, 32], sizes = [4, 16], strides = [1, 1]} : vector<4x48xf32> to vector<4x16xf32>
    %536 = arith.mulf %525, %535 : vector<4x16xf32>
    %537 = arith.addf %534, %536 : vector<4x16xf32>
    %538 = math.tanh %537 : vector<4x16xf32>
    %cst_218 = arith.constant 1.000000e+00 : f32
    %539 = vector.broadcast %cst_218 : f32 to vector<4x16xf32>
    %540 = arith.subf %539, %533 : vector<4x16xf32>
    %541 = arith.mulf %540, %538 : vector<4x16xf32>
    %542 = arith.mulf %533, %506 : vector<4x16xf32>
    %543 = arith.addf %541, %542 : vector<4x16xf32>
    %c0_219 = arith.constant 0 : index
    %c5_220 = arith.constant 5 : index
    %c0_221 = arith.constant 0 : index
    %544 = vector.load %arg8[%c0_219, %c5_220, %c0_221] : memref<4x8x16xf32, #tpu.memory_space<vmem>>, vector<4x1x16xf32>
    %545 = vector.shape_cast %544 : vector<4x1x16xf32> to vector<4x16xf32>
    %546 = vector.shape_cast %543 : vector<4x16xf32> to vector<4x1x16xf32>
    tpu.vector_store %arg8[%c0_219, %c5_220, %c0_221], %546 {strides = array<i32>} : memref<4x8x16xf32, #tpu.memory_space<vmem>>, vector<4x1x16xf32>,
    %547 = arith.truncf %543 : vector<4x16xf32> to vector<4x16xbf16>
    %c64_222 = arith.constant 64 : index
    %c0_223 = arith.constant 0 : index
    %548 = vector.load %arg2[%c64_222, %c0_223] : memref<160x64xbf16, #tpu.memory_space<vmem>>, vector<16x48xbf16>
    %cst_224 = arith.constant dense<0.000000e+00> : vector<4x48xf32>
    %549 = tpu.matmul %547, %548, %cst_224 {dimension_numbers = #tpu.dot_dimension_numbers<[1], [0], [0], [1], [0, 0, 1, 1], [], []>} : vector<4x16xbf16>, vector<16x48xbf16>, vector<4x48xf32> -> vector<4x48xf32>
    %c3_225 = arith.constant 3 : index
    %c0_226 = arith.constant 0 : index
    %550 = vector.load %arg3[%c3_225, %c0_226] : memref<8x64xf32, #tpu.memory_space<vmem>>, vector<1x48xf32>
    %551 = vector.broadcast %550 : vector<1x48xf32> to vector<4x48xf32>
    %552 = arith.addf %549, %551 : vector<4x48xf32>
    %c0_227 = arith.constant 0 : index
    %c6_228 = arith.constant 6 : index
    %c0_229 = arith.constant 0 : index
    %553 = vector.load %arg6[%c0_227, %c6_228, %c0_229] : memref<4x8x64xf32, #tpu.memory_space<vmem>>, vector<4x1x48xf32>
    %554 = vector.shape_cast %553 : vector<4x1x48xf32> to vector<4x48xf32>
    %555 = vector.extract_strided_slice %554 {offsets = [0, 0], sizes = [4, 16], strides = [1, 1]} : vector<4x48xf32> to vector<4x16xf32>
    %556 = vector.extract_strided_slice %552 {offsets = [0, 0], sizes = [4, 16], strides = [1, 1]} : vector<4x48xf32> to vector<4x16xf32>
    %557 = arith.addf %555, %556 : vector<4x16xf32>
    %558 = arith.negf %557 : vector<4x16xf32>
    %559 = math.exp %558 : vector<4x16xf32>
    %cst_230 = arith.constant 1.000000e+00 : f32
    %560 = vector.broadcast %cst_230 : f32 to vector<4x16xf32>
    %561 = arith.addf %560, %559 : vector<4x16xf32>
    %562 = arith.divf %560, %561 : vector<4x16xf32>
    %563 = vector.extract_strided_slice %554 {offsets = [0, 16], sizes = [4, 16], strides = [1, 1]} : vector<4x48xf32> to vector<4x16xf32>
    %564 = vector.extract_strided_slice %552 {offsets = [0, 16], sizes = [4, 16], strides = [1, 1]} : vector<4x48xf32> to vector<4x16xf32>
    %565 = arith.addf %563, %564 : vector<4x16xf32>
    %566 = arith.negf %565 : vector<4x16xf32>
    %567 = math.exp %566 : vector<4x16xf32>
    %cst_231 = arith.constant 1.000000e+00 : f32
    %568 = vector.broadcast %cst_231 : f32 to vector<4x16xf32>
    %569 = arith.addf %568, %567 : vector<4x16xf32>
    %570 = arith.divf %568, %569 : vector<4x16xf32>
    %571 = vector.extract_strided_slice %554 {offsets = [0, 32], sizes = [4, 16], strides = [1, 1]} : vector<4x48xf32> to vector<4x16xf32>
    %572 = vector.extract_strided_slice %552 {offsets = [0, 32], sizes = [4, 16], strides = [1, 1]} : vector<4x48xf32> to vector<4x16xf32>
    %573 = arith.mulf %562, %572 : vector<4x16xf32>
    %574 = arith.addf %571, %573 : vector<4x16xf32>
    %575 = math.tanh %574 : vector<4x16xf32>
    %cst_232 = arith.constant 1.000000e+00 : f32
    %576 = vector.broadcast %cst_232 : f32 to vector<4x16xf32>
    %577 = arith.subf %576, %570 : vector<4x16xf32>
    %578 = arith.mulf %577, %575 : vector<4x16xf32>
    %579 = arith.mulf %570, %543 : vector<4x16xf32>
    %580 = arith.addf %578, %579 : vector<4x16xf32>
    %c0_233 = arith.constant 0 : index
    %c6_234 = arith.constant 6 : index
    %c0_235 = arith.constant 0 : index
    %581 = vector.load %arg8[%c0_233, %c6_234, %c0_235] : memref<4x8x16xf32, #tpu.memory_space<vmem>>, vector<4x1x16xf32>
    %582 = vector.shape_cast %581 : vector<4x1x16xf32> to vector<4x16xf32>
    %583 = vector.shape_cast %580 : vector<4x16xf32> to vector<4x1x16xf32>
    tpu.vector_store %arg8[%c0_233, %c6_234, %c0_235], %583 {strides = array<i32>} : memref<4x8x16xf32, #tpu.memory_space<vmem>>, vector<4x1x16xf32>,
    %584 = arith.truncf %580 : vector<4x16xf32> to vector<4x16xbf16>
    %c64_236 = arith.constant 64 : index
    %c0_237 = arith.constant 0 : index
    %585 = vector.load %arg2[%c64_236, %c0_237] : memref<160x64xbf16, #tpu.memory_space<vmem>>, vector<16x48xbf16>
    %cst_238 = arith.constant dense<0.000000e+00> : vector<4x48xf32>
    %586 = tpu.matmul %584, %585, %cst_238 {dimension_numbers = #tpu.dot_dimension_numbers<[1], [0], [0], [1], [0, 0, 1, 1], [], []>} : vector<4x16xbf16>, vector<16x48xbf16>, vector<4x48xf32> -> vector<4x48xf32>
    %c3_239 = arith.constant 3 : index
    %c0_240 = arith.constant 0 : index
    %587 = vector.load %arg3[%c3_239, %c0_240] : memref<8x64xf32, #tpu.memory_space<vmem>>, vector<1x48xf32>
    %588 = vector.broadcast %587 : vector<1x48xf32> to vector<4x48xf32>
    %589 = arith.addf %586, %588 : vector<4x48xf32>
    %c0_241 = arith.constant 0 : index
    %c7_242 = arith.constant 7 : index
    %c0_243 = arith.constant 0 : index
    %590 = vector.load %arg6[%c0_241, %c7_242, %c0_243] : memref<4x8x64xf32, #tpu.memory_space<vmem>>, vector<4x1x48xf32>
    %591 = vector.shape_cast %590 : vector<4x1x48xf32> to vector<4x48xf32>
    %592 = vector.extract_strided_slice %591 {offsets = [0, 0], sizes = [4, 16], strides = [1, 1]} : vector<4x48xf32> to vector<4x16xf32>
    %593 = vector.extract_strided_slice %589 {offsets = [0, 0], sizes = [4, 16], strides = [1, 1]} : vector<4x48xf32> to vector<4x16xf32>
    %594 = arith.addf %592, %593 : vector<4x16xf32>
    %595 = arith.negf %594 : vector<4x16xf32>
    %596 = math.exp %595 : vector<4x16xf32>
    %cst_244 = arith.constant 1.000000e+00 : f32
    %597 = vector.broadcast %cst_244 : f32 to vector<4x16xf32>
    %598 = arith.addf %597, %596 : vector<4x16xf32>
    %599 = arith.divf %597, %598 : vector<4x16xf32>
    %600 = vector.extract_strided_slice %591 {offsets = [0, 16], sizes = [4, 16], strides = [1, 1]} : vector<4x48xf32> to vector<4x16xf32>
    %601 = vector.extract_strided_slice %589 {offsets = [0, 16], sizes = [4, 16], strides = [1, 1]} : vector<4x48xf32> to vector<4x16xf32>
    %602 = arith.addf %600, %601 : vector<4x16xf32>
    %603 = arith.negf %602 : vector<4x16xf32>
    %604 = math.exp %603 : vector<4x16xf32>
    %cst_245 = arith.constant 1.000000e+00 : f32
    %605 = vector.broadcast %cst_245 : f32 to vector<4x16xf32>
    %606 = arith.addf %605, %604 : vector<4x16xf32>
    %607 = arith.divf %605, %606 : vector<4x16xf32>
    %608 = vector.extract_strided_slice %591 {offsets = [0, 32], sizes = [4, 16], strides = [1, 1]} : vector<4x48xf32> to vector<4x16xf32>
    %609 = vector.extract_strided_slice %589 {offsets = [0, 32], sizes = [4, 16], strides = [1, 1]} : vector<4x48xf32> to vector<4x16xf32>
    %610 = arith.mulf %599, %609 : vector<4x16xf32>
    %611 = arith.addf %608, %610 : vector<4x16xf32>
    %612 = math.tanh %611 : vector<4x16xf32>
    %cst_246 = arith.constant 1.000000e+00 : f32
    %613 = vector.broadcast %cst_246 : f32 to vector<4x16xf32>
    %614 = arith.subf %613, %607 : vector<4x16xf32>
    %615 = arith.mulf %614, %612 : vector<4x16xf32>
    %616 = arith.mulf %607, %580 : vector<4x16xf32>
    %617 = arith.addf %615, %616 : vector<4x16xf32>
    %c0_247 = arith.constant 0 : index
    %c7_248 = arith.constant 7 : index
    %c0_249 = arith.constant 0 : index
    %618 = vector.load %arg8[%c0_247, %c7_248, %c0_249] : memref<4x8x16xf32, #tpu.memory_space<vmem>>, vector<4x1x16xf32>
    %619 = vector.shape_cast %618 : vector<4x1x16xf32> to vector<4x16xf32>
    %620 = vector.shape_cast %617 : vector<4x16xf32> to vector<4x1x16xf32>
    tpu.vector_store %arg8[%c0_247, %c7_248, %c0_249], %620 {strides = array<i32>} : memref<4x8x16xf32, #tpu.memory_space<vmem>>, vector<4x1x16xf32>,
    %c0_250 = arith.constant 0 : index
    %c0_251 = arith.constant 0 : index
    %c0_252 = arith.constant 0 : index
    %621 = vector.load %arg8[%c0_250, %c0_251, %c0_252] : memref<4x8x16xf32, #tpu.memory_space<vmem>>, vector<4x8x16xf32>
    %622 = vector.shape_cast %621 : vector<4x8x16xf32> to vector<32x16xf32>
    %623 = arith.truncf %622 : vector<32x16xf32> to vector<32x16xbf16>
    %c80 = arith.constant 80 : index
    %c0_253 = arith.constant 0 : index
    %624 = vector.load %arg2[%c80, %c0_253] : memref<160x64xbf16, #tpu.memory_space<vmem>>, vector<16x48xbf16>
    %cst_254 = arith.constant dense<0.000000e+00> : vector<32x48xf32>
    %625 = tpu.matmul %623, %624, %cst_254 {dimension_numbers = #tpu.dot_dimension_numbers<[1], [0], [0], [1], [0, 0, 1, 1], [], []>} : vector<32x16xbf16>, vector<16x48xbf16>, vector<32x48xf32> -> vector<32x48xf32>
    %c4_255 = arith.constant 4 : index
    %c0_256 = arith.constant 0 : index
    %626 = vector.load %arg3[%c4_255, %c0_256] : memref<8x64xf32, #tpu.memory_space<vmem>>, vector<1x48xf32>
    %627 = vector.broadcast %626 : vector<1x48xf32> to vector<32x48xf32>
    %628 = arith.addf %625, %627 : vector<32x48xf32>
    %629 = vector.shape_cast %628 : vector<32x48xf32> to vector<4x8x48xf32>
    %630 = vector.extract_strided_slice %629 {offsets = [0, 7, 0], sizes = [4, 1, 16], strides = [1, 1, 1]} : vector<4x8x48xf32> to vector<4x1x16xf32>
    %631 = vector.shape_cast %630 : vector<4x1x16xf32> to vector<4x16xf32>
    %cst_257 = arith.constant 0.353553385 : f32
    %632 = vector.broadcast %cst_257 : f32 to vector<4x16xf32>
    %633 = arith.mulf %631, %632 : vector<4x16xf32>
    %634 = vector.extract_strided_slice %629 {offsets = [0, 0, 16], sizes = [4, 8, 16], strides = [1, 1, 1]} : vector<4x8x48xf32> to vector<4x8x16xf32>
    %635 = vector.extract_strided_slice %629 {offsets = [0, 0, 32], sizes = [4, 8, 16], strides = [1, 1, 1]} : vector<4x8x48xf32> to vector<4x8x16xf32>
    %636 = vector.extract_strided_slice %633 {offsets = [0, 0], sizes = [4, 8], strides = [1, 1]} : vector<4x16xf32> to vector<4x8xf32>
    %637 = vector.shape_cast %636 : vector<4x8xf32> to vector<4x1x8xf32>
    %638 = vector.extract_strided_slice %634 {offsets = [0, 0, 0], sizes = [4, 8, 8], strides = [1, 1, 1]} : vector<4x8x16xf32> to vector<4x8x8xf32>
    %639 = vector.broadcast %637 : vector<4x1x8xf32> to vector<4x8x8xf32>
    %640 = arith.mulf %639, %638 : vector<4x8x8xf32>
    %cst_258 = arith.constant dense<0.000000e+00> : vector<4x8xf32>
    %641 = vector.multi_reduction <add>, %640, %cst_258 [2] : vector<4x8x8xf32> to vector<4x8xf32>
    %cst_259 = arith.constant dense<0xFF800000> : vector<4xf32>
    %642 = vector.multi_reduction <maximumf>, %641, %cst_259 [1] : vector<4x8xf32> to vector<4xf32>
    %cst_260 = arith.constant 0xFF800000 : f32
    %643 = vector.broadcast %cst_260 : f32 to vector<4xf32>
    %644 = arith.maximumf %643, %642 : vector<4xf32>
    %645 = vector.shape_cast %644 : vector<4xf32> to vector<4x1xf32>
    %646 = vector.broadcast %645 : vector<4x1xf32> to vector<4x8xf32>
    %647 = arith.subf %641, %646 : vector<4x8xf32>
    %648 = math.exp %647 : vector<4x8xf32>
    %cst_261 = arith.constant dense<0.000000e+00> : vector<4xf32>
    %649 = vector.multi_reduction <add>, %648, %cst_261 [1] : vector<4x8xf32> to vector<4xf32>
    %650 = vector.shape_cast %649 : vector<4xf32> to vector<4x1xf32>
    %651 = vector.broadcast %650 : vector<4x1xf32> to vector<4x8xf32>
    %652 = arith.divf %648, %651 : vector<4x8xf32>
    %653 = vector.shape_cast %652 : vector<4x8xf32> to vector<4x8x1xf32>
    %654 = vector.extract_strided_slice %635 {offsets = [0, 0, 0], sizes = [4, 8, 8], strides = [1, 1, 1]} : vector<4x8x16xf32> to vector<4x8x8xf32>
    %655 = vector.broadcast %653 : vector<4x8x1xf32> to vector<4x8x8xf32>
    %656 = arith.mulf %655, %654 : vector<4x8x8xf32>
    %cst_262 = arith.constant dense<0.000000e+00> : vector<4x8xf32>
    %657 = vector.multi_reduction <add>, %656, %cst_262 [1] : vector<4x8x8xf32> to vector<4x8xf32>
    %658 = vector.extract_strided_slice %633 {offsets = [0, 8], sizes = [4, 8], strides = [1, 1]} : vector<4x16xf32> to vector<4x8xf32>
    %659 = vector.shape_cast %658 : vector<4x8xf32> to vector<4x1x8xf32>
    %660 = vector.extract_strided_slice %634 {offsets = [0, 0, 8], sizes = [4, 8, 8], strides = [1, 1, 1]} : vector<4x8x16xf32> to vector<4x8x8xf32>
    %661 = vector.broadcast %659 : vector<4x1x8xf32> to vector<4x8x8xf32>
    %662 = arith.mulf %661, %660 : vector<4x8x8xf32>
    %cst_263 = arith.constant dense<0.000000e+00> : vector<4x8xf32>
    %663 = vector.multi_reduction <add>, %662, %cst_263 [2] : vector<4x8x8xf32> to vector<4x8xf32>
    %cst_264 = arith.constant dense<0xFF800000> : vector<4xf32>
    %664 = vector.multi_reduction <maximumf>, %663, %cst_264 [1] : vector<4x8xf32> to vector<4xf32>
    %cst_265 = arith.constant 0xFF800000 : f32
    %665 = vector.broadcast %cst_265 : f32 to vector<4xf32>
    %666 = arith.maximumf %665, %664 : vector<4xf32>
    %667 = vector.shape_cast %666 : vector<4xf32> to vector<4x1xf32>
    %668 = vector.broadcast %667 : vector<4x1xf32> to vector<4x8xf32>
    %669 = arith.subf %663, %668 : vector<4x8xf32>
    %670 = math.exp %669 : vector<4x8xf32>
    %cst_266 = arith.constant dense<0.000000e+00> : vector<4xf32>
    %671 = vector.multi_reduction <add>, %670, %cst_266 [1] : vector<4x8xf32> to vector<4xf32>
    %672 = vector.shape_cast %671 : vector<4xf32> to vector<4x1xf32>
    %673 = vector.broadcast %672 : vector<4x1xf32> to vector<4x8xf32>
    %674 = arith.divf %670, %673 : vector<4x8xf32>
    %675 = vector.shape_cast %674 : vector<4x8xf32> to vector<4x8x1xf32>
    %676 = vector.extract_strided_slice %635 {offsets = [0, 0, 8], sizes = [4, 8, 8], strides = [1, 1, 1]} : vector<4x8x16xf32> to vector<4x8x8xf32>
    %677 = vector.broadcast %675 : vector<4x8x1xf32> to vector<4x8x8xf32>
    %678 = arith.mulf %677, %676 : vector<4x8x8xf32>
    %cst_267 = arith.constant dense<0.000000e+00> : vector<4x8xf32>
    %679 = vector.multi_reduction <add>, %678, %cst_267 [1] : vector<4x8x8xf32> to vector<4x8xf32>
    %680 = tpu.concatenate %657, %679 in 1 : vector<4x8xf32>, vector<4x8xf32> -> vector<4x16xf32>
    %681 = arith.truncf %680 : vector<4x16xf32> to vector<4x16xbf16>
    %c96 = arith.constant 96 : index
    %c0_268 = arith.constant 0 : index
    %682 = vector.load %arg2[%c96, %c0_268] : memref<160x64xbf16, #tpu.memory_space<vmem>>, vector<16x16xbf16>
    %cst_269 = arith.constant dense<0.000000e+00> : vector<4x16xf32>
    %683 = tpu.matmul %681, %682, %cst_269 {dimension_numbers = #tpu.dot_dimension_numbers<[1], [0], [0], [1], [0, 0, 1, 1], [], []>} : vector<4x16xbf16>, vector<16x16xbf16>, vector<4x16xf32> -> vector<4x16xf32>
    %c5_270 = arith.constant 5 : index
    %c0_271 = arith.constant 0 : index
    %684 = vector.load %arg3[%c5_270, %c0_271] : memref<8x64xf32, #tpu.memory_space<vmem>>, vector<1x16xf32>
    %685 = vector.broadcast %684 : vector<1x16xf32> to vector<4x16xf32>
    %686 = arith.addf %683, %685 : vector<4x16xf32>
    %687 = arith.truncf %686 : vector<4x16xf32> to vector<4x16xbf16>
    %c112 = arith.constant 112 : index
    %c0_272 = arith.constant 0 : index
    %688 = vector.load %arg2[%c112, %c0_272] : memref<160x64xbf16, #tpu.memory_space<vmem>>, vector<16x32xbf16>
    %cst_273 = arith.constant dense<0.000000e+00> : vector<4x32xf32>
    %689 = tpu.matmul %687, %688, %cst_273 {dimension_numbers = #tpu.dot_dimension_numbers<[1], [0], [0], [1], [0, 0, 1, 1], [], []>} : vector<4x16xbf16>, vector<16x32xbf16>, vector<4x32xf32> -> vector<4x32xf32>
    %c6_274 = arith.constant 6 : index
    %c0_275 = arith.constant 0 : index
    %690 = vector.load %arg3[%c6_274, %c0_275] : memref<8x64xf32, #tpu.memory_space<vmem>>, vector<1x32xf32>
    %691 = vector.broadcast %690 : vector<1x32xf32> to vector<4x32xf32>
    %692 = arith.addf %689, %691 : vector<4x32xf32>
    %cst_276 = arith.constant 0.000000e+00 : f32
    %693 = vector.broadcast %cst_276 : f32 to vector<4x32xf32>
    %694 = arith.maximumf %692, %693 : vector<4x32xf32>
    %695 = arith.truncf %694 : vector<4x32xf32> to vector<4x32xbf16>
    %c128 = arith.constant 128 : index
    %c0_277 = arith.constant 0 : index
    %696 = vector.load %arg2[%c128, %c0_277] : memref<160x64xbf16, #tpu.memory_space<vmem>>, vector<32x2xbf16>
    %cst_278 = arith.constant dense<0.000000e+00> : vector<4x2xf32>
    %697 = tpu.matmul %695, %696, %cst_278 {dimension_numbers = #tpu.dot_dimension_numbers<[1], [0], [0], [1], [0, 0, 1, 1], [], []>} : vector<4x32xbf16>, vector<32x2xbf16>, vector<4x2xf32> -> vector<4x2xf32>
    %c7_279 = arith.constant 7 : index
    %c0_280 = arith.constant 0 : index
    %698 = vector.load %arg3[%c7_279, %c0_280] : memref<8x64xf32, #tpu.memory_space<vmem>>, vector<1x2xf32>
    %699 = vector.broadcast %698 : vector<1x2xf32> to vector<4x2xf32>
    %700 = arith.addf %697, %699 : vector<4x2xf32>
    %c0_281 = arith.constant 0 : index
    %c0_282 = arith.constant 0 : index
    %c0_283 = arith.constant 0 : index
    %701 = vector.load %arg4[%c0_281, %c0_282, %c0_283] : memref<1x4x2xf32, #tpu.memory_space<vmem>>, vector<1x4x2xf32>
    %702 = vector.shape_cast %701 : vector<1x4x2xf32> to vector<4x2xf32>
    %703 = vector.shape_cast %700 : vector<4x2xf32> to vector<1x4x2xf32>
    tpu.vector_store %arg4[%c0_281, %c0_282, %c0_283], %703 {strides = array<i32>} : memref<1x4x2xf32, #tpu.memory_space<vmem>>, vector<1x4x2xf32>,
    return
  }
  func.func @transform_0(%arg0: i32) -> (i32, i32, i32) {
    %c0_i32 = arith.constant 0 : i32
    %c0_i32_0 = arith.constant 0 : i32
    %c0_i32_1 = arith.constant 0 : i32
    return %arg0, %c0_i32, %c0_i32_0 : i32, i32, i32
  }
  func.func @transform_1(%arg0: i32) -> (i32, i32) {
    %c0_i32 = arith.constant 0 : i32
    %c0_i32_0 = arith.constant 0 : i32
    %c0_i32_1 = arith.constant 0 : i32
    return %c0_i32, %c0_i32_0 : i32, i32
  }
  func.func @transform_2(%arg0: i32) -> (i32, i32) {
    %c0_i32 = arith.constant 0 : i32
    %c0_i32_0 = arith.constant 0 : i32
    %c0_i32_1 = arith.constant 0 : i32
    return %c0_i32, %c0_i32_0 : i32, i32
  }
  func.func @transform_3(%arg0: i32) -> (i32, i32, i32) {
    %c0_i32 = arith.constant 0 : i32
    %c0_i32_0 = arith.constant 0 : i32
    %c0_i32_1 = arith.constant 0 : i32
    return %arg0, %c0_i32, %c0_i32_0 : i32, i32, i32
  }
}

</mosaic_0001>

<bundles_post_ra>
// kernel: forward.1
= control target key start
LH: loop header
LB: loop body
LE: loop exit
PB: predicated region body
PF: predicated region fallthrough
CT: control target
= control target key end

     0   :  { %s5477_s12 = smov 0   ;;  %s6913_s0 = inlined_call_operand.vmem [shape: f32[8,8,5], index: 0, kind: input, shape index: {}]   ;;  %s6914_s1 = inlined_call_operand.vmem [shape: bf16[160,64], index: 1, kind: input, shape index: {}]   ;;  %s6915_s2 = inlined_call_operand.vmem [shape: f32[8,64], index: 2, kind: input, shape index: {}]   ;;  %s6916_s3 = inlined_call_operand.vmem [shape: f32[2,4,2], index: 3, kind: output, shape index: {}]  }
   0x1 LB: > { %s5483_s13 = sadd.s32 4294967295, %s5446_s12   ;;  %p4706_p0 = scmp.ge.s32.totalorder %s5446_s12, 1  ;;  %s5446_s12 = sphi %s5477_s12, %s13_s12  }
   0x2   : > { %p138_p1 = scmp.lt.s32.totalorder %s5446_s12, 3 }
   0x4   : > { %p139_p2 = pnand %p4706_p0, %p138_p1 }
   0x5   : > { %s4707_s22 = sshll.u32 (!%p139_p2), %s5483_s13, 2  ;;  %s5451_s8 = smov (!%p139_p2), 96  }
   0x6   : > { %142 = sbr.rel (%p139_p2) target bundleno = 11244 (0x2bec), region = 32  ;;  %p162_p3 = scmp.lt.s32.totalorder (!%p139_p2), %s4707_s22, 7 }
   0x7   : > { %s5452_s9 = smov (!%p139_p2), 16   ;;  %s5453_s10 = smov (!%p139_p2), 32  }
   0x8   : > { %s5454_s15 = smov (!%p139_p2), 80   ;;  %s5455_s11 = smov (!%p139_p2), 112  }
   0x9   : > { %p167_p4 = scmp.lt.s32.totalorder (!%p139_p2), %s5483_s13, 1 }
   0xb   : > { %v4712_v0 = vld [vmem:[%s6914_s1] sm:$0xc]  ;;  %v4897_v1 = vld [vmem:[%s6914_s1] sm:$0x10]  ;;  %vm224_vm0 = vcmask 1041408   ;;  %vm225_vm1 = vcmask 1042432  }
   0xc   : > { %v4713_v2 = vor.u32 %v4897_v1, %v4712_v0  ;;  %v194_v3 = vld [vmem:[%s6914_s1] sm:$0x7]  ;;  %v282_v4 = vld [vmem:[%s6914_s1 + $0x4] sm:$0xe]  ;;  %v5448_v5 = vmov 65535   ;;  %vm172_vm2 = vcmask 32768  }
   0xd   : > { %v226_v6 = vsel %vm224_vm0, 4294967295, %v5448_v5  ;;  %v286_v7 = vunpack.c.l.b16 %v282_v4  ;;  %s6918_s22 = smov (!%p162_p3, %s4707_s22), 7  ;;  %vm185_vm3 = vcmask 39936   ;;  %v5449_v13 = vmov 0.0   ;;  %v4898_v42 = vld [vmem:[%s6914_s1 + $0x10] sm:$0xff]  ;;  %s6920_s13 = smov (!%p167_p4, %s5483_s13), 1 }
   0xe   : > { %v211_v8 = vshrl.u32 %v4713_v2, 16  ;;  %v214_v9 = vshll.u32 %v4713_v2, 16  ;;  %v227_v10 = vsel %vm225_vm1, %v226_v6, 0  ;;  %173 = vst.msk [vmem:[#allocation2] sm:$0x1] %vm172_vm2, %v5449_v13  ;;  %s4708_s23 = sshll.u32 %s6918_s22, 3 }
   0xf   : > { %v257_v11 = vand.u32 %v227_v10, %v194_v3  ;;  %v287_v12 = vpack.c.b16 %v286_v7, %v286_v7  ;;  %174 = vst.msk [vmem:[#allocation2 + $0x10] sm:$0x1] %vm172_vm2, %v5449_v13  ;;  %s165_s26 = scalar_lea.vmem %s6913_s0, %s4708_s23  ;;  %v329_v43 = vld [vmem:[%s6914_s1 + $0x8] sm:$0xf]  ;;  %vm339_vm4 = vcmask 1043456   ;;  %v5450_v45 = vmov 0  }
  0x10   : > { %v213_v14 = vrot.slane %v211_v8, 2  ;;  %v216_v15 = vrot.slane %v214_v9, 3  ;;  %175 = vst.msk [vmem:[#allocation2 + $0x20] sm:$0x1] %vm172_vm2, %v5449_v13  ;;  %v181_v19 = vld [vmem:[%s165_s26] sm:$0xff]  ;;  %v182_v20 = vld [vmem:[%s165_s26 + $0x8] sm:$0xff]  ;;  %4939 = vset.pattern.permute.xlu1 %v5450_v45  ;;  %4938 = vset.pattern.permute.xlu0 %v5450_v45 }
  0x11   : > { %266 = vmatpush.bf16.msra.mxu1 %v257_v11  ;;  %v288_v16 = vrot.slane %v287_v12, 1  ;;  %176 = vst.msk [vmem:[#allocation2 + $0x30] sm:$0x1] %vm172_vm2, %v5449_v13  ;;  %v183_v22 = vld [vmem:[%s165_s26 + $0x10] sm:$0xff]  ;;  %v184_v23 = vld [vmem:[%s165_s26 + $0x18] sm:$0xff]  ;;  %v341_v44 = vsel %vm339_vm4, %v329_v43, 0  ;;  %4937 = vset.pattern.permute.xlu2 %v5450_v45 }
  0x12   : > { %v217_v17 = vor.u32 %v216_v15, %v213_v14  ;;  %177 = vst.msk [vmem:[#allocation2 + $0x9] sm:$0x1] %vm172_vm2, %v5449_v13  ;;  %350 = vmatpush.bf16.msra.mxu3 %v341_v44  ;;  %v4945_v53 = vld [vmem:[%s6915_s2] ss:$0 sm:$0xff]  ;;  %vm332_vm5 = vcmask 64512   ;;  %vm362_vm6 = vcmask 523264  }
  0x13   : > { %v296_v18 = vand.u32 %v288_v16, %v227_v10  ;;  %186 = vst.msk [vmem:[#allocation2 + $0x1] sm:$0xff] %vm185_vm3, %v181_v19  ;;  %v4946_v11 = vld [vmem:[%s6915_s2 + $0x1] ss:$0 sm:$0xff]  ;;  %s5456_s23 = smov 120   ;;  %s4709_s7 = sshll.u32 %s6920_s13, 2 }
  0x14   : > { %v229_v21 = vand.u32 %v227_v10, %v217_v17  ;;  %187 = vst.msk [vmem:[#allocation2 + $0x11] sm:$0xff] %vm185_vm3, %v182_v20  ;;  %s170_s17 = scalar_lea.vmem %s6916_s3, %s4709_s7 }
  0x15   : > { %305 = vmatpush.bf16.msra.mxu2 %v296_v18  ;;  %178 = vst.msk [vmem:[#allocation2 + $0x19] sm:$0x1] %vm172_vm2, %v5449_v13 }
  0x16   : > { %238 = vmatpush.bf16.msra.mxu0 %v229_v21  ;;  %179 = vst.msk [vmem:[#allocation2 + $0x29] sm:$0x1] %vm172_vm2, %v5449_v13 }
  0x17   : > { %180 = vst.msk [vmem:[#allocation2 + $0x39] sm:$0x1] %vm172_vm2, %v5449_v13 }
  0x18   : > { %188 = vst.msk [vmem:[#allocation2 + $0x21] sm:$0xff] %vm185_vm3, %v183_v22 }
  0x19   : > { %189 = vst.msk [vmem:[#allocation2 + $0x31] sm:$0xff] %vm185_vm3, %v184_v23 }
  0x1a   : > { %v197_v24 = vld [vmem:[#allocation2 + $0x1] sm:$0xff]  ;;  %390 = vmatpush.bf16.msrb.mxu0 %v4898_v42 }
  0x1b   : > { %v190_v25 = vld [vmem:[#allocation2] sm:$0xff]  ;;  %v198_v27 = vld [vmem:[#allocation2 + $0x11] sm:$0xff] }
  0x1c   : > { %v278_v26 = vld [vmem:[#allocation2 + $0x2] sm:$0xff]  ;;  %v191_v28 = vld [vmem:[#allocation2 + $0x10] sm:$0xff]  ;;  %v203_v29 = vpack.c.bf16 %v198_v27, %v197_v24 }
  0x1d   : > { %v195_v30 = vpack.c.bf16 %v191_v28, %v190_v25  ;;  %v279_v31 = vld [vmem:[#allocation2 + $0x12] sm:$0xff] }
  0x1e   : > { %v283_v32 = vpack.c.bf16 %v279_v31, %v278_v26  ;;  %4714 = vmatmul.msk.bf16.vlgmr.msra.gmra.mxu0 %vm185_vm3, %v203_v29 }
  0x1f   : > { %4716 = vmatmul.msk.bf16.vlgmr.msra.gmra.mxu1 %vm185_vm3, %v195_v30  ;;  %v199_v33 = vld [vmem:[#allocation2 + $0x21] sm:$0xff] }
  0x20   : > { %4718 = vmatmul.msk.bf16.vlgmr.msra.gmra.mxu2 %vm185_vm3, %v283_v32  ;;  %v200_v34 = vld [vmem:[#allocation2 + $0x31] sm:$0xff]  ;;  %v192_v35 = vld [vmem:[#allocation2 + $0x20] sm:$0xff] }
  0x21   : > { %v193_v36 = vld [vmem:[#allocation2 + $0x30] sm:$0xff]  ;;  %v280_v37 = vld [vmem:[#allocation2 + $0x22] sm:$0xff]  ;;  %v204_v39 = vpack.c.bf16 %v200_v34, %v199_v33 }
  0x22   : > { %v281_v38 = vld [vmem:[#allocation2 + $0x32] sm:$0xff]  ;;  %v196_v40 = vpack.c.bf16 %v193_v36, %v192_v35 }
  0x23   : > { %v284_v41 = vpack.c.bf16 %v281_v38, %v280_v37 }
  0x2e   : > { %4715 = vmatmul.msk.bf16.gmra.mxu0 %vm185_vm3, %v204_v39 }
  0x2f   : > { %4717 = vmatmul.msk.bf16.gmra.mxu1 %vm185_vm3, %v196_v40 }
  0x30   : > { %4719 = vmatmul.msk.bf16.gmra.mxu2 %vm185_vm3, %v284_v41 }
  0x3e   : > { %391 = vmatmul.bf16.vlgmr.msrb.gmra.mxu0 %v5450_v45 }
  0x9b   : > { %v240_v46 = vpop.f32.mrf.mxu0 }
  0x9c   : > { %v268_v47 = vpop.f32.mrf.mxu1 }
  0x9d   : > { %v269_v51 = vadd.f32 %v268_v47, %v240_v46 }
  0xa3   : > { %v307_v48 = vpop.f32.mrf.mxu2  ;;  %v242_v49 = vpop.f32.mrf.mxu0 }
  0xa4   : > { %v270_v50 = vpop.f32.mrf.mxu1  ;;  %v317_v52 = vadd.f32 %v307_v48, %v269_v51 }
  0xa5   : > { %v271_v54 = vadd.f32 %v270_v50, %v242_v49 }
  0xa6   : > { %v323_v59 = vadd.f32 %v4945_v53, %v317_v52 }
  0xab   : > { %v309_v55 = vpop.f32.mrf.mxu2  ;;  %v245_v57 = vpop.f32.mrf.mxu0 }
  0xac   : > { %v318_v56 = vadd.f32 %v309_v55, %v271_v54  ;;  %v273_v58 = vpop.f32.mrf.mxu1 }
  0xad   : > { %v274_v63 = vadd.f32 %v273_v58, %v245_v57 }
  0xae   : > { %v324_v60 = vadd.f32 %v4945_v53, %v318_v56 }
  0xb0   : > { %v327_v61 = vpack.c.bf16 %v324_v60, %v323_v59 }
  0xb2   : > { %4720 = vmatmul.msk.bf16.vlgmr.msra.gmra.mxu3 %vm332_vm5, %v327_v61 }
  0xb3   : > { %v312_v62 = vpop.f32.mrf.mxu2  ;;  %v247_v0 = vpop.f32.mrf.mxu0 }
  0xb4   : > { %v275_v1 = vpop.f32.mrf.mxu1  ;;  %v319_v2 = vadd.f32 %v312_v62, %v274_v63 }
  0xb5   : > { %v276_v3 = vadd.f32 %v275_v1, %v247_v0 }
  0xb6   : > { %v325_v6 = vadd.f32 %v4945_v53, %v319_v2 }
  0xbb   : > { %v314_v4 = vpop.f32.mrf.mxu2  ;;  %v392_v9 = vpop.f32.mrf.mxu0 }
  0xbc   : > { %v320_v5 = vadd.f32 %v314_v4, %v276_v3  ;;  %v397_v19 = vrot.slane %v392_v9, 1  ;;  %v398_v25 = vrot.slane %v392_v9, 2  ;;  %v399_v30 = vrot.slane %v392_v9, 3 }
  0xbe   : > { %v326_v7 = vadd.f32 %v4945_v53, %v320_v5 }
  0xc0   : > { %v328_v8 = vpack.c.bf16 %v326_v7, %v325_v6 }
  0xc2   : > { %4721 = vmatmul.msk.bf16.gmra.mxu3 %vm332_vm5, %v328_v8 }
  0xc3   : > { %v394_v10 = vpop.f32.mrf.mxu0 }
 0x135   : > { %v352_v12 = vpop.f32.mrf.mxu3 }
 0x136   : > { %v353_v13 = vadd.f32 %v4946_v11, %v352_v12 }
 0x138   : > { %363 = vst.msk [vmem:[#allocation3] sm:$0xff] %vm362_vm6, %v353_v13 }
 0x13d   : > { %v354_v14 = vpop.f32.mrf.mxu3 }
 0x13e   : > { %v355_v15 = vadd.f32 %v4946_v11, %v354_v14 }
 0x13f   : > { %v367_v16 = vld [vmem:[#allocation3] sm:$0x1] }
 0x140   : > { %v404_v17 = vadd.f32 %v392_v9, %v367_v16  ;;  %364 = vst.msk [vmem:[#allocation3 + $0x8] sm:$0xff] %vm362_vm6, %v355_v15 }
 0x142   : > { %4960 = vtanh.f32 %v404_v17  ;;  %v4726_v35 = vmul.f32 -1.442695, %v404_v17 }
 0x145   : > { %v357_v18 = vpop.f32.mrf.mxu3 }
 0x146   : > { %v358_v20 = vadd.f32 %v4946_v11, %v357_v18 }
 0x147   : > { %v368_v21 = vld [vmem:[#allocation3 + $0x8] sm:$0x1] }
 0x148   : > { %v4961_v22 = vpop.eup %4960  ;;  %365 = vst.msk [vmem:[#allocation3 + $0x10] sm:$0xff] %vm362_vm6, %v358_v20  ;;  %v405_v23 = vadd.f32 %v397_v19, %v368_v21 }
 0x149   : > { %496 = vrot.lane.b32.xlu1 %v4961_v22, %s5451_s8 }
 0x14a   : > { %4962 = vtanh.f32 %v405_v23  ;;  %v4727_v36 = vmul.f32 -1.442695, %v405_v23 }
 0x14d   : > { %v359_v24 = vpop.f32.mrf.mxu3 }
 0x14e   : > { %v360_v26 = vadd.f32 %v4946_v11, %v359_v24 }
 0x14f   : > { %v369_v27 = vld [vmem:[#allocation3 + $0x10] sm:$0x1] }
 0x150   : > { %v4963_v28 = vpop.eup %4962  ;;  %366 = vst.msk [vmem:[#allocation3 + $0x18] sm:$0xff] %vm362_vm6, %v360_v26  ;;  %v406_v29 = vadd.f32 %v398_v25, %v369_v27 }
 0x151   : > { %498 = vrot.lane.b32.xlu0 %v4963_v28, %s5451_s8 }
 0x152   : > { %4964 = vtanh.f32 %v406_v29  ;;  %v4728_v39 = vmul.f32 -1.442695, %v406_v29 }
 0x157   : > { %v370_v31 = vld [vmem:[#allocation3 + $0x18] sm:$0x1] }
 0x158   : > { %v4965_v32 = vpop.eup %4964  ;;  %v407_v33 = vadd.f32 %v399_v30, %v370_v31 }
 0x159   : > { %500 = vrot.lane.b32.xlu0 %v4965_v32, %s5451_s8 }
 0x15a   : > { %4966 = vtanh.f32 %v407_v33  ;;  %v4729_v43 = vmul.f32 -1.442695, %v407_v33 }
 0x15b   : > { %4968 = vpow2.f32 %v4726_v35 }
 0x15c   : > { %4970 = vpow2.f32 %v4727_v36 }
 0x160   : > { %v4967_v34 = vpop.eup %4966 }
 0x161   : > { %502 = vrot.lane.b32.xlu1 %v4967_v34, %s5451_s8  ;;  %v4969_v37 = vpop.eup %4968 }
 0x162   : > { %v420_v38 = vadd.f32 1.0, %v4969_v37  ;;  %v4971_v40 = vpop.eup %4970 }
 0x163   : > { %v421_v41 = vadd.f32 1.0, %v4971_v40 }
 0x164   : > { %4972 = vrcp.f32 %v420_v38  ;;  %v435_v57 = vand.u32 2147483648, %v420_v38  ;;  %vm429_vm8 = vweird.f32 %v420_v38  ;;  %v433_v58 = vand.u32 2147483647, %v420_v38 }
 0x165   : > { %4974 = vpow2.f32 %v4728_v39  ;;  %v450_v5 = vand.u32 2147483648, %v421_v41  ;;  %vm444_vm12 = vweird.f32 %v421_v41  ;;  %v448_v6 = vand.u32 2147483647, %v421_v41 }
 0x166   : > { %4976 = vrcp.f32 %v421_v41  ;;  %v436_v62 = vor.u32 1.1754944e-38, %v435_v57  ;;  %vm434_vm10 = vcmp.eq.f32.partialorder %v433_v58, 8.507059e+37 }
 0x167   : > { %4978 = vpow2.f32 %v4729_v43  ;;  %v451_v10 = vor.u32 1.1754944e-38, %v450_v5  ;;  %vm449_vm14 = vcmp.eq.f32.partialorder %v448_v6, 8.507059e+37 }
 0x16a   : > { %v4973_v42 = vpop.eup %4972 }
 0x16b   : > { %v4975_v44 = vpop.eup %4974  ;;  %v425_v46 = vmul.f32 %v4973_v42, %v420_v38  ;;  %vm430_vm7 = vweird.f32 %v4973_v42 }
 0x16c   : > { %v422_v47 = vadd.f32 1.0, %v4975_v44  ;;  %v4977_v49 = vpop.eup %4976  ;;  %vm431_vm9 = vmor %vm429_vm8, %vm430_vm7  ;;  %vm596_vm8 = vcmask 1041409  }
 0x16d   : > { %v426_v48 = vsub.f32 1.0, %v425_v46  ;;  %v4979_v50 = vpop.eup %4978  ;;  %v440_v52 = vmul.f32 %v4977_v49, %v421_v41  ;;  %vm445_vm11 = vweird.f32 %v4977_v49 }
 0x16e   : > { %4980 = vrcp.f32 %v422_v47  ;;  %v423_v53 = vadd.f32 1.0, %v4979_v50  ;;  %vm446_vm13 = vmor %vm444_vm12, %vm445_vm11  ;;  %v465_v16 = vand.u32 2147483648, %v422_v47  ;;  %vm459_vm0 = vweird.f32 %v422_v47 }
 0x16f   : > { %v427_v51 = vmul.f32 %v4973_v42, %v426_v48  ;;  %v441_v55 = vsub.f32 1.0, %v440_v52  ;;  %v463_v17 = vand.u32 2147483647, %v422_v47  ;;  %vm379_vm11 = vcmask 130048  }
 0x170   : > { %4982 = vrcp.f32 %v423_v53  ;;  %v466_v20 = vor.u32 1.1754944e-38, %v465_v16  ;;  %v480_v25 = vand.u32 2147483648, %v423_v53  ;;  %vm474_vm4 = vweird.f32 %v423_v53 }
 0x171   : > { %v428_v54 = vadd.f32 %v4973_v42, %v427_v51  ;;  %v442_v60 = vmul.f32 %v4977_v49, %v441_v55  ;;  %vm464_vm2 = vcmp.eq.f32.partialorder %v463_v17, 8.507059e+37  ;;  %v478_v26 = vand.u32 2147483647, %v423_v53  ;;  %v579_v17 = vld [vmem:[#allocation3 + $0x11] sm:$0x1] }
 0x172   : > { %v481_v28 = vor.u32 1.1754944e-38, %v480_v25 }
 0x173   : > { %v432_v59 = vsel %vm431_vm9, %v4973_v42, %v428_v54  ;;  %v443_v2 = vadd.f32 %v4977_v49, %v442_v60  ;;  %vm479_vm7 = vcmp.eq.f32.partialorder %v478_v26, 8.507059e+37  ;;  %vm599_vm9 = vcmask 1042434  }
 0x174   : > { %v4981_v56 = vpop.eup %4980  ;;  %v5547_v0 = vsel %vm434_vm10, %v436_v62, %v432_v59  ;;  %vm602_vm10 = vcmask 1043459  }
 0x175   : > { %v455_v61 = vmul.f32 %v4981_v56, %v422_v47  ;;  %v447_v7 = vsel %vm446_vm13, %v4977_v49, %v443_v2  ;;  %vm460_vm15 = vweird.f32 %v4981_v56  ;;  %v488_v39 = vmul.f32 0.0, %v5547_v0  ;;  %v4899_v49 = vld [vmem:[%s6914_s1 + $0x10] sm:$0xff] }
 0x176   : > { %v4983_v4 = vpop.eup %4982  ;;  %v452_v12 = vsel %vm449_vm14, %v451_v10, %v447_v7  ;;  %vm461_vm1 = vmor %vm459_vm0, %vm460_vm15  ;;  %623 = vmatpush.bf16.msrb.mxu1 %v4899_v49  ;;  %v577_v10 = vld [vmem:[#allocation3 + $0x1] sm:$0x1] }
 0x177   : > { %v456_v3 = vsub.f32 1.0, %v455_v61  ;;  %v470_v9 = vmul.f32 %v4983_v4, %v423_v53  ;;  %vm475_vm3 = vweird.f32 %v4983_v4  ;;  %v489_v32 = vmul.f32 0.0, %v452_v12 }
 0x178   : > { %vm476_vm6 = vmor %vm474_vm4, %vm475_vm3 }
 0x179   : > { %v457_v8 = vmul.f32 %v4981_v56, %v456_v3  ;;  %v471_v15 = vsub.f32 1.0, %v470_v9 }
 0x17b   : > { %v458_v14 = vadd.f32 %v4981_v56, %v457_v8  ;;  %v472_v19 = vmul.f32 %v4983_v4, %v471_v15 }
 0x17d   : > { %v462_v18 = vsel %vm461_vm1, %v4981_v56, %v458_v14  ;;  %v473_v24 = vadd.f32 %v4983_v4, %v472_v19  ;;  %v578_v14 = vld [vmem:[#allocation3 + $0x9] sm:$0x1] }
 0x17e   : > { %v467_v21 = vsel %vm464_vm2, %v466_v20, %v462_v18 }
 0x17f   : > { %v477_v27 = vsel %vm476_vm6, %v4983_v4, %v473_v24  ;;  %v490_v35 = vmul.f32 0.0, %v467_v21 }
 0x180   : > { %v482_v29 = vsel %vm479_vm7, %v481_v28, %v477_v27 }
 0x181   : > { %v491_v44 = vmul.f32 0.0, %v482_v29 }
 0x1bb   : > { %v497_v63 = vpop.permute.xlu1 %496 }
 0x1bc   : > { %v508_v1 = vmul.f32 %v497_v63, %v5547_v0 }
 0x1be   : > { %516 = vrot.lane.b32.xlu0 %v508_v1, %s5452_s9 }
 0x1c3   : > { %v499_v11 = vpop.permute.xlu0 %498 }
 0x1c4   : > { %v509_v13 = vmul.f32 %v499_v11, %v452_v12 }
 0x1c6   : > { %518 = vrot.lane.b32.xlu2 %v509_v13, %s5452_s9 }
 0x1cb   : > { %v501_v22 = vpop.permute.xlu0 %500 }
 0x1cc   : > { %v510_v23 = vmul.f32 %v501_v22, %v467_v21 }
 0x1ce   : > { %520 = vrot.lane.b32.xlu2 %v510_v23, %s5452_s9 }
 0x1d3   : > { %v503_v30 = vpop.permute.xlu1 %502 }
 0x1d4   : > { %v511_v31 = vmul.f32 %v503_v30, %v482_v29 }
 0x1d6   : > { %522 = vrot.lane.b32.xlu1 %v511_v31, %s5452_s9 }
 0x220   : > { %v519_v33 = vpop.permute.xlu2 %518 }
 0x221   : > { %v5554_v34 = vadd.f32 %v519_v33, %v489_v32 }
 0x223   : > { %4984 = vtanh.f32 %v5554_v34 }
 0x228   : > { %v521_v36 = vpop.permute.xlu2 %520 }
 0x229   : > { %v4985_v37 = vpop.eup %4984  ;;  %v5557_v38 = vadd.f32 %v521_v36, %v490_v35 }
 0x22a   : > { %542 = vrot.lane.b32.xlu2 %v4985_v37, %s5453_s10 }
 0x22b   : > { %4986 = vtanh.f32 %v5557_v38 }
 0x230   : > { %v517_v40 = vpop.permute.xlu0 %516 }
 0x231   : > { %v4987_v41 = vpop.eup %4986  ;;  %v5562_v42 = vadd.f32 %v517_v40, %v488_v39 }
 0x232   : > { %544 = vrot.lane.b32.xlu0 %v4987_v41, %s5453_s10 }
 0x233   : > { %4988 = vtanh.f32 %v5562_v42 }
 0x239   : > { %v4989_v43 = vpop.eup %4988 }
 0x23a   : > { %540 = vrot.lane.b32.xlu1 %v4989_v43, %s5453_s10 }
 0x248   : > { %v523_v46 = vpop.permute.xlu1 %522 }
 0x249   : > { %v5567_v47 = vadd.f32 %v523_v46, %v491_v44 }
 0x24b   : > { %4990 = vtanh.f32 %v5567_v47 }
 0x251   : > { %v4991_v48 = vpop.eup %4990 }
 0x252   : > { %546 = vrot.lane.b32.xlu2 %v4991_v48, %s5453_s10 }
 0x284   : > { %v543_v50 = vpop.permute.xlu2 %542 }
 0x285   : > { %v5574_v52 = vmul.f32 %v543_v50, %v452_v12 }
 0x287   : > { %v582_v54 = vpack.c.bf16 %v5574_v52, %v5574_v52 }
 0x289   : > { %v592_v58 = vunpack.c.l.b16 %v582_v54 }
 0x28b   : > { %v595_v1 = vrot.slane %v592_v58, 7 }
 0x2a4   : > { %v545_v51 = vpop.permute.xlu0 %544 }
 0x2a5   : > { %v5576_v53 = vmul.f32 %v545_v51, %v467_v21  ;;  %v580_v21 = vld [vmem:[#allocation3 + $0x19] sm:$0x1] }
 0x2a7   : > { %v583_v55 = vpack.c.bf16 %v5576_v53, %v5576_v53 }
 0x2a9   : > { %v593_v61 = vunpack.c.l.b16 %v583_v55 }
 0x2ab   : > { %v598_v4 = vrot.slane %v593_v61, 6 }
 0x2ac   : > { %v547_v56 = vpop.permute.xlu2 %546  ;;  %v541_v57 = vpop.permute.xlu1 %540 }
 0x2ad   : > { %v5582_v59 = vmul.f32 %v547_v56, %v482_v29  ;;  %v5585_v60 = vmul.f32 %v541_v57, %v5547_v0 }
 0x2af   : > { %v584_v62 = vpack.c.bf16 %v5582_v59, %v5582_v59  ;;  %v581_v63 = vpack.c.bf16 %v5585_v60, %v5585_v60 }
 0x2b1   : > { %v594_v2 = vunpack.c.l.b16 %v584_v62  ;;  %v591_v3 = vunpack.c.l.b16 %v581_v63 }
 0x2b3   : > { %v601_v5 = vrot.slane %v594_v2, 5  ;;  %v597_v6 = vsel %vm596_vm8, %v595_v1, %v591_v3 }
 0x2b4   : > { %v600_v0 = vsel %vm599_vm9, %v598_v4, %v597_v6 }
 0x2b5   : > { %v603_v7 = vsel %vm602_vm10, %v601_v5, %v600_v0 }
 0x2b6   : > { %v604_v8 = vpack.c.b16 %v603_v7, %v603_v7 }
 0x2b8   : > { %605 = vrot.lane.b32.xlu0 %v604_v8, %s5454_s15 }
 0x32a   : > { %v606_v9 = vpop.permute.xlu0 %605 }
 0x32b   : > { %4734 = vmatmul.msk.bf16.vlgmr.msrb.gmra.mxu1 %vm379_vm11, %v606_v9 }
 0x3a8   : > { %v625_v11 = vpop.f32.mrf.mxu1 }
 0x3a9   : > { %v630_v12 = vrot.slane %v625_v11, 1  ;;  %v637_v13 = vadd.f32 %v625_v11, %v577_v10  ;;  %v631_v15 = vrot.slane %v625_v11, 2  ;;  %v632_v18 = vrot.slane %v625_v11, 3 }
 0x3ab   : > { %v638_v16 = vadd.f32 %v630_v12, %v578_v14  ;;  %4992 = vtanh.f32 %v637_v13  ;;  %v639_v19 = vadd.f32 %v631_v15, %v579_v17  ;;  %v640_v23 = vadd.f32 %v632_v18, %v580_v21 }
 0x3ac   : > { %v4735_v30 = vmul.f32 -1.442695, %v637_v13 }
 0x3ad   : > { %4994 = vtanh.f32 %v638_v16  ;;  %v4737_v27 = vmul.f32 -1.442695, %v639_v19  ;;  %v4736_v31 = vmul.f32 -1.442695, %v638_v16  ;;  %v4738_v36 = vmul.f32 -1.442695, %v640_v23 }
 0x3ae   : > { %4996 = vtanh.f32 %v639_v19 }
 0x3af   : > { %4998 = vtanh.f32 %v640_v23 }
 0x3b0   : > { %v627_v20 = vpop.f32.mrf.mxu1  ;;  %5000 = vpow2.f32 %v4737_v27 }
 0x3b1   : > { %v4993_v22 = vpop.eup %4992 }
 0x3b2   : > { %729 = vrot.lane.b32.xlu0 %v4993_v22, %s5451_s8 }
 0x3b3   : > { %v4995_v24 = vpop.eup %4994 }
 0x3b4   : > { %731 = vrot.lane.b32.xlu1 %v4995_v24, %s5451_s8  ;;  %v4997_v25 = vpop.eup %4996 }
 0x3b5   : > { %733 = vrot.lane.b32.xlu2 %v4997_v25, %s5451_s8  ;;  %v4999_v26 = vpop.eup %4998 }
 0x3b6   : > { %v5001_v28 = vpop.eup %5000 }
 0x3b7   : > { %v655_v29 = vadd.f32 1.0, %v5001_v28 }
 0x3b9   : > { %5002 = vrcp.f32 %v655_v29  ;;  %v698_v48 = vand.u32 2147483648, %v655_v29  ;;  %vm692_vm13 = vweird.f32 %v655_v29  ;;  %v696_v49 = vand.u32 2147483647, %v655_v29 }
 0x3ba   : > { %5004 = vpow2.f32 %v4735_v30 }
 0x3bb   : > { %5006 = vpow2.f32 %v4736_v31  ;;  %v699_v56 = vor.u32 1.1754944e-38, %v698_v48  ;;  %vm697_vm15 = vcmp.eq.f32.partialorder %v696_v49, 8.507059e+37 }
 0x3bc   : > { %735 = vrot.lane.b32.xlu1 %v4999_v26, %s5451_s8  ;;  %5008 = vpow2.f32 %v4738_v36 }
 0x3bf   : > { %v5003_v32 = vpop.eup %5002 }
 0x3c0   : > { %v688_v33 = vmul.f32 %v5003_v32, %v655_v29  ;;  %v5005_v35 = vpop.eup %5004  ;;  %vm693_vm12 = vweird.f32 %v5003_v32 }
 0x3c1   : > { %v5007_v37 = vpop.eup %5006  ;;  %v653_v40 = vadd.f32 1.0, %v5005_v35  ;;  %vm694_vm14 = vmor %vm692_vm13, %vm693_vm12 }
 0x3c2   : > { %v689_v39 = vsub.f32 1.0, %v688_v33  ;;  %v654_v41 = vadd.f32 1.0, %v5007_v37  ;;  %v5009_v44 = vpop.eup %5008 }
 0x3c3   : > { %5010 = vrcp.f32 %v653_v40  ;;  %v656_v51 = vadd.f32 1.0, %v5009_v44  ;;  %vm662_vm1 = vweird.f32 %v653_v40  ;;  %v668_v7 = vand.u32 2147483648, %v653_v40 }
 0x3c4   : > { %v690_v43 = vmul.f32 %v5003_v32, %v689_v39  ;;  %5012 = vrcp.f32 %v654_v41  ;;  %v666_v8 = vand.u32 2147483647, %v653_v40  ;;  %v683_v11 = vand.u32 2147483648, %v654_v41 }
 0x3c5   : > { %5014 = vrcp.f32 %v656_v51  ;;  %vm677_vm4 = vweird.f32 %v654_v41  ;;  %v681_v13 = vand.u32 2147483647, %v654_v41  ;;  %v669_v14 = vor.u32 1.1754944e-38, %v668_v7 }
 0x3c6   : > { %v691_v46 = vadd.f32 %v5003_v32, %v690_v43  ;;  %vm667_vm7 = vcmp.eq.f32.partialorder %v666_v8, 8.507059e+37  ;;  %v684_v19 = vor.u32 1.1754944e-38, %v683_v11  ;;  %v713_v25 = vand.u32 2147483648, %v656_v51 }
 0x3c7   : > { %vm682_vm12 = vcmp.eq.f32.partialorder %v681_v13, 8.507059e+37  ;;  %v711_v26 = vand.u32 2147483647, %v656_v51 }
 0x3c8   : > { %v695_v54 = vsel %vm694_vm14, %v5003_v32, %v691_v46  ;;  %vm707_vm14 = vweird.f32 %v656_v51  ;;  %v714_v28 = vor.u32 1.1754944e-38, %v713_v25  ;;  %v812_v25 = vld [vmem:[#allocation3 + $0x1a] sm:$0x1] }
 0x3c9   : > { %v5011_v50 = vpop.eup %5010  ;;  %v5600_v61 = vsel %vm697_vm15, %v699_v56, %v695_v54 }
 0x3ca   : > { %v5013_v55 = vpop.eup %5012  ;;  %v658_v57 = vmul.f32 %v5011_v50, %v653_v40  ;;  %vm663_vm0 = vweird.f32 %v5011_v50  ;;  %v723_v36 = vmul.f32 %v5600_v61, %v5557_v38 }
 0x3cb   : > { %v673_v63 = vmul.f32 %v5013_v55, %v654_v41  ;;  %v5015_v3 = vpop.eup %5014  ;;  %vm678_vm2 = vweird.f32 %v5013_v55  ;;  %vm664_vm3 = vmor %vm662_vm1, %vm663_vm0  ;;  %vm712_vm0 = vcmp.eq.f32.partialorder %v711_v26, 8.507059e+37 }
 0x3cc   : > { %v659_v1 = vsub.f32 1.0, %v658_v57  ;;  %v703_v6 = vmul.f32 %v5015_v3, %v656_v51  ;;  %vm679_vm6 = vmor %vm677_vm4, %vm678_vm2  ;;  %vm708_vm13 = vweird.f32 %v5015_v3 }
 0x3cd   : > { %v674_v2 = vsub.f32 1.0, %v673_v63  ;;  %vm709_vm15 = vmor %vm707_vm14, %vm708_vm13 }
 0x3ce   : > { %v660_v4 = vmul.f32 %v5011_v50, %v659_v1  ;;  %v704_v10 = vsub.f32 1.0, %v703_v6 }
 0x3cf   : > { %v675_v5 = vmul.f32 %v5013_v55, %v674_v2 }
 0x3d0   : > { %v661_v0 = vadd.f32 %v5011_v50, %v660_v4  ;;  %v705_v16 = vmul.f32 %v5015_v3, %v704_v10 }
 0x3d1   : > { %v676_v9 = vadd.f32 %v5013_v55, %v675_v5 }
 0x3d2   : > { %v665_v12 = vsel %vm664_vm3, %v5011_v50, %v661_v0  ;;  %v706_v24 = vadd.f32 %v5015_v3, %v705_v16  ;;  %v4900_v50 = vld [vmem:[%s6914_s1 + $0x10] sm:$0xff] }
 0x3d3   : > { %v680_v15 = vsel %vm679_vm6, %v5013_v55, %v676_v9  ;;  %v670_v18 = vsel %vm667_vm7, %v669_v14, %v665_v12  ;;  %852 = vmatpush.bf16.msrb.mxu2 %v4900_v50  ;;  %v809_v14 = vld [vmem:[#allocation3 + $0x2] sm:$0x1] }
 0x3d4   : > { %v685_v22 = vsel %vm682_vm12, %v684_v19, %v680_v15  ;;  %v710_v27 = vsel %vm709_vm15, %v5015_v3, %v706_v24  ;;  %v721_v46 = vmul.f32 %v670_v18, %v5562_v42 }
 0x3d5   : > { %v715_v29 = vsel %vm712_vm0, %v714_v28, %v710_v27  ;;  %v722_v32 = vmul.f32 %v685_v22, %v5554_v34 }
 0x3d6   : > { %v724_v40 = vmul.f32 %v715_v29, %v5567_v47 }
 0x40f   : > { %v734_v58 = vpop.permute.xlu2 %733 }
 0x410   : > { %v743_v62 = vmul.f32 %v734_v58, %v5600_v61 }
 0x412   : > { %753 = vrot.lane.b32.xlu0 %v743_v62, %s5452_s9 }
 0x424   : > { %v730_v17 = vpop.permute.xlu0 %729 }
 0x425   : > { %v741_v20 = vmul.f32 %v730_v17, %v670_v18 }
 0x426   : > { %v732_v21 = vpop.permute.xlu1 %731 }
 0x427   : > { %v742_v23 = vmul.f32 %v732_v21, %v685_v22  ;;  %749 = vrot.lane.b32.xlu1 %v741_v20, %s5452_s9  ;;  %v811_v21 = vld [vmem:[#allocation3 + $0x12] sm:$0x1] }
 0x429   : > { %751 = vrot.lane.b32.xlu2 %v742_v23, %s5452_s9 }
 0x42e   : > { %v736_v30 = vpop.permute.xlu1 %735 }
 0x42f   : > { %v744_v31 = vmul.f32 %v736_v30, %v715_v29 }
 0x431   : > { %755 = vrot.lane.b32.xlu2 %v744_v31, %s5452_s9 }
 0x483   : > { %v752_v33 = vpop.permute.xlu2 %751 }
 0x484   : > { %v5608_v35 = vadd.f32 %v752_v33, %v722_v32  ;;  %v754_v37 = vpop.permute.xlu0 %753 }
 0x485   : > { %v5613_v39 = vadd.f32 %v754_v37, %v723_v36 }
 0x486   : > { %5016 = vtanh.f32 %v5608_v35 }
 0x487   : > { %5018 = vtanh.f32 %v5613_v39 }
 0x48b   : > { %v756_v41 = vpop.permute.xlu2 %755 }
 0x48c   : > { %v5017_v43 = vpop.eup %5016  ;;  %v5617_v44 = vadd.f32 %v756_v41, %v724_v40 }
 0x48d   : > { %775 = vrot.lane.b32.xlu0 %v5017_v43, %s5453_s10  ;;  %v5019_v34 = vpop.eup %5018 }
 0x48e   : > { %5020 = vtanh.f32 %v5617_v44  ;;  %777 = vrot.lane.b32.xlu1 %v5019_v34, %s5453_s10 }
 0x494   : > { %v5021_v38 = vpop.eup %5020 }
 0x495   : > { %779 = vrot.lane.b32.xlu0 %v5021_v38, %s5453_s10 }
 0x499   : > { %v750_v48 = vpop.permute.xlu1 %749 }
 0x49a   : > { %v5624_v49 = vadd.f32 %v750_v48, %v721_v46 }
 0x49c   : > { %5022 = vtanh.f32 %v5624_v49 }
 0x4a2   : > { %v5023_v47 = vpop.eup %5022 }
 0x4a3   : > { %773 = vrot.lane.b32.xlu2 %v5023_v47, %s5453_s10 }
 0x4fd   : > { %v774_v51 = vpop.permute.xlu2 %773 }
 0x4fe   : > { %v5633_v56 = vmul.f32 %v774_v51, %v670_v18  ;;  %v810_v18 = vld [vmem:[#allocation3 + $0xa] sm:$0x1] }
 0x4ff   : > { %v776_v54 = vpop.permute.xlu0 %775 }
 0x500   : > { %v5631_v55 = vmul.f32 %v776_v54, %v685_v22  ;;  %v778_v57 = vpop.permute.xlu1 %777  ;;  %v813_v63 = vpack.c.bf16 %v5633_v56, %v5633_v56 }
 0x501   : > { %v5638_v58 = vmul.f32 %v778_v57, %v5600_v61 }
 0x502   : > { %v814_v42 = vpack.c.bf16 %v5631_v55, %v5631_v55  ;;  %v823_v6 = vunpack.c.l.b16 %v813_v63 }
 0x503   : > { %v815_v1 = vpack.c.bf16 %v5638_v58, %v5638_v58 }
 0x504   : > { %v824_v62 = vunpack.c.l.b16 %v814_v42 }
 0x505   : > { %v825_v3 = vunpack.c.l.b16 %v815_v1 }
 0x506   : > { %v827_v4 = vrot.slane %v824_v62, 7 }
 0x507   : > { %v780_v2 = vpop.permute.xlu0 %779  ;;  %v829_v7 = vrot.slane %v825_v3, 6 }
 0x508   : > { %v5644_v5 = vmul.f32 %v780_v2, %v715_v29  ;;  %v828_v61 = vsel %vm596_vm8, %v827_v4, %v823_v6 }
 0x509   : > { %v830_v10 = vsel %vm599_vm9, %v829_v7, %v828_v61 }
 0x50a   : > { %v816_v0 = vpack.c.bf16 %v5644_v5, %v5644_v5 }
 0x50c   : > { %v826_v8 = vunpack.c.l.b16 %v816_v0 }
 0x50e   : > { %v831_v9 = vrot.slane %v826_v8, 5 }
 0x510   : > { %v832_v11 = vsel %vm602_vm10, %v831_v9, %v830_v10 }
 0x511   : > { %v833_v12 = vpack.c.b16 %v832_v11, %v832_v11 }
 0x513   : > { %834 = vrot.lane.b32.xlu1 %v833_v12, %s5454_s15 }
 0x585   : > { %v835_v13 = vpop.permute.xlu1 %834 }
 0x586   : > { %4743 = vmatmul.msk.bf16.vlgmr.msrb.gmra.mxu2 %vm379_vm11, %v835_v13 }
 0x609   : > { %v854_v15 = vpop.f32.mrf.mxu2 }
 0x60a   : > { %v859_v16 = vrot.slane %v854_v15, 1  ;;  %v866_v17 = vadd.f32 %v854_v15, %v809_v14  ;;  %v860_v19 = vrot.slane %v854_v15, 2  ;;  %v861_v22 = vrot.slane %v854_v15, 3 }
 0x60c   : > { %v867_v20 = vadd.f32 %v859_v16, %v810_v18  ;;  %5024 = vtanh.f32 %v866_v17  ;;  %v868_v23 = vadd.f32 %v860_v19, %v811_v21  ;;  %v869_v27 = vadd.f32 %v861_v22, %v812_v25 }
 0x60d   : > { %v4744_v41 = vmul.f32 -1.442695, %v866_v17 }
 0x60e   : > { %5026 = vtanh.f32 %v867_v20  ;;  %v4745_v31 = vmul.f32 -1.442695, %v867_v20  ;;  %v4747_v32 = vmul.f32 -1.442695, %v869_v27  ;;  %v4746_v38 = vmul.f32 -1.442695, %v868_v23 }
 0x60f   : > { %5028 = vtanh.f32 %v868_v23 }
 0x610   : > { %5030 = vtanh.f32 %v869_v27 }
 0x611   : > { %v856_v24 = vpop.f32.mrf.mxu2  ;;  %5032 = vpow2.f32 %v4745_v31 }
 0x612   : > { %v5025_v26 = vpop.eup %5024  ;;  %5034 = vpow2.f32 %v4747_v32 }
 0x613   : > { %958 = vrot.lane.b32.xlu1 %v5025_v26, %s5451_s8 }
 0x614   : > { %v5027_v28 = vpop.eup %5026 }
 0x615   : > { %960 = vrot.lane.b32.xlu2 %v5027_v28, %s5451_s8  ;;  %v5029_v29 = vpop.eup %5028 }
 0x616   : > { %962 = vrot.lane.b32.xlu0 %v5029_v29, %s5451_s8  ;;  %v5031_v30 = vpop.eup %5030 }
 0x617   : > { %v5033_v33 = vpop.eup %5032 }
 0x618   : > { %v883_v36 = vadd.f32 1.0, %v5033_v33  ;;  %v5035_v37 = vpop.eup %5034 }
 0x619   : > { %v885_v40 = vadd.f32 1.0, %v5035_v37 }
 0x61a   : > { %5036 = vrcp.f32 %v883_v36  ;;  %v912_v63 = vand.u32 2147483648, %v883_v36  ;;  %vm906_vm2 = vweird.f32 %v883_v36  ;;  %v910_v1 = vand.u32 2147483647, %v883_v36 }
 0x61b   : > { %5038 = vrcp.f32 %v885_v40  ;;  %v942_v10 = vand.u32 2147483648, %v885_v40  ;;  %vm936_vm7 = vweird.f32 %v885_v40  ;;  %v940_v11 = vand.u32 2147483647, %v885_v40 }
 0x61c   : > { %5040 = vpow2.f32 %v4744_v41  ;;  %v913_v6 = vor.u32 1.1754944e-38, %v912_v63  ;;  %vm911_vm4 = vcmp.eq.f32.partialorder %v910_v1, 8.507059e+37 }
 0x61d   : > { %964 = vrot.lane.b32.xlu2 %v5031_v30, %s5451_s8  ;;  %5042 = vpow2.f32 %v4746_v38  ;;  %v943_v15 = vor.u32 1.1754944e-38, %v942_v10  ;;  %vm941_vm13 = vcmp.eq.f32.partialorder %v940_v11, 8.507059e+37 }
 0x620   : > { %v5037_v43 = vpop.eup %5036 }
 0x621   : > { %v902_v34 = vmul.f32 %v5037_v43, %v883_v36  ;;  %v5039_v48 = vpop.eup %5038  ;;  %vm907_vm1 = vweird.f32 %v5037_v43 }
 0x622   : > { %v5041_v47 = vpop.eup %5040  ;;  %v932_v51 = vmul.f32 %v5039_v48, %v885_v40  ;;  %vm908_vm3 = vmor %vm906_vm2, %vm907_vm1  ;;  %vm937_vm6 = vweird.f32 %v5039_v48 }
 0x623   : > { %v903_v46 = vsub.f32 1.0, %v902_v34  ;;  %v882_v54 = vadd.f32 1.0, %v5041_v47  ;;  %v5043_v42 = vpop.eup %5042  ;;  %vm938_vm12 = vmor %vm936_vm7, %vm937_vm6 }
 0x624   : > { %v933_v62 = vsub.f32 1.0, %v932_v51  ;;  %v884_v2 = vadd.f32 1.0, %v5043_v42 }
 0x625   : > { %v904_v50 = vmul.f32 %v5037_v43, %v903_v46  ;;  %5044 = vrcp.f32 %v882_v54  ;;  %v897_v24 = vand.u32 2147483648, %v882_v54  ;;  %vm891_vm15 = vweird.f32 %v882_v54 }
 0x626   : > { %v934_v4 = vmul.f32 %v5039_v48, %v933_v62  ;;  %5046 = vrcp.f32 %v884_v2  ;;  %v895_v25 = vand.u32 2147483647, %v882_v54  ;;  %v927_v32 = vand.u32 2147483648, %v884_v2 }
 0x627   : > { %v905_v57 = vadd.f32 %v5037_v43, %v904_v50  ;;  %v898_v28 = vor.u32 1.1754944e-38, %v897_v24  ;;  %v925_v36 = vand.u32 2147483647, %v884_v2 }
 0x628   : > { %v935_v9 = vadd.f32 %v5039_v48, %v934_v4  ;;  %vm896_vm1 = vcmp.eq.f32.partialorder %v895_v25, 8.507059e+37  ;;  %v928_v40 = vor.u32 1.1754944e-38, %v927_v32 }
 0x629   : > { %v909_v3 = vsel %vm908_vm3, %v5037_v43, %v905_v57  ;;  %vm921_vm3 = vweird.f32 %v884_v2  ;;  %vm926_vm6 = vcmp.eq.f32.partialorder %v925_v36, 8.507059e+37 }
 0x62a   : > { %v5657_v8 = vsel %vm911_vm4, %v913_v6, %v909_v3  ;;  %v939_v13 = vsel %vm938_vm12, %v5039_v48, %v935_v9  ;;  %v4901_v3 = vld [vmem:[%s6914_s1 + $0x10] sm:$0xff] }
 0x62b   : > { %v5045_v0 = vpop.eup %5044  ;;  %v5661_v17 = vsel %vm941_vm13, %v943_v15, %v939_v13  ;;  %v951_v47 = vmul.f32 %v5657_v8, %v5608_v35  ;;  %1081 = vmatpush.bf16.msrb.mxu3 %v4901_v3 }
 0x62c   : > { %v887_v12 = vmul.f32 %v5045_v0, %v882_v54  ;;  %v5047_v14 = vpop.eup %5046  ;;  %vm892_vm14 = vweird.f32 %v5045_v0  ;;  %v953_v42 = vmul.f32 %v5661_v17, %v5617_v44 }
 0x62d   : > { %v917_v20 = vmul.f32 %v5047_v14, %v884_v2  ;;  %vm893_vm0 = vmor %vm891_vm15, %vm892_vm14  ;;  %vm922_vm2 = vweird.f32 %v5047_v14 }
 0x62e   : > { %v888_v16 = vsub.f32 1.0, %v887_v12  ;;  %vm923_vm4 = vmor %vm921_vm3, %vm922_vm2 }
 0x62f   : > { %v918_v22 = vsub.f32 1.0, %v917_v20 }
 0x630   : > { %v889_v21 = vmul.f32 %v5045_v0, %v888_v16 }
 0x631   : > { %v919_v26 = vmul.f32 %v5047_v14, %v918_v22 }
 0x632   : > { %v890_v23 = vadd.f32 %v5045_v0, %v889_v21 }
 0x633   : > { %v920_v29 = vadd.f32 %v5047_v14, %v919_v26 }
 0x634   : > { %v894_v27 = vsel %vm893_vm0, %v5045_v0, %v890_v23 }
 0x635   : > { %v899_v31 = vsel %vm896_vm1, %v898_v28, %v894_v27  ;;  %v924_v37 = vsel %vm923_vm4, %v5047_v14, %v920_v29 }
 0x636   : > { %v929_v43 = vsel %vm926_vm6, %v928_v40, %v924_v37  ;;  %v950_v38 = vmul.f32 %v899_v31, %v5624_v49 }
 0x637   : > { %v952_v63 = vmul.f32 %v929_v43, %v5613_v39 }
 0x66f   : > { %v961_v7 = vpop.permute.xlu2 %960 }
 0x670   : > { %v971_v61 = vmul.f32 %v961_v7, %v5657_v8 }
 0x672   : > { %980 = vrot.lane.b32.xlu0 %v971_v61, %s5452_s9 }
 0x677   : > { %v965_v18 = vpop.permute.xlu2 %964 }
 0x678   : > { %v973_v19 = vmul.f32 %v965_v18, %v5661_v17 }
 0x67a   : > { %984 = vrot.lane.b32.xlu0 %v973_v19, %s5452_s9 }
 0x685   : > { %v959_v30 = vpop.permute.xlu1 %958 }
 0x686   : > { %v970_v33 = vmul.f32 %v959_v30, %v899_v31  ;;  %v1039_v30 = vld [vmem:[#allocation3 + $0xb] sm:$0x1] }
 0x688   : > { %978 = vrot.lane.b32.xlu2 %v970_v33, %s5452_s9  ;;  %v963_v41 = vpop.permute.xlu0 %962  ;;  %v1040_v33 = vld [vmem:[#allocation3 + $0x13] sm:$0x1] }
 0x689   : > { %v972_v34 = vmul.f32 %v963_v41, %v929_v43  ;;  %v1041_v41 = vld [vmem:[#allocation3 + $0x1b] sm:$0x1] }
 0x68b   : > { %982 = vrot.lane.b32.xlu1 %v972_v34, %s5452_s9 }
 0x6e2   : > { %v979_v46 = vpop.permute.xlu2 %978 }
 0x6e3   : > { %v5668_v48 = vadd.f32 %v979_v46, %v950_v38 }
 0x6e4   : > { %v981_v50 = vpop.permute.xlu0 %980 }
 0x6e5   : > { %5048 = vtanh.f32 %v5668_v48  ;;  %v5673_v51 = vadd.f32 %v981_v50, %v951_v47 }
 0x6e7   : > { %5050 = vtanh.f32 %v5673_v51 }
 0x6eb   : > { %v5049_v54 = vpop.eup %5048 }
 0x6ec   : > { %1002 = vrot.lane.b32.xlu0 %v5049_v54, %s5453_s10  ;;  %v985_v49 = vpop.permute.xlu0 %984 }
 0x6ed   : > { %v5051_v57 = vpop.eup %5050  ;;  %v5679_v62 = vadd.f32 %v985_v49, %v953_v42 }
 0x6ee   : > { %1004 = vrot.lane.b32.xlu1 %v5051_v57, %s5453_s10 }
 0x6ef   : > { %5052 = vtanh.f32 %v5679_v62 }
 0x6f5   : > { %v5053_v35 = vpop.eup %5052 }
 0x6f6   : > { %1008 = vrot.lane.b32.xlu1 %v5053_v35, %s5453_s10 }
 0x6fd   : > { %v983_v1 = vpop.permute.xlu1 %982 }
 0x6fe   : > { %v5685_v2 = vadd.f32 %v983_v1, %v952_v63 }
 0x700   : > { %5054 = vtanh.f32 %v5685_v2 }
 0x706   : > { %v5055_v44 = vpop.eup %5054 }
 0x707   : > { %1006 = vrot.lane.b32.xlu2 %v5055_v44, %s5453_s10 }
 0x75e   : > { %v1003_v4 = vpop.permute.xlu0 %1002 }
 0x75f   : > { %v5695_v7 = vmul.f32 %v1003_v4, %v899_v31 }
 0x760   : > { %v1005_v6 = vpop.permute.xlu1 %1004 }
 0x761   : > { %v5693_v0 = vmul.f32 %v1005_v6, %v5657_v8  ;;  %v1007_v61 = vpop.permute.xlu2 %1006  ;;  %v1042_v11 = vpack.c.bf16 %v5695_v7, %v5695_v7 }
 0x762   : > { %v5699_v9 = vmul.f32 %v1007_v61, %v929_v43 }
 0x763   : > { %v1043_v39 = vpack.c.bf16 %v5693_v0, %v5693_v0  ;;  %v1052_v16 = vunpack.c.l.b16 %v1042_v11 }
 0x764   : > { %v1044_v12 = vpack.c.bf16 %v5699_v9, %v5699_v9 }
 0x765   : > { %v1053_v10 = vunpack.c.l.b16 %v1043_v39 }
 0x766   : > { %v1054_v14 = vunpack.c.l.b16 %v1044_v12 }
 0x767   : > { %v1056_v15 = vrot.slane %v1053_v10, 7 }
 0x768   : > { %v1009_v13 = vpop.permute.xlu1 %1008  ;;  %v1058_v19 = vrot.slane %v1054_v14, 6 }
 0x769   : > { %v5706_v8 = vmul.f32 %v1009_v13, %v5661_v17  ;;  %v1057_v21 = vsel %vm596_vm8, %v1056_v15, %v1052_v16  ;;  %v1038_v17 = vld [vmem:[#allocation3 + $0x3] sm:$0x1] }
 0x76a   : > { %v1059_v23 = vsel %vm599_vm9, %v1058_v19, %v1057_v21 }
 0x76b   : > { %v1045_v18 = vpack.c.bf16 %v5706_v8, %v5706_v8 }
 0x76d   : > { %v1055_v20 = vunpack.c.l.b16 %v1045_v18 }
 0x76f   : > { %v1060_v22 = vrot.slane %v1055_v20, 5 }
 0x771   : > { %v1061_v24 = vsel %vm602_vm10, %v1060_v22, %v1059_v23 }
 0x772   : > { %v1062_v25 = vpack.c.b16 %v1061_v24, %v1061_v24 }
 0x774   : > { %1063 = vrot.lane.b32.xlu2 %v1062_v25, %s5454_s15 }
 0x7ce   : > { %v1064_v26 = vpop.permute.xlu2 %1063 }
 0x7cf   : > { %4752 = vmatmul.msk.bf16.vlgmr.msrb.gmra.mxu3 %vm379_vm11, %v1064_v26 }
 0x852   : > { %v1083_v27 = vpop.f32.mrf.mxu3 }
 0x853   : > { %v1088_v28 = vrot.slane %v1083_v27, 1  ;;  %v1095_v29 = vadd.f32 %v1083_v27, %v1038_v17  ;;  %v1089_v31 = vrot.slane %v1083_v27, 2  ;;  %v1090_v36 = vrot.slane %v1083_v27, 3 }
 0x855   : > { %v1096_v32 = vadd.f32 %v1088_v28, %v1039_v30  ;;  %5056 = vtanh.f32 %v1095_v29  ;;  %v1097_v37 = vadd.f32 %v1089_v31, %v1040_v33  ;;  %v1098_v34 = vadd.f32 %v1090_v36, %v1041_v41 }
 0x856   : > { %v4753_v50 = vmul.f32 -1.442695, %v1095_v29 }
 0x857   : > { %5058 = vtanh.f32 %v1096_v32  ;;  %v4754_v57 = vmul.f32 -1.442695, %v1096_v32  ;;  %v4755_v63 = vmul.f32 -1.442695, %v1097_v37  ;;  %v4756_v44 = vmul.f32 -1.442695, %v1098_v34 }
 0x858   : > { %5060 = vtanh.f32 %v1097_v37 }
 0x859   : > { %5062 = vtanh.f32 %v1098_v34 }
 0x85a   : > { %v1085_v40 = vpop.f32.mrf.mxu3  ;;  %5064 = vpow2.f32 %v4753_v50 }
 0x85b   : > { %v5057_v43 = vpop.eup %5056 }
 0x85c   : > { %1187 = vrot.lane.b32.xlu2 %v5057_v43, %s5451_s8 }
 0x85d   : > { %v5059_v38 = vpop.eup %5058 }
 0x85e   : > { %1189 = vrot.lane.b32.xlu0 %v5059_v38, %s5451_s8  ;;  %v5061_v46 = vpop.eup %5060 }
 0x85f   : > { %1191 = vrot.lane.b32.xlu1 %v5061_v46, %s5451_s8  ;;  %v5063_v47 = vpop.eup %5062 }
 0x860   : > { %v5065_v54 = vpop.eup %5064 }
 0x861   : > { %v1111_v42 = vadd.f32 1.0, %v5065_v54 }
 0x863   : > { %5066 = vrcp.f32 %v1111_v42  ;;  %v1126_v61 = vand.u32 2147483648, %v1111_v42  ;;  %vm1120_vm12 = vweird.f32 %v1111_v42  ;;  %v1124_v11 = vand.u32 2147483647, %v1111_v42 }
 0x864   : > { %5068 = vpow2.f32 %v4754_v57 }
 0x865   : > { %5070 = vpow2.f32 %v4755_v63  ;;  %v1127_v14 = vor.u32 1.1754944e-38, %v1126_v61  ;;  %vm1125_vm14 = vcmp.eq.f32.partialorder %v1124_v11, 8.507059e+37 }
 0x866   : > { %1193 = vrot.lane.b32.xlu0 %v5063_v47, %s5451_s8  ;;  %5072 = vpow2.f32 %v4756_v44 }
 0x869   : > { %v5067_v49 = vpop.eup %5066 }
 0x86a   : > { %v1116_v35 = vmul.f32 %v5067_v49, %v1111_v42  ;;  %v5069_v4 = vpop.eup %5068  ;;  %vm1121_vm7 = vweird.f32 %v5067_v49 }
 0x86b   : > { %v1112_v39 = vadd.f32 1.0, %v5069_v4  ;;  %v5071_v10 = vpop.eup %5070  ;;  %vm1122_vm13 = vmor %vm1120_vm12, %vm1121_vm7 }
 0x86c   : > { %v1117_v1 = vsub.f32 1.0, %v1116_v35  ;;  %v1113_v13 = vadd.f32 1.0, %v5071_v10  ;;  %v5073_v15 = vpop.eup %5072 }
 0x86d   : > { %5074 = vrcp.f32 %v1112_v39  ;;  %v1114_v20 = vadd.f32 1.0, %v5073_v15  ;;  %v1141_v32 = vand.u32 2147483648, %v1112_v39  ;;  %vm1135_vm0 = vweird.f32 %v1112_v39 }
 0x86e   : > { %v1118_v3 = vmul.f32 %v5067_v49, %v1117_v1  ;;  %5076 = vrcp.f32 %v1113_v13  ;;  %v1139_v33 = vand.u32 2147483647, %v1112_v39  ;;  %v1156_v41 = vand.u32 2147483648, %v1113_v13 }
 0x86f   : > { %5078 = vrcp.f32 %v1114_v20  ;;  %v1142_v43 = vor.u32 1.1754944e-38, %v1141_v32  ;;  %vm1150_vm3 = vweird.f32 %v1113_v13  ;;  %v1154_v34 = vand.u32 2147483647, %v1113_v13 }
 0x870   : > { %v1119_v6 = vadd.f32 %v5067_v49, %v1118_v3  ;;  %vm1140_vm4 = vcmp.eq.f32.partialorder %v1139_v33, 8.507059e+37  ;;  %v1157_v42 = vor.u32 1.1754944e-38, %v1156_v41  ;;  %v1169_v57 = vand.u32 2147483647, %v1114_v20 }
 0x871   : > { %vm1155_vm12 = vcmp.eq.f32.partialorder %v1154_v34, 8.507059e+37 }
 0x872   : > { %v1123_v12 = vsel %vm1122_vm13, %v5067_v49, %v1119_v6  ;;  %v1171_v49 = vand.u32 2147483648, %v1114_v20  ;;  %vm1165_vm13 = vweird.f32 %v1114_v20 }
 0x873   : > { %v5719_v18 = vsel %vm1125_vm14, %v1127_v14, %v1123_v12  ;;  %v5075_v21 = vpop.eup %5074 }
 0x874   : > { %v1131_v22 = vmul.f32 %v5075_v21, %v1112_v39  ;;  %v5077_v23 = vpop.eup %5076  ;;  %vm1136_vm15 = vweird.f32 %v5075_v21  ;;  %v1172_v3 = vor.u32 1.1754944e-38, %v1171_v49  ;;  %v1179_v61 = vmul.f32 %v5719_v18, %v5668_v48  ;;  %v1267_v49 = vld [vmem:[#allocation3 + $0x4] sm:$0x1] }
 0x875   : > { %v1146_v24 = vmul.f32 %v5077_v23, %v1113_v13  ;;  %v5079_v26 = vpop.eup %5078  ;;  %vm1137_vm1 = vmor %vm1135_vm0, %vm1136_vm15  ;;  %vm1151_vm2 = vweird.f32 %v5077_v23  ;;  %vm1170_vm15 = vcmp.eq.f32.partialorder %v1169_v57, 8.507059e+37 }
 0x876   : > { %v1132_v25 = vsub.f32 1.0, %v1131_v22  ;;  %v1161_v28 = vmul.f32 %v5079_v26, %v1114_v20  ;;  %vm1152_vm6 = vmor %vm1150_vm3, %vm1151_vm2  ;;  %vm1166_vm7 = vweird.f32 %v5079_v26 }
 0x877   : > { %v1147_v17 = vsub.f32 1.0, %v1146_v24  ;;  %vm1167_vm14 = vmor %vm1165_vm13, %vm1166_vm7 }
 0x878   : > { %v1133_v27 = vmul.f32 %v5075_v21, %v1132_v25  ;;  %v1162_v31 = vsub.f32 1.0, %v1161_v28 }
 0x879   : > { %v1148_v29 = vmul.f32 %v5077_v23, %v1147_v17 }
 0x87a   : > { %v1134_v30 = vadd.f32 %v5075_v21, %v1133_v27  ;;  %v1163_v40 = vmul.f32 %v5079_v26, %v1162_v31 }
 0x87b   : > { %v1149_v36 = vadd.f32 %v5077_v23, %v1148_v29 }
 0x87c   : > { %v1138_v37 = vsel %vm1137_vm1, %v5075_v21, %v1134_v30  ;;  %v1164_v54 = vadd.f32 %v5079_v26, %v1163_v40 }
 0x87d   : > { %v1143_v46 = vsel %vm1140_vm4, %v1142_v43, %v1138_v37  ;;  %v1153_v47 = vsel %vm1152_vm6, %v5077_v23, %v1149_v36 }
 0x87e   : > { %v1158_v63 = vsel %vm1155_vm12, %v1157_v42, %v1153_v47  ;;  %v1168_v44 = vsel %vm1167_vm14, %v5079_v26, %v1164_v54  ;;  %v1180_v48 = vmul.f32 %v1143_v46, %v5673_v51  ;;  %v4902_v51 = vld [vmem:[%s6914_s1 + $0x10] sm:$0xff] }
 0x87f   : > { %v1173_v4 = vsel %vm1170_vm15, %v1172_v3, %v1168_v44  ;;  %v1181_v12 = vmul.f32 %v1158_v63, %v5685_v2  ;;  %1310 = vmatpush.bf16.msra.mxu0 %v4902_v51 }
 0x880   : > { %v1182_v2 = vmul.f32 %v1173_v4, %v5679_v62 }
 0x8b6   : > { %v1188_v16 = vpop.permute.xlu2 %1187 }
 0x8b7   : > { %v1199_v19 = vmul.f32 %v1188_v16, %v5719_v18 }
 0x8b9   : > { %1207 = vrot.lane.b32.xlu0 %v1199_v19, %s5452_s9 }
 0x8d0   : > { %v1190_v38 = vpop.permute.xlu0 %1189 }
 0x8d1   : > { %v1200_v50 = vmul.f32 %v1190_v38, %v1143_v46  ;;  %v1192_v35 = vpop.permute.xlu1 %1191 }
 0x8d2   : > { %v1201_v1 = vmul.f32 %v1192_v35, %v1158_v63 }
 0x8d3   : > { %1209 = vrot.lane.b32.xlu1 %v1200_v50, %s5452_s9 }
 0x8d4   : > { %1211 = vrot.lane.b32.xlu2 %v1201_v1, %s5452_s9  ;;  %v1268_v1 = vld [vmem:[#allocation3 + $0xc] sm:$0x1] }
 0x8d8   : > { %v1194_v6 = vpop.permute.xlu0 %1193 }
 0x8d9   : > { %v1202_v39 = vmul.f32 %v1194_v6, %v1173_v4 }
 0x8db   : > { %1213 = vrot.lane.b32.xlu1 %v1202_v39, %s5452_s9 }
 0x92b   : > { %v1208_v10 = vpop.permute.xlu0 %1207 }
 0x92c   : > { %v5728_v11 = vadd.f32 %v1208_v10, %v1179_v61  ;;  %v1270_v10 = vld [vmem:[#allocation3 + $0x1c] sm:$0x1] }
 0x92e   : > { %5080 = vtanh.f32 %v5728_v11  ;;  %v1212_v13 = vpop.permute.xlu2 %1211 }
 0x92f   : > { %v5732_v14 = vadd.f32 %v1212_v13, %v1181_v12 }
 0x931   : > { %5082 = vtanh.f32 %v5732_v14 }
 0x934   : > { %v5081_v15 = vpop.eup %5080 }
 0x935   : > { %1231 = vrot.lane.b32.xlu1 %v5081_v15, %s5453_s10 }
 0x937   : > { %v5083_v16 = vpop.eup %5082 }
 0x938   : > { %1235 = vrot.lane.b32.xlu0 %v5083_v16, %s5453_s10 }
 0x945   : > { %v1210_v19 = vpop.permute.xlu1 %1209 }
 0x946   : > { %v5738_v20 = vadd.f32 %v1210_v19, %v1180_v48 }
 0x948   : > { %5084 = vtanh.f32 %v5738_v20 }
 0x94d   : > { %v1214_v21 = vpop.permute.xlu1 %1213 }
 0x94e   : > { %v5085_v22 = vpop.eup %5084  ;;  %v5742_v23 = vadd.f32 %v1214_v21, %v1182_v2 }
 0x94f   : > { %1233 = vrot.lane.b32.xlu2 %v5085_v22, %s5453_s10 }
 0x950   : > { %5086 = vtanh.f32 %v5742_v23 }
 0x956   : > { %v5087_v24 = vpop.eup %5086 }
 0x957   : > { %1237 = vrot.lane.b32.xlu2 %v5087_v24, %s5453_s10 }
 0x9a7   : > { %v1232_v25 = vpop.permute.xlu1 %1231 }
 0x9a8   : > { %v5753_v62 = vmul.f32 %v1232_v25, %v5719_v18 }
 0x9a9   : > { %v1234_v26 = vpop.permute.xlu2 %1233 }
 0x9aa   : > { %v5750_v17 = vmul.f32 %v1234_v26, %v1143_v46  ;;  %v1236_v28 = vpop.permute.xlu0 %1235  ;;  %v1271_v31 = vpack.c.bf16 %v5753_v62, %v5753_v62 }
 0x9ab   : > { %v5757_v29 = vmul.f32 %v1236_v28, %v1158_v63 }
 0x9ac   : > { %v1272_v27 = vpack.c.bf16 %v5750_v17, %v5750_v17  ;;  %v1281_v18 = vunpack.c.l.b16 %v1271_v31 }
 0x9ad   : > { %v1273_v32 = vpack.c.bf16 %v5757_v29, %v5757_v29 }
 0x9ae   : > { %v1282_v30 = vunpack.c.l.b16 %v1272_v27 }
 0x9af   : > { %v1283_v36 = vunpack.c.l.b16 %v1273_v32 }
 0x9b0   : > { %v1285_v37 = vrot.slane %v1282_v30, 7 }
 0x9b1   : > { %v1238_v33 = vpop.permute.xlu2 %1237  ;;  %v1287_v43 = vrot.slane %v1283_v36, 6 }
 0x9b2   : > { %v5763_v40 = vmul.f32 %v1238_v33, %v1173_v4  ;;  %v1286_v38 = vsel %vm596_vm8, %v1285_v37, %v1281_v18  ;;  %v1269_v4 = vld [vmem:[#allocation3 + $0x14] sm:$0x1] }
 0x9b3   : > { %v1288_v47 = vsel %vm599_vm9, %v1287_v43, %v1286_v38 }
 0x9b4   : > { %v1274_v41 = vpack.c.bf16 %v5763_v40, %v5763_v40 }
 0x9b6   : > { %v1284_v34 = vunpack.c.l.b16 %v1274_v41 }
 0x9b8   : > { %v1289_v46 = vrot.slane %v1284_v34, 5 }
 0x9ba   : > { %v1290_v50 = vsel %vm602_vm10, %v1289_v46, %v1288_v47 }
 0x9bb   : > { %v1291_v54 = vpack.c.b16 %v1290_v50, %v1290_v50 }
 0x9bd   : > { %1292 = vrot.lane.b32.xlu0 %v1291_v54, %s5454_s15 }
 0xa2f   : > { %v1293_v42 = vpop.permute.xlu0 %1292 }
 0xa30   : > { %4761 = vmatmul.msk.bf16.vlgmr.msra.gmra.mxu0 %vm379_vm11, %v1293_v42 }
 0xaad   : > { %v1312_v57 = vpop.f32.mrf.mxu0 }
 0xaae   : > { %v1317_v35 = vrot.slane %v1312_v57, 1  ;;  %v1324_v63 = vadd.f32 %v1312_v57, %v1267_v49  ;;  %v1318_v44 = vrot.slane %v1312_v57, 2  ;;  %v1319_v6 = vrot.slane %v1312_v57, 3 }
 0xab0   : > { %v1325_v3 = vadd.f32 %v1317_v35, %v1268_v1  ;;  %5088 = vtanh.f32 %v1324_v63  ;;  %v1326_v39 = vadd.f32 %v1318_v44, %v1269_v4  ;;  %v1327_v13 = vadd.f32 %v1319_v6, %v1270_v10 }
 0xab1   : > { %v4762_v22 = vmul.f32 -1.442695, %v1324_v63 }
 0xab2   : > { %5090 = vtanh.f32 %v1325_v3  ;;  %v4764_v19 = vmul.f32 -1.442695, %v1326_v39  ;;  %v4763_v24 = vmul.f32 -1.442695, %v1325_v3  ;;  %v4765_v27 = vmul.f32 -1.442695, %v1327_v13 }
 0xab3   : > { %5092 = vtanh.f32 %v1326_v39 }
 0xab4   : > { %5094 = vtanh.f32 %v1327_v13 }
 0xab5   : > { %v1314_v61 = vpop.f32.mrf.mxu0  ;;  %5096 = vpow2.f32 %v4764_v19 }
 0xab6   : > { %v5089_v12 = vpop.eup %5088 }
 0xab7   : > { %1416 = vrot.lane.b32.xlu0 %v5089_v12, %s5451_s8 }
 0xab8   : > { %v5091_v15 = vpop.eup %5090 }
 0xab9   : > { %1418 = vrot.lane.b32.xlu1 %v5091_v15, %s5451_s8  ;;  %v5093_v16 = vpop.eup %5092 }
 0xaba   : > { %1420 = vrot.lane.b32.xlu2 %v5093_v16, %s5451_s8  ;;  %v5095_v48 = vpop.eup %5094 }
 0xabb   : > { %v5097_v2 = vpop.eup %5096 }
 0xabc   : > { %v1342_v21 = vadd.f32 1.0, %v5097_v2 }
 0xabe   : > { %5098 = vrcp.f32 %v1342_v21  ;;  %v1385_v18 = vand.u32 2147483648, %v1342_v21  ;;  %vm1379_vm1 = vweird.f32 %v1342_v21  ;;  %v1383_v41 = vand.u32 2147483647, %v1342_v21 }
 0xabf   : > { %5100 = vpow2.f32 %v4762_v22 }
 0xac0   : > { %5102 = vpow2.f32 %v4763_v24  ;;  %v1386_v47 = vor.u32 1.1754944e-38, %v1385_v18  ;;  %vm1384_vm3 = vcmp.eq.f32.partialorder %v1383_v41, 8.507059e+37 }
 0xac1   : > { %1422 = vrot.lane.b32.xlu1 %v5095_v48, %s5451_s8  ;;  %5104 = vpow2.f32 %v4765_v27 }
 0xac4   : > { %v5099_v51 = vpop.eup %5098 }
 0xac5   : > { %v1375_v25 = vmul.f32 %v5099_v51, %v1342_v21  ;;  %v5101_v26 = vpop.eup %5100  ;;  %vm1380_vm0 = vweird.f32 %v5099_v51 }
 0xac6   : > { %v5103_v28 = vpop.eup %5102  ;;  %v1340_v31 = vadd.f32 1.0, %v5101_v26  ;;  %vm1381_vm2 = vmor %vm1379_vm1, %vm1380_vm0 }
 0xac7   : > { %v1376_v30 = vsub.f32 1.0, %v1375_v25  ;;  %v1341_v32 = vadd.f32 1.0, %v5103_v28  ;;  %v5105_v36 = vpop.eup %5104 }
 0xac8   : > { %5106 = vrcp.f32 %v1340_v31  ;;  %v1343_v34 = vadd.f32 1.0, %v5105_v36  ;;  %vm1349_vm6 = vweird.f32 %v1340_v31  ;;  %v1355_v39 = vand.u32 2147483648, %v1340_v31 }
 0xac9   : > { %v1377_v33 = vmul.f32 %v5099_v51, %v1376_v30  ;;  %5108 = vrcp.f32 %v1341_v32  ;;  %v1353_v61 = vand.u32 2147483647, %v1340_v31  ;;  %v1370_v13 = vand.u32 2147483648, %v1341_v32 }
 0xaca   : > { %5110 = vrcp.f32 %v1343_v34  ;;  %vm1364_vm13 = vweird.f32 %v1341_v32  ;;  %v1368_v16 = vand.u32 2147483647, %v1341_v32  ;;  %v1356_v48 = vor.u32 1.1754944e-38, %v1355_v39 }
 0xacb   : > { %v1378_v37 = vadd.f32 %v5099_v51, %v1377_v33  ;;  %vm1354_vm15 = vcmp.eq.f32.partialorder %v1353_v61, 8.507059e+37  ;;  %v1371_v24 = vor.u32 1.1754944e-38, %v1370_v13  ;;  %v1400_v30 = vand.u32 2147483648, %v1343_v34 }
 0xacc   : > { %vm1369_vm0 = vcmp.eq.f32.partialorder %v1368_v16, 8.507059e+37 }
 0xacd   : > { %v1382_v38 = vsel %vm1381_vm2, %v5099_v51, %v1378_v37  ;;  %vm1394_vm2 = vweird.f32 %v1343_v34  ;;  %v1401_v33 = vor.u32 1.1754944e-38, %v1400_v30 }
 0xace   : > { %v5107_v43 = vpop.eup %5106  ;;  %v5776_v42 = vsel %vm1384_vm3, %v1386_v47, %v1382_v38 }
 0xacf   : > { %v5109_v46 = vpop.eup %5108  ;;  %v1345_v50 = vmul.f32 %v5107_v43, %v1340_v31  ;;  %vm1350_vm4 = vweird.f32 %v5107_v43  ;;  %v1398_v31 = vand.u32 2147483647, %v1343_v34 }
 0xad0   : > { %v1360_v57 = vmul.f32 %v5109_v46, %v1341_v32  ;;  %v5111_v1 = vpop.eup %5110  ;;  %vm1365_vm7 = vweird.f32 %v5109_v46  ;;  %vm1351_vm12 = vmor %vm1349_vm6, %vm1350_vm4 }
 0xad1   : > { %v1346_v35 = vsub.f32 1.0, %v1345_v50  ;;  %v1390_v4 = vmul.f32 %v5111_v1, %v1343_v34  ;;  %vm1366_vm14 = vmor %vm1364_vm13, %vm1365_vm7  ;;  %vm1395_vm1 = vweird.f32 %v5111_v1  ;;  %vm1399_vm4 = vcmp.eq.f32.partialorder %v1398_v31, 8.507059e+37  ;;  %v1496_v31 = vld [vmem:[#allocation3 + $0x5] sm:$0x1] }
 0xad2   : > { %v1361_v63 = vsub.f32 1.0, %v1360_v57  ;;  %vm1396_vm3 = vmor %vm1394_vm2, %vm1395_vm1 }
 0xad3   : > { %v1347_v44 = vmul.f32 %v5107_v43, %v1346_v35  ;;  %v1391_v12 = vsub.f32 1.0, %v1390_v4 }
 0xad4   : > { %v1362_v3 = vmul.f32 %v5109_v46, %v1361_v63 }
 0xad5   : > { %v1348_v6 = vadd.f32 %v5107_v43, %v1347_v44  ;;  %v1392_v2 = vmul.f32 %v5111_v1, %v1391_v12  ;;  %v4903_v44 = vld [vmem:[%s6914_s1 + $0x10] sm:$0xff] }
 0xad6   : > { %v1363_v10 = vadd.f32 %v5109_v46, %v1362_v3  ;;  %1539 = vmatpush.bf16.msra.mxu1 %v4903_v44 }
 0xad7   : > { %v1352_v15 = vsel %vm1351_vm12, %v5107_v43, %v1348_v6  ;;  %v1393_v28 = vadd.f32 %v5111_v1, %v1392_v2 }
 0xad8   : > { %v1367_v19 = vsel %vm1366_vm14, %v5109_v46, %v1363_v10  ;;  %v1357_v22 = vsel %vm1354_vm15, %v1356_v48, %v1352_v15  ;;  %v1410_v46 = vmul.f32 %v5776_v42, %v5732_v14 }
 0xad9   : > { %v1372_v26 = vsel %vm1369_vm0, %v1371_v24, %v1367_v19  ;;  %v1397_v32 = vsel %vm1396_vm3, %v5111_v1, %v1393_v28  ;;  %v1408_v35 = vmul.f32 %v1357_v22, %v5728_v11 }
 0xada   : > { %v1402_v36 = vsel %vm1399_vm4, %v1401_v33, %v1397_v32  ;;  %v1409_v41 = vmul.f32 %v1372_v26, %v5738_v20 }
 0xadb   : > { %v1411_v50 = vmul.f32 %v1402_v36, %v5742_v23 }
 0xb14   : > { %v1421_v54 = vpop.permute.xlu2 %1420 }
 0xb15   : > { %v1430_v49 = vmul.f32 %v1421_v54, %v5776_v42 }
 0xb17   : > { %1440 = vrot.lane.b32.xlu0 %v1430_v49, %s5452_s9 }
 0xb29   : > { %v1417_v21 = vpop.permute.xlu0 %1416 }
 0xb2a   : > { %v1428_v51 = vmul.f32 %v1417_v21, %v1357_v22 }
 0xb2b   : > { %v1419_v25 = vpop.permute.xlu1 %1418 }
 0xb2c   : > { %v1429_v27 = vmul.f32 %v1419_v25, %v1372_v26  ;;  %1436 = vrot.lane.b32.xlu1 %v1428_v51, %s5452_s9 }
 0xb2e   : > { %1438 = vrot.lane.b32.xlu2 %v1429_v27, %s5452_s9 }
 0xb33   : > { %v1423_v37 = vpop.permute.xlu1 %1422 }
 0xb34   : > { %v1431_v18 = vmul.f32 %v1423_v37, %v1402_v36  ;;  %v1497_v37 = vld [vmem:[#allocation3 + $0xd] sm:$0x1] }
 0xb36   : > { %1442 = vrot.lane.b32.xlu2 %v1431_v18, %s5452_s9 }
 0xb88   : > { %v1439_v43 = vpop.permute.xlu2 %1438 }
 0xb89   : > { %v5784_v38 = vadd.f32 %v1439_v43, %v1409_v41  ;;  %v1441_v34 = vpop.permute.xlu0 %1440  ;;  %v1498_v43 = vld [vmem:[#allocation3 + $0x15] sm:$0x1] }
 0xb8a   : > { %v5789_v47 = vadd.f32 %v1441_v34, %v1410_v46 }
 0xb8b   : > { %5112 = vtanh.f32 %v5784_v38 }
 0xb8c   : > { %5114 = vtanh.f32 %v5789_v47 }
 0xb90   : > { %v1443_v54 = vpop.permute.xlu2 %1442 }
 0xb91   : > { %v5113_v49 = vpop.eup %5112  ;;  %v5793_v57 = vadd.f32 %v1443_v54, %v1411_v50  ;;  %v1499_v54 = vld [vmem:[#allocation3 + $0x1d] sm:$0x1] }
 0xb92   : > { %1462 = vrot.lane.b32.xlu0 %v5113_v49, %s5453_s10  ;;  %v5115_v20 = vpop.eup %5114 }
 0xb93   : > { %5116 = vtanh.f32 %v5793_v57  ;;  %1464 = vrot.lane.b32.xlu1 %v5115_v20, %s5453_s10 }
 0xb99   : > { %v5117_v14 = vpop.eup %5116 }
 0xb9a   : > { %1466 = vrot.lane.b32.xlu0 %v5117_v14, %s5453_s10 }
 0xb9e   : > { %v1437_v63 = vpop.permute.xlu1 %1436 }
 0xb9f   : > { %v5800_v1 = vadd.f32 %v1437_v63, %v1408_v35 }
 0xba1   : > { %5118 = vtanh.f32 %v5800_v1 }
 0xba7   : > { %v5119_v23 = vpop.eup %5118 }
 0xba8   : > { %1460 = vrot.lane.b32.xlu2 %v5119_v23, %s5453_s10 }
 0xc02   : > { %v1461_v3 = vpop.permute.xlu2 %1460 }
 0xc03   : > { %v5809_v39 = vmul.f32 %v1461_v3, %v1357_v22 }
 0xc04   : > { %v1463_v4 = vpop.permute.xlu0 %1462 }
 0xc05   : > { %v5807_v6 = vmul.f32 %v1463_v4, %v1372_v26  ;;  %v1465_v61 = vpop.permute.xlu1 %1464  ;;  %v1500_v13 = vpack.c.bf16 %v5809_v39, %v5809_v39 }
 0xc06   : > { %v5814_v10 = vmul.f32 %v1465_v61, %v5776_v42 }
 0xc07   : > { %v1501_v11 = vpack.c.bf16 %v5807_v6, %v5807_v6  ;;  %v1510_v21 = vunpack.c.l.b16 %v1500_v13 }
 0xc08   : > { %v1502_v15 = vpack.c.bf16 %v5814_v10, %v5814_v10 }
 0xc09   : > { %v1511_v12 = vunpack.c.l.b16 %v1501_v11 }
 0xc0a   : > { %v1512_v48 = vunpack.c.l.b16 %v1502_v15 }
 0xc0b   : > { %v1514_v19 = vrot.slane %v1511_v12, 7 }
 0xc0c   : > { %v1467_v16 = vpop.permute.xlu0 %1466  ;;  %v1516_v24 = vrot.slane %v1512_v48, 6 }
 0xc0d   : > { %v5820_v2 = vmul.f32 %v1467_v16, %v1402_v36  ;;  %v1515_v42 = vsel %vm596_vm8, %v1514_v19, %v1510_v21 }
 0xc0e   : > { %v1517_v26 = vsel %vm599_vm9, %v1516_v24, %v1515_v42 }
 0xc0f   : > { %v1503_v22 = vpack.c.bf16 %v5820_v2, %v5820_v2 }
 0xc11   : > { %v1513_v51 = vunpack.c.l.b16 %v1503_v22 }
 0xc13   : > { %v1518_v25 = vrot.slane %v1513_v51, 5 }
 0xc15   : > { %v1519_v27 = vsel %vm602_vm10, %v1518_v25, %v1517_v26 }
 0xc16   : > { %v1520_v28 = vpack.c.b16 %v1519_v27, %v1519_v27 }
 0xc18   : > { %1521 = vrot.lane.b32.xlu1 %v1520_v28, %s5454_s15 }
 0xc8a   : > { %v1522_v30 = vpop.permute.xlu1 %1521 }
 0xc8b   : > { %4770 = vmatmul.msk.bf16.vlgmr.msra.gmra.mxu1 %vm379_vm11, %v1522_v30 }
 0xd08   : > { %v1541_v32 = vpop.f32.mrf.mxu1 }
 0xd09   : > { %v1546_v33 = vrot.slane %v1541_v32, 1  ;;  %v1553_v36 = vadd.f32 %v1541_v32, %v1496_v31  ;;  %v1547_v18 = vrot.slane %v1541_v32, 2  ;;  %v1548_v46 = vrot.slane %v1541_v32, 3 }
 0xd0b   : > { %v1554_v41 = vadd.f32 %v1546_v33, %v1497_v37  ;;  %5120 = vtanh.f32 %v1553_v36  ;;  %v1555_v34 = vadd.f32 %v1547_v18, %v1498_v43  ;;  %v1556_v20 = vadd.f32 %v1548_v46, %v1499_v54 }
 0xd0c   : > { %v4771_v12 = vmul.f32 -1.442695, %v1553_v36 }
 0xd0d   : > { %5122 = vtanh.f32 %v1554_v41  ;;  %v4772_v23 = vmul.f32 -1.442695, %v1554_v41  ;;  %v4774_v44 = vmul.f32 -1.442695, %v1556_v20  ;;  %v4773_v16 = vmul.f32 -1.442695, %v1555_v34 }
 0xd0e   : > { %5124 = vtanh.f32 %v1555_v34 }
 0xd0f   : > { %5126 = vtanh.f32 %v1556_v20 }
 0xd10   : > { %v1543_v50 = vpop.f32.mrf.mxu1  ;;  %5128 = vpow2.f32 %v4772_v23 }
 0xd11   : > { %v5121_v49 = vpop.eup %5120  ;;  %5130 = vpow2.f32 %v4774_v44 }
 0xd12   : > { %1645 = vrot.lane.b32.xlu1 %v5121_v49, %s5451_s8 }
 0xd13   : > { %v5123_v14 = vpop.eup %5122 }
 0xd14   : > { %1647 = vrot.lane.b32.xlu2 %v5123_v14, %s5451_s8  ;;  %v5125_v35 = vpop.eup %5124 }
 0xd15   : > { %1649 = vrot.lane.b32.xlu0 %v5125_v35, %s5451_s8  ;;  %v5127_v63 = vpop.eup %5126 }
 0xd16   : > { %v5129_v3 = vpop.eup %5128 }
 0xd17   : > { %v1570_v4 = vadd.f32 1.0, %v5129_v3  ;;  %v5131_v11 = vpop.eup %5130 }
 0xd18   : > { %v1572_v61 = vadd.f32 1.0, %v5131_v11 }
 0xd19   : > { %5132 = vrcp.f32 %v1570_v4  ;;  %v1599_v27 = vand.u32 2147483648, %v1570_v4  ;;  %vm1593_vm7 = vweird.f32 %v1570_v4  ;;  %v1597_v28 = vand.u32 2147483647, %v1570_v4 }
 0xd1a   : > { %5134 = vrcp.f32 %v1572_v61  ;;  %v1629_v46 = vand.u32 2147483648, %v1572_v61  ;;  %vm1623_vm15 = vweird.f32 %v1572_v61  ;;  %v1627_v34 = vand.u32 2147483647, %v1572_v61 }
 0xd1b   : > { %5136 = vpow2.f32 %v4771_v12  ;;  %v1600_v33 = vor.u32 1.1754944e-38, %v1599_v27  ;;  %vm1598_vm13 = vcmp.eq.f32.partialorder %v1597_v28, 8.507059e+37 }
 0xd1c   : > { %1651 = vrot.lane.b32.xlu2 %v5127_v63, %s5451_s8  ;;  %5138 = vpow2.f32 %v4773_v16  ;;  %v1630_v20 = vor.u32 1.1754944e-38, %v1629_v46  ;;  %vm1628_vm1 = vcmp.eq.f32.partialorder %v1627_v34, 8.507059e+37 }
 0xd1f   : > { %v5133_v13 = vpop.eup %5132 }
 0xd20   : > { %v1589_v15 = vmul.f32 %v5133_v13, %v1570_v4  ;;  %v5135_v19 = vpop.eup %5134  ;;  %vm1594_vm6 = vweird.f32 %v5133_v13 }
 0xd21   : > { %v5137_v21 = vpop.eup %5136  ;;  %v1619_v24 = vmul.f32 %v5135_v19, %v1572_v61  ;;  %vm1595_vm12 = vmor %vm1593_vm7, %vm1594_vm6  ;;  %vm1624_vm14 = vweird.f32 %v5135_v19 }
 0xd22   : > { %v1590_v48 = vsub.f32 1.0, %v1589_v15  ;;  %v1569_v51 = vadd.f32 1.0, %v5137_v21  ;;  %v5139_v42 = vpop.eup %5138  ;;  %vm1625_vm0 = vmor %vm1623_vm15, %vm1624_vm14 }
 0xd23   : > { %v1620_v26 = vsub.f32 1.0, %v1619_v24  ;;  %v1571_v30 = vadd.f32 1.0, %v5139_v42 }
 0xd24   : > { %v1591_v22 = vmul.f32 %v5133_v13, %v1590_v48  ;;  %5140 = vrcp.f32 %v1569_v51  ;;  %v1584_v61 = vand.u32 2147483648, %v1569_v51  ;;  %vm1578_vm3 = vweird.f32 %v1569_v51 }
 0xd25   : > { %v1621_v32 = vmul.f32 %v5135_v19, %v1620_v26  ;;  %5142 = vrcp.f32 %v1571_v30  ;;  %v1582_v12 = vand.u32 2147483647, %v1569_v51  ;;  %v1612_v42 = vand.u32 2147483647, %v1571_v30 }
 0xd26   : > { %v1592_v25 = vadd.f32 %v5133_v13, %v1591_v22  ;;  %v1585_v16 = vor.u32 1.1754944e-38, %v1584_v61  ;;  %v1614_v22 = vand.u32 2147483648, %v1571_v30 }
 0xd27   : > { %v1622_v43 = vadd.f32 %v5135_v19, %v1621_v32  ;;  %vm1583_vm6 = vcmp.eq.f32.partialorder %v1582_v12, 8.507059e+37  ;;  %vm1613_vm14 = vcmp.eq.f32.partialorder %v1612_v42, 8.507059e+37 }
 0xd28   : > { %v1596_v31 = vsel %vm1595_vm12, %v5133_v13, %v1592_v25  ;;  %vm1608_vm12 = vweird.f32 %v1571_v30  ;;  %v1615_v26 = vor.u32 1.1754944e-38, %v1614_v22 }
 0xd29   : > { %v5833_v18 = vsel %vm1598_vm13, %v1600_v33, %v1596_v31  ;;  %v1626_v54 = vsel %vm1625_vm0, %v5135_v19, %v1622_v43 }
 0xd2a   : > { %v5141_v36 = vpop.eup %5140  ;;  %v5837_v35 = vsel %vm1628_vm1, %v1630_v20, %v1626_v54  ;;  %v4904_v20 = vld [vmem:[%s6914_s1 + $0x10] sm:$0xff] }
 0xd2b   : > { %v1574_v50 = vmul.f32 %v5141_v36, %v1569_v51  ;;  %v5143_v49 = vpop.eup %5142  ;;  %vm1579_vm2 = vweird.f32 %v5141_v36  ;;  %v1640_v43 = vmul.f32 %v5837_v35, %v5793_v57  ;;  %1768 = vmatpush.bf16.msra.mxu2 %v4904_v20 }
 0xd2c   : > { %v1604_v44 = vmul.f32 %v5143_v49, %v1571_v30  ;;  %vm1580_vm4 = vmor %vm1578_vm3, %vm1579_vm2  ;;  %vm1609_vm7 = vweird.f32 %v5143_v49 }
 0xd2d   : > { %v1575_v14 = vsub.f32 1.0, %v1574_v50  ;;  %vm1610_vm13 = vmor %vm1608_vm12, %vm1609_vm7 }
 0xd2e   : > { %v1605_v4 = vsub.f32 1.0, %v1604_v44 }
 0xd2f   : > { %v1576_v3 = vmul.f32 %v5141_v36, %v1575_v14 }
 0xd30   : > { %v1606_v13 = vmul.f32 %v5143_v49, %v1605_v4 }
 0xd31   : > { %v1577_v11 = vadd.f32 %v5141_v36, %v1576_v3 }
 0xd32   : > { %v1607_v48 = vadd.f32 %v5143_v49, %v1606_v13 }
 0xd33   : > { %v1581_v15 = vsel %vm1580_vm4, %v5141_v36, %v1577_v11  ;;  %v1638_v36 = vmul.f32 %v5833_v18, %v5784_v38 }
 0xd34   : > { %v1586_v21 = vsel %vm1583_vm6, %v1585_v16, %v1581_v15  ;;  %v1611_v25 = vsel %vm1610_vm13, %v5143_v49, %v1607_v48 }
 0xd35   : > { %v1616_v27 = vsel %vm1613_vm14, %v1615_v26, %v1611_v25  ;;  %v1637_v31 = vmul.f32 %v1586_v21, %v5800_v1 }
 0xd36   : > { %v1639_v50 = vmul.f32 %v1616_v27, %v5789_v47 }
 0xd6e   : > { %v1648_v37 = vpop.permute.xlu2 %1647 }
 0xd6f   : > { %v1658_v41 = vmul.f32 %v1648_v37, %v5833_v18 }
 0xd71   : > { %1667 = vrot.lane.b32.xlu0 %v1658_v41, %s5452_s9 }
 0xd76   : > { %v1652_v63 = vpop.permute.xlu2 %1651 }
 0xd77   : > { %v1660_v23 = vmul.f32 %v1652_v63, %v5837_v35 }
 0xd79   : > { %1671 = vrot.lane.b32.xlu0 %v1660_v23, %s5452_s9 }
 0xd84   : > { %v1646_v19 = vpop.permute.xlu1 %1645 }
 0xd85   : > { %v1657_v24 = vmul.f32 %v1646_v19, %v1586_v21 }
 0xd87   : > { %1665 = vrot.lane.b32.xlu2 %v1657_v24, %s5452_s9  ;;  %v1650_v51 = vpop.permute.xlu0 %1649 }
 0xd88   : > { %v1659_v28 = vmul.f32 %v1650_v51, %v1616_v27 }
 0xd8a   : > { %1669 = vrot.lane.b32.xlu1 %v1659_v28, %s5452_s9 }
 0xde1   : > { %v1666_v32 = vpop.permute.xlu2 %1665 }
 0xde2   : > { %v5844_v33 = vadd.f32 %v1666_v32, %v1637_v31 }
 0xde3   : > { %v1668_v30 = vpop.permute.xlu0 %1667 }
 0xde4   : > { %5144 = vtanh.f32 %v5844_v33  ;;  %v5849_v37 = vadd.f32 %v1668_v30, %v1638_v36  ;;  %v1726_v36 = vld [vmem:[#allocation3 + $0xe] sm:$0x1] }
 0xde6   : > { %5146 = vtanh.f32 %v5849_v37 }
 0xdea   : > { %v5145_v41 = vpop.eup %5144 }
 0xdeb   : > { %1689 = vrot.lane.b32.xlu0 %v5145_v41, %s5453_s10  ;;  %v1672_v1 = vpop.permute.xlu0 %1671 }
 0xdec   : > { %v5147_v46 = vpop.eup %5146  ;;  %v5855_v34 = vadd.f32 %v1672_v1, %v1640_v43  ;;  %v1727_v43 = vld [vmem:[#allocation3 + $0x16] sm:$0x1] }
 0xded   : > { %1691 = vrot.lane.b32.xlu1 %v5147_v46, %s5453_s10 }
 0xdee   : > { %5148 = vtanh.f32 %v5855_v34 }
 0xdf4   : > { %v5149_v38 = vpop.eup %5148 }
 0xdf5   : > { %1695 = vrot.lane.b32.xlu1 %v5149_v38, %s5453_s10 }
 0xdfc   : > { %v1670_v54 = vpop.permute.xlu1 %1669 }
 0xdfd   : > { %v5861_v49 = vadd.f32 %v1670_v54, %v1639_v50  ;;  %v1728_v50 = vld [vmem:[#allocation3 + $0x1e] sm:$0x1] }
 0xdff   : > { %5150 = vtanh.f32 %v5861_v49 }
 0xe05   : > { %v5151_v57 = vpop.eup %5150 }
 0xe06   : > { %1693 = vrot.lane.b32.xlu2 %v5151_v57, %s5453_s10 }
 0xe5d   : > { %v1690_v14 = vpop.permute.xlu0 %1689 }
 0xe5e   : > { %v5871_v44 = vmul.f32 %v1690_v14, %v1586_v21 }
 0xe5f   : > { %v1692_v63 = vpop.permute.xlu1 %1691 }
 0xe60   : > { %v5869_v23 = vmul.f32 %v1692_v63, %v5833_v18  ;;  %v1694_v3 = vpop.permute.xlu2 %1693  ;;  %v1729_v61 = vpack.c.bf16 %v5871_v44, %v5871_v44 }
 0xe61   : > { %v5875_v4 = vmul.f32 %v1694_v3, %v1616_v27 }
 0xe62   : > { %v1730_v47 = vpack.c.bf16 %v5869_v23, %v5869_v23  ;;  %v1739_v48 = vunpack.c.l.b16 %v1729_v61 }
 0xe63   : > { %v1731_v12 = vpack.c.bf16 %v5875_v4, %v5875_v4 }
 0xe64   : > { %v1740_v11 = vunpack.c.l.b16 %v1730_v47 }
 0xe65   : > { %v1741_v15 = vunpack.c.l.b16 %v1731_v12 }
 0xe66   : > { %v1743_v16 = vrot.slane %v1740_v11, 7 }
 0xe67   : > { %v1696_v13 = vpop.permute.xlu1 %1695  ;;  %v1745_v21 = vrot.slane %v1741_v15, 6 }
 0xe68   : > { %v5882_v18 = vmul.f32 %v1696_v13, %v5837_v35  ;;  %v1744_v24 = vsel %vm596_vm8, %v1743_v16, %v1739_v48  ;;  %v1725_v35 = vld [vmem:[#allocation3 + $0x6] sm:$0x1] }
 0xe69   : > { %v1746_v25 = vsel %vm599_vm9, %v1745_v21, %v1744_v24 }
 0xe6a   : > { %v1732_v19 = vpack.c.bf16 %v5882_v18, %v5882_v18 }
 0xe6c   : > { %v1742_v22 = vunpack.c.l.b16 %v1732_v19 }
 0xe6e   : > { %v1747_v42 = vrot.slane %v1742_v22, 5 }
 0xe70   : > { %v1748_v26 = vsel %vm602_vm10, %v1747_v42, %v1746_v25 }
 0xe71   : > { %v1749_v51 = vpack.c.b16 %v1748_v26, %v1748_v26 }
 0xe73   : > { %1750 = vrot.lane.b32.xlu2 %v1749_v51, %s5454_s15 }
 0xecd   : > { %v1751_v27 = vpop.permute.xlu2 %1750 }
 0xece   : > { %4779 = vmatmul.msk.bf16.vlgmr.msra.gmra.mxu2 %vm379_vm11, %v1751_v27 }
 0xf51   : > { %v1770_v28 = vpop.f32.mrf.mxu2 }
 0xf52   : > { %v1775_v31 = vrot.slane %v1770_v28, 1  ;;  %v1782_v32 = vadd.f32 %v1770_v28, %v1725_v35  ;;  %v1776_v30 = vrot.slane %v1770_v28, 2  ;;  %v1777_v1 = vrot.slane %v1770_v28, 3 }
 0xf54   : > { %v1783_v41 = vadd.f32 %v1775_v31, %v1726_v36  ;;  %5152 = vtanh.f32 %v1782_v32  ;;  %v1784_v46 = vadd.f32 %v1776_v30, %v1727_v43  ;;  %v1785_v57 = vadd.f32 %v1777_v1, %v1728_v50 }
 0xf55   : > { %v4780_v47 = vmul.f32 -1.442695, %v1782_v32 }
 0xf56   : > { %5154 = vtanh.f32 %v1783_v41  ;;  %v4781_v12 = vmul.f32 -1.442695, %v1783_v41  ;;  %v4782_v15 = vmul.f32 -1.442695, %v1784_v46  ;;  %v4783_v48 = vmul.f32 -1.442695, %v1785_v57 }
 0xf57   : > { %5156 = vtanh.f32 %v1784_v46 }
 0xf58   : > { %5158 = vtanh.f32 %v1785_v57 }
 0xf59   : > { %v1772_v38 = vpop.f32.mrf.mxu2  ;;  %5160 = vpow2.f32 %v4780_v47 }
 0xf5a   : > { %v5153_v54 = vpop.eup %5152 }
 0xf5b   : > { %1874 = vrot.lane.b32.xlu2 %v5153_v54, %s5451_s8 }
 0xf5c   : > { %v5155_v20 = vpop.eup %5154 }
 0xf5d   : > { %1876 = vrot.lane.b32.xlu0 %v5155_v20, %s5451_s8  ;;  %v5157_v14 = vpop.eup %5156 }
 0xf5e   : > { %1878 = vrot.lane.b32.xlu1 %v5157_v14, %s5451_s8  ;;  %v5159_v63 = vpop.eup %5158 }
 0xf5f   : > { %v5161_v3 = vpop.eup %5160 }
 0xf60   : > { %v1798_v11 = vadd.f32 1.0, %v5161_v3 }
 0xf62   : > { %5162 = vrcp.f32 %v1798_v11  ;;  %v1813_v42 = vand.u32 2147483648, %v1798_v11  ;;  %vm1807_vm0 = vweird.f32 %v1798_v11  ;;  %v1811_v26 = vand.u32 2147483647, %v1798_v11 }
 0xf63   : > { %5164 = vpow2.f32 %v4781_v12 }
 0xf64   : > { %5166 = vpow2.f32 %v4782_v15  ;;  %v1814_v35 = vor.u32 1.1754944e-38, %v1813_v42  ;;  %vm1812_vm2 = vcmp.eq.f32.partialorder %v1811_v26, 8.507059e+37 }
 0xf65   : > { %1880 = vrot.lane.b32.xlu0 %v5159_v63, %s5451_s8  ;;  %5168 = vpow2.f32 %v4783_v48 }
 0xf68   : > { %v5163_v61 = vpop.eup %5162 }
 0xf69   : > { %v1803_v13 = vmul.f32 %v5163_v61, %v1798_v11  ;;  %v5165_v21 = vpop.eup %5164  ;;  %vm1808_vm15 = vweird.f32 %v5163_v61 }
 0xf6a   : > { %v1799_v24 = vadd.f32 1.0, %v5165_v21  ;;  %v5167_v25 = vpop.eup %5166  ;;  %vm1809_vm1 = vmor %vm1807_vm0, %vm1808_vm15 }
 0xf6b   : > { %v1804_v16 = vsub.f32 1.0, %v1803_v13  ;;  %v1800_v27 = vadd.f32 1.0, %v5167_v25  ;;  %v5169_v28 = vpop.eup %5168 }
 0xf6c   : > { %5170 = vrcp.f32 %v1799_v24  ;;  %v1801_v30 = vadd.f32 1.0, %v5169_v28  ;;  %v1828_v3 = vand.u32 2147483648, %v1799_v24  ;;  %vm1822_vm4 = vweird.f32 %v1799_v24 }
 0xf6d   : > { %v1805_v19 = vmul.f32 %v5163_v61, %v1804_v16  ;;  %5172 = vrcp.f32 %v1800_v27  ;;  %v1826_v11 = vand.u32 2147483647, %v1799_v24  ;;  %v1843_v15 = vand.u32 2147483648, %v1800_v27 }
 0xf6e   : > { %5174 = vrcp.f32 %v1801_v30  ;;  %v1829_v16 = vor.u32 1.1754944e-38, %v1828_v3  ;;  %vm1837_vm12 = vweird.f32 %v1800_v27  ;;  %v1841_v48 = vand.u32 2147483647, %v1800_v27 }
 0xf6f   : > { %v1806_v22 = vadd.f32 %v5163_v61, %v1805_v19  ;;  %vm1827_vm13 = vcmp.eq.f32.partialorder %v1826_v11, 8.507059e+37  ;;  %v1844_v26 = vor.u32 1.1754944e-38, %v1843_v15 }
 0xf70   : > { %vm1842_vm0 = vcmp.eq.f32.partialorder %v1841_v48, 8.507059e+37 }
 0xf71   : > { %v1810_v51 = vsel %vm1809_vm1, %v5163_v61, %v1806_v22  ;;  %vm1852_vm1 = vweird.f32 %v1801_v30 }
 0xf72   : > { %v5895_v32 = vsel %vm1812_vm2, %v1814_v35, %v1810_v51  ;;  %v5171_v41 = vpop.eup %5170  ;;  %v1858_v51 = vand.u32 2147483648, %v1801_v30 }
 0xf73   : > { %v1818_v43 = vmul.f32 %v5171_v41, %v1799_v24  ;;  %v5173_v1 = vpop.eup %5172  ;;  %vm1823_vm3 = vweird.f32 %v5171_v41  ;;  %v1856_v24 = vand.u32 2147483647, %v1801_v30 }
 0xf74   : > { %v1833_v46 = vmul.f32 %v5173_v1, %v1800_v27  ;;  %v5175_v50 = vpop.eup %5174  ;;  %vm1824_vm6 = vmor %vm1822_vm4, %vm1823_vm3  ;;  %vm1838_vm7 = vweird.f32 %v5173_v1 }
 0xf75   : > { %v1819_v38 = vsub.f32 1.0, %v1818_v43  ;;  %v1848_v20 = vmul.f32 %v5175_v50, %v1801_v30  ;;  %vm1839_vm14 = vmor %vm1837_vm12, %vm1838_vm7  ;;  %vm1853_vm15 = vweird.f32 %v5175_v50  ;;  %vm1857_vm3 = vcmp.eq.f32.partialorder %v1856_v24, 8.507059e+37 }
 0xf76   : > { %v1834_v54 = vsub.f32 1.0, %v1833_v46  ;;  %vm1854_vm2 = vmor %vm1852_vm1, %vm1853_vm15  ;;  %v1866_v46 = vmul.f32 %v5895_v32, %v5844_v33 }
 0xf77   : > { %v1820_v57 = vmul.f32 %v5171_v41, %v1819_v38  ;;  %v1849_v47 = vsub.f32 1.0, %v1848_v20 }
 0xf78   : > { %v1835_v14 = vmul.f32 %v5173_v1, %v1834_v54 }
 0xf79   : > { %v1821_v63 = vadd.f32 %v5171_v41, %v1820_v57  ;;  %v1850_v13 = vmul.f32 %v5175_v50, %v1849_v47 }
 0xf7a   : > { %v1836_v61 = vadd.f32 %v5173_v1, %v1835_v14 }
 0xf7b   : > { %v1825_v12 = vsel %vm1824_vm6, %v5171_v41, %v1821_v63  ;;  %v1851_v25 = vadd.f32 %v5175_v50, %v1850_v13 }
 0xf7c   : > { %v1830_v21 = vsel %vm1827_vm13, %v1829_v16, %v1825_v12  ;;  %v1840_v22 = vsel %vm1839_vm14, %v5173_v1, %v1836_v61 }
 0xf7d   : > { %v1845_v28 = vsel %vm1842_vm0, %v1844_v26, %v1840_v22  ;;  %v1855_v27 = vsel %vm1854_vm2, %v5175_v50, %v1851_v25  ;;  %v1867_v33 = vmul.f32 %v1830_v21, %v5849_v37  ;;  %v4905_v37 = vld [vmem:[%s6914_s1 + $0x10] sm:$0xff] }
 0xf7e   : > { %v1868_v30 = vmul.f32 %v1845_v28, %v5861_v49  ;;  %1997 = vmatpush.bf16.msra.mxu3 %v4905_v37  ;;  %v1957_v37 = vld [vmem:[#allocation3 + $0x1f] sm:$0x1] }
 0xfb5   : > { %v1875_v31 = vpop.permute.xlu2 %1874 }
 0xfb6   : > { %v1886_v36 = vmul.f32 %v1875_v31, %v5895_v32 }
 0xfb8   : > { %1894 = vrot.lane.b32.xlu0 %v1886_v36, %s5452_s9  ;;  %v1859_v36 = vor.u32 1.1754944e-38, %v1858_v51 }
 0xfba   : > { %v1860_v41 = vsel %vm1857_vm3, %v1859_v36, %v1855_v27 }
 0xfbb   : > { %v1869_v49 = vmul.f32 %v1860_v41, %v5855_v34 }
 0xfcf   : > { %v1877_v19 = vpop.permute.xlu0 %1876 }
 0xfd0   : > { %v1887_v42 = vmul.f32 %v1877_v19, %v1830_v21  ;;  %v1879_v35 = vpop.permute.xlu1 %1878 }
 0xfd1   : > { %v1888_v31 = vmul.f32 %v1879_v35, %v1845_v28 }
 0xfd2   : > { %1896 = vrot.lane.b32.xlu1 %v1887_v42, %s5452_s9 }
 0xfd3   : > { %1898 = vrot.lane.b32.xlu2 %v1888_v31, %s5452_s9 }
 0xfd7   : > { %v1881_v43 = vpop.permute.xlu0 %1880 }
 0xfd8   : > { %v1889_v1 = vmul.f32 %v1881_v43, %v1860_v41 }
 0xfda   : > { %1900 = vrot.lane.b32.xlu1 %v1889_v1, %s5452_s9 }
0x102a   : > { %v1895_v38 = vpop.permute.xlu0 %1894 }
0x102b   : > { %v5904_v54 = vadd.f32 %v1895_v38, %v1866_v46 }
0x102d   : > { %5176 = vtanh.f32 %v5904_v54  ;;  %v1899_v50 = vpop.permute.xlu2 %1898 }
0x102e   : > { %v5908_v57 = vadd.f32 %v1899_v50, %v1868_v30 }
0x1030   : > { %5178 = vtanh.f32 %v5908_v57 }
0x1033   : > { %v5177_v20 = vpop.eup %5176 }
0x1034   : > { %1918 = vrot.lane.b32.xlu1 %v5177_v20, %s5453_s10 }
0x1036   : > { %v5179_v14 = vpop.eup %5178 }
0x1037   : > { %1922 = vrot.lane.b32.xlu0 %v5179_v14, %s5453_s10 }
0x1044   : > { %v1897_v63 = vpop.permute.xlu1 %1896 }
0x1045   : > { %v5914_v47 = vadd.f32 %v1897_v63, %v1867_v33  ;;  %v1955_v33 = vld [vmem:[#allocation3 + $0xf] sm:$0x1] }
0x1047   : > { %5180 = vtanh.f32 %v5914_v47 }
0x104c   : > { %v1901_v3 = vpop.permute.xlu1 %1900 }
0x104d   : > { %v5181_v11 = vpop.eup %5180  ;;  %v5918_v61 = vadd.f32 %v1901_v3, %v1869_v49 }
0x104e   : > { %1920 = vrot.lane.b32.xlu2 %v5181_v11, %s5453_s10  ;;  %v1956_v11 = vld [vmem:[#allocation3 + $0x17] sm:$0x1] }
0x104f   : > { %5182 = vtanh.f32 %v5918_v61 }
0x1055   : > { %v5183_v12 = vpop.eup %5182 }
0x1056   : > { %1924 = vrot.lane.b32.xlu2 %v5183_v12, %s5453_s10 }
0x10a6   : > { %v1919_v13 = vpop.permute.xlu1 %1918 }
0x10a7   : > { %v5929_v34 = vmul.f32 %v1919_v13, %v5895_v32 }
0x10a8   : > { %v1921_v15 = vpop.permute.xlu2 %1920 }
0x10a9   : > { %v5926_v16 = vmul.f32 %v1921_v15, %v1830_v21  ;;  %v1923_v19 = vpop.permute.xlu0 %1922  ;;  %v1958_v25 = vpack.c.bf16 %v5929_v34, %v5929_v34 }
0x10aa   : > { %v5933_v22 = vmul.f32 %v1923_v19, %v1845_v28 }
0x10ab   : > { %v1959_v48 = vpack.c.bf16 %v5926_v16, %v5926_v16  ;;  %v1968_v32 = vunpack.c.l.b16 %v1958_v25 }
0x10ac   : > { %v1960_v26 = vpack.c.bf16 %v5933_v22, %v5933_v22 }
0x10ad   : > { %v1969_v42 = vunpack.c.l.b16 %v1959_v48 }
0x10ae   : > { %v1970_v24 = vunpack.c.l.b16 %v1960_v26 }
0x10af   : > { %v1972_v21 = vrot.slane %v1969_v42, 7 }
0x10b0   : > { %v1925_v51 = vpop.permute.xlu2 %1924  ;;  %v1974_v27 = vrot.slane %v1970_v24, 6 }
0x10b1   : > { %v5939_v35 = vmul.f32 %v1925_v51, %v1860_v41  ;;  %v1973_v28 = vsel %vm596_vm8, %v1972_v21, %v1968_v32  ;;  %v1954_v41 = vld [vmem:[#allocation3 + $0x7] sm:$0x1] }
0x10b2   : > { %v1975_v1 = vsel %vm599_vm9, %v1974_v27, %v1973_v28 }
0x10b3   : > { %v1961_v31 = vpack.c.bf16 %v5939_v35, %v5939_v35 }
0x10b5   : > { %v1971_v36 = vunpack.c.l.b16 %v1961_v31 }
0x10b7   : > { %v1976_v43 = vrot.slane %v1971_v36, 5 }
0x10b9   : > { %v1977_v46 = vsel %vm602_vm10, %v1976_v43, %v1975_v1 }
0x10ba   : > { %v1978_v38 = vpack.c.b16 %v1977_v46, %v1977_v46 }
0x10bc   : > { %1979 = vrot.lane.b32.xlu0 %v1978_v38, %s5454_s15 }
0x112e   : > { %v1980_v30 = vpop.permute.xlu0 %1979 }
0x112f   : > { %4788 = vmatmul.msk.bf16.vlgmr.msra.gmra.mxu3 %vm379_vm11, %v1980_v30 }
0x11b2   : > { %v1999_v50 = vpop.f32.mrf.mxu3 }
0x11b3   : > { %v2004_v20 = vrot.slane %v1999_v50, 1  ;;  %v2011_v14 = vadd.f32 %v1999_v50, %v1954_v41  ;;  %v2005_v63 = vrot.slane %v1999_v50, 2  ;;  %v2006_v3 = vrot.slane %v1999_v50, 3 }
0x11b5   : > { %v2012_v49 = vadd.f32 %v2004_v20, %v1955_v33  ;;  %5184 = vtanh.f32 %v2011_v14  ;;  %v2013_v12 = vadd.f32 %v2005_v63, %v1956_v11  ;;  %v2014_v13 = vadd.f32 %v2006_v3, %v1957_v37 }
0x11b6   : > { %v4789_v21 = vmul.f32 -1.442695, %v2011_v14 }
0x11b7   : > { %5186 = vtanh.f32 %v2012_v49  ;;  %v4790_v26 = vmul.f32 -1.442695, %v2012_v49  ;;  %v4791_v27 = vmul.f32 -1.442695, %v2013_v12  ;;  %v4792_v36 = vmul.f32 -1.442695, %v2014_v13 }
0x11b8   : > { %5188 = vtanh.f32 %v2013_v12 }
0x11b9   : > { %5190 = vtanh.f32 %v2014_v13 }
0x11ba   : > { %v2001_v15 = vpop.f32.mrf.mxu3  ;;  %5192 = vpow2.f32 %v4790_v26 }
0x11bb   : > { %v5185_v48 = vpop.eup %5184 }
0x11bc   : > { %2103 = vrot.lane.b32.xlu1 %v5185_v48, %s5451_s8 }
0x11bd   : > { %v5187_v19 = vpop.eup %5186 }
0x11be   : > { %2105 = vrot.lane.b32.xlu2 %v5187_v19, %s5451_s8  ;;  %v5189_v42 = vpop.eup %5188 }
0x11bf   : > { %2107 = vrot.lane.b32.xlu0 %v5189_v42, %s5451_s8  ;;  %v5191_v25 = vpop.eup %5190 }
0x11c0   : > { %v5193_v51 = vpop.eup %5192 }
0x11c1   : > { %v2028_v24 = vadd.f32 1.0, %v5193_v51 }
0x11c3   : > { %5194 = vrcp.f32 %v2028_v24  ;;  %v2057_v41 = vand.u32 2147483648, %v2028_v24  ;;  %vm2051_vm6 = vweird.f32 %v2028_v24  ;;  %v2055_v20 = vand.u32 2147483647, %v2028_v24 }
0x11c4   : > { %2109 = vrot.lane.b32.xlu1 %v5191_v25, %s5451_s8  ;;  %5196 = vpow2.f32 %v4789_v21 }
0x11c5   : > { %5198 = vpow2.f32 %v4791_v27  ;;  %v2058_v49 = vor.u32 1.1754944e-38, %v2057_v41  ;;  %vm2056_vm12 = vcmp.eq.f32.partialorder %v2055_v20, 8.507059e+37 }
0x11c6   : > { %5200 = vpow2.f32 %v4792_v36 }
0x11c9   : > { %v5195_v32 = vpop.eup %5194 }
0x11ca   : > { %v2047_v31 = vmul.f32 %v5195_v32, %v2028_v24  ;;  %v5197_v43 = vpop.eup %5196  ;;  %vm2052_vm4 = vweird.f32 %v5195_v32 }
0x11cb   : > { %v2027_v46 = vadd.f32 1.0, %v5197_v43  ;;  %v5199_v38 = vpop.eup %5198  ;;  %vm2053_vm7 = vmor %vm2051_vm6, %vm2052_vm4 }
0x11cc   : > { %v2048_v28 = vsub.f32 1.0, %v2047_v31  ;;  %v5201_v50 = vpop.eup %5200  ;;  %v2029_v14 = vadd.f32 1.0, %v5199_v38 }
0x11cd   : > { %5202 = vrcp.f32 %v2027_v46  ;;  %v2030_v63 = vadd.f32 1.0, %v5201_v50  ;;  %vm2036_vm14 = vweird.f32 %v2027_v46  ;;  %v2040_v31 = vand.u32 2147483647, %v2027_v46 }
0x11ce   : > { %v2049_v1 = vmul.f32 %v5195_v32, %v2048_v28  ;;  %5204 = vrcp.f32 %v2029_v14  ;;  %vm2066_vm2 = vweird.f32 %v2029_v14  ;;  %v2070_v50 = vand.u32 2147483647, %v2029_v14 }
0x11cf   : > { %5206 = vrcp.f32 %v2030_v63  ;;  %vm2041_vm0 = vcmp.eq.f32.partialorder %v2040_v31, 8.507059e+37  ;;  %v2087_v20 = vand.u32 2147483648, %v2030_v63  ;;  %vm2081_vm6 = vweird.f32 %v2030_v63 }
0x11d0   : > { %v2050_v30 = vadd.f32 %v5195_v32, %v2049_v1 }
0x11d2   : > { %v2054_v33 = vsel %vm2053_vm7, %v5195_v32, %v2050_v30  ;;  %v2042_v32 = vand.u32 2147483648, %v2027_v46  ;;  %v2072_v30 = vand.u32 2147483648, %v2029_v14 }
0x11d3   : > { %v5203_v3 = vpop.eup %5202  ;;  %v5952_v12 = vsel %vm2056_vm12, %v2058_v49, %v2054_v33  ;;  %vm2071_vm12 = vcmp.eq.f32.partialorder %v2070_v50, 8.507059e+37  ;;  %v4906_v50 = vld [vmem:[%s6914_s1 + $0x18] sm:$0xff] }
0x11d4   : > { %v2032_v13 = vmul.f32 %v5203_v3, %v2027_v46  ;;  %v5205_v15 = vpop.eup %5204  ;;  %vm2037_vm13 = vweird.f32 %v5203_v3  ;;  %v2043_v43 = vor.u32 1.1754944e-38, %v2042_v32  ;;  %v2073_v49 = vor.u32 1.1754944e-38, %v2072_v30  ;;  %2212 = vmatpush.bf16.msrb.mxu0 %v4906_v50 }
0x11d5   : > { %v5207_v19 = vpop.eup %5206  ;;  %v2062_v42 = vmul.f32 %v5205_v15, %v2029_v14  ;;  %vm2038_vm15 = vmor %vm2036_vm14, %vm2037_vm13  ;;  %vm2067_vm1 = vweird.f32 %v5205_v15  ;;  %v2088_v14 = vor.u32 1.1754944e-38, %v2087_v20  ;;  %vm572_vm14 = vcmask 122880  }
0x11d6   : > { %v2033_v48 = vsub.f32 1.0, %v2032_v13  ;;  %v2077_v26 = vmul.f32 %v5207_v19, %v2030_v63  ;;  %vm2082_vm3 = vweird.f32 %v5207_v19  ;;  %vm2068_vm4 = vmor %vm2066_vm2, %vm2067_vm1 }
0x11d7   : > { %v2063_v51 = vsub.f32 1.0, %v2062_v42  ;;  %vm2083_vm7 = vmor %vm2081_vm6, %vm2082_vm3 }
0x11d8   : > { %v2034_v25 = vmul.f32 %v5203_v3, %v2033_v48  ;;  %v2078_v21 = vsub.f32 1.0, %v2077_v26 }
0x11d9   : > { %v2064_v27 = vmul.f32 %v5205_v15, %v2063_v51 }
0x11da   : > { %v2035_v24 = vadd.f32 %v5203_v3, %v2034_v25  ;;  %v2079_v28 = vmul.f32 %v5207_v19, %v2078_v21 }
0x11db   : > { %v2065_v1 = vadd.f32 %v5205_v15, %v2064_v27 }
0x11dc   : > { %v2039_v36 = vsel %vm2038_vm15, %v5203_v3, %v2035_v24  ;;  %v2080_v46 = vadd.f32 %v5207_v19, %v2079_v28  ;;  %vm2224_vm15 = vcmask 392192  }
0x11dd   : > { %v5960_v38 = vsel %vm2041_vm0, %v2043_v43, %v2039_v36  ;;  %v2069_v33 = vsel %vm2068_vm4, %v5205_v15, %v2065_v1 }
0x11de   : > { %v2084_v3 = vsel %vm2083_vm7, %v5207_v19, %v2080_v46 }
0x1218   : > { %v2106_v11 = vpop.permute.xlu2 %2105 }
0x1219   : > { %v2116_v37 = vmul.f32 %v2106_v11, %v5952_v12 }
0x121b   : > { %2125 = vrot.lane.b32.xlu0 %v2116_v37, %s5452_s9  ;;  %v5966_v37 = vsel %vm2071_vm12, %v2073_v49, %v2069_v33 }
0x1223   : > { %793 = vrot.lane.b32.xlu0 %v5633_v56, %s5454_s15 }
0x122b   : > { %1024 = vrot.lane.b32.xlu0 %v5693_v0, %s5454_s15  ;;  %v2085_v0 = vand.u32 2147483647, %v2030_v63 }
0x122d   : > { %vm2086_vm13 = vcmp.eq.f32.partialorder %v2085_v0, 8.507059e+37 }
0x122e   : > { %v2104_v56 = vpop.permute.xlu1 %2103  ;;  %v5969_v15 = vsel %vm2086_vm13, %v2088_v14, %v2084_v3 }
0x122f   : > { %v2115_v41 = vmul.f32 %v2104_v56, %v5960_v38 }
0x1231   : > { %2123 = vrot.lane.b32.xlu2 %v2115_v41, %s5452_s9  ;;  %v2108_v11 = vpop.permute.xlu0 %2107 }
0x1232   : > { %v2117_v13 = vmul.f32 %v2108_v11, %v5966_v37 }
0x1233   : > { %1480 = vrot.lane.b32.xlu0 %v5809_v39, %s5454_s15 }
0x1234   : > { %2127 = vrot.lane.b32.xlu1 %v2117_v13, %s5452_s9 }
0x1236   : > { %v2110_v48 = vpop.permute.xlu1 %2109 }
0x1237   : > { %v2118_v63 = vmul.f32 %v2110_v48, %v5969_v15  ;;  %v4947_v48 = vld [vmem:[%s6915_s2 + $0x3] ss:$0 sm:$0xff] }
0x1239   : > { %2129 = vrot.lane.b32.xlu2 %v2118_v63, %s5452_s9 }
0x123c   : > { %560 = vrot.lane.b32.xlu1 %v5585_v60, %s5454_s15 }
0x1241   : > { %562 = vrot.lane.b32.xlu2 %v5574_v52, %s5454_s15  ;;  %v2095_v52 = vmul.f32 %v5960_v38, %v5904_v54  ;;  %v2098_v54 = vmul.f32 %v5969_v15, %v5918_v61 }
0x1244   : > { %795 = vrot.lane.b32.xlu1 %v5631_v55, %s5454_s15 }
0x1249   : > { %1022 = vrot.lane.b32.xlu2 %v5695_v7, %s5454_s15  ;;  %v2096_v7 = vmul.f32 %v5952_v12, %v5914_v47 }
0x124c   : > { %1251 = vrot.lane.b32.xlu1 %v5753_v62, %s5454_s15 }
0x1251   : > { %1253 = vrot.lane.b32.xlu2 %v5750_v17, %s5454_s15 }
0x1259   : > { %1709 = vrot.lane.b32.xlu2 %v5871_v44, %s5454_s15 }
0x1261   : > { %1940 = vrot.lane.b32.xlu2 %v5926_v16, %s5454_s15 }
0x128b   : > { %v2124_v60 = vpop.permute.xlu2 %2123 }
0x128c   : > { %v2135_v55 = vadd.f32 %v2124_v60, %v2095_v52 }
0x128d   : > { %v2126_v39 = vpop.permute.xlu0 %2125 }
0x128e   : > { %5208 = vtanh.f32 %v2135_v55  ;;  %v2136_v62 = vadd.f32 %v2126_v39, %v2096_v7 }
0x1290   : > { %5210 = vtanh.f32 %v2136_v62 }
0x1293   : > { %v2130_v19 = vpop.permute.xlu2 %2129 }
0x1294   : > { %v5209_v17 = vpop.eup %5208  ;;  %v2138_v16 = vadd.f32 %v2130_v19, %v2098_v54 }
0x1295   : > { %2147 = vrot.lane.b32.xlu0 %v5209_v17, %s5453_s10  ;;  %v794_v44 = vpop.permute.xlu0 %793  ;;  %v4948_v17 = vld [vmem:[%s6915_s2 + $0x2] ss:$0 sm:$0xff] }
0x1296   : > { %v5211_v42 = vpop.eup %5210  ;;  %805 = vst.msk [vmem:[#allocation4 + $0x1] sm:$0x1] %vm572_vm14, %v794_v44  ;;  %5212 = vtanh.f32 %v2138_v16 }
0x1297   : > { %2149 = vrot.lane.b32.xlu1 %v5211_v42, %s5453_s10 }
0x129b   : > { %v563_v47 = vpop.permute.xlu2 %562 }
0x129c   : > { %574 = vst.msk [vmem:[#allocation4 + $0x8] sm:$0x1] %vm572_vm14, %v563_v47  ;;  %v5213_v51 = vpop.eup %5212 }
0x129d   : > { %1711 = vrot.lane.b32.xlu0 %v5869_v23, %s5454_s15  ;;  %v1025_v25 = vpop.permute.xlu0 %1024  ;;  %v2097_v23 = vmul.f32 %v5966_v37, %v5908_v57 }
0x129e   : > { %1035 = vst.msk [vmem:[#allocation4 + $0xa] sm:$0x1] %vm572_vm14, %v1025_v25 }
0x129f   : > { %1482 = vrot.lane.b32.xlu1 %v5807_v6, %s5454_s15 }
0x12a3   : > { %v1023_v26 = vpop.permute.xlu2 %1022 }
0x12a4   : > { %1034 = vst.msk [vmem:[#allocation4 + $0x2] sm:$0x1] %vm572_vm14, %v1023_v26 }
0x12a5   : > { %2153 = vrot.lane.b32.xlu0 %v5213_v51, %s5453_s10  ;;  %v1481_v61 = vpop.permute.xlu0 %1480 }
0x12a6   : > { %1492 = vst.msk [vmem:[#allocation4 + $0x4] sm:$0x1] %vm572_vm14, %v1481_v61  ;;  %v2128_v24 = vpop.permute.xlu1 %2127 }
0x12a7   : > { %1938 = vrot.lane.b32.xlu1 %v5929_v34, %s5454_s15  ;;  %v2137_v21 = vadd.f32 %v2128_v24, %v2097_v23 }
0x12a9   : > { %5214 = vtanh.f32 %v2137_v21 }
0x12ab   : > { %v1254_v32 = vpop.permute.xlu2 %1253 }
0x12ac   : > { %1264 = vst.msk [vmem:[#allocation4 + $0xb] sm:$0x1] %vm572_vm14, %v1254_v32 }
0x12ad   : > { %566 = vrot.lane.b32.xlu0 %v5582_v59, %s5454_s15 }
0x12ae   : > { %v561_v6 = vpop.permute.xlu1 %560 }
0x12af   : > { %797 = vrot.lane.b32.xlu1 %v5638_v58, %s5454_s15  ;;  %v5215_v31 = vpop.eup %5214  ;;  %573 = vst.msk [vmem:[#allocation4] sm:$0x1] %vm572_vm14, %v561_v6 }
0x12b0   : > { %2151 = vrot.lane.b32.xlu2 %v5215_v31, %s5453_s10 }
0x12b3   : > { %v1710_v34 = vpop.permute.xlu2 %1709 }
0x12b4   : > { %1721 = vst.msk [vmem:[#allocation4 + $0x5] sm:$0x1] %vm572_vm14, %v1710_v34 }
0x12b5   : > { %1026 = vrot.lane.b32.xlu0 %v5699_v9, %s5454_s15 }
0x12b6   : > { %v796_v57 = vpop.permute.xlu1 %795 }
0x12b7   : > { %1028 = vrot.lane.b32.xlu1 %v5706_v8, %s5454_s15  ;;  %806 = vst.msk [vmem:[#allocation4 + $0x9] sm:$0x1] %vm572_vm14, %v796_v57 }
0x12b8   : > { %564 = vrot.lane.b32.xlu2 %v5576_v53, %s5454_s15 }
0x12bb   : > { %v1941_v59 = vpop.permute.xlu2 %1940 }
0x12bc   : > { %1951 = vst.msk [vmem:[#allocation4 + $0xe] sm:$0x1] %vm572_vm14, %v1941_v59 }
0x12bd   : > { %1257 = vrot.lane.b32.xlu0 %v5763_v40, %s5454_s15 }
0x12be   : > { %v1252_v58 = vpop.permute.xlu1 %1251 }
0x12bf   : > { %1484 = vrot.lane.b32.xlu1 %v5814_v10, %s5454_s15  ;;  %1263 = vst.msk [vmem:[#allocation4 + $0x3] sm:$0x1] %vm572_vm14, %v1252_v58 }
0x12c0   : > { %799 = vrot.lane.b32.xlu2 %v5644_v5, %s5454_s15 }
0x12c8   : > { %1255 = vrot.lane.b32.xlu2 %v5757_v29, %s5454_s15 }
0x12d0   : > { %1486 = vrot.lane.b32.xlu2 %v5820_v2, %s5454_s15 }
0x12d8   : > { %1942 = vrot.lane.b32.xlu2 %v5933_v22, %s5454_s15  ;;  %v4907_v22 = vld [vmem:[%s6914_s1 + $0x20] sm:$0xff] }
0x12d9   : > { %2246 = vmatpush.bf16.msrb.mxu1 %v4907_v22 }
0x12dc   : > { %2247 = vmatmul.bf16.vlgmr.msrb.gmra.mxu1 %v5450_v45 }
0x1307   : > { %v2148_v53 = vpop.permute.xlu0 %2147 }
0x1308   : > { %v2159_v9 = vmul.f32 %v2148_v53, %v5960_v38 }
0x1309   : > { %v2150_v8 = vpop.permute.xlu1 %2149 }
0x130a   : > { %v2160_v40 = vmul.f32 %v2150_v8, %v5952_v12  ;;  %2167 = vrot.lane.b32.xlu0 %v2159_v9, %s5454_s15  ;;  %v2152_v5 = vpop.permute.xlu2 %2151 }
0x130b   : > { %v2161_v28 = vmul.f32 %v2152_v5, %v5966_v37 }
0x130c   : > { %2169 = vrot.lane.b32.xlu1 %v2160_v40, %s5454_s15 }
0x130f   : > { %v1712_v10 = vpop.permute.xlu0 %1711 }
0x1310   : > { %1722 = vst.msk [vmem:[#allocation4 + $0xd] sm:$0x1] %vm572_vm14, %v1712_v10 }
0x1311   : > { %v1483_v29 = vpop.permute.xlu1 %1482 }
0x1312   : > { %1493 = vst.msk [vmem:[#allocation4 + $0xc] sm:$0x1] %vm572_vm14, %v1483_v29  ;;  %1713 = vrot.lane.b32.xlu0 %v5875_v4, %s5454_s15  ;;  %v565_v2 = vpop.permute.xlu2 %564 }
0x1313   : > { %575 = vst.msk [vmem:[#allocation4 + $0x10] sm:$0x1] %vm572_vm14, %v565_v2 }
0x1314   : > { %1715 = vrot.lane.b32.xlu1 %v5882_v18, %s5454_s15 }
0x1317   : > { %v2154_v12 = vpop.permute.xlu0 %2153 }
0x1318   : > { %v2162_v27 = vmul.f32 %v2154_v12, %v5969_v15 }
0x1319   : > { %v1939_v36 = vpop.permute.xlu1 %1938 }
0x131a   : > { %1950 = vst.msk [vmem:[#allocation4 + $0x6] sm:$0x1] %vm572_vm14, %v1939_v36  ;;  %1944 = vrot.lane.b32.xlu0 %v5939_v35, %s5454_s15  ;;  %2173 = vrot.lane.b32.xlu2 %v2162_v27, %s5454_s15  ;;  %v800_v4 = vpop.permute.xlu2 %799 }
0x131b   : > { %808 = vst.msk [vmem:[#allocation4 + $0x19] sm:$0x1] %vm572_vm14, %v800_v4 }
0x131c   : > { %2171 = vrot.lane.b32.xlu1 %v2161_v28, %s5454_s15 }
0x131f   : > { %v567_v18 = vpop.permute.xlu0 %566 }
0x1320   : > { %576 = vst.msk [vmem:[#allocation4 + $0x18] sm:$0x1] %vm572_vm14, %v567_v18 }
0x1321   : > { %v798_v43 = vpop.permute.xlu1 %797 }
0x1322   : > { %807 = vst.msk [vmem:[#allocation4 + $0x11] sm:$0x1] %vm572_vm14, %v798_v43  ;;  %v1256_v1 = vpop.permute.xlu2 %1255 }
0x1323   : > { %1265 = vst.msk [vmem:[#allocation4 + $0x13] sm:$0x1] %vm572_vm14, %v1256_v1 }
0x1327   : > { %v1027_v56 = vpop.permute.xlu0 %1026 }
0x1328   : > { %1036 = vst.msk [vmem:[#allocation4 + $0x12] sm:$0x1] %vm572_vm14, %v1027_v56 }
0x1329   : > { %v1029_v35 = vpop.permute.xlu1 %1028 }
0x132a   : > { %1037 = vst.msk [vmem:[#allocation4 + $0x1a] sm:$0x1] %vm572_vm14, %v1029_v35  ;;  %v1487_v45 = vpop.permute.xlu2 %1486 }
0x132b   : > { %1495 = vst.msk [vmem:[#allocation4 + $0x1c] sm:$0x1] %vm572_vm14, %v1487_v45 }
0x132f   : > { %v1258_v38 = vpop.permute.xlu0 %1257 }
0x1330   : > { %1266 = vst.msk [vmem:[#allocation4 + $0x1b] sm:$0x1] %vm572_vm14, %v1258_v38 }
0x1331   : > { %v1485_v30 = vpop.permute.xlu1 %1484 }
0x1332   : > { %1494 = vst.msk [vmem:[#allocation4 + $0x14] sm:$0x1] %vm572_vm14, %v1485_v30  ;;  %v1943_v41 = vpop.permute.xlu2 %1942 }
0x1333   : > { %1952 = vst.msk [vmem:[#allocation4 + $0x16] sm:$0x1] %vm572_vm14, %v1943_v41 }
0x1359   : > { %v2248_v60 = vpop.f32.mrf.mxu1 }
0x135a   : > { %v2249_v55 = vadd.f32 %v4947_v48, %v2248_v60 }
0x135c   : > { %v2257_v7 = vrot.slane %v2249_v55, 1  ;;  %2344 = vrot.lane.b32.xlu2 %v2249_v55, %s5451_s8  ;;  %v2258_v39 = vrot.slane %v2249_v55, 2  ;;  %v2259_v19 = vrot.slane %v2249_v55, 3 }
0x135e   : > { %2346 = vrot.lane.b32.xlu0 %v2257_v7, %s5451_s8  ;;  %2348 = vrot.lane.b32.xlu1 %v2258_v39, %s5451_s8 }
0x1361   : > { %v2250_v62 = vpop.f32.mrf.mxu1 }
0x1366   : > { %2350 = vrot.lane.b32.xlu0 %v2259_v19, %s5451_s8 }
0x1374   : > { %v2174_v46 = vpop.permute.xlu2 %2173 }
0x1375   : > { %2182 = vst.msk [vmem:[#allocation4 + $0x1f] sm:$0x1] %vm572_vm14, %v2174_v46 }
0x137c   : > { %v2168_v20 = vpop.permute.xlu0 %2167 }
0x137d   : > { %2179 = vst.msk [vmem:[#allocation4 + $0x7] sm:$0x1] %vm572_vm14, %v2168_v20 }
0x137e   : > { %v2170_v33 = vpop.permute.xlu1 %2169 }
0x137f   : > { %2180 = vst.msk [vmem:[#allocation4 + $0xf] sm:$0x1] %vm572_vm14, %v2170_v33 }
0x1384   : > { %v1714_v0 = vpop.permute.xlu0 %1713  ;;  %v2183_v3 = vld [vmem:[#allocation4] sm:$0xff] }
0x1385   : > { %1723 = vst.msk [vmem:[#allocation4 + $0x15] sm:$0x1] %vm572_vm14, %v1714_v0 }
0x1386   : > { %v1716_v49 = vpop.permute.xlu1 %1715  ;;  %v2184_v11 = vld [vmem:[#allocation4 + $0x8] sm:$0xff] }
0x1387   : > { %1724 = vst.msk [vmem:[#allocation4 + $0x1d] sm:$0x1] %vm572_vm14, %v1716_v49  ;;  %v2187_v37 = vpack.c.bf16 %v2184_v11, %v2183_v3 }
0x1389   : > { %4797 = vmatmul.msk.bf16.vlgmr.msrb.gmra.mxu0 %vm379_vm11, %v2187_v37 }
0x138c   : > { %v1945_v14 = vpop.permute.xlu0 %1944 }
0x138d   : > { %1953 = vst.msk [vmem:[#allocation4 + $0x1e] sm:$0x1] %vm572_vm14, %v1945_v14 }
0x138e   : > { %v2172_v13 = vpop.permute.xlu1 %2171 }
0x138f   : > { %2181 = vst.msk [vmem:[#allocation4 + $0x17] sm:$0x1] %vm572_vm14, %v2172_v13 }
0x1394   : > { %v2186_v63 = vld [vmem:[#allocation4 + $0x18] sm:$0xff] }
0x1396   : > { %v2185_v15 = vld [vmem:[#allocation4 + $0x10] sm:$0xff] }
0x1397   : > { %v2188_v52 = vpack.c.bf16 %v2186_v63, %v2185_v15 }
0x1399   : > { %4798 = vmatmul.msk.bf16.gmra.mxu0 %vm379_vm11, %v2188_v52 }
0x13b6   : > { %v2345_v35 = vpop.permute.xlu2 %2344 }
0x13d0   : > { %v2347_v49 = vpop.permute.xlu0 %2346 }
0x1406   : > { %v2214_v44 = vpop.f32.mrf.mxu0 }
0x1407   : > { %v2215_v42 = vadd.f32 %v4948_v17, %v2214_v44 }
0x1409   : > { %2225 = vst.msk [vmem:[#allocation3] sm:$0xff] %vm2224_vm15, %v2215_v42 }
0x140e   : > { %v2216_v54 = vpop.f32.mrf.mxu0 }
0x140f   : > { %v2217_v16 = vadd.f32 %v4948_v17, %v2216_v54 }
0x1410   : > { %v6096_v47 = vld [vmem:[#allocation3] sm:$0x1] }
0x1411   : > { %v2264_v25 = vadd.f32 %v6096_v47, %v2249_v55  ;;  %2226 = vst.msk [vmem:[#allocation3 + $0x8] sm:$0xff] %vm2224_vm15, %v2217_v16 }
0x1413   : > { %v4803_v26 = vmul.f32 -1.442695, %v2264_v25 }
0x1415   : > { %5216 = vpow2.f32 %v4803_v26 }
0x1416   : > { %v2219_v51 = vpop.f32.mrf.mxu0 }
0x1417   : > { %v2220_v61 = vadd.f32 %v4948_v17, %v2219_v51 }
0x1418   : > { %v6100_v23 = vld [vmem:[#allocation3 + $0x8] sm:$0x1] }
0x1419   : > { %2227 = vst.msk [vmem:[#allocation3 + $0x10] sm:$0xff] %vm2224_vm15, %v2220_v61  ;;  %v2265_v24 = vadd.f32 %v2257_v7, %v6100_v23 }
0x141b   : > { %v5217_v21 = vpop.eup %5216  ;;  %v4804_v32 = vmul.f32 -1.442695, %v2265_v24 }
0x141c   : > { %v2280_v6 = vadd.f32 1.0, %v5217_v21 }
0x141d   : > { %5218 = vpow2.f32 %v4804_v32  ;;  %v2351_v32 = vpop.permute.xlu0 %2350 }
0x141e   : > { %v2221_v31 = vpop.f32.mrf.mxu0  ;;  %5220 = vrcp.f32 %v2280_v6  ;;  %v2295_v10 = vand.u32 2147483648, %v2280_v6  ;;  %v2293_v22 = vand.u32 2147483647, %v2280_v6  ;;  %vm2289_vm1 = vweird.f32 %v2280_v6 }
0x141f   : > { %v2222_v34 = vadd.f32 %v4948_v17, %v2221_v31 }
0x1420   : > { %v6104_v57 = vld [vmem:[#allocation3 + $0x10] sm:$0x1]  ;;  %v2296_v18 = vor.u32 1.1754944e-38, %v2295_v10  ;;  %vm2294_vm3 = vcmp.eq.f32.partialorder %v2293_v22, 8.507059e+37 }
0x1421   : > { %2228 = vst.msk [vmem:[#allocation3 + $0x18] sm:$0xff] %vm2224_vm15, %v2222_v34  ;;  %v2266_v59 = vadd.f32 %v2258_v39, %v6104_v57  ;;  %v2349_v39 = vpop.permute.xlu1 %2348 }
0x1423   : > { %v5219_v58 = vpop.eup %5218  ;;  %v4805_v53 = vmul.f32 -1.442695, %v2266_v59 }
0x1424   : > { %v5221_v9 = vpop.eup %5220  ;;  %v2281_v8 = vadd.f32 1.0, %v5219_v58 }
0x1425   : > { %v2285_v40 = vmul.f32 %v5221_v9, %v2280_v6  ;;  %5222 = vpow2.f32 %v4805_v53  ;;  %vm2290_vm0 = vweird.f32 %v5221_v9 }
0x1426   : > { %5224 = vrcp.f32 %v2281_v8  ;;  %vm2291_vm2 = vmor %vm2289_vm1, %vm2290_vm0  ;;  %v2310_v41 = vand.u32 2147483648, %v2281_v8  ;;  %v2308_v46 = vand.u32 2147483647, %v2281_v8  ;;  %vm2304_vm6 = vweird.f32 %v2281_v8 }
0x1427   : > { %v2286_v5 = vsub.f32 1.0, %v2285_v40 }
0x1428   : > { %v6108_v29 = vld [vmem:[#allocation3 + $0x18] sm:$0x1]  ;;  %v2311_v3 = vor.u32 1.1754944e-38, %v2310_v41  ;;  %vm2309_vm12 = vcmp.eq.f32.partialorder %v2308_v46, 8.507059e+37 }
0x1429   : > { %v2287_v2 = vmul.f32 %v5221_v9, %v2286_v5  ;;  %v2267_v12 = vadd.f32 %v2259_v19, %v6108_v29 }
0x142b   : > { %v5223_v27 = vpop.eup %5222  ;;  %v2288_v36 = vadd.f32 %v5221_v9, %v2287_v2  ;;  %v4806_v28 = vmul.f32 -1.442695, %v2267_v12 }
0x142c   : > { %v5225_v4 = vpop.eup %5224  ;;  %v2282_v43 = vadd.f32 1.0, %v5223_v27 }
0x142d   : > { %v2292_v1 = vsel %vm2291_vm2, %v5221_v9, %v2288_v36  ;;  %v2300_v56 = vmul.f32 %v5225_v4, %v2281_v8  ;;  %5226 = vpow2.f32 %v4806_v28  ;;  %vm2305_vm4 = vweird.f32 %v5225_v4 }
0x142e   : > { %v6111_v45 = vsel %vm2294_vm3, %v2296_v18, %v2292_v1  ;;  %5228 = vrcp.f32 %v2282_v43  ;;  %vm2306_vm7 = vmor %vm2304_vm6, %vm2305_vm4  ;;  %v2325_v63 = vand.u32 2147483648, %v2282_v43  ;;  %v2323_v60 = vand.u32 2147483647, %v2282_v43 }
0x142f   : > { %v2356_v38 = vmul.f32 %v2345_v35, %v6111_v45  ;;  %v2301_v30 = vsub.f32 1.0, %v2300_v56  ;;  %vm2319_vm15 = vweird.f32 %v2282_v43  ;;  %v2384_v35 = vsub.f32 1.0, %v6111_v45 }
0x1430   : > { %v2326_v62 = vor.u32 1.1754944e-38, %v2325_v63  ;;  %vm2324_vm1 = vcmp.eq.f32.partialorder %v2323_v60, 8.507059e+37 }
0x1431   : > { %2364 = vrot.lane.b32.xlu0 %v2356_v38, %s5453_s10  ;;  %v2302_v50 = vmul.f32 %v5225_v4, %v2301_v30 }
0x1433   : > { %v5227_v20 = vpop.eup %5226  ;;  %v2303_v33 = vadd.f32 %v5225_v4, %v2302_v50 }
0x1434   : > { %v5229_v0 = vpop.eup %5228  ;;  %v2283_v11 = vadd.f32 1.0, %v5227_v20  ;;  %v2408_v20 = vmul.f32 0.0, %v6111_v45 }
0x1435   : > { %v2307_v37 = vsel %vm2306_vm7, %v5225_v4, %v2303_v33  ;;  %v2315_v14 = vmul.f32 %v5229_v0, %v2282_v43  ;;  %vm2320_vm13 = vweird.f32 %v5229_v0 }
0x1436   : > { %v6115_v13 = vsel %vm2309_vm12, %v2311_v3, %v2307_v37  ;;  %5230 = vrcp.f32 %v2283_v11  ;;  %vm2321_vm0 = vmor %vm2319_vm15, %vm2320_vm13  ;;  %v2340_v16 = vand.u32 2147483648, %v2283_v11  ;;  %v2338_v26 = vand.u32 2147483647, %v2283_v11 }
0x1437   : > { %v2357_v48 = vmul.f32 %v2347_v49, %v6115_v13  ;;  %v2316_v15 = vsub.f32 1.0, %v2315_v14  ;;  %vm2334_vm3 = vweird.f32 %v2283_v11  ;;  %v2409_v28 = vmul.f32 0.0, %v6115_v13 }
0x1438   : > { %v2341_v61 = vor.u32 1.1754944e-38, %v2340_v16  ;;  %vm2339_vm6 = vcmp.eq.f32.partialorder %v2338_v26, 8.507059e+37 }
0x1439   : > { %2366 = vrot.lane.b32.xlu1 %v2357_v48, %s5453_s10  ;;  %v2317_v52 = vmul.f32 %v5229_v0, %v2316_v15 }
0x143b   : > { %v2318_v55 = vadd.f32 %v5229_v0, %v2317_v52 }
0x143c   : > { %v5231_v7 = vpop.eup %5230 }
0x143d   : > { %v2322_v19 = vsel %vm2321_vm0, %v5229_v0, %v2318_v55  ;;  %v2330_v17 = vmul.f32 %v5231_v7, %v2283_v11  ;;  %vm2335_vm2 = vweird.f32 %v5231_v7 }
0x143e   : > { %v2327_v44 = vsel %vm2324_vm1, %v2326_v62, %v2322_v19  ;;  %vm2336_vm4 = vmor %vm2334_vm3, %vm2335_vm2  ;;  %v4949_v62 = vld [vmem:[%s6915_s2 + $0x3] ss:$0 sm:$0xff] }
0x143f   : > { %v2358_v42 = vmul.f32 %v2349_v39, %v2327_v44  ;;  %v2331_v54 = vsub.f32 1.0, %v2330_v17  ;;  %v2386_v27 = vsub.f32 1.0, %v2327_v44  ;;  %v2410_v18 = vmul.f32 0.0, %v2327_v44 }
0x1441   : > { %v2332_v25 = vmul.f32 %v5231_v7, %v2331_v54  ;;  %2368 = vrot.lane.b32.xlu2 %v2358_v42, %s5453_s10 }
0x1443   : > { %v2333_v51 = vadd.f32 %v5231_v7, %v2332_v25  ;;  %v6164_v25 = vld [vmem:[#allocation3 + $0x11] sm:$0x1] }
0x1445   : > { %v2337_v24 = vsel %vm2336_vm4, %v5231_v7, %v2333_v51 }
0x1446   : > { %v2342_v21 = vsel %vm2339_vm6, %v2341_v61, %v2337_v24 }
0x1447   : > { %v2359_v6 = vmul.f32 %v2351_v32, %v2342_v21  ;;  %v2387_v56 = vsub.f32 1.0, %v2342_v21  ;;  %v2411_v50 = vmul.f32 0.0, %v2342_v21  ;;  %v6167_v21 = vld [vmem:[#allocation3 + $0x1] sm:$0x1] }
0x1449   : > { %2370 = vrot.lane.b32.xlu1 %v2359_v6, %s5453_s10  ;;  %v6170_v6 = vld [vmem:[#allocation3 + $0x9] sm:$0x1] }
0x149b   : > { %v2369_v31 = vpop.permute.xlu2 %2368 }
0x149c   : > { %v2378_v34 = vadd.f32 %v2369_v31, %v6104_v57 }
0x149e   : > { %5232 = vtanh.f32 %v2378_v34 }
0x14a3   : > { %v2365_v59 = vpop.permute.xlu0 %2364 }
0x14a4   : > { %v5233_v58 = vpop.eup %5232  ;;  %v2376_v53 = vadd.f32 %v2365_v59, %v6096_v47  ;;  %v4908_v47 = vld [vmem:[%s6914_s1 + $0x20] sm:$0xff] }
0x14a5   : > { %2396 = vrot.lane.b32.xlu0 %v5233_v58, %s5455_s11  ;;  %2477 = vmatpush.bf16.msrb.mxu2 %v4908_v47 }
0x14a6   : > { %5234 = vtanh.f32 %v2376_v53 }
0x14ab   : > { %v2367_v9 = vpop.permute.xlu1 %2366 }
0x14ac   : > { %v5235_v8 = vpop.eup %5234  ;;  %v2377_v40 = vadd.f32 %v2367_v9, %v6100_v23  ;;  %v2385_v23 = vsub.f32 1.0, %v6115_v13  ;;  %v6173_v9 = vld [vmem:[#allocation3 + $0x19] sm:$0x1] }
0x14ad   : > { %2392 = vrot.lane.b32.xlu1 %v5235_v8, %s5455_s11 }
0x14ae   : > { %5236 = vtanh.f32 %v2377_v40 }
0x14b4   : > { %v5237_v5 = vpop.eup %5236 }
0x14b5   : > { %2394 = vrot.lane.b32.xlu2 %v5237_v5, %s5455_s11 }
0x14bb   : > { %v2371_v57 = vpop.permute.xlu1 %2370 }
0x14bc   : > { %v2379_v10 = vadd.f32 %v2371_v57, %v6108_v29 }
0x14be   : > { %5238 = vtanh.f32 %v2379_v10 }
0x14c4   : > { %v5239_v2 = vpop.eup %5238 }
0x14c5   : > { %2398 = vrot.lane.b32.xlu2 %v5239_v2, %s5455_s11 }
0x150f   : > { %v2395_v22 = vpop.permute.xlu2 %2394 }
0x1510   : > { %v2405_v12 = vmul.f32 %v2395_v22, %v2385_v23 }
0x1512   : > { %v6134_v29 = vadd.f32 %v2409_v28, %v2405_v12 }
0x1514   : > { %v2437_v1 = vpack.c.bf16 %v6134_v29, %v6134_v29 }
0x1516   : > { %v2449_v0 = vunpack.c.l.b16 %v2437_v1 }
0x1517   : > { %v2397_v36 = vpop.permute.xlu0 %2396 }
0x1518   : > { %v2406_v4 = vmul.f32 %v2397_v36, %v2386_v27  ;;  %v2452_v13 = vrot.slane %v2449_v0, 7 }
0x151a   : > { %v6136_v43 = vadd.f32 %v2410_v18, %v2406_v4 }
0x151c   : > { %v2438_v38 = vpack.c.bf16 %v6136_v43, %v6136_v43 }
0x151e   : > { %v2450_v11 = vunpack.c.l.b16 %v2438_v38 }
0x151f   : > { %v2399_v30 = vpop.permute.xlu2 %2398  ;;  %v2393_v41 = vpop.permute.xlu1 %2392 }
0x1520   : > { %v2407_v46 = vmul.f32 %v2399_v30, %v2387_v56  ;;  %v2404_v33 = vmul.f32 %v2393_v41, %v2384_v35  ;;  %v2454_v63 = vrot.slane %v2450_v11, 6 }
0x1522   : > { %v6144_v49 = vadd.f32 %v2411_v50, %v2407_v46  ;;  %v6146_v3 = vadd.f32 %v2408_v20, %v2404_v33 }
0x1524   : > { %v2439_v37 = vpack.c.bf16 %v6144_v49, %v6144_v49  ;;  %v2436_v14 = vpack.c.bf16 %v6146_v3, %v6146_v3 }
0x1526   : > { %v2451_v48 = vunpack.c.l.b16 %v2439_v37  ;;  %v2448_v15 = vunpack.c.l.b16 %v2436_v14 }
0x1528   : > { %v2456_v52 = vrot.slane %v2451_v48, 5  ;;  %v2453_v45 = vsel %vm596_vm8, %v2452_v13, %v2448_v15 }
0x1529   : > { %v2455_v60 = vsel %vm599_vm9, %v2454_v63, %v2453_v45 }
0x152a   : > { %v2457_v55 = vsel %vm602_vm10, %v2456_v52, %v2455_v60 }
0x152b   : > { %v2458_v7 = vpack.c.b16 %v2457_v55, %v2457_v55 }
0x152d   : > { %2459 = vrot.lane.b32.xlu0 %v2458_v7, %s5455_s11 }
0x159f   : > { %v2460_v39 = vpop.permute.xlu0 %2459 }
0x15a0   : > { %4811 = vmatmul.msk.bf16.vlgmr.msrb.gmra.mxu2 %vm379_vm11, %v2460_v39 }
0x1623   : > { %v2479_v19 = vpop.f32.mrf.mxu2 }
0x1624   : > { %v2480_v17 = vadd.f32 %v4949_v62, %v2479_v19 }
0x1626   : > { %2575 = vrot.lane.b32.xlu0 %v2480_v17, %s5451_s8  ;;  %v2489_v44 = vrot.slane %v2480_v17, 2  ;;  %v2488_v42 = vrot.slane %v2480_v17, 1  ;;  %v2490_v16 = vrot.slane %v2480_v17, 3  ;;  %v2495_v32 = vadd.f32 %v6167_v21, %v2480_v17 }
0x1628   : > { %2579 = vrot.lane.b32.xlu2 %v2489_v44, %s5451_s8  ;;  %2577 = vrot.lane.b32.xlu1 %v2488_v42, %s5451_s8  ;;  %v2497_v26 = vadd.f32 %v2489_v44, %v6164_v25  ;;  %v2496_v31 = vadd.f32 %v2488_v42, %v6170_v6  ;;  %v4812_v34 = vmul.f32 -1.442695, %v2495_v32  ;;  %v2498_v8 = vadd.f32 %v2490_v16, %v6173_v9 }
0x162a   : > { %v4814_v51 = vmul.f32 -1.442695, %v2497_v26  ;;  %v4813_v58 = vmul.f32 -1.442695, %v2496_v31  ;;  %v4815_v57 = vmul.f32 -1.442695, %v2498_v8 }
0x162b   : > { %v2481_v54 = vpop.f32.mrf.mxu2 }
0x162c   : > { %5240 = vpow2.f32 %v4814_v51 }
0x1630   : > { %2581 = vrot.lane.b32.xlu1 %v2490_v16, %s5451_s8 }
0x1632   : > { %v5241_v61 = vpop.eup %5240 }
0x1633   : > { %v2513_v24 = vadd.f32 1.0, %v5241_v61 }
0x1635   : > { %5242 = vrcp.f32 %v2513_v24  ;;  %v2556_v12 = vand.u32 2147483648, %v2513_v24  ;;  %vm2550_vm12 = vweird.f32 %v2513_v24  ;;  %v2554_v27 = vand.u32 2147483647, %v2513_v24 }
0x1636   : > { %5244 = vpow2.f32 %v4812_v34 }
0x1637   : > { %5246 = vpow2.f32 %v4813_v58  ;;  %v2557_v4 = vor.u32 1.1754944e-38, %v2556_v12  ;;  %vm2555_vm15 = vcmp.eq.f32.partialorder %v2554_v27, 8.507059e+37 }
0x1638   : > { %5248 = vpow2.f32 %v4815_v57 }
0x163b   : > { %v5243_v59 = vpop.eup %5242 }
0x163c   : > { %v2546_v53 = vmul.f32 %v5243_v59, %v2513_v24  ;;  %v5245_v5 = vpop.eup %5244  ;;  %vm2551_vm7 = vweird.f32 %v5243_v59 }
0x163d   : > { %v5247_v10 = vpop.eup %5246  ;;  %v2511_v47 = vadd.f32 1.0, %v5245_v5  ;;  %vm2552_vm13 = vmor %vm2550_vm12, %vm2551_vm7 }
0x163e   : > { %v2547_v40 = vsub.f32 1.0, %v2546_v53  ;;  %v2512_v22 = vadd.f32 1.0, %v5247_v10  ;;  %v5249_v36 = vpop.eup %5248 }
0x163f   : > { %5250 = vrcp.f32 %v2511_v47  ;;  %v2514_v1 = vadd.f32 1.0, %v5249_v36  ;;  %vm2520_vm1 = vweird.f32 %v2511_v47  ;;  %v2526_v13 = vand.u32 2147483648, %v2511_v47 }
0x1640   : > { %v2548_v2 = vmul.f32 %v5243_v59, %v2547_v40  ;;  %5252 = vrcp.f32 %v2512_v22  ;;  %v2524_v48 = vand.u32 2147483647, %v2511_v47  ;;  %v2541_v52 = vand.u32 2147483648, %v2512_v22 }
0x1641   : > { %5254 = vrcp.f32 %v2514_v1  ;;  %vm2535_vm4 = vweird.f32 %v2512_v22  ;;  %v2539_v60 = vand.u32 2147483647, %v2512_v22  ;;  %v2527_v55 = vor.u32 1.1754944e-38, %v2526_v13 }
0x1642   : > { %v2549_v23 = vadd.f32 %v5243_v59, %v2548_v2  ;;  %vm2525_vm7 = vcmp.eq.f32.partialorder %v2524_v48, 8.507059e+37  ;;  %v2542_v17 = vor.u32 1.1754944e-38, %v2541_v52  ;;  %v2571_v51 = vand.u32 2147483648, %v2514_v1 }
0x1643   : > { %vm2540_vm12 = vcmp.eq.f32.partialorder %v2539_v60, 8.507059e+37  ;;  %v2569_v61 = vand.u32 2147483647, %v2514_v1 }
0x1644   : > { %v2553_v28 = vsel %vm2552_vm13, %v5243_v59, %v2549_v23  ;;  %v2572_v32 = vor.u32 1.1754944e-38, %v2571_v51 }
0x1645   : > { %v5251_v18 = vpop.eup %5250  ;;  %v6176_v35 = vsel %vm2555_vm15, %v2557_v4, %v2553_v28  ;;  %vm2565_vm15 = vweird.f32 %v2514_v1 }
0x1646   : > { %v5253_v30 = vpop.eup %5252  ;;  %v2516_v41 = vmul.f32 %v5251_v18, %v2511_v47  ;;  %vm2521_vm0 = vweird.f32 %v5251_v18  ;;  %v2617_v12 = vsub.f32 1.0, %v6176_v35  ;;  %v2641_v4 = vmul.f32 %v6176_v35, %v6136_v43 }
0x1647   : > { %v2531_v50 = vmul.f32 %v5253_v30, %v2512_v22  ;;  %v5255_v33 = vpop.eup %5254  ;;  %vm2536_vm2 = vweird.f32 %v5253_v30  ;;  %vm2522_vm3 = vmor %vm2520_vm1, %vm2521_vm0  ;;  %vm2570_vm1 = vcmp.eq.f32.partialorder %v2569_v61, 8.507059e+37 }
0x1648   : > { %v2517_v46 = vsub.f32 1.0, %v2516_v41  ;;  %v2561_v37 = vmul.f32 %v5255_v33, %v2514_v1  ;;  %vm2537_vm6 = vmor %vm2535_vm4, %vm2536_vm2  ;;  %vm2566_vm13 = vweird.f32 %v5255_v33 }
0x1649   : > { %v2532_v20 = vsub.f32 1.0, %v2531_v50  ;;  %vm2567_vm0 = vmor %vm2565_vm15, %vm2566_vm13 }
0x164a   : > { %v2518_v0 = vmul.f32 %v5251_v18, %v2517_v46  ;;  %v2562_v63 = vsub.f32 1.0, %v2561_v37 }
0x164b   : > { %v2533_v11 = vmul.f32 %v5253_v30, %v2532_v20 }
0x164c   : > { %v2519_v14 = vadd.f32 %v5251_v18, %v2518_v0  ;;  %v2563_v39 = vmul.f32 %v5255_v33, %v2562_v63 }
0x164d   : > { %v2534_v15 = vadd.f32 %v5253_v30, %v2533_v11 }
0x164e   : > { %v2523_v45 = vsel %vm2522_vm3, %v5251_v18, %v2519_v14  ;;  %v2564_v26 = vadd.f32 %v5255_v33, %v2563_v39 }
0x164f   : > { %v2538_v7 = vsel %vm2537_vm6, %v5253_v30, %v2534_v15  ;;  %v2528_v19 = vsel %vm2525_vm7, %v2527_v55, %v2523_v45 }
0x1650   : > { %v2543_v54 = vsel %vm2540_vm12, %v2542_v17, %v2538_v7  ;;  %v2568_v24 = vsel %vm2567_vm0, %v5255_v33, %v2564_v26  ;;  %v2615_v27 = vsub.f32 1.0, %v2528_v19  ;;  %v2639_v41 = vmul.f32 %v2528_v19, %v6146_v3 }
0x1651   : > { %v2573_v31 = vsel %vm2570_vm1, %v2572_v32, %v2568_v24  ;;  %v2616_v28 = vsub.f32 1.0, %v2543_v54  ;;  %v6228_v32 = vld [vmem:[#allocation3 + $0xa] sm:$0x1] }
0x1652   : > { %v2618_v0 = vsub.f32 1.0, %v2573_v31  ;;  %v2642_v14 = vmul.f32 %v2573_v31, %v6144_v49 }
0x1682   : > { %v2580_v56 = vpop.permute.xlu2 %2579 }
0x1683   : > { %v2589_v38 = vmul.f32 %v2580_v56, %v6176_v35  ;;  %v2640_v56 = vmul.f32 %v2543_v54, %v6134_v29 }
0x1685   : > { %2599 = vrot.lane.b32.xlu0 %v2589_v38, %s5453_s10 }
0x1698   : > { %v2576_v62 = vpop.permute.xlu0 %2575 }
0x1699   : > { %v2587_v44 = vmul.f32 %v2576_v62, %v2528_v19 }
0x169a   : > { %v2578_v42 = vpop.permute.xlu1 %2577 }
0x169b   : > { %v2588_v16 = vmul.f32 %v2578_v42, %v2543_v54  ;;  %2595 = vrot.lane.b32.xlu1 %v2587_v44, %s5453_s10  ;;  %v4950_v42 = vld [vmem:[%s6915_s2 + $0x3] ss:$0 sm:$0xff] }
0x169d   : > { %2597 = vrot.lane.b32.xlu2 %v2588_v16, %s5453_s10 }
0x16a2   : > { %v2582_v34 = vpop.permute.xlu1 %2581 }
0x16a3   : > { %v2590_v59 = vmul.f32 %v2582_v34, %v2573_v31 }
0x16a5   : > { %2601 = vrot.lane.b32.xlu2 %v2590_v59, %s5453_s10  ;;  %v6231_v59 = vld [vmem:[#allocation3 + $0x1a] sm:$0x1] }
0x16f7   : > { %v2600_v58 = vpop.permute.xlu0 %2599  ;;  %v2598_v53 = vpop.permute.xlu2 %2597 }
0x16f8   : > { %v2609_v8 = vadd.f32 %v2600_v58, %v6164_v25  ;;  %v2608_v40 = vadd.f32 %v2598_v53, %v6170_v6 }
0x16fa   : > { %5256 = vtanh.f32 %v2609_v8 }
0x16fb   : > { %5258 = vtanh.f32 %v2608_v40 }
0x16ff   : > { %v2602_v5 = vpop.permute.xlu2 %2601 }
0x1700   : > { %v5257_v57 = vpop.eup %5256  ;;  %v2610_v10 = vadd.f32 %v2602_v5, %v6173_v9  ;;  %v4909_v9 = vld [vmem:[%s6914_s1 + $0x20] sm:$0xff] }
0x1701   : > { %v5259_v2 = vpop.eup %5258  ;;  %2627 = vrot.lane.b32.xlu1 %v5257_v57, %s5455_s11  ;;  %2708 = vmatpush.bf16.msrb.mxu3 %v4909_v9  ;;  %v6234_v5 = vld [vmem:[#allocation3 + $0x2] sm:$0x1] }
0x1702   : > { %5260 = vtanh.f32 %v2610_v10  ;;  %2625 = vrot.lane.b32.xlu0 %v5259_v2, %s5455_s11  ;;  %v6237_v2 = vld [vmem:[#allocation3 + $0x12] sm:$0x1] }
0x1708   : > { %v5261_v47 = vpop.eup %5260 }
0x170a   : > { %2629 = vrot.lane.b32.xlu0 %v5261_v47, %s5455_s11 }
0x170d   : > { %v2596_v22 = vpop.permute.xlu1 %2595 }
0x170e   : > { %v2607_v25 = vadd.f32 %v2596_v22, %v6167_v21 }
0x1710   : > { %5262 = vtanh.f32 %v2607_v25 }
0x1716   : > { %v5263_v6 = vpop.eup %5262 }
0x1717   : > { %2623 = vrot.lane.b32.xlu2 %v5263_v6, %s5455_s11 }
0x1771   : > { %v2624_v23 = vpop.permute.xlu2 %2623 }
0x1772   : > { %v2635_v1 = vmul.f32 %v2624_v23, %v2615_v27 }
0x1773   : > { %v2628_v36 = vpop.permute.xlu1 %2627 }
0x1774   : > { %v2637_v18 = vmul.f32 %v2628_v36, %v2617_v12  ;;  %v2626_v21 = vpop.permute.xlu0 %2625  ;;  %v6203_v46 = vadd.f32 %v2639_v41, %v2635_v1 }
0x1775   : > { %v2636_v38 = vmul.f32 %v2626_v21, %v2616_v28 }
0x1776   : > { %v6198_v30 = vadd.f32 %v2641_v4, %v2637_v18  ;;  %v2667_v37 = vpack.c.bf16 %v6203_v46, %v6203_v46 }
0x1777   : > { %v6201_v50 = vadd.f32 %v2640_v56, %v2636_v38 }
0x1778   : > { %v2669_v35 = vpack.c.bf16 %v6198_v30, %v6198_v30  ;;  %v2679_v52 = vunpack.c.l.b16 %v2667_v37 }
0x1779   : > { %v2668_v20 = vpack.c.bf16 %v6201_v50, %v6201_v50 }
0x177a   : > { %v2681_v48 = vunpack.c.l.b16 %v2669_v35 }
0x177b   : > { %v2680_v33 = vunpack.c.l.b16 %v2668_v20 }
0x177c   : > { %v2630_v11 = vpop.permute.xlu0 %2629  ;;  %v2685_v60 = vrot.slane %v2681_v48, 6 }
0x177d   : > { %v2638_v13 = vmul.f32 %v2630_v11, %v2618_v0  ;;  %v2683_v15 = vrot.slane %v2680_v33, 7 }
0x177f   : > { %v6212_v63 = vadd.f32 %v2642_v14, %v2638_v13  ;;  %v2684_v7 = vsel %vm596_vm8, %v2683_v15, %v2679_v52 }
0x1780   : > { %v2686_v62 = vsel %vm599_vm9, %v2685_v60, %v2684_v7 }
0x1781   : > { %v2670_v45 = vpack.c.bf16 %v6212_v63, %v6212_v63 }
0x1783   : > { %v2682_v55 = vunpack.c.l.b16 %v2670_v45 }
0x1785   : > { %v2687_v39 = vrot.slane %v2682_v55, 5 }
0x1787   : > { %v2688_v19 = vsel %vm602_vm10, %v2687_v39, %v2686_v62 }
0x1788   : > { %v2689_v17 = vpack.c.b16 %v2688_v19, %v2688_v19 }
0x178a   : > { %2690 = vrot.lane.b32.xlu1 %v2689_v17, %s5455_s11 }
0x17fc   : > { %v2691_v44 = vpop.permute.xlu1 %2690 }
0x17fd   : > { %4820 = vmatmul.msk.bf16.vlgmr.msrb.gmra.mxu3 %vm379_vm11, %v2691_v44 }
0x1880   : > { %v2710_v54 = vpop.f32.mrf.mxu3 }
0x1881   : > { %v2711_v16 = vadd.f32 %v4950_v42, %v2710_v54 }
0x1883   : > { %2806 = vrot.lane.b32.xlu1 %v2711_v16, %s5451_s8  ;;  %v2720_v26 = vrot.slane %v2711_v16, 2  ;;  %v2719_v51 = vrot.slane %v2711_v16, 1  ;;  %v2721_v24 = vrot.slane %v2711_v16, 3  ;;  %v2726_v10 = vadd.f32 %v6234_v5, %v2711_v16 }
0x1885   : > { %2810 = vrot.lane.b32.xlu0 %v2720_v26, %s5451_s8  ;;  %2808 = vrot.lane.b32.xlu2 %v2719_v51, %s5451_s8  ;;  %v2727_v31 = vadd.f32 %v2719_v51, %v6228_v32  ;;  %v2729_v58 = vadd.f32 %v2721_v24, %v6231_v59  ;;  %v2728_v47 = vadd.f32 %v2720_v26, %v6237_v2  ;;  %v4821_v25 = vmul.f32 -1.442695, %v2726_v10 }
0x1887   : > { %v4822_v34 = vmul.f32 -1.442695, %v2727_v31  ;;  %v4824_v53 = vmul.f32 -1.442695, %v2729_v58  ;;  %v4823_v9 = vmul.f32 -1.442695, %v2728_v47 }
0x1888   : > { %v2712_v61 = vpop.f32.mrf.mxu3 }
0x1889   : > { %5264 = vpow2.f32 %v4822_v34 }
0x188a   : > { %5266 = vpow2.f32 %v4824_v53 }
0x188d   : > { %2812 = vrot.lane.b32.xlu2 %v2721_v24, %s5451_s8 }
0x188f   : > { %v5265_v8 = vpop.eup %5264 }
0x1890   : > { %v2743_v40 = vadd.f32 1.0, %v5265_v8  ;;  %v5267_v57 = vpop.eup %5266 }
0x1891   : > { %v2745_v22 = vadd.f32 1.0, %v5267_v57 }
0x1892   : > { %5268 = vrcp.f32 %v2743_v40  ;;  %v2772_v41 = vand.u32 2147483648, %v2743_v40  ;;  %vm2766_vm3 = vweird.f32 %v2743_v40  ;;  %v2770_v20 = vand.u32 2147483647, %v2743_v40 }
0x1893   : > { %5270 = vrcp.f32 %v2745_v22  ;;  %v2802_v52 = vand.u32 2147483648, %v2745_v22  ;;  %vm2796_vm12 = vweird.f32 %v2745_v22  ;;  %v2800_v45 = vand.u32 2147483647, %v2745_v22 }
0x1894   : > { %5272 = vpow2.f32 %v4821_v25  ;;  %v2773_v0 = vor.u32 1.1754944e-38, %v2772_v41  ;;  %vm2771_vm6 = vcmp.eq.f32.partialorder %v2770_v20, 8.507059e+37 }
0x1895   : > { %5274 = vpow2.f32 %v4823_v9  ;;  %v2803_v39 = vor.u32 1.1754944e-38, %v2802_v52  ;;  %vm2801_vm15 = vcmp.eq.f32.partialorder %v2800_v45, 8.507059e+37 }
0x1898   : > { %v5269_v6 = vpop.eup %5268 }
0x1899   : > { %v2762_v23 = vmul.f32 %v5269_v6, %v2743_v40  ;;  %v5271_v27 = vpop.eup %5270  ;;  %vm2767_vm2 = vweird.f32 %v5269_v6 }
0x189a   : > { %v5273_v36 = vpop.eup %5272  ;;  %v2792_v18 = vmul.f32 %v5271_v27, %v2745_v22  ;;  %vm2768_vm4 = vmor %vm2766_vm3, %vm2767_vm2  ;;  %vm2797_vm7 = vweird.f32 %v5271_v27 }
0x189b   : > { %v2763_v12 = vsub.f32 1.0, %v2762_v23  ;;  %v5275_v28 = vpop.eup %5274  ;;  %v2742_v21 = vadd.f32 1.0, %v5273_v36  ;;  %vm2798_vm13 = vmor %vm2796_vm12, %vm2797_vm7 }
0x189c   : > { %v2744_v1 = vadd.f32 1.0, %v5275_v28  ;;  %v2793_v38 = vsub.f32 1.0, %v2792_v18 }
0x189d   : > { %v2764_v4 = vmul.f32 %v5269_v6, %v2763_v12  ;;  %5276 = vrcp.f32 %v2742_v21  ;;  %v2757_v51 = vand.u32 2147483648, %v2742_v21  ;;  %vm2751_vm1 = vweird.f32 %v2742_v21 }
0x189e   : > { %5278 = vrcp.f32 %v2744_v1  ;;  %v2794_v33 = vmul.f32 %v5271_v27, %v2793_v38  ;;  %v2755_v61 = vand.u32 2147483647, %v2742_v21  ;;  %v2787_v31 = vand.u32 2147483648, %v2744_v1 }
0x189f   : > { %v2765_v56 = vadd.f32 %v5269_v6, %v2764_v4  ;;  %v2785_v58 = vand.u32 2147483647, %v2744_v1  ;;  %v2758_v53 = vor.u32 1.1754944e-38, %v2757_v51 }
0x18a0   : > { %v2795_v48 = vadd.f32 %v5271_v27, %v2794_v33  ;;  %vm2756_vm7 = vcmp.eq.f32.partialorder %v2755_v61, 8.507059e+37  ;;  %v2788_v10 = vor.u32 1.1754944e-38, %v2787_v31 }
0x18a1   : > { %v2769_v35 = vsel %vm2768_vm4, %v5269_v6, %v2765_v56  ;;  %vm2781_vm4 = vweird.f32 %v2744_v1  ;;  %vm2786_vm12 = vcmp.eq.f32.partialorder %v2785_v58, 8.507059e+37 }
0x18a2   : > { %v6240_v14 = vsel %vm2771_vm6, %v2773_v0, %v2769_v35  ;;  %v2799_v55 = vsel %vm2798_vm13, %v5271_v27, %v2795_v48 }
0x18a3   : > { %v5277_v11 = vpop.eup %5276  ;;  %v6244_v19 = vsel %vm2801_vm15, %v2803_v39, %v2799_v55  ;;  %v2847_v20 = vsub.f32 1.0, %v6240_v14 }
0x18a4   : > { %v5279_v15 = vpop.eup %5278  ;;  %v2747_v60 = vmul.f32 %v5277_v11, %v2742_v21  ;;  %vm2752_vm0 = vweird.f32 %v5277_v11  ;;  %v2849_v39 = vsub.f32 1.0, %v6244_v19 }
0x18a5   : > { %v2777_v7 = vmul.f32 %v5279_v15, %v2744_v1  ;;  %vm2782_vm2 = vweird.f32 %v5279_v15  ;;  %vm2753_vm3 = vmor %vm2751_vm1, %vm2752_vm0 }
0x18a6   : > { %v2748_v62 = vsub.f32 1.0, %v2747_v60  ;;  %vm2783_vm6 = vmor %vm2781_vm4, %vm2782_vm2 }
0x18a7   : > { %v2778_v42 = vsub.f32 1.0, %v2777_v7 }
0x18a8   : > { %v2749_v54 = vmul.f32 %v5277_v11, %v2748_v62 }
0x18a9   : > { %v2779_v16 = vmul.f32 %v5279_v15, %v2778_v42 }
0x18aa   : > { %v2750_v26 = vadd.f32 %v5277_v11, %v2749_v54 }
0x18ab   : > { %v2780_v24 = vadd.f32 %v5279_v15, %v2779_v16 }
0x18ac   : > { %v2754_v34 = vsel %vm2753_vm3, %v5277_v11, %v2750_v26 }
0x18ad   : > { %v2784_v8 = vsel %vm2783_vm6, %v5279_v15, %v2780_v24  ;;  %v2759_v57 = vsel %vm2756_vm7, %v2758_v53, %v2754_v34 }
0x18ae   : > { %v2789_v25 = vsel %vm2786_vm12, %v2788_v10, %v2784_v8  ;;  %v2870_v48 = vmul.f32 %v2759_v57, %v6203_v46 }
0x18af   : > { %v2848_v41 = vsub.f32 1.0, %v2789_v25  ;;  %v2872_v35 = vmul.f32 %v2789_v25, %v6198_v30 }
0x18df   : > { %v2809_v37 = vpop.permute.xlu2 %2808 }
0x18e0   : > { %v2819_v13 = vmul.f32 %v2809_v37, %v6240_v14  ;;  %v2871_v37 = vmul.f32 %v6240_v14, %v6201_v50 }
0x18e2   : > { %2828 = vrot.lane.b32.xlu0 %v2819_v13, %s5453_s10 }
0x18e7   : > { %v2813_v17 = vpop.permute.xlu2 %2812 }
0x18e8   : > { %v2821_v44 = vmul.f32 %v2813_v17, %v6244_v19  ;;  %v2873_v17 = vmul.f32 %v6244_v19, %v6212_v63 }
0x18ea   : > { %2832 = vrot.lane.b32.xlu0 %v2821_v44, %s5453_s10 }
0x18f5   : > { %v2807_v40 = vpop.permute.xlu1 %2806 }
0x18f6   : > { %v2818_v47 = vmul.f32 %v2807_v40, %v2759_v57  ;;  %v4951_v40 = vld [vmem:[%s6915_s2 + $0x3] ss:$0 sm:$0xff] }
0x18f7   : > { %v2811_v22 = vpop.permute.xlu0 %2810 }
0x18f8   : > { %v2820_v6 = vmul.f32 %v2811_v22, %v2789_v25  ;;  %2826 = vrot.lane.b32.xlu2 %v2818_v47, %s5453_s10 }
0x18fa   : > { %2830 = vrot.lane.b32.xlu1 %v2820_v6, %s5453_s10 }
0x1952   : > { %v2827_v9 = vpop.permute.xlu2 %2826 }
0x1953   : > { %v2838_v23 = vadd.f32 %v2827_v9, %v6234_v5  ;;  %v6297_v9 = vld [vmem:[#allocation3 + $0x3] sm:$0x1] }
0x1954   : > { %v2829_v12 = vpop.permute.xlu0 %2828 }
0x1955   : > { %5280 = vtanh.f32 %v2838_v23  ;;  %v2839_v27 = vadd.f32 %v2829_v12, %v6228_v32  ;;  %v4910_v32 = vld [vmem:[%s6914_s1 + $0x20] sm:$0xff] }
0x1956   : > { %2939 = vmatpush.bf16.msra.mxu1 %v4910_v32 }
0x1957   : > { %5282 = vtanh.f32 %v2839_v27 }
0x195b   : > { %v5281_v36 = vpop.eup %5280 }
0x195c   : > { %2854 = vrot.lane.b32.xlu0 %v5281_v36, %s5455_s11  ;;  %v2833_v28 = vpop.permute.xlu0 %2832 }
0x195d   : > { %v5283_v4 = vpop.eup %5282  ;;  %v2841_v18 = vadd.f32 %v2833_v28, %v6231_v59  ;;  %v2846_v59 = vsub.f32 1.0, %v2759_v57  ;;  %v6300_v28 = vld [vmem:[#allocation3 + $0x13] sm:$0x1] }
0x195e   : > { %2856 = vrot.lane.b32.xlu1 %v5283_v4, %s5455_s11 }
0x195f   : > { %5284 = vtanh.f32 %v2841_v18  ;;  %v6303_v18 = vld [vmem:[#allocation3 + $0xb] sm:$0x1] }
0x1965   : > { %v5285_v21 = vpop.eup %5284 }
0x1966   : > { %2860 = vrot.lane.b32.xlu1 %v5285_v21, %s5455_s11 }
0x196c   : > { %v2831_v1 = vpop.permute.xlu1 %2830 }
0x196d   : > { %v2840_v5 = vadd.f32 %v2831_v1, %v6237_v2 }
0x196f   : > { %5286 = vtanh.f32 %v2840_v5 }
0x1975   : > { %v5287_v56 = vpop.eup %5286 }
0x1976   : > { %2858 = vrot.lane.b32.xlu2 %v5287_v56, %s5455_s11 }
0x19ce   : > { %v2855_v38 = vpop.permute.xlu0 %2854 }
0x19cf   : > { %v2866_v11 = vmul.f32 %v2855_v38, %v2846_v59  ;;  %v6306_v38 = vld [vmem:[#allocation3 + $0x1b] sm:$0x1] }
0x19d0   : > { %v2859_v33 = vpop.permute.xlu2 %2858  ;;  %v2857_v0 = vpop.permute.xlu1 %2856 }
0x19d1   : > { %v2868_v2 = vmul.f32 %v2859_v33, %v2848_v41  ;;  %v2867_v13 = vmul.f32 %v2857_v0, %v2847_v20  ;;  %v6270_v45 = vadd.f32 %v2870_v48, %v2866_v11 }
0x19d3   : > { %v6266_v15 = vadd.f32 %v2872_v35, %v2868_v2  ;;  %v6268_v52 = vadd.f32 %v2871_v37, %v2867_v13  ;;  %v2898_v14 = vpack.c.bf16 %v6270_v45, %v6270_v45 }
0x19d5   : > { %v2899_v60 = vpack.c.bf16 %v6268_v52, %v6268_v52  ;;  %v2900_v55 = vpack.c.bf16 %v6266_v15, %v6266_v15  ;;  %v2910_v26 = vunpack.c.l.b16 %v2898_v14 }
0x19d7   : > { %v2911_v7 = vunpack.c.l.b16 %v2899_v60  ;;  %v2912_v42 = vunpack.c.l.b16 %v2900_v55 }
0x19d8   : > { %v2861_v62 = vpop.permute.xlu1 %2860 }
0x19d9   : > { %v2869_v44 = vmul.f32 %v2861_v62, %v2849_v39  ;;  %v2914_v54 = vrot.slane %v2911_v7, 7  ;;  %v2916_v61 = vrot.slane %v2912_v42, 6 }
0x19db   : > { %v6281_v16 = vadd.f32 %v2873_v17, %v2869_v44  ;;  %v2915_v31 = vsel %vm596_vm8, %v2914_v54, %v2910_v26 }
0x19dc   : > { %v2917_v58 = vsel %vm599_vm9, %v2916_v61, %v2915_v31 }
0x19dd   : > { %v2901_v51 = vpack.c.bf16 %v6281_v16, %v6281_v16 }
0x19df   : > { %v2913_v24 = vunpack.c.l.b16 %v2901_v51 }
0x19e1   : > { %v2918_v34 = vrot.slane %v2913_v24, 5 }
0x19e3   : > { %v2919_v53 = vsel %vm602_vm10, %v2918_v34, %v2917_v58 }
0x19e4   : > { %v2920_v8 = vpack.c.b16 %v2919_v53, %v2919_v53 }
0x19e6   : > { %2921 = vrot.lane.b32.xlu2 %v2920_v8, %s5455_s11 }
0x1a40   : > { %v2922_v19 = vpop.permute.xlu2 %2921 }
0x1a41   : > { %4829 = vmatmul.msk.bf16.vlgmr.msra.gmra.mxu1 %vm379_vm11, %v2922_v19 }
0x1abe   : > { %v2941_v57 = vpop.f32.mrf.mxu1 }
0x1abf   : > { %v2942_v10 = vadd.f32 %v4951_v40, %v2941_v57 }
0x1ac1   : > { %3037 = vrot.lane.b32.xlu2 %v2942_v10, %s5451_s8  ;;  %v2951_v47 = vrot.slane %v2942_v10, 2  ;;  %v2950_v22 = vrot.slane %v2942_v10, 1  ;;  %v2952_v6 = vrot.slane %v2942_v10, 3  ;;  %v2957_v23 = vadd.f32 %v6297_v9, %v2942_v10 }
0x1ac3   : > { %3041 = vrot.lane.b32.xlu1 %v2951_v47, %s5451_s8  ;;  %3039 = vrot.lane.b32.xlu0 %v2950_v22, %s5451_s8  ;;  %v4830_v12 = vmul.f32 -1.442695, %v2957_v23  ;;  %v2959_v4 = vadd.f32 %v2951_v47, %v6300_v28  ;;  %v2958_v21 = vadd.f32 %v2950_v22, %v6303_v18  ;;  %v2960_v59 = vadd.f32 %v2952_v6, %v6306_v38 }
0x1ac5   : > { %5288 = vpow2.f32 %v4830_v12  ;;  %v4832_v5 = vmul.f32 -1.442695, %v2959_v4  ;;  %v4831_v56 = vmul.f32 -1.442695, %v2958_v21  ;;  %v4833_v20 = vmul.f32 -1.442695, %v2960_v59 }
0x1ac6   : > { %v2943_v25 = vpop.f32.mrf.mxu1 }
0x1acb   : > { %3043 = vrot.lane.b32.xlu0 %v2952_v6, %s5451_s8  ;;  %v5289_v27 = vpop.eup %5288 }
0x1acc   : > { %v2973_v36 = vadd.f32 1.0, %v5289_v27 }
0x1ace   : > { %5290 = vrcp.f32 %v2973_v36  ;;  %v2988_v13 = vand.u32 2147483648, %v2973_v36  ;;  %vm2982_vm15 = vweird.f32 %v2973_v36  ;;  %v2986_v48 = vand.u32 2147483647, %v2973_v36 }
0x1acf   : > { %5292 = vpow2.f32 %v4832_v5 }
0x1ad0   : > { %5294 = vpow2.f32 %v4831_v56  ;;  %v2989_v55 = vor.u32 1.1754944e-38, %v2988_v13  ;;  %vm2987_vm1 = vcmp.eq.f32.partialorder %v2986_v48, 8.507059e+37 }
0x1ad1   : > { %5296 = vpow2.f32 %v4833_v20 }
0x1ad4   : > { %v5291_v1 = vpop.eup %5290 }
0x1ad5   : > { %v2978_v32 = vmul.f32 %v5291_v1, %v2973_v36  ;;  %v5293_v33 = vpop.eup %5292  ;;  %vm2983_vm13 = vweird.f32 %v5291_v1 }
0x1ad6   : > { %v5295_v0 = vpop.eup %5294  ;;  %v2975_v11 = vadd.f32 1.0, %v5293_v33  ;;  %vm2984_vm0 = vmor %vm2982_vm15, %vm2983_vm13 }
0x1ad7   : > { %v2979_v41 = vsub.f32 1.0, %v2978_v32  ;;  %v2974_v37 = vadd.f32 1.0, %v5295_v0  ;;  %v5297_v7 = vpop.eup %5296 }
0x1ad8   : > { %5298 = vrcp.f32 %v2975_v11  ;;  %v2976_v17 = vadd.f32 1.0, %v5297_v7  ;;  %vm3012_vm4 = vweird.f32 %v2975_v11  ;;  %v3018_v40 = vand.u32 2147483648, %v2975_v11 }
0x1ad9   : > { %v2980_v35 = vmul.f32 %v5291_v1, %v2979_v41  ;;  %5300 = vrcp.f32 %v2974_v37  ;;  %v3003_v57 = vand.u32 2147483648, %v2974_v37  ;;  %v3016_v10 = vand.u32 2147483647, %v2975_v11 }
0x1ada   : > { %5302 = vrcp.f32 %v2976_v17  ;;  %vm2997_vm7 = vweird.f32 %v2974_v37  ;;  %v3001_v47 = vand.u32 2147483647, %v2974_v37  ;;  %v3019_v23 = vor.u32 1.1754944e-38, %v3018_v40 }
0x1adb   : > { %v2981_v2 = vadd.f32 %v5291_v1, %v2980_v35  ;;  %v3004_v12 = vor.u32 1.1754944e-38, %v3003_v57  ;;  %vm3017_vm13 = vcmp.eq.f32.partialorder %v3016_v10, 8.507059e+37  ;;  %v3033_v32 = vand.u32 2147483648, %v2976_v17 }
0x1adc   : > { %vm3002_vm15 = vcmp.eq.f32.partialorder %v3001_v47, 8.507059e+37  ;;  %v3031_v59 = vand.u32 2147483647, %v2976_v17 }
0x1add   : > { %v2985_v60 = vsel %vm2984_vm0, %v5291_v1, %v2981_v2  ;;  %v3034_v20 = vor.u32 1.1754944e-38, %v3033_v32 }
0x1ade   : > { %v6309_v62 = vsel %vm2987_vm1, %v2989_v55, %v2985_v60  ;;  %v5299_v44 = vpop.eup %5298  ;;  %vm3027_vm1 = vweird.f32 %v2976_v17 }
0x1adf   : > { %v5301_v42 = vpop.eup %5300  ;;  %v3008_v54 = vmul.f32 %v5299_v44, %v2975_v11  ;;  %vm3013_vm2 = vweird.f32 %v5299_v44 }
0x1ae0   : > { %v2993_v26 = vmul.f32 %v5301_v42, %v2974_v37  ;;  %v5303_v24 = vpop.eup %5302  ;;  %vm2998_vm3 = vweird.f32 %v5301_v42  ;;  %vm3014_vm6 = vmor %vm3012_vm4, %vm3013_vm2 }
0x1ae1   : > { %v3009_v51 = vsub.f32 1.0, %v3008_v54  ;;  %v3023_v58 = vmul.f32 %v5303_v24, %v2976_v17  ;;  %vm2999_vm12 = vmor %vm2997_vm7, %vm2998_vm3  ;;  %vm3028_vm0 = vweird.f32 %v5303_v24  ;;  %vm3032_vm3 = vcmp.eq.f32.partialorder %v3031_v59, 8.507059e+37 }
0x1ae2   : > { %v2994_v61 = vsub.f32 1.0, %v2993_v26  ;;  %vm3029_vm2 = vmor %vm3027_vm1, %vm3028_vm0 }
0x1ae3   : > { %v3010_v31 = vmul.f32 %v5299_v44, %v3009_v51  ;;  %v3024_v19 = vsub.f32 1.0, %v3023_v58  ;;  %v3101_v58 = vmul.f32 %v6309_v62, %v6270_v45 }
0x1ae4   : > { %v2995_v34 = vmul.f32 %v5301_v42, %v2994_v61 }
0x1ae5   : > { %v3011_v53 = vadd.f32 %v5299_v44, %v3010_v31  ;;  %v3025_v6 = vmul.f32 %v5303_v24, %v3024_v19 }
0x1ae6   : > { %v2996_v8 = vadd.f32 %v5301_v42, %v2995_v34 }
0x1ae7   : > { %v3015_v22 = vsel %vm3014_vm6, %v5299_v44, %v3011_v53  ;;  %v3026_v56 = vadd.f32 %v5303_v24, %v3025_v6 }
0x1ae8   : > { %v3000_v25 = vsel %vm2999_vm12, %v5301_v42, %v2996_v8  ;;  %v3020_v36 = vsel %vm3017_vm13, %v3019_v23, %v3015_v22  ;;  %v3077_v42 = vsub.f32 1.0, %v6309_v62 }
0x1ae9   : > { %v3005_v21 = vsel %vm3002_vm15, %v3004_v12, %v3000_v25  ;;  %v3030_v41 = vsel %vm3029_vm2, %v5303_v24, %v3026_v56  ;;  %v3103_v26 = vmul.f32 %v3020_v36, %v6266_v15 }
0x1aea   : > { %v3035_v35 = vsel %vm3032_vm3, %v3034_v20, %v3030_v41  ;;  %v3078_v54 = vsub.f32 1.0, %v3005_v21  ;;  %v3102_v31 = vmul.f32 %v3005_v21, %v6268_v52 }
0x1aeb   : > { %v3080_v47 = vsub.f32 1.0, %v3035_v35 }
0x1b1b   : > { %v3038_v39 = vpop.permute.xlu2 %3037 }
0x1b1c   : > { %v3049_v14 = vmul.f32 %v3038_v39, %v6309_v62  ;;  %v3104_v62 = vmul.f32 %v3035_v35, %v6281_v16 }
0x1b1e   : > { %3057 = vrot.lane.b32.xlu0 %v3049_v14, %s5453_s10 }
0x1b35   : > { %v3042_v27 = vpop.permute.xlu1 %3041  ;;  %v3040_v4 = vpop.permute.xlu0 %3039 }
0x1b36   : > { %v3051_v1 = vmul.f32 %v3042_v27, %v3020_v36  ;;  %v3050_v5 = vmul.f32 %v3040_v4, %v3005_v21 }
0x1b38   : > { %3061 = vrot.lane.b32.xlu2 %v3051_v1, %s5453_s10  ;;  %3059 = vrot.lane.b32.xlu1 %v3050_v5, %s5453_s10 }
0x1b3d   : > { %v3044_v33 = vpop.permute.xlu0 %3043 }
0x1b3e   : > { %v3052_v0 = vmul.f32 %v3044_v33, %v3035_v35  ;;  %v4952_v35 = vld [vmem:[%s6915_s2 + $0x3] ss:$0 sm:$0xff] }
0x1b40   : > { %3063 = vrot.lane.b32.xlu1 %v3052_v0, %s5453_s10 }
0x1b90   : > { %v3058_v11 = vpop.permute.xlu0 %3057 }
0x1b91   : > { %v3069_v2 = vadd.f32 %v3058_v11, %v6297_v9 }
0x1b92   : > { %v3062_v37 = vpop.permute.xlu2 %3061 }
0x1b93   : > { %5304 = vtanh.f32 %v3069_v2  ;;  %v3071_v13 = vadd.f32 %v3062_v37, %v6300_v28  ;;  %v4911_v28 = vld [vmem:[%s6914_s1 + $0x20] sm:$0xff] }
0x1b94   : > { %3170 = vmatpush.bf16.msra.mxu2 %v4911_v28 }
0x1b95   : > { %5306 = vtanh.f32 %v3071_v13 }
0x1b99   : > { %v5305_v48 = vpop.eup %5304 }
0x1b9a   : > { %3085 = vrot.lane.b32.xlu1 %v5305_v48, %s5455_s11  ;;  %v6361_v48 = vld [vmem:[#allocation3 + $0x14] sm:$0x1] }
0x1b9b   : > { %v5307_v60 = vpop.eup %5306 }
0x1b9c   : > { %3089 = vrot.lane.b32.xlu0 %v5307_v60, %s5455_s11 }
0x1baa   : > { %v3060_v55 = vpop.permute.xlu1 %3059 }
0x1bab   : > { %v3070_v7 = vadd.f32 %v3060_v55, %v6303_v18  ;;  %v3079_v18 = vsub.f32 1.0, %v3020_v36 }
0x1bad   : > { %5308 = vtanh.f32 %v3070_v7 }
0x1bb2   : > { %v3064_v39 = vpop.permute.xlu1 %3063 }
0x1bb3   : > { %v5309_v14 = vpop.eup %5308  ;;  %v3072_v17 = vadd.f32 %v3064_v39, %v6306_v38 }
0x1bb4   : > { %3087 = vrot.lane.b32.xlu2 %v5309_v14, %s5455_s11  ;;  %v6364_v14 = vld [vmem:[#allocation3 + $0x4] sm:$0x1] }
0x1bb5   : > { %5310 = vtanh.f32 %v3072_v17 }
0x1bbb   : > { %v5311_v9 = vpop.eup %5310 }
0x1bbc   : > { %3091 = vrot.lane.b32.xlu2 %v5311_v9, %s5455_s11  ;;  %v6367_v9 = vld [vmem:[#allocation3 + $0xc] sm:$0x1] }
0x1c0c   : > { %v3086_v44 = vpop.permute.xlu1 %3085 }
0x1c0d   : > { %v3097_v61 = vmul.f32 %v3086_v44, %v3077_v42 }
0x1c0e   : > { %v3090_v51 = vpop.permute.xlu0 %3089  ;;  %v3088_v38 = vpop.permute.xlu2 %3087 }
0x1c0f   : > { %v3099_v24 = vmul.f32 %v3090_v51, %v3079_v18  ;;  %v3098_v34 = vmul.f32 %v3088_v38, %v3078_v54  ;;  %v6336_v19 = vadd.f32 %v3101_v58, %v3097_v61 }
0x1c11   : > { %v6332_v53 = vadd.f32 %v3103_v26, %v3099_v24  ;;  %v6334_v8 = vadd.f32 %v3102_v31, %v3098_v34  ;;  %v3129_v25 = vpack.c.bf16 %v6336_v19, %v6336_v19  ;;  %v6370_v26 = vld [vmem:[#allocation3 + $0x1c] sm:$0x1] }
0x1c13   : > { %v3130_v40 = vpack.c.bf16 %v6334_v8, %v6334_v8  ;;  %v3131_v57 = vpack.c.bf16 %v6332_v53, %v6332_v53  ;;  %v3141_v36 = vunpack.c.l.b16 %v3129_v25 }
0x1c15   : > { %v3142_v10 = vunpack.c.l.b16 %v3130_v40  ;;  %v3143_v23 = vunpack.c.l.b16 %v3131_v57 }
0x1c16   : > { %v3092_v22 = vpop.permute.xlu2 %3091 }
0x1c17   : > { %v3100_v6 = vmul.f32 %v3092_v22, %v3080_v47  ;;  %v3145_v12 = vrot.slane %v3142_v10, 7  ;;  %v3147_v21 = vrot.slane %v3143_v23, 6 }
0x1c19   : > { %v6345_v27 = vadd.f32 %v3104_v62, %v3100_v6  ;;  %v3146_v5 = vsel %vm596_vm8, %v3145_v12, %v3141_v36 }
0x1c1a   : > { %v3148_v32 = vsel %vm599_vm9, %v3147_v21, %v3146_v5 }
0x1c1b   : > { %v3132_v4 = vpack.c.bf16 %v6345_v27, %v6345_v27 }
0x1c1d   : > { %v3144_v1 = vunpack.c.l.b16 %v3132_v4 }
0x1c1f   : > { %v3149_v56 = vrot.slane %v3144_v1, 5 }
0x1c21   : > { %v3150_v59 = vsel %vm602_vm10, %v3149_v56, %v3148_v32 }
0x1c22   : > { %v3151_v41 = vpack.c.b16 %v3150_v59, %v3150_v59 }
0x1c24   : > { %3152 = vrot.lane.b32.xlu0 %v3151_v41, %s5455_s11 }
0x1c96   : > { %v3153_v20 = vpop.permute.xlu0 %3152 }
0x1c97   : > { %4838 = vmatmul.msk.bf16.vlgmr.msra.gmra.mxu2 %vm379_vm11, %v3153_v20 }
0x1d1a   : > { %v3172_v33 = vpop.f32.mrf.mxu2 }
0x1d1b   : > { %v3173_v0 = vadd.f32 %v4952_v35, %v3172_v33 }
0x1d1d   : > { %3268 = vrot.lane.b32.xlu0 %v3173_v0, %s5451_s8  ;;  %v3182_v11 = vrot.slane %v3173_v0, 2  ;;  %v3181_v2 = vrot.slane %v3173_v0, 1  ;;  %v3183_v13 = vrot.slane %v3173_v0, 3  ;;  %v3188_v17 = vadd.f32 %v6364_v14, %v3173_v0 }
0x1d1f   : > { %3272 = vrot.lane.b32.xlu2 %v3182_v11, %s5451_s8  ;;  %3270 = vrot.lane.b32.xlu1 %v3181_v2, %s5451_s8  ;;  %v3190_v60 = vadd.f32 %v3182_v11, %v6361_v48  ;;  %v3189_v28 = vadd.f32 %v3181_v2, %v6367_v9  ;;  %v4839_v44 = vmul.f32 -1.442695, %v3188_v17  ;;  %v3191_v51 = vadd.f32 %v3183_v13, %v6370_v26 }
0x1d21   : > { %v4841_v55 = vmul.f32 -1.442695, %v3190_v60  ;;  %v4840_v18 = vmul.f32 -1.442695, %v3189_v28  ;;  %v4842_v24 = vmul.f32 -1.442695, %v3191_v51 }
0x1d22   : > { %v3174_v37 = vpop.f32.mrf.mxu2 }
0x1d23   : > { %5312 = vpow2.f32 %v4841_v55 }
0x1d27   : > { %3274 = vrot.lane.b32.xlu1 %v3183_v13, %s5451_s8 }
0x1d29   : > { %v5313_v7 = vpop.eup %5312 }
0x1d2a   : > { %v3206_v39 = vadd.f32 1.0, %v5313_v7 }
0x1d2c   : > { %5314 = vrcp.f32 %v3206_v39  ;;  %v3249_v10 = vand.u32 2147483648, %v3206_v39  ;;  %vm3243_vm6 = vweird.f32 %v3206_v39  ;;  %v3247_v47 = vand.u32 2147483647, %v3206_v39 }
0x1d2d   : > { %5316 = vpow2.f32 %v4839_v44 }
0x1d2e   : > { %5318 = vpow2.f32 %v4840_v18  ;;  %v3250_v62 = vor.u32 1.1754944e-38, %v3249_v10  ;;  %vm3248_vm12 = vcmp.eq.f32.partialorder %v3247_v47, 8.507059e+37 }
0x1d2f   : > { %5320 = vpow2.f32 %v4842_v24 }
0x1d32   : > { %v5315_v42 = vpop.eup %5314 }
0x1d33   : > { %v3239_v54 = vmul.f32 %v5315_v42, %v3206_v39  ;;  %v5317_v61 = vpop.eup %5316  ;;  %vm3244_vm4 = vweird.f32 %v5315_v42 }
0x1d34   : > { %v5319_v31 = vpop.eup %5318  ;;  %v3204_v58 = vadd.f32 1.0, %v5317_v61  ;;  %vm3245_vm7 = vmor %vm3243_vm6, %vm3244_vm4 }
0x1d35   : > { %v3240_v38 = vsub.f32 1.0, %v3239_v54  ;;  %v3205_v40 = vadd.f32 1.0, %v5319_v31  ;;  %v5321_v22 = vpop.eup %5320 }
0x1d36   : > { %5322 = vrcp.f32 %v3204_v58  ;;  %v3207_v23 = vadd.f32 1.0, %v5321_v22  ;;  %vm3213_vm15 = vweird.f32 %v3204_v58  ;;  %v3219_v0 = vand.u32 2147483648, %v3204_v58 }
0x1d37   : > { %v3241_v34 = vmul.f32 %v5315_v42, %v3240_v38  ;;  %5324 = vrcp.f32 %v3205_v40  ;;  %v3217_v11 = vand.u32 2147483647, %v3204_v58  ;;  %v3234_v13 = vand.u32 2147483648, %v3205_v40 }
0x1d38   : > { %5326 = vrcp.f32 %v3207_v23  ;;  %vm3228_vm2 = vweird.f32 %v3205_v40  ;;  %v3232_v55 = vand.u32 2147483647, %v3205_v40  ;;  %v3220_v7 = vor.u32 1.1754944e-38, %v3219_v0 }
0x1d39   : > { %v3242_v57 = vadd.f32 %v5315_v42, %v3241_v34  ;;  %vm3218_vm4 = vcmp.eq.f32.partialorder %v3217_v11, 8.507059e+37  ;;  %v3264_v24 = vand.u32 2147483648, %v3207_v23  ;;  %v3262_v31 = vand.u32 2147483647, %v3207_v23 }
0x1d3a   : > { %vm3233_vm6 = vcmp.eq.f32.partialorder %v3232_v55, 8.507059e+37 }
0x1d3b   : > { %v3246_v25 = vsel %vm3245_vm7, %v5315_v42, %v3242_v57  ;;  %v3235_v42 = vor.u32 1.1754944e-38, %v3234_v13 }
0x1d3c   : > { %v5323_v6 = vpop.eup %5322  ;;  %v6373_v36 = vsel %vm3248_vm12, %v3250_v62, %v3246_v25  ;;  %vm3258_vm12 = vweird.f32 %v3207_v23 }
0x1d3d   : > { %v5325_v21 = vpop.eup %5324  ;;  %v3209_v1 = vmul.f32 %v5323_v6, %v3204_v58  ;;  %vm3214_vm13 = vweird.f32 %v5323_v6  ;;  %v3265_v58 = vor.u32 1.1754944e-38, %v3264_v24 }
0x1d3e   : > { %v3224_v5 = vmul.f32 %v5325_v21, %v3205_v40  ;;  %v5327_v59 = vpop.eup %5326  ;;  %vm3229_vm0 = vweird.f32 %v5325_v21  ;;  %vm3215_vm1 = vmor %vm3213_vm15, %vm3214_vm13  ;;  %vm3263_vm15 = vcmp.eq.f32.partialorder %v3262_v31, 8.507059e+37 }
0x1d3f   : > { %v3210_v56 = vsub.f32 1.0, %v3209_v1  ;;  %v3254_v35 = vmul.f32 %v5327_v59, %v3207_v23  ;;  %vm3230_vm3 = vmor %vm3228_vm2, %vm3229_vm0  ;;  %vm3259_vm7 = vweird.f32 %v5327_v59 }
0x1d40   : > { %v3225_v32 = vsub.f32 1.0, %v3224_v5  ;;  %vm3260_vm13 = vmor %vm3258_vm12, %vm3259_vm7 }
0x1d41   : > { %v3211_v41 = vmul.f32 %v5323_v6, %v3210_v56  ;;  %v3255_v37 = vsub.f32 1.0, %v3254_v35  ;;  %v3310_v56 = vsub.f32 1.0, %v6373_v36 }
0x1d42   : > { %v3226_v20 = vmul.f32 %v5325_v21, %v3225_v32 }
0x1d43   : > { %v3212_v33 = vadd.f32 %v5323_v6, %v3211_v41  ;;  %v3256_v17 = vmul.f32 %v5327_v59, %v3255_v37 }
0x1d44   : > { %v3227_v2 = vadd.f32 %v5325_v21, %v3226_v20  ;;  %v3334_v20 = vmul.f32 %v6373_v36, %v6332_v53 }
0x1d45   : > { %v3216_v60 = vsel %vm3215_vm1, %v5323_v6, %v3212_v33  ;;  %v3257_v61 = vadd.f32 %v5327_v59, %v3256_v17 }
0x1d46   : > { %v3231_v39 = vsel %vm3230_vm3, %v5325_v21, %v3227_v2  ;;  %v3221_v44 = vsel %vm3218_vm4, %v3220_v7, %v3216_v60 }
0x1d47   : > { %v3236_v51 = vsel %vm3233_vm6, %v3235_v42, %v3231_v39  ;;  %v3261_v34 = vsel %vm3260_vm13, %v5327_v59, %v3257_v61  ;;  %v3308_v32 = vsub.f32 1.0, %v3221_v44  ;;  %v3332_v37 = vmul.f32 %v3221_v44, %v6336_v19 }
0x1d48   : > { %v3266_v40 = vsel %vm3263_vm15, %v3265_v58, %v3261_v34  ;;  %v3309_v41 = vsub.f32 1.0, %v3236_v51  ;;  %v3333_v0 = vmul.f32 %v3236_v51, %v6334_v8 }
0x1d49   : > { %v3311_v39 = vsub.f32 1.0, %v3266_v40  ;;  %v3335_v42 = vmul.f32 %v3266_v40, %v6345_v27 }
0x1d79   : > { %v3273_v12 = vpop.permute.xlu2 %3272 }
0x1d7a   : > { %v3282_v4 = vmul.f32 %v3273_v12, %v6373_v36 }
0x1d7c   : > { %3292 = vrot.lane.b32.xlu0 %v3282_v4, %s5453_s10 }
0x1d8f   : > { %v3269_v28 = vpop.permute.xlu0 %3268 }
0x1d90   : > { %v3280_v18 = vmul.f32 %v3269_v28, %v3221_v44 }
0x1d91   : > { %v3271_v54 = vpop.permute.xlu1 %3270 }
0x1d92   : > { %v3281_v38 = vmul.f32 %v3271_v54, %v3236_v51  ;;  %3288 = vrot.lane.b32.xlu1 %v3280_v18, %s5453_s10 }
0x1d94   : > { %3290 = vrot.lane.b32.xlu2 %v3281_v38, %s5453_s10 }
0x1d99   : > { %v3275_v57 = vpop.permute.xlu1 %3274 }
0x1d9a   : > { %v3283_v10 = vmul.f32 %v3275_v57, %v3266_v40 }
0x1d9c   : > { %3294 = vrot.lane.b32.xlu2 %v3283_v10, %s5453_s10 }
0x1dee   : > { %v3293_v47 = vpop.permute.xlu0 %3292  ;;  %v3291_v22 = vpop.permute.xlu2 %3290 }
0x1def   : > { %v3302_v25 = vadd.f32 %v3293_v47, %v6361_v48  ;;  %v3301_v62 = vadd.f32 %v3291_v22, %v6367_v9  ;;  %v4953_v22 = vld [vmem:[%s6915_s2 + $0x3] ss:$0 sm:$0xff] }
0x1df1   : > { %5328 = vtanh.f32 %v3302_v25 }
0x1df2   : > { %5330 = vtanh.f32 %v3301_v62 }
0x1df6   : > { %v3295_v6 = vpop.permute.xlu2 %3294 }
0x1df7   : > { %v5329_v12 = vpop.eup %5328  ;;  %v3303_v23 = vadd.f32 %v3295_v6, %v6370_v26  ;;  %v4912_v26 = vld [vmem:[%s6914_s1 + $0x20] sm:$0xff] }
0x1df8   : > { %v5331_v4 = vpop.eup %5330  ;;  %3320 = vrot.lane.b32.xlu1 %v5329_v12, %s5455_s11  ;;  %3401 = vmatpush.bf16.msra.mxu3 %v4912_v26 }
0x1df9   : > { %5332 = vtanh.f32 %v3303_v23  ;;  %3318 = vrot.lane.b32.xlu0 %v5331_v4, %s5455_s11 }
0x1dff   : > { %v5333_v21 = vpop.eup %5332 }
0x1e01   : > { %3322 = vrot.lane.b32.xlu0 %v5333_v21, %s5455_s11  ;;  %v6425_v21 = vld [vmem:[#allocation3 + $0xd] sm:$0x1] }
0x1e04   : > { %v3289_v1 = vpop.permute.xlu1 %3288 }
0x1e05   : > { %v3300_v48 = vadd.f32 %v3289_v1, %v6364_v14 }
0x1e07   : > { %5334 = vtanh.f32 %v3300_v48 }
0x1e0d   : > { %v5335_v9 = vpop.eup %5334 }
0x1e0e   : > { %3316 = vrot.lane.b32.xlu2 %v5335_v9, %s5455_s11  ;;  %v6428_v9 = vld [vmem:[#allocation3 + $0x1d] sm:$0x1] }
0x1e68   : > { %v3317_v5 = vpop.permute.xlu2 %3316 }
0x1e69   : > { %v3328_v33 = vmul.f32 %v3317_v5, %v3308_v32 }
0x1e6a   : > { %v3321_v59 = vpop.permute.xlu1 %3320 }
0x1e6b   : > { %v3330_v35 = vmul.f32 %v3321_v59, %v3310_v56  ;;  %v3319_v14 = vpop.permute.xlu0 %3318  ;;  %v6400_v60 = vadd.f32 %v3332_v37, %v3328_v33  ;;  %v6431_v59 = vld [vmem:[#allocation3 + $0x5] sm:$0x1] }
0x1e6c   : > { %v3329_v11 = vmul.f32 %v3319_v14, %v3309_v41 }
0x1e6d   : > { %v6395_v2 = vadd.f32 %v3334_v20, %v3330_v35  ;;  %v3360_v28 = vpack.c.bf16 %v6400_v60, %v6400_v60  ;;  %v6434_v35 = vld [vmem:[#allocation3 + $0x15] sm:$0x1] }
0x1e6e   : > { %v6398_v13 = vadd.f32 %v3333_v0, %v3329_v11 }
0x1e6f   : > { %v3362_v36 = vpack.c.bf16 %v6395_v2, %v6395_v2  ;;  %v3372_v38 = vunpack.c.l.b16 %v3360_v28 }
0x1e70   : > { %v3361_v55 = vpack.c.bf16 %v6398_v13, %v6398_v13 }
0x1e71   : > { %v3374_v44 = vunpack.c.l.b16 %v3362_v36 }
0x1e72   : > { %v3373_v7 = vunpack.c.l.b16 %v3361_v55 }
0x1e73   : > { %v3323_v17 = vpop.permute.xlu0 %3322  ;;  %v3378_v24 = vrot.slane %v3374_v44, 6 }
0x1e74   : > { %v3331_v18 = vmul.f32 %v3323_v17, %v3311_v39  ;;  %v3376_v54 = vrot.slane %v3373_v7, 7 }
0x1e76   : > { %v6409_v51 = vadd.f32 %v3335_v42, %v3331_v18  ;;  %v3377_v34 = vsel %vm596_vm8, %v3376_v54, %v3372_v38 }
0x1e77   : > { %v3379_v57 = vsel %vm599_vm9, %v3378_v24, %v3377_v34 }
0x1e78   : > { %v3363_v61 = vpack.c.bf16 %v6409_v51, %v6409_v51 }
0x1e7a   : > { %v3375_v31 = vunpack.c.l.b16 %v3363_v61 }
0x1e7c   : > { %v3380_v58 = vrot.slane %v3375_v31, 5 }
0x1e7e   : > { %v3381_v10 = vsel %vm602_vm10, %v3380_v58, %v3379_v57 }
0x1e7f   : > { %v3382_v47 = vpack.c.b16 %v3381_v10, %v3381_v10 }
0x1e81   : > { %3383 = vrot.lane.b32.xlu1 %v3382_v47, %s5455_s11 }
0x1ef3   : > { %v3384_v40 = vpop.permute.xlu1 %3383 }
0x1ef4   : > { %4847 = vmatmul.msk.bf16.vlgmr.msra.gmra.mxu3 %vm379_vm11, %v3384_v40 }
0x1f77   : > { %v3403_v25 = vpop.f32.mrf.mxu3 }
0x1f78   : > { %v3404_v62 = vadd.f32 %v4953_v22, %v3403_v25 }
0x1f7a   : > { %3499 = vrot.lane.b32.xlu1 %v3404_v62, %s5451_s8  ;;  %v3413_v6 = vrot.slane %v3404_v62, 2  ;;  %v3412_v12 = vrot.slane %v3404_v62, 1  ;;  %v3414_v4 = vrot.slane %v3404_v62, 3  ;;  %v3419_v20 = vadd.f32 %v6431_v59, %v3404_v62 }
0x1f7c   : > { %3503 = vrot.lane.b32.xlu0 %v3413_v6, %s5451_s8  ;;  %3501 = vrot.lane.b32.xlu2 %v3412_v12, %s5451_s8  ;;  %v3420_v1 = vadd.f32 %v3412_v12, %v6425_v21  ;;  %v3422_v26 = vadd.f32 %v3414_v4, %v6428_v9  ;;  %v3421_v14 = vadd.f32 %v3413_v6, %v6434_v35  ;;  %v4848_v0 = vmul.f32 -1.442695, %v3419_v20 }
0x1f7e   : > { %v4849_v48 = vmul.f32 -1.442695, %v3420_v1  ;;  %v4851_v5 = vmul.f32 -1.442695, %v3422_v26  ;;  %v4850_v37 = vmul.f32 -1.442695, %v3421_v14 }
0x1f7f   : > { %v3405_v23 = vpop.f32.mrf.mxu3 }
0x1f80   : > { %5336 = vpow2.f32 %v4849_v48 }
0x1f81   : > { %5338 = vpow2.f32 %v4851_v5 }
0x1f84   : > { %3505 = vrot.lane.b32.xlu2 %v3414_v4, %s5451_s8 }
0x1f86   : > { %v5337_v56 = vpop.eup %5336 }
0x1f87   : > { %v3436_v32 = vadd.f32 1.0, %v5337_v56  ;;  %v5339_v41 = vpop.eup %5338 }
0x1f88   : > { %v3438_v33 = vadd.f32 1.0, %v5339_v41 }
0x1f89   : > { %5340 = vrcp.f32 %v3436_v32  ;;  %v3465_v61 = vand.u32 2147483648, %v3436_v32  ;;  %vm3459_vm1 = vweird.f32 %v3436_v32  ;;  %v3463_v24 = vand.u32 2147483647, %v3436_v32 }
0x1f8a   : > { %5342 = vrcp.f32 %v3438_v33  ;;  %v3495_v62 = vand.u32 2147483648, %v3438_v33  ;;  %vm3489_vm6 = vweird.f32 %v3438_v33  ;;  %v3493_v6 = vand.u32 2147483647, %v3438_v33 }
0x1f8b   : > { %5344 = vpow2.f32 %v4848_v0  ;;  %v3466_v58 = vor.u32 1.1754944e-38, %v3465_v61  ;;  %vm3464_vm3 = vcmp.eq.f32.partialorder %v3463_v24, 8.507059e+37 }
0x1f8c   : > { %5346 = vpow2.f32 %v4850_v37  ;;  %v3496_v1 = vor.u32 1.1754944e-38, %v3495_v62  ;;  %vm3494_vm12 = vcmp.eq.f32.partialorder %v3493_v6, 8.507059e+37 }
0x1f8f   : > { %v5341_v11 = vpop.eup %5340 }
0x1f90   : > { %v3455_v55 = vmul.f32 %v5341_v11, %v3436_v32  ;;  %v5343_v7 = vpop.eup %5342  ;;  %vm3460_vm0 = vweird.f32 %v5341_v11 }
0x1f91   : > { %v5345_v39 = vpop.eup %5344  ;;  %v3485_v42 = vmul.f32 %v5343_v7, %v3438_v33  ;;  %vm3461_vm2 = vmor %vm3459_vm1, %vm3460_vm0  ;;  %vm3490_vm4 = vweird.f32 %v5343_v7 }
0x1f92   : > { %v3456_v36 = vsub.f32 1.0, %v3455_v55  ;;  %v5347_v17 = vpop.eup %5346  ;;  %v3435_v18 = vadd.f32 1.0, %v5345_v39  ;;  %vm3491_vm7 = vmor %vm3489_vm6, %vm3490_vm4 }
0x1f93   : > { %v3437_v44 = vadd.f32 1.0, %v5347_v17  ;;  %v3486_v38 = vsub.f32 1.0, %v3485_v42 }
0x1f94   : > { %v3457_v28 = vmul.f32 %v5341_v11, %v3456_v36  ;;  %5348 = vrcp.f32 %v3435_v18  ;;  %v3450_v33 = vand.u32 2147483648, %v3435_v18  ;;  %vm3444_vm15 = vweird.f32 %v3435_v18 }
0x1f95   : > { %5350 = vrcp.f32 %v3437_v44  ;;  %v3487_v34 = vmul.f32 %v5343_v7, %v3486_v38  ;;  %v3448_v0 = vand.u32 2147483647, %v3435_v18  ;;  %v3480_v37 = vand.u32 2147483648, %v3437_v44 }
0x1f96   : > { %v3458_v54 = vadd.f32 %v5341_v11, %v3457_v28  ;;  %v3478_v36 = vand.u32 2147483647, %v3437_v44 }
0x1f97   : > { %v3488_v22 = vadd.f32 %v5343_v7, %v3487_v34  ;;  %vm3449_vm4 = vcmp.eq.f32.partialorder %v3448_v0, 8.507059e+37  ;;  %v3481_v42 = vor.u32 1.1754944e-38, %v3480_v37 }
0x1f98   : > { %v3462_v31 = vsel %vm3461_vm2, %v5341_v11, %v3458_v54  ;;  %vm3474_vm2 = vweird.f32 %v3437_v44  ;;  %vm3479_vm6 = vcmp.eq.f32.partialorder %v3478_v36, 8.507059e+37 }
0x1f99   : > { %v6437_v47 = vsel %vm3464_vm3, %v3466_v58, %v3462_v31  ;;  %v3492_v23 = vsel %vm3491_vm7, %v5343_v7, %v3488_v22  ;;  %v3451_v7 = vor.u32 1.1754944e-38, %v3450_v33 }
0x1f9a   : > { %v5349_v57 = vpop.eup %5348  ;;  %v6441_v26 = vsel %vm3494_vm12, %v3496_v1, %v3492_v23  ;;  %v3540_v23 = vsub.f32 1.0, %v6437_v47 }
0x1f9b   : > { %v5351_v25 = vpop.eup %5350  ;;  %v3440_v12 = vmul.f32 %v5349_v57, %v3435_v18  ;;  %vm3445_vm13 = vweird.f32 %v5349_v57 }
0x1f9c   : > { %v3470_v4 = vmul.f32 %v5351_v25, %v3437_v44  ;;  %vm3475_vm0 = vweird.f32 %v5351_v25  ;;  %vm3446_vm1 = vmor %vm3444_vm15, %vm3445_vm13 }
0x1f9d   : > { %v3441_v48 = vsub.f32 1.0, %v3440_v12  ;;  %vm3476_vm3 = vmor %vm3474_vm2, %vm3475_vm0 }
0x1f9e   : > { %v3471_v32 = vsub.f32 1.0, %v3470_v4 }
0x1f9f   : > { %v3442_v41 = vmul.f32 %v5349_v57, %v3441_v48 }
0x1fa0   : > { %v3472_v20 = vmul.f32 %v5351_v25, %v3471_v32 }
0x1fa1   : > { %v3443_v14 = vadd.f32 %v5349_v57, %v3442_v41 }
0x1fa2   : > { %v3473_v11 = vadd.f32 %v5351_v25, %v3472_v20 }
0x1fa3   : > { %v3447_v55 = vsel %vm3446_vm1, %v5349_v57, %v3443_v14 }
0x1fa4   : > { %v3477_v39 = vsel %vm3476_vm3, %v5351_v25, %v3473_v11  ;;  %v3452_v28 = vsel %vm3449_vm4, %v3451_v7, %v3447_v55  ;;  %v3542_v55 = vsub.f32 1.0, %v6441_v26  ;;  %v3566_v7 = vmul.f32 %v6441_v26, %v6409_v51 }
0x1fa5   : > { %v3482_v61 = vsel %vm3479_vm6, %v3481_v42, %v3477_v39  ;;  %v3563_v41 = vmul.f32 %v3452_v28, %v6400_v60 }
0x1fa6   : > { %v3541_v12 = vsub.f32 1.0, %v3482_v61  ;;  %v3565_v4 = vmul.f32 %v3482_v61, %v6395_v2 }
0x1fd6   : > { %v3502_v10 = vpop.permute.xlu2 %3501 }
0x1fd7   : > { %v3512_v40 = vmul.f32 %v3502_v10, %v6437_v47 }
0x1fd9   : > { %3521 = vrot.lane.b32.xlu0 %v3512_v40, %s5453_s10 }
0x1fde   : > { %v3506_v5 = vpop.permute.xlu2 %3505 }
0x1fdf   : > { %v3514_v56 = vmul.f32 %v3506_v5, %v6441_v26 }
0x1fe1   : > { %3525 = vrot.lane.b32.xlu0 %v3514_v56, %s5453_s10  ;;  %v3564_v56 = vmul.f32 %v6437_v47, %v6398_v13 }
0x1fec   : > { %v3500_v17 = vpop.permute.xlu1 %3499 }
0x1fed   : > { %v3511_v54 = vmul.f32 %v3500_v17, %v3452_v28 }
0x1fee   : > { %v3504_v38 = vpop.permute.xlu0 %3503 }
0x1fef   : > { %v3513_v24 = vmul.f32 %v3504_v38, %v3482_v61  ;;  %3519 = vrot.lane.b32.xlu2 %v3511_v54, %s5453_s10 }
0x1ff1   : > { %3523 = vrot.lane.b32.xlu1 %v3513_v24, %s5453_s10 }
0x2049   : > { %v3520_v18 = vpop.permute.xlu2 %3519 }
0x204a   : > { %v3531_v31 = vadd.f32 %v3520_v18, %v6431_v59 }
0x204b   : > { %v3522_v44 = vpop.permute.xlu0 %3521 }
0x204c   : > { %5352 = vtanh.f32 %v3531_v31  ;;  %v3532_v34 = vadd.f32 %v3522_v44, %v6425_v21  ;;  %v4913_v21 = vld [vmem:[%s6914_s1 + $0x20] sm:$0xff] }
0x204d   : > { %3632 = vmatpush.bf16.msra.mxu0 %v4913_v21  ;;  %v6494_v21 = vld [vmem:[#allocation3 + $0x6] sm:$0x1] }
0x204e   : > { %5354 = vtanh.f32 %v3532_v34 }
0x2052   : > { %v5353_v58 = vpop.eup %5352 }
0x2053   : > { %3547 = vrot.lane.b32.xlu0 %v5353_v58, %s5455_s11  ;;  %v3526_v57 = vpop.permute.xlu0 %3525 }
0x2054   : > { %v5355_v10 = vpop.eup %5354  ;;  %v3534_v40 = vadd.f32 %v3526_v57, %v6428_v9  ;;  %v3539_v9 = vsub.f32 1.0, %v3452_v28  ;;  %v4954_v57 = vld [vmem:[%s6915_s2 + $0x3] ss:$0 sm:$0xff] }
0x2055   : > { %3549 = vrot.lane.b32.xlu1 %v5355_v10, %s5455_s11 }
0x2056   : > { %5356 = vtanh.f32 %v3534_v40 }
0x205c   : > { %v5357_v22 = vpop.eup %5356 }
0x205d   : > { %3553 = vrot.lane.b32.xlu1 %v5357_v22, %s5455_s11 }
0x2063   : > { %v3524_v25 = vpop.permute.xlu1 %3523 }
0x2064   : > { %v3533_v59 = vadd.f32 %v3524_v25, %v6434_v35 }
0x2066   : > { %5358 = vtanh.f32 %v3533_v59 }
0x206c   : > { %v5359_v62 = vpop.eup %5358 }
0x206d   : > { %3551 = vrot.lane.b32.xlu2 %v5359_v62, %s5455_s11 }
0x20c5   : > { %v3548_v6 = vpop.permute.xlu0 %3547 }
0x20c6   : > { %v3559_v5 = vmul.f32 %v3548_v6, %v3539_v9 }
0x20c7   : > { %v3552_v1 = vpop.permute.xlu2 %3551  ;;  %v3550_v48 = vpop.permute.xlu1 %3549 }
0x20c8   : > { %v3561_v35 = vmul.f32 %v3552_v1, %v3541_v12  ;;  %v3560_v32 = vmul.f32 %v3550_v48, %v3540_v23  ;;  %v6467_v33 = vadd.f32 %v3563_v41, %v3559_v5  ;;  %v6500_v48 = vld [vmem:[#allocation3 + $0xe] sm:$0x1] }
0x20ca   : > { %v6463_v20 = vadd.f32 %v3565_v4, %v3561_v35  ;;  %v6465_v14 = vadd.f32 %v3564_v56, %v3560_v32  ;;  %v3591_v47 = vpack.c.bf16 %v6467_v33, %v6467_v33  ;;  %v6497_v4 = vld [vmem:[#allocation3 + $0x16] sm:$0x1] }
0x20cc   : > { %v3592_v0 = vpack.c.bf16 %v6465_v14, %v6465_v14  ;;  %v3593_v11 = vpack.c.bf16 %v6463_v20, %v6463_v20  ;;  %v3603_v54 = vunpack.c.l.b16 %v3591_v47 }
0x20ce   : > { %v3604_v37 = vunpack.c.l.b16 %v3592_v0  ;;  %v3605_v17 = vunpack.c.l.b16 %v3593_v11  ;;  %v6503_v0 = vld [vmem:[#allocation3 + $0x1e] sm:$0x1] }
0x20cf   : > { %v3554_v36 = vpop.permute.xlu1 %3553 }
0x20d0   : > { %v3562_v39 = vmul.f32 %v3554_v36, %v3542_v55  ;;  %v3607_v28 = vrot.slane %v3604_v37, 7  ;;  %v3609_v61 = vrot.slane %v3605_v17, 6 }
0x20d2   : > { %v6478_v42 = vadd.f32 %v3566_v7, %v3562_v39  ;;  %v3608_v18 = vsel %vm596_vm8, %v3607_v28, %v3603_v54 }
0x20d3   : > { %v3610_v44 = vsel %vm599_vm9, %v3609_v61, %v3608_v18 }
0x20d4   : > { %v3594_v38 = vpack.c.bf16 %v6478_v42, %v6478_v42 }
0x20d6   : > { %v3606_v24 = vunpack.c.l.b16 %v3594_v38 }
0x20d8   : > { %v3611_v31 = vrot.slane %v3606_v24, 5 }
0x20da   : > { %v3612_v34 = vsel %vm602_vm10, %v3611_v31, %v3610_v44 }
0x20db   : > { %v3613_v58 = vpack.c.b16 %v3612_v34, %v3612_v34 }
0x20dd   : > { %3614 = vrot.lane.b32.xlu2 %v3613_v58, %s5455_s11 }
0x2137   : > { %v3615_v26 = vpop.permute.xlu2 %3614 }
0x2138   : > { %4856 = vmatmul.msk.bf16.vlgmr.msra.gmra.mxu0 %vm379_vm11, %v3615_v26 }
0x21b5   : > { %v3634_v10 = vpop.f32.mrf.mxu0 }
0x21b6   : > { %v3635_v40 = vadd.f32 %v4954_v57, %v3634_v10 }
0x21b8   : > { %3730 = vrot.lane.b32.xlu2 %v3635_v40, %s5451_s8  ;;  %v3644_v22 = vrot.slane %v3635_v40, 2  ;;  %v3643_v25 = vrot.slane %v3635_v40, 1  ;;  %v3645_v62 = vrot.slane %v3635_v40, 3  ;;  %v3650_v6 = vadd.f32 %v6494_v21, %v3635_v40 }
0x21ba   : > { %3734 = vrot.lane.b32.xlu1 %v3644_v22, %s5451_s8  ;;  %3732 = vrot.lane.b32.xlu0 %v3643_v25, %s5451_s8  ;;  %v4857_v9 = vmul.f32 -1.442695, %v3650_v6  ;;  %v3652_v1 = vadd.f32 %v3644_v22, %v6497_v4  ;;  %v3651_v5 = vadd.f32 %v3643_v25, %v6500_v48  ;;  %v3653_v11 = vadd.f32 %v3645_v62, %v6503_v0 }
0x21bc   : > { %5360 = vpow2.f32 %v4857_v9  ;;  %v4859_v56 = vmul.f32 -1.442695, %v3652_v1  ;;  %v4858_v32 = vmul.f32 -1.442695, %v3651_v5  ;;  %v4860_v55 = vmul.f32 -1.442695, %v3653_v11 }
0x21bd   : > { %v3636_v59 = vpop.f32.mrf.mxu0 }
0x21c2   : > { %3736 = vrot.lane.b32.xlu0 %v3645_v62, %s5451_s8  ;;  %v5361_v12 = vpop.eup %5360 }
0x21c3   : > { %v3666_v23 = vadd.f32 1.0, %v5361_v12 }
0x21c5   : > { %5362 = vrcp.f32 %v3666_v23  ;;  %v3681_v54 = vand.u32 2147483648, %v3666_v23  ;;  %vm3675_vm12 = vweird.f32 %v3666_v23  ;;  %v3679_v38 = vand.u32 2147483647, %v3666_v23 }
0x21c6   : > { %5364 = vpow2.f32 %v4859_v56 }
0x21c7   : > { %5366 = vpow2.f32 %v4858_v32  ;;  %v3682_v24 = vor.u32 1.1754944e-38, %v3681_v54  ;;  %vm3680_vm15 = vcmp.eq.f32.partialorder %v3679_v38, 8.507059e+37 }
0x21c8   : > { %5368 = vpow2.f32 %v4860_v55 }
0x21cb   : > { %v5363_v35 = vpop.eup %5362 }
0x21cc   : > { %v3671_v41 = vmul.f32 %v5363_v35, %v3666_v23  ;;  %v5365_v47 = vpop.eup %5364  ;;  %vm3676_vm7 = vweird.f32 %v5363_v35 }
0x21cd   : > { %v5367_v7 = vpop.eup %5366  ;;  %v3668_v39 = vadd.f32 1.0, %v5365_v47  ;;  %vm3677_vm13 = vmor %vm3675_vm12, %vm3676_vm7 }
0x21ce   : > { %v3672_v37 = vsub.f32 1.0, %v3671_v41  ;;  %v3667_v28 = vadd.f32 1.0, %v5367_v7  ;;  %v5369_v18 = vpop.eup %5368 }
0x21cf   : > { %5370 = vrcp.f32 %v3668_v39  ;;  %v3669_v58 = vadd.f32 1.0, %v5369_v18  ;;  %vm3705_vm2 = vweird.f32 %v3668_v39  ;;  %v3711_v5 = vand.u32 2147483648, %v3668_v39 }
0x21d0   : > { %v3673_v36 = vmul.f32 %v5363_v35, %v3672_v37  ;;  %5372 = vrcp.f32 %v3667_v28  ;;  %v3709_v56 = vand.u32 2147483647, %v3668_v39  ;;  %vm3690_vm4 = vweird.f32 %v3667_v28 }
0x21d1   : > { %5374 = vrcp.f32 %v3669_v58  ;;  %v3694_v32 = vand.u32 2147483647, %v3667_v28  ;;  %v3712_v55 = vor.u32 1.1754944e-38, %v3711_v5  ;;  %v3726_v18 = vand.u32 2147483648, %v3669_v58 }
0x21d2   : > { %v3674_v17 = vadd.f32 %v5363_v35, %v3673_v36  ;;  %vm3710_vm7 = vcmp.eq.f32.partialorder %v3709_v56, 8.507059e+37 }
0x21d3   : > { %vm3695_vm12 = vcmp.eq.f32.partialorder %v3694_v32, 8.507059e+37 }
0x21d4   : > { %v3678_v61 = vsel %vm3677_vm13, %v5363_v35, %v3674_v17  ;;  %v3696_v35 = vand.u32 2147483648, %v3667_v28 }
0x21d5   : > { %v6506_v44 = vsel %vm3680_vm15, %v3682_v24, %v3678_v61  ;;  %v5371_v26 = vpop.eup %5370  ;;  %vm3720_vm15 = vweird.f32 %v3669_v58 }
0x21d6   : > { %v5373_v57 = vpop.eup %5372  ;;  %v3701_v10 = vmul.f32 %v5371_v26, %v3668_v39  ;;  %vm3706_vm0 = vweird.f32 %v5371_v26  ;;  %v3697_v36 = vor.u32 1.1754944e-38, %v3696_v35  ;;  %v3724_v39 = vand.u32 2147483647, %v3669_v58 }
0x21d7   : > { %v3686_v40 = vmul.f32 %v5373_v57, %v3667_v28  ;;  %v5375_v59 = vpop.eup %5374  ;;  %vm3691_vm1 = vweird.f32 %v5373_v57  ;;  %vm3707_vm3 = vmor %vm3705_vm2, %vm3706_vm0  ;;  %v3770_v5 = vsub.f32 1.0, %v6506_v44 }
0x21d8   : > { %v3702_v22 = vsub.f32 1.0, %v3701_v10  ;;  %v3716_v9 = vmul.f32 %v5375_v59, %v3669_v58  ;;  %vm3692_vm6 = vmor %vm3690_vm4, %vm3691_vm1  ;;  %vm3721_vm13 = vweird.f32 %v5375_v59  ;;  %vm3725_vm1 = vcmp.eq.f32.partialorder %v3724_v39, 8.507059e+37 }
0x21d9   : > { %v3687_v25 = vsub.f32 1.0, %v3686_v40  ;;  %vm3722_vm0 = vmor %vm3720_vm15, %vm3721_vm13 }
0x21da   : > { %v3703_v62 = vmul.f32 %v5371_v26, %v3702_v22  ;;  %v3717_v1 = vsub.f32 1.0, %v3716_v9 }
0x21db   : > { %v3688_v6 = vmul.f32 %v5373_v57, %v3687_v25 }
0x21dc   : > { %v3704_v12 = vadd.f32 %v5371_v26, %v3703_v62  ;;  %v3718_v37 = vmul.f32 %v5375_v59, %v3717_v1 }
0x21dd   : > { %v3689_v23 = vadd.f32 %v5373_v57, %v3688_v6 }
0x21de   : > { %v3708_v41 = vsel %vm3707_vm3, %v5371_v26, %v3704_v12  ;;  %v3719_v24 = vadd.f32 %v5375_v59, %v3718_v37 }
0x21df   : > { %v3693_v11 = vsel %vm3692_vm6, %v5373_v57, %v3689_v23  ;;  %v3713_v7 = vsel %vm3710_vm7, %v3712_v55, %v3708_v41 }
0x21e0   : > { %v3698_v54 = vsel %vm3695_vm12, %v3697_v36, %v3693_v11  ;;  %v3723_v28 = vsel %vm3722_vm0, %v5375_v59, %v3719_v24  ;;  %v3796_v56 = vmul.f32 %v3713_v7, %v6463_v20  ;;  %v3794_v36 = vmul.f32 %v6506_v44, %v6467_v33 }
0x21e1   : > { %v3771_v35 = vsub.f32 1.0, %v3698_v54  ;;  %v3795_v37 = vmul.f32 %v3698_v54, %v6465_v14 }
0x2212   : > { %v3731_v31 = vpop.permute.xlu2 %3730 }
0x2213   : > { %v3742_v34 = vmul.f32 %v3731_v31, %v6506_v44  ;;  %v3727_v31 = vor.u32 1.1754944e-38, %v3726_v18 }
0x2215   : > { %3750 = vrot.lane.b32.xlu0 %v3742_v34, %s5453_s10  ;;  %v3728_v34 = vsel %vm3725_vm1, %v3727_v31, %v3723_v28 }
0x2216   : > { %v3773_v18 = vsub.f32 1.0, %v3728_v34  ;;  %v3797_v44 = vmul.f32 %v3728_v34, %v6478_v42 }
0x222c   : > { %v3735_v47 = vpop.permute.xlu1 %3734  ;;  %v3733_v17 = vpop.permute.xlu0 %3732 }
0x222d   : > { %v3744_v38 = vmul.f32 %v3735_v47, %v3713_v7  ;;  %v3743_v61 = vmul.f32 %v3733_v17, %v3698_v54 }
0x222f   : > { %3754 = vrot.lane.b32.xlu2 %v3744_v38, %s5453_s10  ;;  %3752 = vrot.lane.b32.xlu1 %v3743_v61, %s5453_s10 }
0x2234   : > { %v3737_v26 = vpop.permute.xlu0 %3736 }
0x2235   : > { %v3745_v57 = vmul.f32 %v3737_v26, %v3728_v34 }
0x2237   : > { %3756 = vrot.lane.b32.xlu1 %v3745_v57, %s5453_s10 }
0x2287   : > { %v3751_v10 = vpop.permute.xlu0 %3750 }
0x2288   : > { %v3762_v40 = vadd.f32 %v3751_v10, %v6494_v21 }
0x2289   : > { %v3755_v22 = vpop.permute.xlu2 %3754 }
0x228a   : > { %5376 = vtanh.f32 %v3762_v40  ;;  %v3764_v25 = vadd.f32 %v3755_v22, %v6497_v4  ;;  %v4914_v4 = vld [vmem:[%s6914_s1 + $0x20] sm:$0xff] }
0x228b   : > { %3863 = vmatpush.bf16.msrb.mxu1 %v4914_v4 }
0x228c   : > { %5378 = vtanh.f32 %v3764_v25 }
0x2290   : > { %v5377_v62 = vpop.eup %5376 }
0x2291   : > { %3778 = vrot.lane.b32.xlu1 %v5377_v62, %s5455_s11 }
0x2292   : > { %v5379_v58 = vpop.eup %5378 }
0x2293   : > { %3782 = vrot.lane.b32.xlu0 %v5379_v58, %s5455_s11 }
0x22a1   : > { %v3753_v59 = vpop.permute.xlu1 %3752 }
0x22a2   : > { %v3763_v6 = vadd.f32 %v3753_v59, %v6500_v48  ;;  %v3772_v48 = vsub.f32 1.0, %v3713_v7 }
0x22a4   : > { %5380 = vtanh.f32 %v3763_v6 }
0x22a9   : > { %v3757_v9 = vpop.permute.xlu1 %3756 }
0x22aa   : > { %v5381_v12 = vpop.eup %5380  ;;  %v3765_v23 = vadd.f32 %v3757_v9, %v6503_v0 }
0x22ab   : > { %3780 = vrot.lane.b32.xlu2 %v5381_v12, %s5455_s11  ;;  %v4955_v12 = vld [vmem:[%s6915_s2 + $0x3] ss:$0 sm:$0xff] }
0x22ac   : > { %5382 = vtanh.f32 %v3765_v23 }
0x22b2   : > { %v5383_v21 = vpop.eup %5382 }
0x22b3   : > { %3784 = vrot.lane.b32.xlu2 %v5383_v21, %s5455_s11 }
0x2303   : > { %v3779_v1 = vpop.permute.xlu1 %3778 }
0x2304   : > { %v3790_v41 = vmul.f32 %v3779_v1, %v3770_v5 }
0x2305   : > { %v3783_v32 = vpop.permute.xlu0 %3782  ;;  %v3781_v0 = vpop.permute.xlu2 %3780 }
0x2306   : > { %v3792_v11 = vmul.f32 %v3783_v32, %v3772_v48  ;;  %v3791_v55 = vmul.f32 %v3781_v0, %v3771_v35  ;;  %v6533_v38 = vadd.f32 %v3794_v36, %v3790_v41  ;;  %v6558_v35 = vld [vmem:[#allocation3 + $0xf] sm:$0x1] }
0x2308   : > { %v6529_v47 = vadd.f32 %v3796_v56, %v3792_v11  ;;  %v6531_v17 = vadd.f32 %v3795_v37, %v3791_v55  ;;  %v3822_v54 = vpack.c.bf16 %v6533_v38, %v6533_v38  ;;  %v6561_v11 = vld [vmem:[#allocation3 + $0x7] sm:$0x1]  ;;  %v6564_v55 = vld [vmem:[#allocation3 + $0x17] sm:$0x1] }
0x230a   : > { %v3823_v61 = vpack.c.bf16 %v6531_v17, %v6531_v17  ;;  %v3824_v7 = vpack.c.bf16 %v6529_v47, %v6529_v47  ;;  %v3834_v10 = vunpack.c.l.b16 %v3822_v54 }
0x230c   : > { %v3835_v24 = vunpack.c.l.b16 %v3823_v61  ;;  %v3836_v31 = vunpack.c.l.b16 %v3824_v7 }
0x230d   : > { %v3785_v39 = vpop.permute.xlu2 %3784 }
0x230e   : > { %v3793_v28 = vmul.f32 %v3785_v39, %v3773_v18  ;;  %v3838_v26 = vrot.slane %v3835_v24, 7  ;;  %v3840_v22 = vrot.slane %v3836_v31, 6  ;;  %v6567_v18 = vld [vmem:[#allocation3 + $0x1f] sm:$0x1] }
0x2310   : > { %v6542_v57 = vadd.f32 %v3797_v44, %v3793_v28  ;;  %v3839_v62 = vsel %vm596_vm8, %v3838_v26, %v3834_v10 }
0x2311   : > { %v3841_v59 = vsel %vm599_vm9, %v3840_v22, %v3839_v62 }
0x2312   : > { %v3825_v40 = vpack.c.bf16 %v6542_v57, %v6542_v57 }
0x2314   : > { %v3837_v25 = vunpack.c.l.b16 %v3825_v40 }
0x2316   : > { %v3842_v58 = vrot.slane %v3837_v25, 5 }
0x2318   : > { %v3843_v6 = vsel %vm602_vm10, %v3842_v58, %v3841_v59 }
0x2319   : > { %v3844_v9 = vpack.c.b16 %v3843_v6, %v3843_v6 }
0x231b   : > { %3845 = vrot.lane.b32.xlu0 %v3844_v9, %s5455_s11 }
0x238d   : > { %v3846_v34 = vpop.permute.xlu0 %3845 }
0x238e   : > { %4865 = vmatmul.msk.bf16.vlgmr.msrb.gmra.mxu1 %vm379_vm11, %v3846_v34 }
0x240b   : > { %v3865_v23 = vpop.f32.mrf.mxu1 }
0x240c   : > { %v3866_v21 = vadd.f32 %v4955_v12, %v3865_v23 }
0x240e   : > { %3961 = vrot.lane.b32.xlu1 %v3866_v21, %s5451_s8  ;;  %v3875_v4 = vrot.slane %v3866_v21, 2  ;;  %v3874_v1 = vrot.slane %v3866_v21, 1  ;;  %v3876_v48 = vrot.slane %v3866_v21, 3  ;;  %v3881_v37 = vadd.f32 %v6561_v11, %v3866_v21 }
0x2410   : > { %3965 = vrot.lane.b32.xlu0 %v3875_v4, %s5451_s8  ;;  %3963 = vrot.lane.b32.xlu2 %v3874_v1, %s5451_s8  ;;  %v3882_v56 = vadd.f32 %v3874_v1, %v6558_v35  ;;  %v3883_v36 = vadd.f32 %v3875_v4, %v6564_v55  ;;  %v4866_v61 = vmul.f32 -1.442695, %v3881_v37  ;;  %v3884_v39 = vadd.f32 %v3876_v48, %v6567_v18 }
0x2412   : > { %v4867_v32 = vmul.f32 -1.442695, %v3882_v56  ;;  %v4868_v24 = vmul.f32 -1.442695, %v3883_v36  ;;  %v4869_v44 = vmul.f32 -1.442695, %v3884_v39 }
0x2413   : > { %v3867_v5 = vpop.f32.mrf.mxu1 }
0x2414   : > { %5384 = vpow2.f32 %v4867_v32 }
0x2416   : > { %3967 = vrot.lane.b32.xlu1 %v3876_v48, %s5451_s8 }
0x241a   : > { %v5385_v0 = vpop.eup %5384 }
0x241b   : > { %v3898_v41 = vadd.f32 1.0, %v5385_v0 }
0x241d   : > { %5386 = vrcp.f32 %v3898_v41  ;;  %v3927_v62 = vand.u32 2147483648, %v3898_v41  ;;  %vm3921_vm3 = vweird.f32 %v3898_v41  ;;  %v3925_v59 = vand.u32 2147483647, %v3898_v41 }
0x241e   : > { %5388 = vpow2.f32 %v4866_v61 }
0x241f   : > { %5390 = vpow2.f32 %v4868_v24  ;;  %v3928_v34 = vor.u32 1.1754944e-38, %v3927_v62  ;;  %vm3926_vm6 = vcmp.eq.f32.partialorder %v3925_v59, 8.507059e+37 }
0x2420   : > { %5392 = vpow2.f32 %v4869_v44 }
0x2423   : > { %v5387_v7 = vpop.eup %5386 }
0x2424   : > { %v3917_v54 = vmul.f32 %v5387_v7, %v3898_v41  ;;  %v5389_v31 = vpop.eup %5388  ;;  %vm3922_vm2 = vweird.f32 %v5387_v7 }
0x2425   : > { %v5391_v26 = vpop.eup %5390  ;;  %v3897_v40 = vadd.f32 1.0, %v5389_v31  ;;  %vm3923_vm4 = vmor %vm3921_vm3, %vm3922_vm2 }
0x2426   : > { %v3918_v28 = vsub.f32 1.0, %v3917_v54  ;;  %v3899_v22 = vadd.f32 1.0, %v5391_v26  ;;  %v5393_v58 = vpop.eup %5392 }
0x2427   : > { %5394 = vrcp.f32 %v3897_v40  ;;  %v3900_v9 = vadd.f32 1.0, %v5393_v58  ;;  %v3912_v24 = vand.u32 2147483648, %v3897_v40  ;;  %vm3906_vm12 = vweird.f32 %v3897_v40 }
0x2428   : > { %v3919_v10 = vmul.f32 %v5387_v7, %v3918_v28  ;;  %5396 = vrcp.f32 %v3899_v22  ;;  %v3910_v39 = vand.u32 2147483647, %v3897_v40  ;;  %v3942_v44 = vand.u32 2147483648, %v3899_v22 }
0x2429   : > { %5398 = vrcp.f32 %v3900_v9  ;;  %vm3936_vm0 = vweird.f32 %v3899_v22  ;;  %v3940_v31 = vand.u32 2147483647, %v3899_v22  ;;  %v3913_v26 = vor.u32 1.1754944e-38, %v3912_v24 }
0x242a   : > { %v3920_v25 = vadd.f32 %v5387_v7, %v3919_v10  ;;  %vm3911_vm2 = vcmp.eq.f32.partialorder %v3910_v39, 8.507059e+37  ;;  %v3943_v58 = vor.u32 1.1754944e-38, %v3942_v44 }
0x242b   : > { %vm3941_vm3 = vcmp.eq.f32.partialorder %v3940_v31, 8.507059e+37 }
0x242c   : > { %v3924_v6 = vsel %vm3923_vm4, %v5387_v7, %v3920_v25 }
0x242d   : > { %v5395_v12 = vpop.eup %5394  ;;  %v6570_v21 = vsel %vm3926_vm6, %v3928_v34, %v3924_v6  ;;  %vm3951_vm6 = vweird.f32 %v3900_v9 }
0x242e   : > { %v5397_v1 = vpop.eup %5396  ;;  %v3902_v5 = vmul.f32 %v5395_v12, %v3897_v40  ;;  %vm3907_vm7 = vweird.f32 %v5395_v12 }
0x242f   : > { %v3932_v48 = vmul.f32 %v5397_v1, %v3899_v22  ;;  %v5399_v32 = vpop.eup %5398  ;;  %vm3937_vm13 = vweird.f32 %v5397_v1  ;;  %vm3908_vm15 = vmor %vm3906_vm12, %vm3907_vm7 }
0x2430   : > { %v3903_v56 = vsub.f32 1.0, %v3902_v5  ;;  %v3947_v37 = vmul.f32 %v5399_v32, %v3900_v9  ;;  %vm3938_vm1 = vmor %vm3936_vm0, %vm3937_vm13  ;;  %vm3952_vm4 = vweird.f32 %v5399_v32 }
0x2431   : > { %v3933_v0 = vsub.f32 1.0, %v3932_v48  ;;  %vm3953_vm7 = vmor %vm3951_vm6, %vm3952_vm4 }
0x2432   : > { %v3904_v41 = vmul.f32 %v5395_v12, %v3903_v56  ;;  %v3948_v7 = vsub.f32 1.0, %v3947_v37 }
0x2433   : > { %v3934_v36 = vmul.f32 %v5397_v1, %v3933_v0 }
0x2434   : > { %v3905_v61 = vadd.f32 %v5395_v12, %v3904_v41 }
0x2435   : > { %v3935_v54 = vadd.f32 %v5397_v1, %v3934_v36 }
0x2436   : > { %v3909_v28 = vsel %vm3908_vm15, %v5395_v12, %v3905_v61  ;;  %v3955_v12 = vand.u32 2147483647, %v3900_v9 }
0x2437   : > { %v3939_v10 = vsel %vm3938_vm1, %v5397_v1, %v3935_v54  ;;  %v6578_v62 = vsel %vm3911_vm2, %v3913_v26, %v3909_v28 }
0x2438   : > { %v6581_v34 = vsel %vm3941_vm3, %v3943_v58, %v3939_v10  ;;  %vm3956_vm12 = vcmp.eq.f32.partialorder %v3955_v12, 8.507059e+37 }
0x246a   : > { %v3964_v23 = vpop.permute.xlu2 %3963 }
0x246b   : > { %v3974_v4 = vmul.f32 %v3964_v23, %v6570_v21 }
0x246d   : > { %3983 = vrot.lane.b32.xlu0 %v3974_v4, %s5453_s10 }
0x2475   : > { %2651 = vrot.lane.b32.xlu0 %v6203_v46, %s5455_s11  ;;  %v3949_v46 = vmul.f32 %v5399_v32, %v3948_v7 }
0x2477   : > { %v3950_v59 = vadd.f32 %v5399_v32, %v3949_v46 }
0x2479   : > { %v3954_v23 = vsel %vm3953_vm7, %v5399_v32, %v3950_v59 }
0x247d   : > { %2884 = vrot.lane.b32.xlu0 %v6268_v52, %s5455_s11  ;;  %v3957_v52 = vand.u32 2147483648, %v3900_v9 }
0x247f   : > { %v3958_v4 = vor.u32 1.1754944e-38, %v3957_v52 }
0x2480   : > { %v3962_v25 = vpop.permute.xlu1 %3961 }
0x2481   : > { %v3973_v40 = vmul.f32 %v3962_v25, %v6578_v62  ;;  %v6588_v5 = vsel %vm3956_vm12, %v3958_v4, %v3954_v23  ;;  %v4027_v25 = vmul.f32 %v6581_v34, %v6529_v47 }
0x2482   : > { %v3966_v6 = vpop.permute.xlu0 %3965  ;;  %v4028_v31 = vmul.f32 %v6588_v5, %v6542_v57 }
0x2483   : > { %v3975_v22 = vmul.f32 %v3966_v6, %v6581_v34  ;;  %3981 = vrot.lane.b32.xlu2 %v3973_v40, %s5453_s10 }
0x2485   : > { %3985 = vrot.lane.b32.xlu1 %v3975_v22, %s5453_s10  ;;  %3344 = vrot.lane.b32.xlu0 %v6400_v60, %s5455_s11  ;;  %v4915_v22 = vld [vmem:[%s6914_s1 + $0x28] sm:$0xff] }
0x2486   : > { %4082 = vmatpush.bf16.msrb.mxu2 %v4915_v22 }
0x2488   : > { %v3968_v1 = vpop.permute.xlu1 %3967 }
0x2489   : > { %v3976_v48 = vmul.f32 %v3968_v1, %v6588_v5 }
0x248b   : > { %3987 = vrot.lane.b32.xlu2 %v3976_v48, %s5453_s10 }
0x248d   : > { %2420 = vrot.lane.b32.xlu1 %v6146_v3, %s5455_s11 }
0x2493   : > { %2422 = vrot.lane.b32.xlu2 %v6134_v29, %s5455_s11 }
0x2495   : > { %2653 = vrot.lane.b32.xlu1 %v6201_v50, %s5455_s11 }
0x249b   : > { %2882 = vrot.lane.b32.xlu2 %v6270_v45, %s5455_s11 }
0x249d   : > { %3113 = vrot.lane.b32.xlu1 %v6336_v19, %s5455_s11 }
0x24a3   : > { %3115 = vrot.lane.b32.xlu2 %v6334_v8, %s5455_s11 }
0x24ab   : > { %3575 = vrot.lane.b32.xlu2 %v6467_v33, %s5455_s11 }
0x24b3   : > { %3808 = vrot.lane.b32.xlu2 %v6531_v17, %s5455_s11 }
0x24dd   : > { %v3982_v3 = vpop.permute.xlu2 %3981 }
0x24de   : > { %v3993_v29 = vadd.f32 %v3982_v3, %v6561_v11 }
0x24df   : > { %v3984_v60 = vpop.permute.xlu0 %3983 }
0x24e0   : > { %5400 = vtanh.f32 %v3993_v29  ;;  %v3994_v50 = vadd.f32 %v3984_v60, %v6558_v35 }
0x24e2   : > { %5402 = vtanh.f32 %v3994_v50 }
0x24e5   : > { %v3988_v45 = vpop.permute.xlu2 %3987 }
0x24e6   : > { %v5401_v9 = vpop.eup %5400  ;;  %v3996_v33 = vadd.f32 %v3988_v45, %v6567_v18 }
0x24e7   : > { %4009 = vrot.lane.b32.xlu0 %v5401_v9, %s5455_s11  ;;  %v2652_v19 = vpop.permute.xlu0 %2651 }
0x24e8   : > { %v5403_v8 = vpop.eup %5402  ;;  %2663 = vst.msk [vmem:[#allocation5 + $0x1] sm:$0x1] %vm572_vm14, %v2652_v19  ;;  %5404 = vtanh.f32 %v3996_v33 }
0x24e9   : > { %4011 = vrot.lane.b32.xlu1 %v5403_v8, %s5455_s11  ;;  %v4956_v8 = vld [vmem:[%s6915_s2 + $0x4] ss:$0 sm:$0xff] }
0x24ed   : > { %v2423_v56 = vpop.permute.xlu2 %2422 }
0x24ee   : > { %2433 = vst.msk [vmem:[#allocation5 + $0x8] sm:$0x1] %vm572_vm14, %v2423_v56  ;;  %v5405_v32 = vpop.eup %5404 }
0x24ef   : > { %3577 = vrot.lane.b32.xlu0 %v6465_v14, %s5455_s11  ;;  %v2885_v35 = vpop.permute.xlu0 %2884 }
0x24f0   : > { %2895 = vst.msk [vmem:[#allocation5 + $0xa] sm:$0x1] %vm572_vm14, %v2885_v35 }
0x24f1   : > { %3346 = vrot.lane.b32.xlu1 %v6398_v13, %s5455_s11 }
0x24f5   : > { %v2883_v11 = vpop.permute.xlu2 %2882 }
0x24f6   : > { %2894 = vst.msk [vmem:[#allocation5 + $0x2] sm:$0x1] %vm572_vm14, %v2883_v11 }
0x24f7   : > { %v3986_v0 = vpop.permute.xlu1 %3985  ;;  %4015 = vrot.lane.b32.xlu0 %v5405_v32, %s5455_s11  ;;  %v3345_v18 = vpop.permute.xlu0 %3344 }
0x24f8   : > { %v3995_v41 = vadd.f32 %v3986_v0, %v6564_v55  ;;  %3356 = vst.msk [vmem:[#allocation5 + $0x4] sm:$0x1] %vm572_vm14, %v3345_v18 }
0x24f9   : > { %3806 = vrot.lane.b32.xlu1 %v6533_v38, %s5455_s11 }
0x24fa   : > { %5406 = vtanh.f32 %v3995_v41 }
0x24fd   : > { %v3116_v14 = vpop.permute.xlu2 %3115 }
0x24fe   : > { %3126 = vst.msk [vmem:[#allocation5 + $0xb] sm:$0x1] %vm572_vm14, %v3116_v14 }
0x24ff   : > { %v2421_v13 = vpop.permute.xlu1 %2420  ;;  %2426 = vrot.lane.b32.xlu0 %v6144_v49, %s5455_s11 }
0x2500   : > { %v5407_v37 = vpop.eup %5406  ;;  %2432 = vst.msk [vmem:[#allocation5] sm:$0x1] %vm572_vm14, %v2421_v13 }
0x2501   : > { %4013 = vrot.lane.b32.xlu2 %v5407_v37, %s5455_s11  ;;  %2655 = vrot.lane.b32.xlu1 %v6198_v30, %s5455_s11 }
0x2505   : > { %v3576_v55 = vpop.permute.xlu2 %3575 }
0x2506   : > { %3587 = vst.msk [vmem:[#allocation5 + $0x5] sm:$0x1] %vm572_vm14, %v3576_v55 }
0x2507   : > { %v2654_v36 = vpop.permute.xlu1 %2653  ;;  %2886 = vrot.lane.b32.xlu0 %v6266_v15, %s5455_s11  ;;  %v4025_v15 = vmul.f32 %v6578_v62, %v6533_v38 }
0x2508   : > { %2664 = vst.msk [vmem:[#allocation5 + $0x9] sm:$0x1] %vm572_vm14, %v2654_v36 }
0x2509   : > { %2424 = vrot.lane.b32.xlu2 %v6136_v43, %s5455_s11  ;;  %2888 = vrot.lane.b32.xlu1 %v6281_v16, %s5455_s11  ;;  %v4001_v43 = vsub.f32 1.0, %v6578_v62 }
0x250d   : > { %v3809_v49 = vpop.permute.xlu2 %3808 }
0x250e   : > { %3819 = vst.msk [vmem:[#allocation5 + $0xe] sm:$0x1] %vm572_vm14, %v3809_v49 }
0x250f   : > { %v3114_v61 = vpop.permute.xlu1 %3113  ;;  %3119 = vrot.lane.b32.xlu0 %v6345_v27, %s5455_s11 }
0x2510   : > { %3125 = vst.msk [vmem:[#allocation5 + $0x3] sm:$0x1] %vm572_vm14, %v3114_v61 }
0x2511   : > { %2657 = vrot.lane.b32.xlu2 %v6212_v63, %s5455_s11  ;;  %3348 = vrot.lane.b32.xlu1 %v6395_v2, %s5455_s11  ;;  %v4002_v63 = vsub.f32 1.0, %v6570_v21 }
0x2519   : > { %3117 = vrot.lane.b32.xlu2 %v6332_v53, %s5455_s11  ;;  %v4026_v53 = vmul.f32 %v6570_v21, %v6531_v17  ;;  %v4003_v17 = vsub.f32 1.0, %v6581_v34  ;;  %v4004_v21 = vsub.f32 1.0, %v6588_v5 }
0x2521   : > { %3350 = vrot.lane.b32.xlu2 %v6409_v51, %s5455_s11 }
0x2529   : > { %3810 = vrot.lane.b32.xlu2 %v6529_v47, %s5455_s11 }
0x2559   : > { %v4010_v30 = vpop.permute.xlu0 %4009 }
0x255a   : > { %v4021_v16 = vmul.f32 %v4010_v30, %v4001_v43 }
0x255b   : > { %v4014_v27 = vpop.permute.xlu2 %4013  ;;  %v4012_v2 = vpop.permute.xlu1 %4011 }
0x255c   : > { %v4029_v7 = vadd.f32 %v4025_v15, %v4021_v16  ;;  %v4022_v24 = vmul.f32 %v4012_v2, %v4002_v63  ;;  %v4023_v28 = vmul.f32 %v4014_v27, %v4003_v17 }
0x255e   : > { %v4030_v51 = vadd.f32 %v4026_v53, %v4022_v24  ;;  %4037 = vrot.lane.b32.xlu0 %v4029_v7, %s5455_s11 }
0x2560   : > { %4039 = vrot.lane.b32.xlu1 %v4030_v51, %s5455_s11 }
0x2561   : > { %v3578_v39 = vpop.permute.xlu0 %3577 }
0x2562   : > { %3588 = vst.msk [vmem:[#allocation5 + $0xd] sm:$0x1] %vm572_vm14, %v3578_v39 }
0x2563   : > { %v2425_v54 = vpop.permute.xlu2 %2424  ;;  %v3347_v38 = vpop.permute.xlu1 %3346 }
0x2564   : > { %2434 = vst.msk [vmem:[#allocation5 + $0x10] sm:$0x1] %vm572_vm14, %v2425_v54 }
0x2565   : > { %3357 = vst.msk [vmem:[#allocation5 + $0xc] sm:$0x1] %vm572_vm14, %v3347_v38 }
0x2566   : > { %3579 = vrot.lane.b32.xlu0 %v6463_v20, %s5455_s11  ;;  %v4031_v20 = vadd.f32 %v4027_v25, %v4023_v28  ;;  %v4138_v25 = vlaneseq }
0x2568   : > { %3581 = vrot.lane.b32.xlu1 %v6478_v42, %s5455_s11 }
0x2569   : > { %v4016_v44 = vpop.permute.xlu0 %4015 }
0x256a   : > { %v4024_v46 = vmul.f32 %v4016_v44, %v4004_v21 }
0x256b   : > { %v2658_v26 = vpop.permute.xlu2 %2657  ;;  %v3807_v10 = vpop.permute.xlu1 %3806 }
0x256c   : > { %v4032_v62 = vadd.f32 %v4028_v31, %v4024_v46  ;;  %2666 = vst.msk [vmem:[#allocation5 + $0x19] sm:$0x1] %vm572_vm14, %v2658_v26 }
0x256d   : > { %3818 = vst.msk [vmem:[#allocation5 + $0x6] sm:$0x1] %vm572_vm14, %v3807_v10 }
0x256e   : > { %3812 = vrot.lane.b32.xlu0 %v6542_v57, %s5455_s11  ;;  %4043 = vrot.lane.b32.xlu2 %v4032_v62, %s5455_s11 }
0x2570   : > { %4041 = vrot.lane.b32.xlu1 %v4031_v20, %s5455_s11  ;;  %v6734_v20 = vand.u32 127, %v4138_v25 }
0x2571   : > { %v2427_v42 = vpop.permute.xlu0 %2426 }
0x2572   : > { %2435 = vst.msk [vmem:[#allocation5 + $0x18] sm:$0x1] %vm572_vm14, %v2427_v42 }
0x2573   : > { %v3118_v58 = vpop.permute.xlu2 %3117  ;;  %v2656_v40 = vpop.permute.xlu1 %2655 }
0x2574   : > { %3127 = vst.msk [vmem:[#allocation5 + $0x13] sm:$0x1] %vm572_vm14, %v3118_v58 }
0x2575   : > { %2665 = vst.msk [vmem:[#allocation5 + $0x11] sm:$0x1] %vm572_vm14, %v2656_v40 }
0x2579   : > { %v2887_v47 = vpop.permute.xlu0 %2886 }
0x257a   : > { %2896 = vst.msk [vmem:[#allocation5 + $0x12] sm:$0x1] %vm572_vm14, %v2887_v47 }
0x257b   : > { %v3351_v59 = vpop.permute.xlu2 %3350  ;;  %v2889_v6 = vpop.permute.xlu1 %2888 }
0x257c   : > { %3359 = vst.msk [vmem:[#allocation5 + $0x1c] sm:$0x1] %vm572_vm14, %v3351_v59 }
0x257d   : > { %2897 = vst.msk [vmem:[#allocation5 + $0x1a] sm:$0x1] %vm572_vm14, %v2889_v6 }
0x2581   : > { %v3120_v57 = vpop.permute.xlu0 %3119 }
0x2582   : > { %3128 = vst.msk [vmem:[#allocation5 + $0x1b] sm:$0x1] %vm572_vm14, %v3120_v57 }
0x2583   : > { %v3811_v34 = vpop.permute.xlu2 %3810  ;;  %v3349_v52 = vpop.permute.xlu1 %3348 }
0x2584   : > { %3820 = vst.msk [vmem:[#allocation5 + $0x16] sm:$0x1] %vm572_vm14, %v3811_v34 }
0x2585   : > { %3358 = vst.msk [vmem:[#allocation5 + $0x14] sm:$0x1] %vm572_vm14, %v3349_v52 }
0x25c8   : > { %v4044_v12 = vpop.permute.xlu2 %4043 }
0x25c9   : > { %4052 = vst.msk [vmem:[#allocation5 + $0x1f] sm:$0x1] %vm572_vm14, %v4044_v12 }
0x25d0   : > { %v4038_v23 = vpop.permute.xlu0 %4037 }
0x25d1   : > { %4049 = vst.msk [vmem:[#allocation5 + $0x7] sm:$0x1] %vm572_vm14, %v4038_v23 }
0x25d2   : > { %v4040_v4 = vpop.permute.xlu1 %4039 }
0x25d3   : > { %4050 = vst.msk [vmem:[#allocation5 + $0xf] sm:$0x1] %vm572_vm14, %v4040_v4 }
0x25d8   : > { %v3580_v1 = vpop.permute.xlu0 %3579  ;;  %v4053_v48 = vld [vmem:[#allocation5] sm:$0xff] }
0x25d9   : > { %3589 = vst.msk [vmem:[#allocation5 + $0x15] sm:$0x1] %vm572_vm14, %v3580_v1 }
0x25da   : > { %v3582_v5 = vpop.permute.xlu1 %3581  ;;  %v4054_v3 = vld [vmem:[#allocation5 + $0x8] sm:$0xff] }
0x25db   : > { %3590 = vst.msk [vmem:[#allocation5 + $0x1d] sm:$0x1] %vm572_vm14, %v3582_v5  ;;  %v4057_v29 = vpack.c.bf16 %v4054_v3, %v4053_v48 }
0x25dd   : > { %4874 = vmatmul.msk.bf16.vlgmr.msrb.gmra.mxu2 %vm379_vm11, %v4057_v29 }
0x25e0   : > { %v3813_v60 = vpop.permute.xlu0 %3812 }
0x25e1   : > { %3821 = vst.msk [vmem:[#allocation5 + $0x1e] sm:$0x1] %vm572_vm14, %v3813_v60 }
0x25e2   : > { %v4042_v50 = vpop.permute.xlu1 %4041 }
0x25e3   : > { %4051 = vst.msk [vmem:[#allocation5 + $0x17] sm:$0x1] %vm572_vm14, %v4042_v50  ;;  %vm4148_vm14 = vcmask 60416  }
0x25e8   : > { %v4056_v9 = vld [vmem:[#allocation5 + $0x18] sm:$0xff] }
0x25ea   : > { %v4055_v45 = vld [vmem:[#allocation5 + $0x10] sm:$0xff] }
0x25eb   : > { %v4058_v19 = vpack.c.bf16 %v4056_v9, %v4055_v45 }
0x25ed   : > { %4875 = vmatmul.msk.bf16.gmra.mxu2 %vm379_vm11, %v4058_v19 }
0x2660   : > { %v4084_v33 = vpop.f32.mrf.mxu2 }
0x2661   : > { %v6706_v56 = vadd.f32 %v4956_v8, %v4084_v33 }
0x2663   : > { %4106 = vrot.lane.b32.xlu0 %v6706_v56, %s5455_s11  ;;  %v4094_v36 = vmul.f32 0.35355338, %v6706_v56 }
0x2665   : > { %v4098_v49 = vperm.slane %v4094_v36, 7 }
0x2668   : > { %v4086_v35 = vpop.f32.mrf.mxu2 }
0x2669   : > { %v6710_v11 = vadd.f32 %v4956_v8, %v4086_v35 }
0x266b   : > { %4108 = vrot.lane.b32.xlu1 %v6710_v11, %s5455_s11  ;;  %v4095_v30 = vmul.f32 0.35355338, %v6710_v11 }
0x266d   : > { %v4099_v15 = vperm.slane %v4095_v30, 7 }
0x2670   : > { %v4089_v32 = vpop.f32.mrf.mxu2 }
0x2671   : > { %v6714_v0 = vadd.f32 %v4956_v8, %v4089_v32 }
0x2673   : > { %4110 = vrot.lane.b32.xlu2 %v6714_v0, %s5455_s11  ;;  %v4096_v14 = vmul.f32 0.35355338, %v6714_v0 }
0x2675   : > { %v4100_v13 = vperm.slane %v4096_v14, 7 }
0x2678   : > { %v4091_v18 = vpop.f32.mrf.mxu2 }
0x2679   : > { %v6718_v41 = vadd.f32 %v4956_v8, %v4091_v18 }
0x267b   : > { %4112 = vrot.lane.b32.xlu0 %v6718_v41, %s5455_s11  ;;  %v4097_v27 = vmul.f32 0.35355338, %v6718_v41 }
0x267d   : > { %v4101_v2 = vperm.slane %v4097_v27, 7 }
0x26cd   : > { %v4111_v37 = vpop.permute.xlu2 %4110 }
0x26ce   : > { %v4120_v55 = vmul.f32 %v4111_v37, %v4100_v13 }
0x26d0   : > { %4330 = vrot.lane.b32.xlu0 %v4120_v55, %s5456_s23  ;;  %v4128_v39 = vsel %vm332_vm5, %v4120_v55, 0.0 }
0x26d5   : > { %v4107_v61 = vpop.permute.xlu0 %4106 }
0x26d6   : > { %v4118_v43 = vmul.f32 %v4107_v61, %v4098_v49 }
0x26d8   : > { %4326 = vrot.lane.b32.xlu1 %v4118_v43, %s5456_s23  ;;  %v4122_v51 = vsel %vm332_vm5, %v4118_v43, 0.0 }
0x26dd   : > { %v4109_v16 = vpop.permute.xlu1 %4108 }
0x26de   : > { %v4119_v63 = vmul.f32 %v4109_v16, %v4099_v15 }
0x26e0   : > { %4328 = vrot.lane.b32.xlu2 %v4119_v63, %s5456_s23  ;;  %v4125_v24 = vsel %vm332_vm5, %v4119_v63, 0.0 }
0x26ed   : > { %v4113_v7 = vpop.permute.xlu0 %4112 }
0x26ee   : > { %v4121_v53 = vmul.f32 %v4113_v7, %v4101_v2 }
0x26f0   : > { %4332 = vrot.lane.b32.xlu1 %v4121_v53, %s5456_s23  ;;  %v4131_v31 = vsel %vm332_vm5, %v4121_v53, 0.0 }
0x26fa   : > { %4126 = vadd.xlane.f32.xlu0 %v4125_v24 }
0x2709   : > { %4123 = vadd.xlane.f32.xlu2 %v4122_v51 }
0x2711   : > { %4129 = vadd.xlane.f32.xlu2 %v4128_v39 }
0x273a   : > { %v4329_v54 = vpop.permute.xlu2 %4328 }
0x273b   : > { %v4341_v38 = vsel %vm332_vm5, %v4329_v54, 0.0 }
0x273c   : > { %4342 = vadd.xlane.f32.xlu2 %v4341_v38 }
0x2742   : > { %v4331_v17 = vpop.permute.xlu0 %4330 }
0x2743   : > { %v4344_v21 = vsel %vm332_vm5, %v4331_v17, 0.0 }
0x2744   : > { %4345 = vadd.xlane.f32.xlu0 %v4344_v21 }
0x274a   : > { %v4327_v44 = vpop.permute.xlu1 %4326 }
0x274b   : > { %v4338_v28 = vsel %vm332_vm5, %v4327_v44, 0.0 }
0x274c   : > { %4339 = vadd.xlane.f32.xlu1 %v4338_v28 }
0x2754   : > { %4132 = vadd.xlane.f32.xlu1 %v4131_v31 }
0x2762   : > { %v4333_v46 = vpop.permute.xlu1 %4332 }
0x2763   : > { %v4347_v26 = vsel %vm332_vm5, %v4333_v46, 0.0 }
0x2764   : > { %4348 = vadd.xlane.f32.xlu2 %v4347_v26 }
0x276d   : > { %v4127_v58 = vpop.xlane.xlu0 %4126 }
0x276e   : > { %v4141_v59 = vperm.slane %v4127_v58, %v6734_v20 }
0x277c   : > { %v4124_v10 = vpop.xlane.xlu2 %4123 }
0x277d   : > { %v4140_v40 = vperm.slane %v4124_v10, %v6734_v20 }
0x277f   : > { %v4144_v57 = vsel %vm596_vm8, %v4141_v59, %v4140_v40 }
0x2784   : > { %v4130_v42 = vpop.xlane.xlu2 %4129 }
0x2785   : > { %v4142_v47 = vperm.slane %v4130_v42, %v6734_v20 }
0x2787   : > { %v4145_v52 = vsel %vm599_vm9, %v4142_v47, %v4144_v57 }
0x27af   : > { %v4343_v23 = vpop.xlane.xlu2 %4342 }
0x27b0   : > { %v4355_v1 = vperm.slane %v4343_v23, %v6734_v20 }
0x27b7   : > { %v4346_v5 = vpop.xlane.xlu0 %4345 }
0x27b8   : > { %v4356_v3 = vperm.slane %v4346_v5, %v6734_v20 }
0x27bf   : > { %v4340_v62 = vpop.xlane.xlu1 %4339 }
0x27c0   : > { %v4354_v4 = vperm.slane %v4340_v62, %v6734_v20 }
0x27c2   : > { %v4358_v48 = vsel %vm596_vm8, %v4355_v1, %v4354_v4 }
0x27c3   : > { %v4359_v50 = vsel %vm599_vm9, %v4356_v3, %v4358_v48 }
0x27c7   : > { %v4133_v6 = vpop.xlane.xlu1 %4132 }
0x27c8   : > { %v4143_v34 = vperm.slane %v4133_v6, %v6734_v20 }
0x27ca   : > { %v4146_v22 = vsel %vm602_vm10, %v4143_v34, %v4145_v52 }
0x27cb   : > { %v4149_v12 = vsel %vm4148_vm14, %v4146_v22, -inf }
0x27cc   : > { %4150 = vmax.xlane.f32.xlu0 %v4149_v12 }
0x27d7   : > { %v4349_v29 = vpop.xlane.xlu2 %4348 }
0x27d8   : > { %v4357_v60 = vperm.slane %v4349_v29, %v6734_v20 }
0x27da   : > { %v4360_v45 = vsel %vm602_vm10, %v4357_v60, %v4359_v50 }
0x27db   : > { %v4362_v9 = vsel %vm4148_vm14, %v4360_v45, -inf }
0x27dc   : > { %4363 = vmax.xlane.f32.xlu1 %v4362_v9 }
0x283f   : > { %v4151_v19 = vpop.xlane.xlu0 %4150 }
0x2840   : > { %v4153_v8 = vperm.slane %v4151_v19, 0  ;;  %v4154_v33 = vperm.slane %v4151_v19, 1  ;;  %v4155_v35 = vperm.slane %v4151_v19, 2  ;;  %v4156_v16 = vperm.slane %v4151_v19, 3 }
0x2842   : > { %v4161_v32 = vsub.f32 %v4124_v10, %v4153_v8  ;;  %v4162_v18 = vsub.f32 %v4127_v58, %v4154_v33  ;;  %v4163_v14 = vsub.f32 %v4130_v42, %v4155_v35  ;;  %v4164_v24 = vsub.f32 %v4133_v6, %v4156_v16 }
0x2844   : > { %v4165_v13 = vmul.f32 1.442695, %v4161_v32  ;;  %v4167_v37 = vmul.f32 1.442695, %v4162_v18  ;;  %v4169_v55 = vmul.f32 1.442695, %v4163_v14 }
0x2845   : > { %v4171_v39 = vmul.f32 1.442695, %v4164_v24 }
0x2846   : > { %5408 = vpow2.f32 %v4165_v13 }
0x2847   : > { %5410 = vpow2.f32 %v4167_v37 }
0x2848   : > { %5412 = vpow2.f32 %v4169_v55 }
0x284c   : > { %v6752_v36 = vpop.eup %5408 }
0x284d   : > { %v6754_v49 = vpop.eup %5410  ;;  %4178 = vperm.xlu2 %4937, %v6752_v36  }
0x284e   : > { %v6757_v61 = vpop.eup %5412  ;;  %4181 = vperm.xlu0 %4938, %v6754_v49  }
0x284f   : > { %4184 = vperm.xlu1 %4939, %v6757_v61   ;;  %v4364_v43 = vpop.xlane.xlu1 %4363 }
0x2850   : > { %v4366_v30 = vperm.slane %v4364_v43, 0  ;;  %v4367_v15 = vperm.slane %v4364_v43, 1  ;;  %v4368_v2 = vperm.slane %v4364_v43, 2  ;;  %v4369_v54 = vperm.slane %v4364_v43, 3 }
0x2852   : > { %v4374_v63 = vsub.f32 %v4340_v62, %v4366_v30  ;;  %v4375_v27 = vsub.f32 %v4343_v23, %v4367_v15  ;;  %v4376_v51 = vsub.f32 %v4346_v5, %v4368_v2  ;;  %v4377_v44 = vsub.f32 %v4349_v29, %v4369_v54 }
0x2854   : > { %v4378_v7 = vmul.f32 1.442695, %v4374_v63  ;;  %v4380_v53 = vmul.f32 1.442695, %v4375_v27  ;;  %v4382_v38 = vmul.f32 1.442695, %v4376_v51 }
0x2855   : > { %v4384_v28 = vmul.f32 1.442695, %v4377_v44 }
0x2856   : > { %5414 = vpow2.f32 %v4378_v7 }
0x2857   : > { %5416 = vpow2.f32 %v4380_v53 }
0x2858   : > { %5418 = vpow2.f32 %v4171_v39 }
0x2859   : > { %5420 = vpow2.f32 %v4382_v38 }
0x285a   : > { %5422 = vpow2.f32 %v4384_v28 }
0x285c   : > { %v6761_v17 = vpop.eup %5414 }
0x285d   : > { %v6763_v21 = vpop.eup %5416  ;;  %4391 = vperm.xlu1 %4939, %v6761_v17  }
0x285e   : > { %4394 = vperm.xlu2 %4937, %v6763_v21   ;;  %v6767_v31 = vpop.eup %5418 }
0x285f   : > { %v6769_v46 = vpop.eup %5420 }
0x2860   : > { %v6773_v26 = vpop.eup %5422 }
0x2865   : > { %4187 = vperm.xlu1 %4939, %v6767_v31  }
0x2866   : > { %4397 = vperm.xlu2 %4937, %v6769_v46  }
0x286e   : > { %4400 = vperm.xlu2 %4937, %v6773_v26  }
0x28a7   : > { %v4179_v10 = vpop.permute.xlu2 %4178 }
0x28a8   : > { %v4189_v23 = vperm.slane %v4179_v10, %v6734_v20 }
0x28b8   : > { %v4395_v25 = vpop.permute.xlu2 %4394 }
0x28b9   : > { %v4403_v59 = vperm.slane %v4395_v25, %v6734_v20 }
0x28c0   : > { %v4398_v62 = vpop.permute.xlu2 %4397  ;;  %v4182_v58 = vpop.permute.xlu0 %4181 }
0x28c1   : > { %v4185_v42 = vpop.permute.xlu1 %4184  ;;  %v4404_v57 = vperm.slane %v4398_v62, %v6734_v20  ;;  %v4190_v34 = vperm.slane %v4182_v58, %v6734_v20 }
0x28c2   : > { %v4191_v1 = vperm.slane %v4185_v42, %v6734_v20 }
0x28c3   : > { %v4193_v48 = vsel %vm596_vm8, %v4190_v34, %v4189_v23 }
0x28c4   : > { %v4194_v60 = vsel %vm599_vm9, %v4191_v1, %v4193_v48 }
0x28c8   : > { %v4401_v40 = vpop.permute.xlu2 %4400 }
0x28c9   : > { %v4405_v52 = vperm.slane %v4401_v40, %v6734_v20 }
0x28cf   : > { %v4392_v47 = vpop.permute.xlu1 %4391 }
0x28d0   : > { %v4402_v6 = vperm.slane %v4392_v47, %v6734_v20 }
0x28d2   : > { %v4406_v22 = vsel %vm596_vm8, %v4403_v59, %v4402_v6 }
0x28d3   : > { %v4407_v12 = vsel %vm599_vm9, %v4404_v57, %v4406_v22 }
0x28d4   : > { %v4408_v4 = vsel %vm602_vm10, %v4405_v52, %v4407_v12 }
0x28d5   : > { %v4410_v5 = vsel %vm4148_vm14, %v4408_v4, 0.0 }
0x28d6   : > { %4411 = vadd.xlane.f32.xlu1 %v4410_v5 }
0x28d7   : > { %v4188_v3 = vpop.permute.xlu1 %4187 }
0x28d8   : > { %v4192_v29 = vperm.slane %v4188_v3, %v6734_v20 }
0x28da   : > { %v4195_v50 = vsel %vm602_vm10, %v4192_v29, %v4194_v60 }
0x28db   : > { %v4197_v45 = vsel %vm4148_vm14, %v4195_v50, 0.0 }
0x28dc   : > { %4198 = vadd.xlane.f32.xlu0 %v4197_v45 }
0x2949   : > { %v6792_v9 = vpop.xlane.xlu1 %4411 }
0x294a   : > { %v4416_v19 = vperm.slane %v6792_v9, 2  ;;  %v6805_v13 = vperm.slane %v6792_v9, 0  ;;  %v6812_v2 = vperm.slane %v6792_v9, 1 }
0x294c   : > { %5424 = vrcp.f32 %v4416_v19  ;;  %v4461_v55 = vand.u32 2147483647, %v4416_v19  ;;  %v4463_v43 = vand.u32 2147483648, %v4416_v19  ;;  %vm4457_vm15 = vweird.f32 %v4416_v19 }
0x294e   : > { %vm4462_vm0 = vcmp.eq.f32.partialorder %v4461_v55, 8.507059e+37  ;;  %v4464_v39 = vor.u32 1.1754944e-38, %v4463_v43 }
0x294f   : > { %v4199_v8 = vpop.xlane.xlu0 %4198 }
0x2950   : > { %v4201_v33 = vperm.slane %v4199_v8, 0  ;;  %v6795_v35 = vperm.slane %v4199_v8, 1  ;;  %v6797_v32 = vperm.slane %v4199_v8, 2  ;;  %v6799_v18 = vperm.slane %v4199_v8, 3 }
0x2952   : > { %5426 = vrcp.f32 %v4201_v33  ;;  %v5425_v20 = vpop.eup %5424  ;;  %v4218_v44 = vand.u32 2147483647, %v4201_v33  ;;  %v4220_v28 = vand.u32 2147483648, %v4201_v33  ;;  %vm4214_vm3 = vweird.f32 %v4201_v33 }
0x2953   : > { %5428 = vrcp.f32 %v6795_v35  ;;  %v4453_v14 = vmul.f32 %v5425_v20, %v4416_v19  ;;  %vm4458_vm13 = vweird.f32 %v5425_v20  ;;  %v4263_v6 = vand.u32 2147483647, %v6799_v18 }
0x2954   : > { %5430 = vrcp.f32 %v6797_v32  ;;  %vm4459_vm1 = vmor %vm4457_vm15, %vm4458_vm13  ;;  %v4265_v57 = vand.u32 2147483648, %v6799_v18  ;;  %vm4219_vm6 = vcmp.eq.f32.partialorder %v4218_v44, 8.507059e+37  ;;  %v4221_v52 = vor.u32 1.1754944e-38, %v4220_v28 }
0x2955   : > { %5432 = vrcp.f32 %v6799_v18  ;;  %v4454_v37 = vsub.f32 1.0, %v4453_v14  ;;  %vm4259_vm14 = vweird.f32 %v6799_v18  ;;  %v4235_v5 = vand.u32 2147483648, %v6795_v35 }
0x2956   : > { %5434 = vrcp.f32 %v6805_v13  ;;  %v4266_v3 = vor.u32 1.1754944e-38, %v4265_v57  ;;  %vm4229_vm15 = vweird.f32 %v6795_v35  ;;  %v4233_v29 = vand.u32 2147483647, %v6795_v35 }
0x2957   : > { %v4455_v63 = vmul.f32 %v5425_v20, %v4454_v37  ;;  %5436 = vrcp.f32 %v6812_v2  ;;  %v4250_v55 = vand.u32 2147483648, %v6797_v32 }
0x2958   : > { %v5427_v30 = vpop.eup %5426 }
0x2959   : > { %v6807_v15 = vpop.eup %5428  ;;  %v4210_v16 = vmul.f32 %v5427_v30, %v4201_v33  ;;  %v4456_v51 = vadd.f32 %v5425_v20, %v4455_v63  ;;  %vm4215_vm2 = vweird.f32 %v5427_v30  ;;  %v4236_v33 = vor.u32 1.1754944e-38, %v4235_v5 }
0x295a   : > { %v6809_v27 = vpop.eup %5430  ;;  %v4225_v7 = vmul.f32 %v6807_v15, %v6795_v35  ;;  %vm4216_vm4 = vmor %vm4214_vm3, %vm4215_vm2  ;;  %vm4230_vm12 = vweird.f32 %v6807_v15  ;;  %vm4234_vm2 = vcmp.eq.f32.partialorder %v4233_v29, 8.507059e+37  ;;  %v4417_v35 = vperm.slane %v6792_v9, 3 }
0x295b   : > { %v5433_v53 = vpop.eup %5432  ;;  %v4211_v24 = vsub.f32 1.0, %v4210_v16  ;;  %v4240_v10 = vmul.f32 %v6809_v27, %v6797_v32  ;;  %v4460_v25 = vsel %vm4459_vm1, %v5425_v20, %v4456_v51  ;;  %vm4231_vm1 = vmor %vm4229_vm15, %vm4230_vm12  ;;  %vm4245_vm3 = vweird.f32 %v6809_v27 }
0x295c   : > { %v4226_v54 = vsub.f32 1.0, %v4225_v7  ;;  %v4255_v38 = vmul.f32 %v5433_v53, %v6799_v18  ;;  %v4465_v58 = vsel %vm4462_vm0, %v4464_v39, %v4460_v25  ;;  %v6824_v34 = vpop.eup %5434  ;;  %vm4260_vm7 = vweird.f32 %v5433_v53 }
0x295d   : > { %v4212_v62 = vmul.f32 %v5427_v30, %v4211_v24  ;;  %v4466_v47 = vmul.f32 %v6769_v46, %v4465_v58  ;;  %v4241_v12 = vsub.f32 1.0, %v4240_v10  ;;  %vm4261_vm13 = vmor %vm4259_vm14, %vm4260_vm7  ;;  %vm4264_vm0 = vcmp.eq.f32.partialorder %v4263_v6, 8.507059e+37  ;;  %v5437_v37 = vpop.eup %5436 }
0x295e   : > { %v4256_v42 = vsub.f32 1.0, %v4255_v38  ;;  %v4227_v40 = vmul.f32 %v6807_v15, %v4226_v54  ;;  %v4423_v50 = vmul.f32 %v6824_v34, %v6805_v13  ;;  %5438 = vrcp.f32 %v4417_v35 }
0x295f   : > { %v4213_v59 = vadd.f32 %v5427_v30, %v4212_v62  ;;  %4494 = vperm.xlu0 %4938, %v4466_v47   ;;  %v4438_v9 = vmul.f32 %v5437_v37, %v6812_v2  ;;  %v4251_v16 = vor.u32 1.1754944e-38, %v4250_v55  ;;  %vm4428_vm12 = vweird.f32 %v6824_v34 }
0x2960   : > { %v4257_v22 = vmul.f32 %v5433_v53, %v4256_v42  ;;  %v4228_v4 = vadd.f32 %v6807_v15, %v4227_v40  ;;  %v4424_v20 = vsub.f32 1.0, %v4423_v50  ;;  %vm4427_vm14 = vweird.f32 %v6805_v13  ;;  %v4916_v50 = vld [vmem:[%s6914_s1 + $0x30] sm:$0xff] }
0x2961   : > { %v4217_v23 = vsel %vm4216_vm4, %v5427_v30, %v4213_v59  ;;  %vm4244_vm4 = vweird.f32 %v6797_v32  ;;  %v4439_v7 = vsub.f32 1.0, %v4438_v9  ;;  %v4431_v51 = vand.u32 2147483647, %v6805_v13  ;;  %4577 = vmatpush.bf16.msrb.mxu3 %v4916_v50 }
0x2962   : > { %v4222_v46 = vsel %vm4219_vm6, %v4221_v52, %v4217_v23  ;;  %v4258_v1 = vadd.f32 %v5433_v53, %v4257_v22  ;;  %v4232_v19 = vsel %vm4231_vm1, %v6807_v15, %v4228_v4  ;;  %vm4246_vm6 = vmor %vm4244_vm4, %vm4245_vm3  ;;  %v4425_v15 = vmul.f32 %v6824_v34, %v4424_v20 }
0x2963   : > { %v4223_v48 = vmul.f32 %v6752_v36, %v4222_v46  ;;  %v4242_v36 = vmul.f32 %v6809_v27, %v4241_v12  ;;  %v4237_v18 = vsel %vm4234_vm2, %v4236_v33, %v4232_v19  ;;  %v4440_v54 = vmul.f32 %v5437_v37, %v4439_v7 }
0x2964   : > { %v4262_v60 = vsel %vm4261_vm13, %v5433_v53, %v4258_v1  ;;  %v4238_v43 = vmul.f32 %v6754_v49, %v4237_v18  ;;  %v4426_v53 = vadd.f32 %v6824_v34, %v4425_v15  ;;  %v5439_v49 = vpop.eup %5438  ;;  %vm4429_vm13 = vmor %vm4427_vm14, %vm4428_vm12  ;;  %vm4432_vm15 = vcmp.eq.f32.partialorder %v4431_v51, 8.507059e+37 }
0x2965   : > { %4271 = vperm.xlu2 %4937, %v4223_v48   ;;  %v4267_v45 = vsel %vm4264_vm0, %v4266_v3, %v4262_v60  ;;  %v4243_v14 = vadd.f32 %v6809_v27, %v4242_v36  ;;  %v4441_v10 = vadd.f32 %v5437_v37, %v4440_v54  ;;  %vm4443_vm0 = vweird.f32 %v5437_v37 }
0x2966   : > { %v4268_v8 = vmul.f32 %v6767_v31, %v4267_v45  ;;  %v4248_v31 = vand.u32 2147483647, %v6797_v32  ;;  %v4433_v32 = vand.u32 2147483648, %v6805_v13  ;;  %v4430_v39 = vsel %vm4429_vm13, %v6824_v34, %v4426_v53 }
0x2967   : > { %v4247_v30 = vsel %vm4246_vm6, %v6809_v27, %v4243_v14  ;;  %v4468_v27 = vmul.f32 %v5439_v49, %v4417_v35  ;;  %v4448_v25 = vand.u32 2147483648, %v6812_v2  ;;  %vm4442_vm1 = vweird.f32 %v6812_v2 }
0x2968   : > { %4286 = vperm.xlu1 %4939, %v4268_v8   ;;  %vm4249_vm7 = vcmp.eq.f32.partialorder %v4248_v31, 8.507059e+37  ;;  %v4434_v38 = vor.u32 1.1754944e-38, %v4433_v32  ;;  %v4446_v13 = vand.u32 2147483647, %v6812_v2  ;;  %vm4444_vm2 = vmor %vm4442_vm1, %vm4443_vm0  ;;  %vm4473_vm4 = vweird.f32 %v5439_v49 }
0x2969   : > { %v4252_v63 = vsel %vm4249_vm7, %v4251_v16, %v4247_v30  ;;  %v4469_v28 = vsub.f32 1.0, %v4468_v27  ;;  %v4445_v62 = vsel %vm4444_vm2, %v5437_v37, %v4441_v10  ;;  %v4449_v58 = vor.u32 1.1754944e-38, %v4448_v25 }
0x296a   : > { %v4253_v24 = vmul.f32 %v6757_v61, %v4252_v63  ;;  %v4435_v44 = vsel %vm4432_vm15, %v4434_v38, %v4430_v39  ;;  %vm4447_vm3 = vcmp.eq.f32.partialorder %v4446_v13, 8.507059e+37  ;;  %v4478_v59 = vand.u32 2147483648, %v4417_v35 }
0x296b   : > { %v4436_v61 = vmul.f32 %v6761_v17, %v4435_v44  ;;  %v4470_v42 = vmul.f32 %v5439_v49, %v4469_v28  ;;  %v4450_v40 = vsel %vm4447_vm3, %v4449_v58, %v4445_v62  ;;  %vm4472_vm6 = vweird.f32 %v4417_v35 }
0x296c   : > { %v4451_v6 = vmul.f32 %v6763_v21, %v4450_v40  ;;  %v4476_v57 = vand.u32 2147483647, %v4417_v35  ;;  %vm4474_vm7 = vmor %vm4472_vm6, %vm4473_vm4  ;;  %v4479_v34 = vor.u32 1.1754944e-38, %v4478_v59  ;;  %vm4293_vm14 = vcmask 326912  }
0x296d   : > { %4276 = vperm.xlu2 %4937, %v4238_v43   ;;  %v4471_v47 = vadd.f32 %v5439_v49, %v4470_v42  ;;  %vm4506_vm13 = vcmask 392512  }
0x296e   : > { %vm4477_vm12 = vcmp.eq.f32.partialorder %v4476_v57, 8.507059e+37 }
0x296f   : > { %v4475_v17 = vsel %vm4474_vm7, %v5439_v49, %v4471_v47 }
0x2970   : > { %v4480_v2 = vsel %vm4477_vm12, %v4479_v34, %v4475_v17 }
0x2971   : > { %v4481_v52 = vmul.f32 %v6773_v26, %v4480_v2 }
0x2975   : > { %4281 = vperm.xlu2 %4937, %v4253_v24  }
0x297d   : > { %4484 = vperm.xlu2 %4937, %v4436_v61  }
0x2985   : > { %4489 = vperm.xlu2 %4937, %v4451_v6  }
0x298d   : > { %4499 = vperm.xlu2 %4937, %v4481_v52  }
0x29bf   : > { %v4272_v22 = vpop.permute.xlu2 %4271 }
0x29c0   : > { %v4289_v5 = vmul.f32 %v4272_v22, %v6706_v56 }
0x29c2   : > { %v4294_v36 = vsel %vm4293_vm14, %v4289_v5, 0.0 }
0x29c7   : > { %v4277_v12 = vpop.permute.xlu2 %4276 }
0x29c8   : > { %v4290_v4 = vmul.f32 %v4277_v12, %v6710_v11 }
0x29ca   : > { %v4301_v29 = vsel %vm4293_vm14, %v4290_v4, 0.0 }
0x29cb   : > { %v4302_v8 = vrot.slane %v4301_v29, 4 }
0x29cd   : > { %v4303_v43 = vadd.f32 %v4302_v8, %v4301_v29 }
0x29cf   : > { %v4282_v23 = vpop.permute.xlu2 %4281  ;;  %v4304_v53 = vrot.slane %v4303_v43, 2 }
0x29d0   : > { %v4291_v1 = vmul.f32 %v4282_v23, %v6714_v0 }
0x29d1   : > { %v4495_v46 = vpop.permute.xlu0 %4494  ;;  %v4305_v44 = vadd.f32 %v4304_v53, %v4303_v43  ;;  %v4959_v53 = vld [vmem:[%s6915_s2 + $0x7] ss:$0 sm:$0xff] }
0x29d2   : > { %v4504_v3 = vmul.f32 %v4495_v46, %v6714_v0  ;;  %v4308_v45 = vsel %vm4293_vm14, %v4291_v1, 0.0  ;;  %v4295_v0 = vrot.slane %v4294_v36, 4 }
0x29d3   : > { %v4309_v18 = vrot.slane %v4308_v45, 4  ;;  %v4306_v47 = vrot.slane %v4305_v44, 1 }
0x29d4   : > { %v4296_v15 = vadd.f32 %v4295_v0, %v4294_v36  ;;  %v4917_v36 = vld [vmem:[%s6914_s1 + $0x38] sm:$0xff]  ;;  %v4919_v0 = vld [vmem:[%s6914_s1 + $0x48] sm:$0xff] }
0x29d5   : > { %v4310_v9 = vadd.f32 %v4309_v18, %v4308_v45  ;;  %v4307_v22 = vadd.f32 %v4306_v47, %v4305_v44  ;;  %4604 = vmatpush.bf16.msrb.mxu0 %v4917_v36  ;;  %4640 = vmatpush.bf16.msra.mxu1 %v4919_v0 }
0x29d6   : > { %v4297_v51 = vrot.slane %v4296_v15, 2 }
0x29d7   : > { %v4485_v21 = vpop.permute.xlu2 %4484  ;;  %v4311_v24 = vrot.slane %v4310_v9, 2 }
0x29d8   : > { %v4502_v48 = vmul.f32 %v4485_v21, %v6706_v56  ;;  %v4521_v56 = vsel %vm4506_vm13, %v4504_v3, 0.0  ;;  %v4298_v13 = vadd.f32 %v4297_v51, %v4296_v15 }
0x29d9   : > { %v4522_v37 = vrot.slane %v4521_v56, 4  ;;  %v4312_v25 = vadd.f32 %v4311_v24, %v4310_v9  ;;  %v4958_v9 = vld [vmem:[%s6915_s2 + $0x6] ss:$0 sm:$0xff] }
0x29da   : > { %v4287_v26 = vpop.permute.xlu1 %4286  ;;  %v4507_v60 = vsel %vm4506_vm13, %v4502_v48, 0.0  ;;  %v4299_v17 = vrot.slane %v4298_v13, 1 }
0x29db   : > { %v4292_v19 = vmul.f32 %v4287_v26, %v6718_v41  ;;  %v4508_v35 = vrot.slane %v4507_v60, 4  ;;  %v4523_v7 = vadd.f32 %v4522_v37, %v4521_v56  ;;  %v4313_v57 = vrot.slane %v4312_v25, 1 }
0x29dc   : > { %v4300_v46 = vadd.f32 %v4299_v17, %v4298_v13 }
0x29dd   : > { %v4315_v33 = vsel %vm4293_vm14, %v4292_v19, 0.0  ;;  %v4509_v31 = vadd.f32 %v4508_v35, %v4507_v60  ;;  %v4524_v38 = vrot.slane %v4523_v7, 2  ;;  %v4314_v4 = vadd.f32 %v4313_v57, %v4312_v25 }
0x29de   : > { %v4316_v20 = vrot.slane %v4315_v33, 4  ;;  %v4539_v3 = vsel %vm596_vm8, %v4307_v22, %v4300_v46 }
0x29df   : > { %v4490_v14 = vpop.permute.xlu2 %4489  ;;  %v4510_v49 = vrot.slane %v4509_v31, 2  ;;  %v4525_v40 = vadd.f32 %v4524_v38, %v4523_v7  ;;  %v4540_v26 = vsel %vm599_vm9, %v4314_v4, %v4539_v3 }
0x29e0   : > { %v4503_v55 = vmul.f32 %v4490_v14, %v6710_v11  ;;  %v4317_v16 = vadd.f32 %v4316_v20, %v4315_v33  ;;  %v4918_v20 = vld [vmem:[%s6914_s1 + $0x40] sm:$0xff] }
0x29e1   : > { %v4511_v28 = vadd.f32 %v4510_v49, %v4509_v31  ;;  %4641 = vmatpush.bf16.msra.mxu1 %v4918_v20  ;;  %v4957_v14 = vld [vmem:[%s6915_s2 + $0x5] ss:$0 sm:$0xff] }
0x29e2   : > { %v4514_v30 = vsel %vm4506_vm13, %v4503_v55, 0.0  ;;  %v4318_v27 = vrot.slane %v4317_v16, 2 }
0x29e3   : > { %v4515_v63 = vrot.slane %v4514_v30, 4  ;;  %v4512_v59 = vrot.slane %v4511_v28, 1 }
0x29e4   : > { %v4319_v62 = vadd.f32 %v4318_v27, %v4317_v16 }
0x29e5   : > { %v4516_v32 = vadd.f32 %v4515_v63, %v4514_v30  ;;  %v4513_v12 = vadd.f32 %v4512_v59, %v4511_v28 }
0x29e6   : > { %v4320_v34 = vrot.slane %v4319_v62, 1 }
0x29e7   : > { %v4517_v39 = vrot.slane %v4516_v32, 2  ;;  %v4500_v54 = vpop.permute.xlu2 %4499 }
0x29e8   : > { %v4505_v11 = vmul.f32 %v4500_v54, %v6718_v41  ;;  %v4526_v41 = vrot.slane %v4525_v40, 1  ;;  %v4321_v1 = vadd.f32 %v4320_v34, %v4319_v62 }
0x29e9   : > { %v4518_v10 = vadd.f32 %v4517_v39, %v4516_v32 }
0x29ea   : > { %v4528_v61 = vsel %vm4506_vm13, %v4505_v11, 0.0  ;;  %v4527_v48 = vadd.f32 %v4526_v41, %v4525_v40  ;;  %v4541_v50 = vsel %vm602_vm10, %v4321_v1, %v4540_v26 }
0x29eb   : > { %v4519_v42 = vrot.slane %v4518_v10, 1  ;;  %v4529_v58 = vrot.slane %v4528_v61, 4 }
0x29ed   : > { %v4530_v6 = vadd.f32 %v4529_v58, %v4528_v61  ;;  %v4520_v2 = vadd.f32 %v4519_v42, %v4518_v10 }
0x29ef   : > { %v4531_v52 = vrot.slane %v4530_v6, 2  ;;  %v4549_v21 = vsel %vm596_vm8, %v4520_v2, %v4513_v12  ;;  %vm4647_vm8 = vcmask 11264  }
0x29f0   : > { %v4550_v60 = vsel %vm599_vm9, %v4527_v48, %v4549_v21 }
0x29f1   : > { %v4532_v23 = vadd.f32 %v4531_v52, %v4530_v6 }
0x29f3   : > { %v4533_v5 = vrot.slane %v4532_v23, 1 }
0x29f5   : > { %v4534_v29 = vadd.f32 %v4533_v5, %v4532_v23 }
0x29f7   : > { %v4551_v45 = vsel %vm602_vm10, %v4534_v29, %v4550_v60 }
0x29f8   : > { %v4940_v19 = vpack.i.bf16 %v4551_v45, %v4541_v50 }
0x29fa   : > { %4941 = vrot.lane.b32.xlu2 %v4940_v19, %s5451_s8 }
0x2a54   : > { %v4942_v8 = vpop.permute.xlu2 %4941 }
0x2a55   : > { %v4944_v56 = vunpack.i.h.bf16 %v4942_v8  ;;  %v4943_v33 = vunpack.i.l.bf16 %v4942_v8 }
0x2a57   : > { %v4555_v35 = vsel %vm332_vm5, %v4943_v33, %v4944_v56  ;;  %vm4630_vm5 = vcmask 261120  }
0x2a58   : > { %v4556_v18 = vpack.c.bf16 %v4555_v35, %v4555_v35 }
0x2a5a   : > { %4880 = vmatmul.msk.bf16.vlgmr.msrb.gmra.mxu3 %vm379_vm11, %v4556_v18 }
0x2add   : > { %v4579_v37 = vpop.f32.mrf.mxu3 }
0x2ade   : > { %v4580_v55 = vadd.f32 %v4957_v14, %v4579_v37 }
0x2ae0   : > { %v4583_v43 = vpack.c.bf16 %v4580_v55, %v4580_v55 }
0x2ae2   : > { %4885 = vmatmul.msk.bf16.vlgmr.msrb.gmra.mxu0 %vm379_vm11, %v4583_v43 }
0x2ae5   : > { %v4581_v31 = vpop.f32.mrf.mxu3 }
0x2b5f   : > { %v4606_v30 = vpop.f32.mrf.mxu0 }
0x2b60   : > { %v4607_v15 = vadd.f32 %v4958_v9, %v4606_v30 }
0x2b62   : > { %v4610_v16 = vmax.f32 %v4607_v15, 0.0 }
0x2b64   : > { %v4611_v63 = vpack.c.bf16 %v4610_v16, %v4610_v16 }
0x2b66   : > { %4894 = vmatmul.msk.bf16.vlgmr.msra.gmra.mxu1 %vm4630_vm5, %v4611_v63 }
0x2b67   : > { %v4608_v7 = vpop.f32.mrf.mxu0 }
0x2be3   : > { %v4643_v49 = vpop.f32.mrf.mxu1 }
0x2be4   : > { %v4644_v32 = vadd.f32 %v4959_v53, %v4643_v49 }
0x2be6   : > { %4648 = vst.msk [vmem:[%s170_s17] sm:$0xf] %vm4647_vm8, %v4644_v32 }
0x2beb   : > { %v4645_v24 = vpop.f32.mrf.mxu1 }
0x2bec PF: > { %s13_s12 = sadd.s32 1, %s5446_s12  }
0x2bed   : > { %p10_p5 = scmp.ge.s32.totalorder %s13_s12, 4  }
0x2bef   :  { %12 = sbr.rel (!%p10_p5) target bundleno = 1 (0x1), region = 62 }

</bundles_post_ra>
